<compile_context>
chip_gen: v5e
topology: v5e:2x2
jax: 0.10.0
libtpu: 0.0.40
codegen_flags: <defaults>
</compile_context>

<pallas_src>
import functools
import math

import jax
import jax.numpy as jnp
from jax.experimental import pallas as pl
from jax.experimental.pallas import tpu as pltpu

LANE = 128


def _rup(n, m=LANE):
    return ((n + m - 1) // m) * m


# ------------------------------------------------------------------
# fused whole-network kernel: one network x one sequence per grid step
# ------------------------------------------------------------------
_WEIGHT_ORDER = (
    "pg_in_w", "pg_in_b", "pg_a_w", "pg_a_b", "pg_c_w", "pg_c_b",
    "pg_f_w", "pg_f_b", "pg_out_w", "pg_out_b",
    "r_in_w", "r_in_b", "r_d_w", "r_d_b", "r_p_w", "r_p_b",
    "r_out_w", "r_out_b",
)


def _make_mstcn2_kernel(*, T, n_pg, n_rl, n_r, n_cls):
    def kernel(x_ref, m_ref,
               pg_in_w, pg_in_b, pg_a_w, pg_a_b, pg_c_w, pg_c_b,
               pg_f_w, pg_f_b, pg_out_w, pg_out_b,
               r_in_w, r_in_b, r_d_w, r_d_b, r_p_w, r_p_b,
               r_out_w, r_out_b,
               out_ref):
        P = pg_in_w.shape[-1]          # padded feature-map lanes
        Pc = pg_out_w.shape[-1]        # padded class lanes

        x = x_ref[...]                 # (T, Pin) f32 -- one sequence
        m1 = m_ref[...]                # (T, 1)   f32 sequence mask

        # ---- hoisted per-kernel constants (computed once, reused everywhere)
        m1_P = jnp.broadcast_to(m1, (T, P))
        m1_C = jnp.broadcast_to(m1, (T, Pc))
        tpos = jax.lax.broadcasted_iota(jnp.int32, (T, 1), 0)
        dils = sorted({2 ** i for i in range(max(n_pg, n_rl))})
        keep_pos = {d: (tpos >= d).astype(jnp.float32) for d in dils if d < T}
        keep_neg = {d: (tpos < T - d).astype(jnp.float32) for d in dils if d < T}
        cls_valid = jax.lax.broadcasted_iota(jnp.int32, (T, Pc), 1) < n_cls

        def mm(a_bf16, w, b):
            # bf16 MXU matmul, f32 accumulation, f32 bias add
            return jnp.dot(a_bf16, w, preferred_element_type=jnp.float32) + b

        def dil_conv(vb, d, w_ref, tap0, b):
            # y[t] = w_prev . v[t-d] + w_mid . v[t] + w_next . v[t+d], zero-padded
            # edges.  Shifts applied to the f32 dot RESULTS (identical math,
            # single bf16 cast of v per layer, no (T,3P) concat temporary).
            y = jnp.dot(vb, w_ref[tap0 + 1], preferred_element_type=jnp.float32)
            if d < T:
                yp = jnp.dot(vb, w_ref[tap0 + 0], preferred_element_type=jnp.float32)
                yn = jnp.dot(vb, w_ref[tap0 + 2], preferred_element_type=jnp.float32)
                y = (y
                     + pltpu.roll(yp, shift=d, axis=0) * keep_pos[d]
                     + pltpu.roll(yn, shift=T - d, axis=0) * keep_neg[d])
            return y + b

        # ---------------- Prediction_Generation stage ----------------
        f = mm(x.astype(jnp.bfloat16), pg_in_w[...], pg_in_b[...])      # (T, P)
        for i in range(n_pg):
            fb = f.astype(jnp.bfloat16)            # single cast feeds both convs
            d1 = 2 ** (n_pg - 1 - i)
            d2 = 2 ** i
            ya = dil_conv(fb, d1, pg_a_w, 3 * i, pg_a_b[i])
            yc = dil_conv(fb, d2, pg_c_w, 3 * i, pg_c_b[i])
            h = (jnp.dot(ya.astype(jnp.bfloat16), pg_f_w[2 * i],
                         preferred_element_type=jnp.float32)
                 + jnp.dot(yc.astype(jnp.bfloat16), pg_f_w[2 * i + 1],
                           preferred_element_type=jnp.float32)
                 + pg_f_b[i])
            f = jnp.maximum(h, 0.0) + f            # dropout == identity
        logits = mm(f.astype(jnp.bfloat16), pg_out_w[...], pg_out_b[...]) * m1_C
        out_ref[0] = logits

        # ---------------- Refinement stages ----------------
        for r in range(n_r):
            z = jnp.where(cls_valid, logits, -1e30)
            z = z - jnp.max(z, axis=-1, keepdims=True)
            e = jnp.exp(z)
            inv = pl.reciprocal(jnp.sum(e, axis=-1, keepdims=True), approx=False)
            p = (e * inv) * m1_C                    # softmax(out) * mask
            g = mm(p.astype(jnp.bfloat16), r_in_w[r], r_in_b[r])        # (T, P)
            for i in range(n_rl):
                li = r * n_rl + i
                gb = g.astype(jnp.bfloat16)
                h = dil_conv(gb, 2 ** i, r_d_w, 3 * li, r_d_b[li])
                h = mm(jnp.maximum(h, 0.0).astype(jnp.bfloat16),
                       r_p_w[li], r_p_b[li])
                g = (g + h) * m1_P                  # DilatedResidualLayer
            logits = mm(g.astype(jnp.bfloat16), r_out_w[r], r_out_b[r]) * m1_C
            out_ref[1 + r] = logits

    return kernel


def _seq_spec(shape):
    # per-sequence block of a (B, T, C) array: depends only on batch grid axis
    nd = len(shape)
    return pl.BlockSpec((None,) + tuple(shape[1:]),
                        lambda n, b, _nd=nd: (b,) + (0,) * (_nd - 1))


def _net_spec(shape):
    # per-network weight block of a (N, ...) array: depends only on net axis,
    # so it stays VMEM-resident across the (innermost) batch axis.
    nd = len(shape)
    return pl.BlockSpec((None,) + tuple(shape[1:]),
                        lambda n, b, _nd=nd: (n,) + (0,) * (_nd - 1))


def run_mstcn2_stack(packed, x3, mask3, *, T, n_pg, n_rl, n_r, n_cls):
    """Run N architecturally-identical MS-TCN2 networks (leading dim of `packed`)
    over a (B, T, Pin) input in a single pallas_call with grid (N, B)."""
    N = packed["pg_in_w"].shape[0]
    B = x3.shape[0]
    Pin = packed["pg_in_w"].shape[1]
    P = packed["pg_in_w"].shape[-1]
    Pc = packed["pg_out_w"].shape[-1]
    n_stages = 1 + n_r

    kernel = _make_mstcn2_kernel(T=T, n_pg=n_pg, n_rl=n_rl, n_r=n_r, n_cls=n_cls)
    weights = [packed[k] for k in _WEIGHT_ORDER]
    in_specs = ([_seq_spec(x3.shape), _seq_spec(mask3.shape)]
                + [_net_spec(w.shape) for w in weights])
    out_spec = pl.BlockSpec((None, None, n_stages, T, Pc),
                            lambda n, b: (n, b, 0, 0, 0))

    macs_row = (Pin * P + n_pg * 8 * P * P + P * Pc
                + n_r * (Pc * P + n_rl * 4 * P * P + P * Pc))
    cost = pl.CostEstimate(
        flops=2 * N * B * T * macs_row,
        transcendentals=N * B * T * Pc * n_r,
        bytes_accessed=(int(x3.size) * 4 + int(mask3.size) * 4
                        + sum(int(w.size) * w.dtype.itemsize for w in weights)
                        + N * B * n_stages * T * Pc * 4))

    return pl.pallas_call(
        kernel,
        out_shape=jax.ShapeDtypeStruct((N, B, n_stages, T, Pc), jnp.float32),
        grid=(N, B),
        in_specs=in_specs,
        out_specs=out_spec,
        compiler_params=pltpu.CompilerParams(
            dimension_semantics=("parallel", "parallel"),   # megacore gets B (and N) units
            vmem_limit_bytes=32 * 1024 * 1024),             # per-sequence blocks -> small
        cost_estimate=cost,
    )(x3, mask3, *weights)


# ------------------------------------------------------------------
# host-side parameter packing: pad to lane width, per-tap weights, cast to bf16
# ------------------------------------------------------------------
def pack_networks(nets):
    pg0 = nets[0]["PG"]
    Pin = _rup(pg0["in_w"].shape[0])
    P = _rup(pg0["in_w"].shape[1])
    Pc = _rup(pg0["out_w"].shape[1])
    assert len(pg0["layers"]) >= 1 and len(nets[0]["Rs"]) >= 1

    def pad2(w, rows, cols):
        return jnp.pad(w, ((0, rows - w.shape[0]), (0, cols - w.shape[1])))

    def pack_one(p):
        pg, rs = p["PG"], p["Rs"]
        return {
            "pg_in_w": pad2(pg["in_w"], Pin, P),
            "pg_in_b": pad2(pg["in_b"], 1, P),
            # taps kept separate: (n_layers*3, P, P) -- consumed as 3 K=128 dots
            "pg_a_w": jnp.stack([pad2(t, P, P) for l in pg["layers"] for t in l["d1_w"]]),
            "pg_a_b": jnp.stack([pad2(l["d1_b"], 1, P) for l in pg["layers"]]),
            "pg_c_w": jnp.stack([pad2(t, P, P) for l in pg["layers"] for t in l["d2_w"]]),
            "pg_c_b": jnp.stack([pad2(l["d2_b"], 1, P) for l in pg["layers"]]),
            "pg_f_w": jnp.stack([pad2(t, P, P) for l in pg["layers"] for t in l["f_w"]]),
            "pg_f_b": jnp.stack([pad2(l["f_b"], 1, P) for l in pg["layers"]]),
            "pg_out_w": pad2(pg["out_w"], P, Pc),
            "pg_out_b": pad2(pg["out_b"], 1, Pc),
            "r_in_w": jnp.stack([pad2(r["in_w"], Pc, P) for r in rs]),
            "r_in_b": jnp.stack([pad2(r["in_b"], 1, P) for r in rs]),
            "r_d_w": jnp.stack([pad2(t, P, P)
                                for r in rs for l in r["layers"] for t in l["d_w"]]),
            "r_d_b": jnp.stack([pad2(l["d_b"], 1, P) for r in rs for l in r["layers"]]),
            "r_p_w": jnp.stack([pad2(l["p_w"], P, P) for r in rs for l in r["layers"]]),
            "r_p_b": jnp.stack([pad2(l["p_b"], 1, P) for r in rs for l in r["layers"]]),
            "r_out_w": jnp.stack([pad2(r["out_w"], P, Pc) for r in rs]),
            "r_out_b": jnp.stack([pad2(r["out_b"], 1, Pc) for r in rs]),
        }

    per_net = [pack_one(p) for p in nets]
    packed = {}
    for k in _WEIGHT_ORDER:
        arr = jnp.stack([d[k] for d in per_net], axis=0)
        packed[k] = arr.astype(jnp.bfloat16) if k.endswith("_w") else arr
    return packed


# ------------------------------------------------------------------
# LF_MH_MS_TCN2 forward (plain-JAX glue around the two pallas_calls)
# ------------------------------------------------------------------
def lf_mh_ms_tcn2_fwd(packed_lr, packed_fused, x_nct, mask_nct, *,
                      n_pg, n_rl, n_r, num_classes):
    # x_nct: (B, dim, T), mask_nct: (B, num_classes, T)  -- PyTorch NCT layout
    B, dim, T = x_nct.shape
    pin_lr = packed_lr["pg_in_w"].shape[1]
    pin_f = packed_fused["pg_in_w"].shape[1]

    x = jnp.transpose(x_nct, (0, 2, 1)).astype(jnp.float32)          # (B, T, dim)
    x_lr = jnp.pad(x, ((0, 0), (0, 0), (0, pin_lr - dim)))           # (B, T, Pin)
    mask1 = jnp.transpose(mask_nct[:, 0:1, :], (0, 2, 1)).astype(jnp.float32)  # (B, T, 1)

    # left + right networks share the input and run in one pallas_call
    lr = run_mstcn2_stack(packed_lr, x_lr, mask1, T=T, n_pg=n_pg,
                          n_rl=n_rl, n_r=n_r, n_cls=num_classes)
    left, right = lr[0], lr[1]                                       # (B, n_stages, T, Pc)

    # late fusion: concat((features, left_usage, right_usage), channel axis)
    fused_in = jnp.concatenate(
        [x, left[:, -1, :, :num_classes], right[:, -1, :, :num_classes]], axis=-1)
    fused_in = jnp.pad(fused_in, ((0, 0), (0, 0), (0, pin_f - fused_in.shape[-1])))
    fused = run_mstcn2_stack(packed_fused, fused_in, mask1, T=T, n_pg=n_pg,
                             n_rl=n_rl, n_r=n_r, n_cls=num_classes)[0]

    def to_torch(o):   # (B, n_stages, T, Pc) -> (n_stages, B, num_classes, T)
        return jnp.transpose(o[..., :num_classes], (1, 0, 3, 2))

    return to_torch(fused), to_torch(left), to_torch(right)


# ------------------------------------------------------------------
# deterministic synthetic parameters (mirrors the PyTorch Conv1d weights,
# channels-last; 3-tap conv weights kept as [w(t-d), w(t), w(t+d)])
# ------------------------------------------------------------------
def init_mstcn2_params(key, dim_in, num_f_maps, num_classes, n_pg, n_rl, n_r):
    state = {"k": key}

    def nkey():
        state["k"], sub = jax.random.split(state["k"])
        return sub

    def mat(i, o):
        return jax.random.normal(nkey(), (i, o), jnp.float32) / math.sqrt(i)

    def vec(o):
        return jax.random.normal(nkey(), (1, o), jnp.float32) * 0.01

    F, C = num_f_maps, num_classes
    pg = {"in_w": mat(dim_in, F), "in_b": vec(F),
          "out_w": mat(F, C), "out_b": vec(C), "layers": []}
    for _ in range(n_pg):
        pg["layers"].append({
            "d1_w": [mat(F, F) for _ in range(3)], "d1_b": vec(F),
            "d2_w": [mat(F, F) for _ in range(3)], "d2_b": vec(F),
            # conv_fusion (2F -> F) split into its dil1 / dil2 halves
            "f_w": [mat(F, F) for _ in range(2)], "f_b": vec(F),
        })
    rs = []
    for _ in range(n_r):
        rs.append({
            "in_w": mat(C, F), "in_b": vec(F),
            "out_w": mat(F, C), "out_b": vec(C),
            "layers": [{"d_w": [mat(F, F) for _ in range(3)], "d_b": vec(F),
                        "p_w": mat(F, F), "p_b": vec(F)}
                       for _ in range(n_rl)],
        })
    return {"PG": pg, "Rs": rs}


# ------------------------------------------------------------------
if __name__ == "__main__":
    B, DIM, T = 2, 16, 32
    F_MAPS, N_CLS = 32, 8
    N_PG, N_RL, N_R = 3, 3, 2            # PG layers, R layers, number of R stages

    key = jax.random.PRNGKey(0)
    k_x, k_left, k_right, k_fused = jax.random.split(key, 4)

    # PyTorch NCT inputs
    x = jax.random.normal(k_x, (B, DIM, T), jnp.float32)
    mask = jnp.ones((B, N_CLS, T), jnp.float32)
    mask = mask.at[1, :, T - 6:].set(0.0)     # ragged second sequence

    left_p = init_mstcn2_params(k_left, DIM, F_MAPS, N_CLS, N_PG, N_RL, N_R)
    right_p = init_mstcn2_params(k_right, DIM, F_MAPS, N_CLS, N_PG, N_RL, N_R)
    fused_p = init_mstcn2_params(k_fused, DIM + 2 * N_CLS, F_MAPS, N_CLS,
                                 N_PG, N_RL, N_R)

    packed_lr = pack_networks([left_p, right_p])
    packed_fused = pack_networks([fused_p])

    fwd = jax.jit(functools.partial(lf_mh_ms_tcn2_fwd, n_pg=N_PG, n_rl=N_RL,
                                    n_r=N_R, num_classes=N_CLS))
    out, left_out, right_out = fwd(packed_lr, packed_fused, x, mask)
    jax.block_until_ready((out, left_out, right_out))

    n_stages = N_R + 1
    assert out.shape == (n_stages, B, N_CLS, T), out.shape
    assert left_out.shape == (n_stages, B, N_CLS, T), left_out.shape
    assert right_out.shape == (n_stages, B, N_CLS, T), right_out.shape
    assert out.dtype == jnp.float32
    assert bool(jnp.all(jnp.isfinite(out)))
    # masked time-steps must be exactly zero in every stage of every head
    assert float(jnp.abs(out[:, 1, :, T - 6:]).max()) == 0.0
    assert float(jnp.abs(left_out[:, 1, :, T - 6:]).max()) == 0.0
    assert float(jnp.abs(right_out[:, 1, :, T - 6:]).max()) == 0.0

    print("KERNEL_OK")
</pallas_src>

<mosaic_0001>
module attributes {stable_mosaic.version = 11 : i64} {
  func.func @kernel(%arg0: i32, %arg1: i32, %arg2: memref<1x32x128xf32, #tpu.memory_space<vmem>>, %arg3: memref<1x32x1xf32, #tpu.memory_space<vmem>>, %arg4: memref<1x128x128xbf16, #tpu.memory_space<vmem>>, %arg5: memref<1x1x128xf32, #tpu.memory_space<vmem>>, %arg6: memref<1x9x128x128xbf16, #tpu.memory_space<vmem>>, %arg7: memref<1x3x1x128xf32, #tpu.memory_space<vmem>>, %arg8: memref<1x9x128x128xbf16, #tpu.memory_space<vmem>>, %arg9: memref<1x3x1x128xf32, #tpu.memory_space<vmem>>, %arg10: memref<1x6x128x128xbf16, #tpu.memory_space<vmem>>, %arg11: memref<1x3x1x128xf32, #tpu.memory_space<vmem>>, %arg12: memref<1x128x128xbf16, #tpu.memory_space<vmem>>, %arg13: memref<1x1x128xf32, #tpu.memory_space<vmem>>, %arg14: memref<1x2x128x128xbf16, #tpu.memory_space<vmem>>, %arg15: memref<1x2x1x128xf32, #tpu.memory_space<vmem>>, %arg16: memref<1x18x128x128xbf16, #tpu.memory_space<vmem>>, %arg17: memref<1x6x1x128xf32, #tpu.memory_space<vmem>>, %arg18: memref<1x6x128x128xbf16, #tpu.memory_space<vmem>>, %arg19: memref<1x6x1x128xf32, #tpu.memory_space<vmem>>, %arg20: memref<1x2x128x128xbf16, #tpu.memory_space<vmem>>, %arg21: memref<1x2x1x128xf32, #tpu.memory_space<vmem>>, %arg22: memref<1x1x3x32x128xf32, #tpu.memory_space<vmem>>) attributes {dimension_semantics = [#tpu.dimension_semantics<parallel>, #tpu.dimension_semantics<parallel>], iteration_bounds = array<i64: 2, 2>, scalar_prefetch = 0 : i64, scratch_operands = 0 : i64, tpu.core_type = #tpu.core_type<tc>, window_params = [{transform_indices = @transform_0, window_bounds = array<i64: 1, 32, 128>}, {transform_indices = @transform_1, window_bounds = array<i64: 1, 32, 1>}, {transform_indices = @transform_2, window_bounds = array<i64: 1, 128, 128>}, {transform_indices = @transform_3, window_bounds = array<i64: 1, 1, 128>}, {transform_indices = @transform_4, window_bounds = array<i64: 1, 9, 128, 128>}, {transform_indices = @transform_5, window_bounds = array<i64: 1, 3, 1, 128>}, {transform_indices = @transform_6, window_bounds = array<i64: 1, 9, 128, 128>}, {transform_indices = @transform_7, window_bounds = array<i64: 1, 3, 1, 128>}, {transform_indices = @transform_8, window_bounds = array<i64: 1, 6, 128, 128>}, {transform_indices = @transform_9, window_bounds = array<i64: 1, 3, 1, 128>}, {transform_indices = @transform_10, window_bounds = array<i64: 1, 128, 128>}, {transform_indices = @transform_11, window_bounds = array<i64: 1, 1, 128>}, {transform_indices = @transform_12, window_bounds = array<i64: 1, 2, 128, 128>}, {transform_indices = @transform_13, window_bounds = array<i64: 1, 2, 1, 128>}, {transform_indices = @transform_14, window_bounds = array<i64: 1, 18, 128, 128>}, {transform_indices = @transform_15, window_bounds = array<i64: 1, 6, 1, 128>}, {transform_indices = @transform_16, window_bounds = array<i64: 1, 6, 128, 128>}, {transform_indices = @transform_17, window_bounds = array<i64: 1, 6, 1, 128>}, {transform_indices = @transform_18, window_bounds = array<i64: 1, 2, 128, 128>}, {transform_indices = @transform_19, window_bounds = array<i64: 1, 2, 1, 128>}, {transform_indices = @transform_20, window_bounds = array<i64: 1, 1, 3, 32, 128>}]} {
    %c0 = arith.constant 0 : index
    %c0_0 = arith.constant 0 : index
    %c0_1 = arith.constant 0 : index
    %0 = vector.load %arg2[%c0, %c0_0, %c0_1] : memref<1x32x128xf32, #tpu.memory_space<vmem>>, vector<1x32x128xf32>
    %1 = vector.shape_cast %0 : vector<1x32x128xf32> to vector<32x128xf32>
    %c0_2 = arith.constant 0 : index
    %c0_3 = arith.constant 0 : index
    %c0_4 = arith.constant 0 : index
    %2 = vector.load %arg3[%c0_2, %c0_3, %c0_4] : memref<1x32x1xf32, #tpu.memory_space<vmem>>, vector<1x32x1xf32>
    %3 = vector.shape_cast %2 : vector<1x32x1xf32> to vector<32x1xf32>
    %4 = vector.shape_cast %3 : vector<32x1xf32> to vector<32x1xf32>
    %5 = vector.broadcast %4 : vector<32x1xf32> to vector<32x128xf32>
    %6 = vector.shape_cast %3 : vector<32x1xf32> to vector<32x1xf32>
    %7 = vector.broadcast %6 : vector<32x1xf32> to vector<32x128xf32>
    %8 = tpu.iota {dimensions = array<i32: 0>} : vector<32x1xi32>
    %c1_i32 = arith.constant 1 : i32
    %9 = vector.broadcast %c1_i32 : i32 to vector<32x1xi32>
    %10 = arith.cmpi sge, %8, %9 : vector<32x1xi32>
    %11 = arith.extui %10 : vector<32x1xi1> to vector<32x1xi32>
    %12 = arith.sitofp %11 : vector<32x1xi32> to vector<32x1xf32>
    %c2_i32 = arith.constant 2 : i32
    %13 = vector.broadcast %c2_i32 : i32 to vector<32x1xi32>
    %14 = arith.cmpi sge, %8, %13 : vector<32x1xi32>
    %15 = arith.extui %14 : vector<32x1xi1> to vector<32x1xi32>
    %16 = arith.sitofp %15 : vector<32x1xi32> to vector<32x1xf32>
    %c4_i32 = arith.constant 4 : i32
    %17 = vector.broadcast %c4_i32 : i32 to vector<32x1xi32>
    %18 = arith.cmpi sge, %8, %17 : vector<32x1xi32>
    %19 = arith.extui %18 : vector<32x1xi1> to vector<32x1xi32>
    %20 = arith.sitofp %19 : vector<32x1xi32> to vector<32x1xf32>
    %c31_i32 = arith.constant 31 : i32
    %21 = vector.broadcast %c31_i32 : i32 to vector<32x1xi32>
    %22 = arith.cmpi slt, %8, %21 : vector<32x1xi32>
    %23 = arith.extui %22 : vector<32x1xi1> to vector<32x1xi32>
    %24 = arith.sitofp %23 : vector<32x1xi32> to vector<32x1xf32>
    %c30_i32 = arith.constant 30 : i32
    %25 = vector.broadcast %c30_i32 : i32 to vector<32x1xi32>
    %26 = arith.cmpi slt, %8, %25 : vector<32x1xi32>
    %27 = arith.extui %26 : vector<32x1xi1> to vector<32x1xi32>
    %28 = arith.sitofp %27 : vector<32x1xi32> to vector<32x1xf32>
    %c28_i32 = arith.constant 28 : i32
    %29 = vector.broadcast %c28_i32 : i32 to vector<32x1xi32>
    %30 = arith.cmpi slt, %8, %29 : vector<32x1xi32>
    %31 = arith.extui %30 : vector<32x1xi1> to vector<32x1xi32>
    %32 = arith.sitofp %31 : vector<32x1xi32> to vector<32x1xf32>
    %33 = tpu.iota {dimensions = array<i32: 1>} : vector<32x128xi32>
    %c8_i32 = arith.constant 8 : i32
    %34 = vector.broadcast %c8_i32 : i32 to vector<32x128xi32>
    %35 = arith.cmpi slt, %33, %34 : vector<32x128xi32>
    %36 = arith.truncf %1 : vector<32x128xf32> to vector<32x128xbf16>
    %c0_5 = arith.constant 0 : index
    %c0_6 = arith.constant 0 : index
    %c0_7 = arith.constant 0 : index
    %37 = vector.load %arg4[%c0_5, %c0_6, %c0_7] : memref<1x128x128xbf16, #tpu.memory_space<vmem>>, vector<1x128x128xbf16>
    %38 = vector.shape_cast %37 : vector<1x128x128xbf16> to vector<128x128xbf16>
    %c0_8 = arith.constant 0 : index
    %c0_9 = arith.constant 0 : index
    %c0_10 = arith.constant 0 : index
    %39 = vector.load %arg5[%c0_8, %c0_9, %c0_10] : memref<1x1x128xf32, #tpu.memory_space<vmem>>, vector<1x1x128xf32>
    %40 = vector.shape_cast %39 : vector<1x1x128xf32> to vector<1x128xf32>
    %cst = arith.constant dense<0.000000e+00> : vector<32x128xf32>
    %41 = tpu.matmul %36, %38, %cst {dimension_numbers = #tpu.dot_dimension_numbers<[1], [0], [0], [1], [0, 0, 1, 1], [], []>} : vector<32x128xbf16>, vector<128x128xbf16>, vector<32x128xf32> -> vector<32x128xf32>
    %42 = vector.broadcast %40 : vector<1x128xf32> to vector<32x128xf32>
    %43 = arith.addf %41, %42 : vector<32x128xf32>
    %44 = arith.truncf %43 : vector<32x128xf32> to vector<32x128xbf16>
    %c0_11 = arith.constant 0 : index
    %c0_12 = arith.constant 0 : index
    %c0_13 = arith.constant 0 : index
    %c0_14 = arith.constant 0 : index
    %45 = vector.load %arg7[%c0_11, %c0_12, %c0_13, %c0_14] : memref<1x3x1x128xf32, #tpu.memory_space<vmem>>, vector<1x1x1x128xf32>
    %46 = vector.shape_cast %45 : vector<1x1x1x128xf32> to vector<1x128xf32>
    %c0_15 = arith.constant 0 : index
    %c1 = arith.constant 1 : index
    %c0_16 = arith.constant 0 : index
    %c0_17 = arith.constant 0 : index
    %47 = vector.load %arg6[%c0_15, %c1, %c0_16, %c0_17] : memref<1x9x128x128xbf16, #tpu.memory_space<vmem>>, vector<1x1x128x128xbf16>
    %48 = vector.shape_cast %47 : vector<1x1x128x128xbf16> to vector<128x128xbf16>
    %cst_18 = arith.constant dense<0.000000e+00> : vector<32x128xf32>
    %49 = tpu.matmul %44, %48, %cst_18 {dimension_numbers = #tpu.dot_dimension_numbers<[1], [0], [0], [1], [0, 0, 1, 1], [], []>} : vector<32x128xbf16>, vector<128x128xbf16>, vector<32x128xf32> -> vector<32x128xf32>
    %c0_19 = arith.constant 0 : index
    %c0_20 = arith.constant 0 : index
    %c0_21 = arith.constant 0 : index
    %c0_22 = arith.constant 0 : index
    %50 = vector.load %arg6[%c0_19, %c0_20, %c0_21, %c0_22] : memref<1x9x128x128xbf16, #tpu.memory_space<vmem>>, vector<1x1x128x128xbf16>
    %51 = vector.shape_cast %50 : vector<1x1x128x128xbf16> to vector<128x128xbf16>
    %cst_23 = arith.constant dense<0.000000e+00> : vector<32x128xf32>
    %52 = tpu.matmul %44, %51, %cst_23 {dimension_numbers = #tpu.dot_dimension_numbers<[1], [0], [0], [1], [0, 0, 1, 1], [], []>} : vector<32x128xbf16>, vector<128x128xbf16>, vector<32x128xf32> -> vector<32x128xf32>
    %c0_24 = arith.constant 0 : index
    %c2 = arith.constant 2 : index
    %c0_25 = arith.constant 0 : index
    %c0_26 = arith.constant 0 : index
    %53 = vector.load %arg6[%c0_24, %c2, %c0_25, %c0_26] : memref<1x9x128x128xbf16, #tpu.memory_space<vmem>>, vector<1x1x128x128xbf16>
    %54 = vector.shape_cast %53 : vector<1x1x128x128xbf16> to vector<128x128xbf16>
    %cst_27 = arith.constant dense<0.000000e+00> : vector<32x128xf32>
    %55 = tpu.matmul %44, %54, %cst_27 {dimension_numbers = #tpu.dot_dimension_numbers<[1], [0], [0], [1], [0, 0, 1, 1], [], []>} : vector<32x128xbf16>, vector<128x128xbf16>, vector<32x128xf32> -> vector<32x128xf32>
    %c4_i32_28 = arith.constant 4 : i32
    %56 = tpu.dynamic_rotate %52 by %c4_i32_28 dim 0 : vector<32x128xf32>, i32 -> vector<32x128xf32>
    %57 = vector.broadcast %20 : vector<32x1xf32> to vector<32x128xf32>
    %58 = arith.mulf %56, %57 : vector<32x128xf32>
    %59 = arith.addf %49, %58 : vector<32x128xf32>
    %c28_i32_29 = arith.constant 28 : i32
    %60 = tpu.dynamic_rotate %55 by %c28_i32_29 dim 0 : vector<32x128xf32>, i32 -> vector<32x128xf32>
    %61 = vector.broadcast %32 : vector<32x1xf32> to vector<32x128xf32>
    %62 = arith.mulf %60, %61 : vector<32x128xf32>
    %63 = arith.addf %59, %62 : vector<32x128xf32>
    %64 = vector.broadcast %46 : vector<1x128xf32> to vector<32x128xf32>
    %65 = arith.addf %63, %64 : vector<32x128xf32>
    %c0_30 = arith.constant 0 : index
    %c0_31 = arith.constant 0 : index
    %c0_32 = arith.constant 0 : index
    %c0_33 = arith.constant 0 : index
    %66 = vector.load %arg9[%c0_30, %c0_31, %c0_32, %c0_33] : memref<1x3x1x128xf32, #tpu.memory_space<vmem>>, vector<1x1x1x128xf32>
    %67 = vector.shape_cast %66 : vector<1x1x1x128xf32> to vector<1x128xf32>
    %c0_34 = arith.constant 0 : index
    %c1_35 = arith.constant 1 : index
    %c0_36 = arith.constant 0 : index
    %c0_37 = arith.constant 0 : index
    %68 = vector.load %arg8[%c0_34, %c1_35, %c0_36, %c0_37] : memref<1x9x128x128xbf16, #tpu.memory_space<vmem>>, vector<1x1x128x128xbf16>
    %69 = vector.shape_cast %68 : vector<1x1x128x128xbf16> to vector<128x128xbf16>
    %cst_38 = arith.constant dense<0.000000e+00> : vector<32x128xf32>
    %70 = tpu.matmul %44, %69, %cst_38 {dimension_numbers = #tpu.dot_dimension_numbers<[1], [0], [0], [1], [0, 0, 1, 1], [], []>} : vector<32x128xbf16>, vector<128x128xbf16>, vector<32x128xf32> -> vector<32x128xf32>
    %c0_39 = arith.constant 0 : index
    %c0_40 = arith.constant 0 : index
    %c0_41 = arith.constant 0 : index
    %c0_42 = arith.constant 0 : index
    %71 = vector.load %arg8[%c0_39, %c0_40, %c0_41, %c0_42] : memref<1x9x128x128xbf16, #tpu.memory_space<vmem>>, vector<1x1x128x128xbf16>
    %72 = vector.shape_cast %71 : vector<1x1x128x128xbf16> to vector<128x128xbf16>
    %cst_43 = arith.constant dense<0.000000e+00> : vector<32x128xf32>
    %73 = tpu.matmul %44, %72, %cst_43 {dimension_numbers = #tpu.dot_dimension_numbers<[1], [0], [0], [1], [0, 0, 1, 1], [], []>} : vector<32x128xbf16>, vector<128x128xbf16>, vector<32x128xf32> -> vector<32x128xf32>
    %c0_44 = arith.constant 0 : index
    %c2_45 = arith.constant 2 : index
    %c0_46 = arith.constant 0 : index
    %c0_47 = arith.constant 0 : index
    %74 = vector.load %arg8[%c0_44, %c2_45, %c0_46, %c0_47] : memref<1x9x128x128xbf16, #tpu.memory_space<vmem>>, vector<1x1x128x128xbf16>
    %75 = vector.shape_cast %74 : vector<1x1x128x128xbf16> to vector<128x128xbf16>
    %cst_48 = arith.constant dense<0.000000e+00> : vector<32x128xf32>
    %76 = tpu.matmul %44, %75, %cst_48 {dimension_numbers = #tpu.dot_dimension_numbers<[1], [0], [0], [1], [0, 0, 1, 1], [], []>} : vector<32x128xbf16>, vector<128x128xbf16>, vector<32x128xf32> -> vector<32x128xf32>
    %c1_i32_49 = arith.constant 1 : i32
    %77 = tpu.dynamic_rotate %73 by %c1_i32_49 dim 0 : vector<32x128xf32>, i32 -> vector<32x128xf32>
    %78 = vector.broadcast %12 : vector<32x1xf32> to vector<32x128xf32>
    %79 = arith.mulf %77, %78 : vector<32x128xf32>
    %80 = arith.addf %70, %79 : vector<32x128xf32>
    %c31_i32_50 = arith.constant 31 : i32
    %81 = tpu.dynamic_rotate %76 by %c31_i32_50 dim 0 : vector<32x128xf32>, i32 -> vector<32x128xf32>
    %82 = vector.broadcast %24 : vector<32x1xf32> to vector<32x128xf32>
    %83 = arith.mulf %81, %82 : vector<32x128xf32>
    %84 = arith.addf %80, %83 : vector<32x128xf32>
    %85 = vector.broadcast %67 : vector<1x128xf32> to vector<32x128xf32>
    %86 = arith.addf %84, %85 : vector<32x128xf32>
    %87 = arith.truncf %65 : vector<32x128xf32> to vector<32x128xbf16>
    %c0_51 = arith.constant 0 : index
    %c0_52 = arith.constant 0 : index
    %c0_53 = arith.constant 0 : index
    %c0_54 = arith.constant 0 : index
    %88 = vector.load %arg10[%c0_51, %c0_52, %c0_53, %c0_54] : memref<1x6x128x128xbf16, #tpu.memory_space<vmem>>, vector<1x1x128x128xbf16>
    %89 = vector.shape_cast %88 : vector<1x1x128x128xbf16> to vector<128x128xbf16>
    %cst_55 = arith.constant dense<0.000000e+00> : vector<32x128xf32>
    %90 = tpu.matmul %87, %89, %cst_55 {dimension_numbers = #tpu.dot_dimension_numbers<[1], [0], [0], [1], [0, 0, 1, 1], [], []>} : vector<32x128xbf16>, vector<128x128xbf16>, vector<32x128xf32> -> vector<32x128xf32>
    %91 = arith.truncf %86 : vector<32x128xf32> to vector<32x128xbf16>
    %c0_56 = arith.constant 0 : index
    %c1_57 = arith.constant 1 : index
    %c0_58 = arith.constant 0 : index
    %c0_59 = arith.constant 0 : index
    %92 = vector.load %arg10[%c0_56, %c1_57, %c0_58, %c0_59] : memref<1x6x128x128xbf16, #tpu.memory_space<vmem>>, vector<1x1x128x128xbf16>
    %93 = vector.shape_cast %92 : vector<1x1x128x128xbf16> to vector<128x128xbf16>
    %cst_60 = arith.constant dense<0.000000e+00> : vector<32x128xf32>
    %94 = tpu.matmul %91, %93, %cst_60 {dimension_numbers = #tpu.dot_dimension_numbers<[1], [0], [0], [1], [0, 0, 1, 1], [], []>} : vector<32x128xbf16>, vector<128x128xbf16>, vector<32x128xf32> -> vector<32x128xf32>
    %95 = arith.addf %90, %94 : vector<32x128xf32>
    %c0_61 = arith.constant 0 : index
    %c0_62 = arith.constant 0 : index
    %c0_63 = arith.constant 0 : index
    %c0_64 = arith.constant 0 : index
    %96 = vector.load %arg11[%c0_61, %c0_62, %c0_63, %c0_64] : memref<1x3x1x128xf32, #tpu.memory_space<vmem>>, vector<1x1x1x128xf32>
    %97 = vector.shape_cast %96 : vector<1x1x1x128xf32> to vector<1x128xf32>
    %98 = vector.broadcast %97 : vector<1x128xf32> to vector<32x128xf32>
    %99 = arith.addf %95, %98 : vector<32x128xf32>
    %cst_65 = arith.constant 0.000000e+00 : f32
    %100 = vector.broadcast %cst_65 : f32 to vector<32x128xf32>
    %101 = arith.maximumf %99, %100 : vector<32x128xf32>
    %102 = arith.addf %101, %43 : vector<32x128xf32>
    %103 = arith.truncf %102 : vector<32x128xf32> to vector<32x128xbf16>
    %c0_66 = arith.constant 0 : index
    %c1_67 = arith.constant 1 : index
    %c0_68 = arith.constant 0 : index
    %c0_69 = arith.constant 0 : index
    %104 = vector.load %arg7[%c0_66, %c1_67, %c0_68, %c0_69] : memref<1x3x1x128xf32, #tpu.memory_space<vmem>>, vector<1x1x1x128xf32>
    %105 = vector.shape_cast %104 : vector<1x1x1x128xf32> to vector<1x128xf32>
    %c0_70 = arith.constant 0 : index
    %c4 = arith.constant 4 : index
    %c0_71 = arith.constant 0 : index
    %c0_72 = arith.constant 0 : index
    %106 = vector.load %arg6[%c0_70, %c4, %c0_71, %c0_72] : memref<1x9x128x128xbf16, #tpu.memory_space<vmem>>, vector<1x1x128x128xbf16>
    %107 = vector.shape_cast %106 : vector<1x1x128x128xbf16> to vector<128x128xbf16>
    %cst_73 = arith.constant dense<0.000000e+00> : vector<32x128xf32>
    %108 = tpu.matmul %103, %107, %cst_73 {dimension_numbers = #tpu.dot_dimension_numbers<[1], [0], [0], [1], [0, 0, 1, 1], [], []>} : vector<32x128xbf16>, vector<128x128xbf16>, vector<32x128xf32> -> vector<32x128xf32>
    %c0_74 = arith.constant 0 : index
    %c3 = arith.constant 3 : index
    %c0_75 = arith.constant 0 : index
    %c0_76 = arith.constant 0 : index
    %109 = vector.load %arg6[%c0_74, %c3, %c0_75, %c0_76] : memref<1x9x128x128xbf16, #tpu.memory_space<vmem>>, vector<1x1x128x128xbf16>
    %110 = vector.shape_cast %109 : vector<1x1x128x128xbf16> to vector<128x128xbf16>
    %cst_77 = arith.constant dense<0.000000e+00> : vector<32x128xf32>
    %111 = tpu.matmul %103, %110, %cst_77 {dimension_numbers = #tpu.dot_dimension_numbers<[1], [0], [0], [1], [0, 0, 1, 1], [], []>} : vector<32x128xbf16>, vector<128x128xbf16>, vector<32x128xf32> -> vector<32x128xf32>
    %c0_78 = arith.constant 0 : index
    %c5 = arith.constant 5 : index
    %c0_79 = arith.constant 0 : index
    %c0_80 = arith.constant 0 : index
    %112 = vector.load %arg6[%c0_78, %c5, %c0_79, %c0_80] : memref<1x9x128x128xbf16, #tpu.memory_space<vmem>>, vector<1x1x128x128xbf16>
    %113 = vector.shape_cast %112 : vector<1x1x128x128xbf16> to vector<128x128xbf16>
    %cst_81 = arith.constant dense<0.000000e+00> : vector<32x128xf32>
    %114 = tpu.matmul %103, %113, %cst_81 {dimension_numbers = #tpu.dot_dimension_numbers<[1], [0], [0], [1], [0, 0, 1, 1], [], []>} : vector<32x128xbf16>, vector<128x128xbf16>, vector<32x128xf32> -> vector<32x128xf32>
    %c2_i32_82 = arith.constant 2 : i32
    %115 = tpu.dynamic_rotate %111 by %c2_i32_82 dim 0 : vector<32x128xf32>, i32 -> vector<32x128xf32>
    %116 = vector.broadcast %16 : vector<32x1xf32> to vector<32x128xf32>
    %117 = arith.mulf %115, %116 : vector<32x128xf32>
    %118 = arith.addf %108, %117 : vector<32x128xf32>
    %c30_i32_83 = arith.constant 30 : i32
    %119 = tpu.dynamic_rotate %114 by %c30_i32_83 dim 0 : vector<32x128xf32>, i32 -> vector<32x128xf32>
    %120 = vector.broadcast %28 : vector<32x1xf32> to vector<32x128xf32>
    %121 = arith.mulf %119, %120 : vector<32x128xf32>
    %122 = arith.addf %118, %121 : vector<32x128xf32>
    %123 = vector.broadcast %105 : vector<1x128xf32> to vector<32x128xf32>
    %124 = arith.addf %122, %123 : vector<32x128xf32>
    %c0_84 = arith.constant 0 : index
    %c1_85 = arith.constant 1 : index
    %c0_86 = arith.constant 0 : index
    %c0_87 = arith.constant 0 : index
    %125 = vector.load %arg9[%c0_84, %c1_85, %c0_86, %c0_87] : memref<1x3x1x128xf32, #tpu.memory_space<vmem>>, vector<1x1x1x128xf32>
    %126 = vector.shape_cast %125 : vector<1x1x1x128xf32> to vector<1x128xf32>
    %c0_88 = arith.constant 0 : index
    %c4_89 = arith.constant 4 : index
    %c0_90 = arith.constant 0 : index
    %c0_91 = arith.constant 0 : index
    %127 = vector.load %arg8[%c0_88, %c4_89, %c0_90, %c0_91] : memref<1x9x128x128xbf16, #tpu.memory_space<vmem>>, vector<1x1x128x128xbf16>
    %128 = vector.shape_cast %127 : vector<1x1x128x128xbf16> to vector<128x128xbf16>
    %cst_92 = arith.constant dense<0.000000e+00> : vector<32x128xf32>
    %129 = tpu.matmul %103, %128, %cst_92 {dimension_numbers = #tpu.dot_dimension_numbers<[1], [0], [0], [1], [0, 0, 1, 1], [], []>} : vector<32x128xbf16>, vector<128x128xbf16>, vector<32x128xf32> -> vector<32x128xf32>
    %c0_93 = arith.constant 0 : index
    %c3_94 = arith.constant 3 : index
    %c0_95 = arith.constant 0 : index
    %c0_96 = arith.constant 0 : index
    %130 = vector.load %arg8[%c0_93, %c3_94, %c0_95, %c0_96] : memref<1x9x128x128xbf16, #tpu.memory_space<vmem>>, vector<1x1x128x128xbf16>
    %131 = vector.shape_cast %130 : vector<1x1x128x128xbf16> to vector<128x128xbf16>
    %cst_97 = arith.constant dense<0.000000e+00> : vector<32x128xf32>
    %132 = tpu.matmul %103, %131, %cst_97 {dimension_numbers = #tpu.dot_dimension_numbers<[1], [0], [0], [1], [0, 0, 1, 1], [], []>} : vector<32x128xbf16>, vector<128x128xbf16>, vector<32x128xf32> -> vector<32x128xf32>
    %c0_98 = arith.constant 0 : index
    %c5_99 = arith.constant 5 : index
    %c0_100 = arith.constant 0 : index
    %c0_101 = arith.constant 0 : index
    %133 = vector.load %arg8[%c0_98, %c5_99, %c0_100, %c0_101] : memref<1x9x128x128xbf16, #tpu.memory_space<vmem>>, vector<1x1x128x128xbf16>
    %134 = vector.shape_cast %133 : vector<1x1x128x128xbf16> to vector<128x128xbf16>
    %cst_102 = arith.constant dense<0.000000e+00> : vector<32x128xf32>
    %135 = tpu.matmul %103, %134, %cst_102 {dimension_numbers = #tpu.dot_dimension_numbers<[1], [0], [0], [1], [0, 0, 1, 1], [], []>} : vector<32x128xbf16>, vector<128x128xbf16>, vector<32x128xf32> -> vector<32x128xf32>
    %c2_i32_103 = arith.constant 2 : i32
    %136 = tpu.dynamic_rotate %132 by %c2_i32_103 dim 0 : vector<32x128xf32>, i32 -> vector<32x128xf32>
    %137 = vector.broadcast %16 : vector<32x1xf32> to vector<32x128xf32>
    %138 = arith.mulf %136, %137 : vector<32x128xf32>
    %139 = arith.addf %129, %138 : vector<32x128xf32>
    %c30_i32_104 = arith.constant 30 : i32
    %140 = tpu.dynamic_rotate %135 by %c30_i32_104 dim 0 : vector<32x128xf32>, i32 -> vector<32x128xf32>
    %141 = vector.broadcast %28 : vector<32x1xf32> to vector<32x128xf32>
    %142 = arith.mulf %140, %141 : vector<32x128xf32>
    %143 = arith.addf %139, %142 : vector<32x128xf32>
    %144 = vector.broadcast %126 : vector<1x128xf32> to vector<32x128xf32>
    %145 = arith.addf %143, %144 : vector<32x128xf32>
    %146 = arith.truncf %124 : vector<32x128xf32> to vector<32x128xbf16>
    %c0_105 = arith.constant 0 : index
    %c2_106 = arith.constant 2 : index
    %c0_107 = arith.constant 0 : index
    %c0_108 = arith.constant 0 : index
    %147 = vector.load %arg10[%c0_105, %c2_106, %c0_107, %c0_108] : memref<1x6x128x128xbf16, #tpu.memory_space<vmem>>, vector<1x1x128x128xbf16>
    %148 = vector.shape_cast %147 : vector<1x1x128x128xbf16> to vector<128x128xbf16>
    %cst_109 = arith.constant dense<0.000000e+00> : vector<32x128xf32>
    %149 = tpu.matmul %146, %148, %cst_109 {dimension_numbers = #tpu.dot_dimension_numbers<[1], [0], [0], [1], [0, 0, 1, 1], [], []>} : vector<32x128xbf16>, vector<128x128xbf16>, vector<32x128xf32> -> vector<32x128xf32>
    %150 = arith.truncf %145 : vector<32x128xf32> to vector<32x128xbf16>
    %c0_110 = arith.constant 0 : index
    %c3_111 = arith.constant 3 : index
    %c0_112 = arith.constant 0 : index
    %c0_113 = arith.constant 0 : index
    %151 = vector.load %arg10[%c0_110, %c3_111, %c0_112, %c0_113] : memref<1x6x128x128xbf16, #tpu.memory_space<vmem>>, vector<1x1x128x128xbf16>
    %152 = vector.shape_cast %151 : vector<1x1x128x128xbf16> to vector<128x128xbf16>
    %cst_114 = arith.constant dense<0.000000e+00> : vector<32x128xf32>
    %153 = tpu.matmul %150, %152, %cst_114 {dimension_numbers = #tpu.dot_dimension_numbers<[1], [0], [0], [1], [0, 0, 1, 1], [], []>} : vector<32x128xbf16>, vector<128x128xbf16>, vector<32x128xf32> -> vector<32x128xf32>
    %154 = arith.addf %149, %153 : vector<32x128xf32>
    %c0_115 = arith.constant 0 : index
    %c1_116 = arith.constant 1 : index
    %c0_117 = arith.constant 0 : index
    %c0_118 = arith.constant 0 : index
    %155 = vector.load %arg11[%c0_115, %c1_116, %c0_117, %c0_118] : memref<1x3x1x128xf32, #tpu.memory_space<vmem>>, vector<1x1x1x128xf32>
    %156 = vector.shape_cast %155 : vector<1x1x1x128xf32> to vector<1x128xf32>
    %157 = vector.broadcast %156 : vector<1x128xf32> to vector<32x128xf32>
    %158 = arith.addf %154, %157 : vector<32x128xf32>
    %cst_119 = arith.constant 0.000000e+00 : f32
    %159 = vector.broadcast %cst_119 : f32 to vector<32x128xf32>
    %160 = arith.maximumf %158, %159 : vector<32x128xf32>
    %161 = arith.addf %160, %102 : vector<32x128xf32>
    %162 = arith.truncf %161 : vector<32x128xf32> to vector<32x128xbf16>
    %c0_120 = arith.constant 0 : index
    %c2_121 = arith.constant 2 : index
    %c0_122 = arith.constant 0 : index
    %c0_123 = arith.constant 0 : index
    %163 = vector.load %arg7[%c0_120, %c2_121, %c0_122, %c0_123] : memref<1x3x1x128xf32, #tpu.memory_space<vmem>>, vector<1x1x1x128xf32>
    %164 = vector.shape_cast %163 : vector<1x1x1x128xf32> to vector<1x128xf32>
    %c0_124 = arith.constant 0 : index
    %c7 = arith.constant 7 : index
    %c0_125 = arith.constant 0 : index
    %c0_126 = arith.constant 0 : index
    %165 = vector.load %arg6[%c0_124, %c7, %c0_125, %c0_126] : memref<1x9x128x128xbf16, #tpu.memory_space<vmem>>, vector<1x1x128x128xbf16>
    %166 = vector.shape_cast %165 : vector<1x1x128x128xbf16> to vector<128x128xbf16>
    %cst_127 = arith.constant dense<0.000000e+00> : vector<32x128xf32>
    %167 = tpu.matmul %162, %166, %cst_127 {dimension_numbers = #tpu.dot_dimension_numbers<[1], [0], [0], [1], [0, 0, 1, 1], [], []>} : vector<32x128xbf16>, vector<128x128xbf16>, vector<32x128xf32> -> vector<32x128xf32>
    %c0_128 = arith.constant 0 : index
    %c6 = arith.constant 6 : index
    %c0_129 = arith.constant 0 : index
    %c0_130 = arith.constant 0 : index
    %168 = vector.load %arg6[%c0_128, %c6, %c0_129, %c0_130] : memref<1x9x128x128xbf16, #tpu.memory_space<vmem>>, vector<1x1x128x128xbf16>
    %169 = vector.shape_cast %168 : vector<1x1x128x128xbf16> to vector<128x128xbf16>
    %cst_131 = arith.constant dense<0.000000e+00> : vector<32x128xf32>
    %170 = tpu.matmul %162, %169, %cst_131 {dimension_numbers = #tpu.dot_dimension_numbers<[1], [0], [0], [1], [0, 0, 1, 1], [], []>} : vector<32x128xbf16>, vector<128x128xbf16>, vector<32x128xf32> -> vector<32x128xf32>
    %c0_132 = arith.constant 0 : index
    %c8 = arith.constant 8 : index
    %c0_133 = arith.constant 0 : index
    %c0_134 = arith.constant 0 : index
    %171 = vector.load %arg6[%c0_132, %c8, %c0_133, %c0_134] : memref<1x9x128x128xbf16, #tpu.memory_space<vmem>>, vector<1x1x128x128xbf16>
    %172 = vector.shape_cast %171 : vector<1x1x128x128xbf16> to vector<128x128xbf16>
    %cst_135 = arith.constant dense<0.000000e+00> : vector<32x128xf32>
    %173 = tpu.matmul %162, %172, %cst_135 {dimension_numbers = #tpu.dot_dimension_numbers<[1], [0], [0], [1], [0, 0, 1, 1], [], []>} : vector<32x128xbf16>, vector<128x128xbf16>, vector<32x128xf32> -> vector<32x128xf32>
    %c1_i32_136 = arith.constant 1 : i32
    %174 = tpu.dynamic_rotate %170 by %c1_i32_136 dim 0 : vector<32x128xf32>, i32 -> vector<32x128xf32>
    %175 = vector.broadcast %12 : vector<32x1xf32> to vector<32x128xf32>
    %176 = arith.mulf %174, %175 : vector<32x128xf32>
    %177 = arith.addf %167, %176 : vector<32x128xf32>
    %c31_i32_137 = arith.constant 31 : i32
    %178 = tpu.dynamic_rotate %173 by %c31_i32_137 dim 0 : vector<32x128xf32>, i32 -> vector<32x128xf32>
    %179 = vector.broadcast %24 : vector<32x1xf32> to vector<32x128xf32>
    %180 = arith.mulf %178, %179 : vector<32x128xf32>
    %181 = arith.addf %177, %180 : vector<32x128xf32>
    %182 = vector.broadcast %164 : vector<1x128xf32> to vector<32x128xf32>
    %183 = arith.addf %181, %182 : vector<32x128xf32>
    %c0_138 = arith.constant 0 : index
    %c2_139 = arith.constant 2 : index
    %c0_140 = arith.constant 0 : index
    %c0_141 = arith.constant 0 : index
    %184 = vector.load %arg9[%c0_138, %c2_139, %c0_140, %c0_141] : memref<1x3x1x128xf32, #tpu.memory_space<vmem>>, vector<1x1x1x128xf32>
    %185 = vector.shape_cast %184 : vector<1x1x1x128xf32> to vector<1x128xf32>
    %c0_142 = arith.constant 0 : index
    %c7_143 = arith.constant 7 : index
    %c0_144 = arith.constant 0 : index
    %c0_145 = arith.constant 0 : index
    %186 = vector.load %arg8[%c0_142, %c7_143, %c0_144, %c0_145] : memref<1x9x128x128xbf16, #tpu.memory_space<vmem>>, vector<1x1x128x128xbf16>
    %187 = vector.shape_cast %186 : vector<1x1x128x128xbf16> to vector<128x128xbf16>
    %cst_146 = arith.constant dense<0.000000e+00> : vector<32x128xf32>
    %188 = tpu.matmul %162, %187, %cst_146 {dimension_numbers = #tpu.dot_dimension_numbers<[1], [0], [0], [1], [0, 0, 1, 1], [], []>} : vector<32x128xbf16>, vector<128x128xbf16>, vector<32x128xf32> -> vector<32x128xf32>
    %c0_147 = arith.constant 0 : index
    %c6_148 = arith.constant 6 : index
    %c0_149 = arith.constant 0 : index
    %c0_150 = arith.constant 0 : index
    %189 = vector.load %arg8[%c0_147, %c6_148, %c0_149, %c0_150] : memref<1x9x128x128xbf16, #tpu.memory_space<vmem>>, vector<1x1x128x128xbf16>
    %190 = vector.shape_cast %189 : vector<1x1x128x128xbf16> to vector<128x128xbf16>
    %cst_151 = arith.constant dense<0.000000e+00> : vector<32x128xf32>
    %191 = tpu.matmul %162, %190, %cst_151 {dimension_numbers = #tpu.dot_dimension_numbers<[1], [0], [0], [1], [0, 0, 1, 1], [], []>} : vector<32x128xbf16>, vector<128x128xbf16>, vector<32x128xf32> -> vector<32x128xf32>
    %c0_152 = arith.constant 0 : index
    %c8_153 = arith.constant 8 : index
    %c0_154 = arith.constant 0 : index
    %c0_155 = arith.constant 0 : index
    %192 = vector.load %arg8[%c0_152, %c8_153, %c0_154, %c0_155] : memref<1x9x128x128xbf16, #tpu.memory_space<vmem>>, vector<1x1x128x128xbf16>
    %193 = vector.shape_cast %192 : vector<1x1x128x128xbf16> to vector<128x128xbf16>
    %cst_156 = arith.constant dense<0.000000e+00> : vector<32x128xf32>
    %194 = tpu.matmul %162, %193, %cst_156 {dimension_numbers = #tpu.dot_dimension_numbers<[1], [0], [0], [1], [0, 0, 1, 1], [], []>} : vector<32x128xbf16>, vector<128x128xbf16>, vector<32x128xf32> -> vector<32x128xf32>
    %c4_i32_157 = arith.constant 4 : i32
    %195 = tpu.dynamic_rotate %191 by %c4_i32_157 dim 0 : vector<32x128xf32>, i32 -> vector<32x128xf32>
    %196 = vector.broadcast %20 : vector<32x1xf32> to vector<32x128xf32>
    %197 = arith.mulf %195, %196 : vector<32x128xf32>
    %198 = arith.addf %188, %197 : vector<32x128xf32>
    %c28_i32_158 = arith.constant 28 : i32
    %199 = tpu.dynamic_rotate %194 by %c28_i32_158 dim 0 : vector<32x128xf32>, i32 -> vector<32x128xf32>
    %200 = vector.broadcast %32 : vector<32x1xf32> to vector<32x128xf32>
    %201 = arith.mulf %199, %200 : vector<32x128xf32>
    %202 = arith.addf %198, %201 : vector<32x128xf32>
    %203 = vector.broadcast %185 : vector<1x128xf32> to vector<32x128xf32>
    %204 = arith.addf %202, %203 : vector<32x128xf32>
    %205 = arith.truncf %183 : vector<32x128xf32> to vector<32x128xbf16>
    %c0_159 = arith.constant 0 : index
    %c4_160 = arith.constant 4 : index
    %c0_161 = arith.constant 0 : index
    %c0_162 = arith.constant 0 : index
    %206 = vector.load %arg10[%c0_159, %c4_160, %c0_161, %c0_162] : memref<1x6x128x128xbf16, #tpu.memory_space<vmem>>, vector<1x1x128x128xbf16>
    %207 = vector.shape_cast %206 : vector<1x1x128x128xbf16> to vector<128x128xbf16>
    %cst_163 = arith.constant dense<0.000000e+00> : vector<32x128xf32>
    %208 = tpu.matmul %205, %207, %cst_163 {dimension_numbers = #tpu.dot_dimension_numbers<[1], [0], [0], [1], [0, 0, 1, 1], [], []>} : vector<32x128xbf16>, vector<128x128xbf16>, vector<32x128xf32> -> vector<32x128xf32>
    %209 = arith.truncf %204 : vector<32x128xf32> to vector<32x128xbf16>
    %c0_164 = arith.constant 0 : index
    %c5_165 = arith.constant 5 : index
    %c0_166 = arith.constant 0 : index
    %c0_167 = arith.constant 0 : index
    %210 = vector.load %arg10[%c0_164, %c5_165, %c0_166, %c0_167] : memref<1x6x128x128xbf16, #tpu.memory_space<vmem>>, vector<1x1x128x128xbf16>
    %211 = vector.shape_cast %210 : vector<1x1x128x128xbf16> to vector<128x128xbf16>
    %cst_168 = arith.constant dense<0.000000e+00> : vector<32x128xf32>
    %212 = tpu.matmul %209, %211, %cst_168 {dimension_numbers = #tpu.dot_dimension_numbers<[1], [0], [0], [1], [0, 0, 1, 1], [], []>} : vector<32x128xbf16>, vector<128x128xbf16>, vector<32x128xf32> -> vector<32x128xf32>
    %213 = arith.addf %208, %212 : vector<32x128xf32>
    %c0_169 = arith.constant 0 : index
    %c2_170 = arith.constant 2 : index
    %c0_171 = arith.constant 0 : index
    %c0_172 = arith.constant 0 : index
    %214 = vector.load %arg11[%c0_169, %c2_170, %c0_171, %c0_172] : memref<1x3x1x128xf32, #tpu.memory_space<vmem>>, vector<1x1x1x128xf32>
    %215 = vector.shape_cast %214 : vector<1x1x1x128xf32> to vector<1x128xf32>
    %216 = vector.broadcast %215 : vector<1x128xf32> to vector<32x128xf32>
    %217 = arith.addf %213, %216 : vector<32x128xf32>
    %cst_173 = arith.constant 0.000000e+00 : f32
    %218 = vector.broadcast %cst_173 : f32 to vector<32x128xf32>
    %219 = arith.maximumf %217, %218 : vector<32x128xf32>
    %220 = arith.addf %219, %161 : vector<32x128xf32>
    %221 = arith.truncf %220 : vector<32x128xf32> to vector<32x128xbf16>
    %c0_174 = arith.constant 0 : index
    %c0_175 = arith.constant 0 : index
    %c0_176 = arith.constant 0 : index
    %222 = vector.load %arg12[%c0_174, %c0_175, %c0_176] : memref<1x128x128xbf16, #tpu.memory_space<vmem>>, vector<1x128x128xbf16>
    %223 = vector.shape_cast %222 : vector<1x128x128xbf16> to vector<128x128xbf16>
    %c0_177 = arith.constant 0 : index
    %c0_178 = arith.constant 0 : index
    %c0_179 = arith.constant 0 : index
    %224 = vector.load %arg13[%c0_177, %c0_178, %c0_179] : memref<1x1x128xf32, #tpu.memory_space<vmem>>, vector<1x1x128xf32>
    %225 = vector.shape_cast %224 : vector<1x1x128xf32> to vector<1x128xf32>
    %cst_180 = arith.constant dense<0.000000e+00> : vector<32x128xf32>
    %226 = tpu.matmul %221, %223, %cst_180 {dimension_numbers = #tpu.dot_dimension_numbers<[1], [0], [0], [1], [0, 0, 1, 1], [], []>} : vector<32x128xbf16>, vector<128x128xbf16>, vector<32x128xf32> -> vector<32x128xf32>
    %227 = vector.broadcast %225 : vector<1x128xf32> to vector<32x128xf32>
    %228 = arith.addf %226, %227 : vector<32x128xf32>
    %229 = arith.mulf %228, %7 : vector<32x128xf32>
    %c0_181 = arith.constant 0 : index
    %c0_182 = arith.constant 0 : index
    %c0_183 = arith.constant 0 : index
    %c0_184 = arith.constant 0 : index
    %c0_185 = arith.constant 0 : index
    %230 = vector.load %arg22[%c0_181, %c0_182, %c0_183, %c0_184, %c0_185] : memref<1x1x3x32x128xf32, #tpu.memory_space<vmem>>, vector<1x1x1x32x128xf32>
    %231 = vector.shape_cast %230 : vector<1x1x1x32x128xf32> to vector<32x128xf32>
    %232 = vector.shape_cast %229 : vector<32x128xf32> to vector<1x1x1x32x128xf32>
    tpu.vector_store %arg22[%c0_181, %c0_182, %c0_183, %c0_184, %c0_185], %232 {strides = array<i32>} : memref<1x1x3x32x128xf32, #tpu.memory_space<vmem>>, vector<1x1x1x32x128xf32>,
    %cst_186 = arith.constant -1.000000e+30 : f32
    %233 = vector.broadcast %cst_186 : f32 to vector<32x128xf32>
    %234 = arith.select %35, %229, %233 : vector<32x128xi1>, vector<32x128xf32>
    %cst_187 = arith.constant dense<0xFF800000> : vector<32xf32>
    %235 = vector.multi_reduction <maximumf>, %234, %cst_187 [1] : vector<32x128xf32> to vector<32xf32>
    %236 = vector.shape_cast %235 : vector<32xf32> to vector<32x1xf32>
    %237 = vector.broadcast %236 : vector<32x1xf32> to vector<32x128xf32>
    %238 = arith.subf %234, %237 : vector<32x128xf32>
    %239 = math.exp %238 : vector<32x128xf32>
    %cst_188 = arith.constant dense<0.000000e+00> : vector<32xf32>
    %240 = vector.multi_reduction <add>, %239, %cst_188 [1] : vector<32x128xf32> to vector<32xf32>
    %241 = vector.shape_cast %240 : vector<32xf32> to vector<32x1xf32>
    %242 = tpu.reciprocal %241 : vector<32x1xf32> -> vector<32x1xf32>
    %243 = vector.broadcast %242 : vector<32x1xf32> to vector<32x128xf32>
    %244 = arith.mulf %239, %243 : vector<32x128xf32>
    %245 = arith.mulf %244, %7 : vector<32x128xf32>
    %246 = arith.truncf %245 : vector<32x128xf32> to vector<32x128xbf16>
    %c0_189 = arith.constant 0 : index
    %c0_190 = arith.constant 0 : index
    %c0_191 = arith.constant 0 : index
    %c0_192 = arith.constant 0 : index
    %247 = vector.load %arg14[%c0_189, %c0_190, %c0_191, %c0_192] : memref<1x2x128x128xbf16, #tpu.memory_space<vmem>>, vector<1x1x128x128xbf16>
    %248 = vector.shape_cast %247 : vector<1x1x128x128xbf16> to vector<128x128xbf16>
    %c0_193 = arith.constant 0 : index
    %c0_194 = arith.constant 0 : index
    %c0_195 = arith.constant 0 : index
    %c0_196 = arith.constant 0 : index
    %249 = vector.load %arg15[%c0_193, %c0_194, %c0_195, %c0_196] : memref<1x2x1x128xf32, #tpu.memory_space<vmem>>, vector<1x1x1x128xf32>
    %250 = vector.shape_cast %249 : vector<1x1x1x128xf32> to vector<1x128xf32>
    %cst_197 = arith.constant dense<0.000000e+00> : vector<32x128xf32>
    %251 = tpu.matmul %246, %248, %cst_197 {dimension_numbers = #tpu.dot_dimension_numbers<[1], [0], [0], [1], [0, 0, 1, 1], [], []>} : vector<32x128xbf16>, vector<128x128xbf16>, vector<32x128xf32> -> vector<32x128xf32>
    %252 = vector.broadcast %250 : vector<1x128xf32> to vector<32x128xf32>
    %253 = arith.addf %251, %252 : vector<32x128xf32>
    %254 = arith.truncf %253 : vector<32x128xf32> to vector<32x128xbf16>
    %c0_198 = arith.constant 0 : index
    %c0_199 = arith.constant 0 : index
    %c0_200 = arith.constant 0 : index
    %c0_201 = arith.constant 0 : index
    %255 = vector.load %arg17[%c0_198, %c0_199, %c0_200, %c0_201] : memref<1x6x1x128xf32, #tpu.memory_space<vmem>>, vector<1x1x1x128xf32>
    %256 = vector.shape_cast %255 : vector<1x1x1x128xf32> to vector<1x128xf32>
    %c0_202 = arith.constant 0 : index
    %c1_203 = arith.constant 1 : index
    %c0_204 = arith.constant 0 : index
    %c0_205 = arith.constant 0 : index
    %257 = vector.load %arg16[%c0_202, %c1_203, %c0_204, %c0_205] : memref<1x18x128x128xbf16, #tpu.memory_space<vmem>>, vector<1x1x128x128xbf16>
    %258 = vector.shape_cast %257 : vector<1x1x128x128xbf16> to vector<128x128xbf16>
    %cst_206 = arith.constant dense<0.000000e+00> : vector<32x128xf32>
    %259 = tpu.matmul %254, %258, %cst_206 {dimension_numbers = #tpu.dot_dimension_numbers<[1], [0], [0], [1], [0, 0, 1, 1], [], []>} : vector<32x128xbf16>, vector<128x128xbf16>, vector<32x128xf32> -> vector<32x128xf32>
    %c0_207 = arith.constant 0 : index
    %c0_208 = arith.constant 0 : index
    %c0_209 = arith.constant 0 : index
    %c0_210 = arith.constant 0 : index
    %260 = vector.load %arg16[%c0_207, %c0_208, %c0_209, %c0_210] : memref<1x18x128x128xbf16, #tpu.memory_space<vmem>>, vector<1x1x128x128xbf16>
    %261 = vector.shape_cast %260 : vector<1x1x128x128xbf16> to vector<128x128xbf16>
    %cst_211 = arith.constant dense<0.000000e+00> : vector<32x128xf32>
    %262 = tpu.matmul %254, %261, %cst_211 {dimension_numbers = #tpu.dot_dimension_numbers<[1], [0], [0], [1], [0, 0, 1, 1], [], []>} : vector<32x128xbf16>, vector<128x128xbf16>, vector<32x128xf32> -> vector<32x128xf32>
    %c0_212 = arith.constant 0 : index
    %c2_213 = arith.constant 2 : index
    %c0_214 = arith.constant 0 : index
    %c0_215 = arith.constant 0 : index
    %263 = vector.load %arg16[%c0_212, %c2_213, %c0_214, %c0_215] : memref<1x18x128x128xbf16, #tpu.memory_space<vmem>>, vector<1x1x128x128xbf16>
    %264 = vector.shape_cast %263 : vector<1x1x128x128xbf16> to vector<128x128xbf16>
    %cst_216 = arith.constant dense<0.000000e+00> : vector<32x128xf32>
    %265 = tpu.matmul %254, %264, %cst_216 {dimension_numbers = #tpu.dot_dimension_numbers<[1], [0], [0], [1], [0, 0, 1, 1], [], []>} : vector<32x128xbf16>, vector<128x128xbf16>, vector<32x128xf32> -> vector<32x128xf32>
    %c1_i32_217 = arith.constant 1 : i32
    %266 = tpu.dynamic_rotate %262 by %c1_i32_217 dim 0 : vector<32x128xf32>, i32 -> vector<32x128xf32>
    %267 = vector.broadcast %12 : vector<32x1xf32> to vector<32x128xf32>
    %268 = arith.mulf %266, %267 : vector<32x128xf32>
    %269 = arith.addf %259, %268 : vector<32x128xf32>
    %c31_i32_218 = arith.constant 31 : i32
    %270 = tpu.dynamic_rotate %265 by %c31_i32_218 dim 0 : vector<32x128xf32>, i32 -> vector<32x128xf32>
    %271 = vector.broadcast %24 : vector<32x1xf32> to vector<32x128xf32>
    %272 = arith.mulf %270, %271 : vector<32x128xf32>
    %273 = arith.addf %269, %272 : vector<32x128xf32>
    %274 = vector.broadcast %256 : vector<1x128xf32> to vector<32x128xf32>
    %275 = arith.addf %273, %274 : vector<32x128xf32>
    %cst_219 = arith.constant 0.000000e+00 : f32
    %276 = vector.broadcast %cst_219 : f32 to vector<32x128xf32>
    %277 = arith.maximumf %275, %276 : vector<32x128xf32>
    %278 = arith.truncf %277 : vector<32x128xf32> to vector<32x128xbf16>
    %c0_220 = arith.constant 0 : index
    %c0_221 = arith.constant 0 : index
    %c0_222 = arith.constant 0 : index
    %c0_223 = arith.constant 0 : index
    %279 = vector.load %arg18[%c0_220, %c0_221, %c0_222, %c0_223] : memref<1x6x128x128xbf16, #tpu.memory_space<vmem>>, vector<1x1x128x128xbf16>
    %280 = vector.shape_cast %279 : vector<1x1x128x128xbf16> to vector<128x128xbf16>
    %c0_224 = arith.constant 0 : index
    %c0_225 = arith.constant 0 : index
    %c0_226 = arith.constant 0 : index
    %c0_227 = arith.constant 0 : index
    %281 = vector.load %arg19[%c0_224, %c0_225, %c0_226, %c0_227] : memref<1x6x1x128xf32, #tpu.memory_space<vmem>>, vector<1x1x1x128xf32>
    %282 = vector.shape_cast %281 : vector<1x1x1x128xf32> to vector<1x128xf32>
    %cst_228 = arith.constant dense<0.000000e+00> : vector<32x128xf32>
    %283 = tpu.matmul %278, %280, %cst_228 {dimension_numbers = #tpu.dot_dimension_numbers<[1], [0], [0], [1], [0, 0, 1, 1], [], []>} : vector<32x128xbf16>, vector<128x128xbf16>, vector<32x128xf32> -> vector<32x128xf32>
    %284 = vector.broadcast %282 : vector<1x128xf32> to vector<32x128xf32>
    %285 = arith.addf %283, %284 : vector<32x128xf32>
    %286 = arith.addf %253, %285 : vector<32x128xf32>
    %287 = arith.mulf %286, %5 : vector<32x128xf32>
    %288 = arith.truncf %287 : vector<32x128xf32> to vector<32x128xbf16>
    %c0_229 = arith.constant 0 : index
    %c1_230 = arith.constant 1 : index
    %c0_231 = arith.constant 0 : index
    %c0_232 = arith.constant 0 : index
    %289 = vector.load %arg17[%c0_229, %c1_230, %c0_231, %c0_232] : memref<1x6x1x128xf32, #tpu.memory_space<vmem>>, vector<1x1x1x128xf32>
    %290 = vector.shape_cast %289 : vector<1x1x1x128xf32> to vector<1x128xf32>
    %c0_233 = arith.constant 0 : index
    %c4_234 = arith.constant 4 : index
    %c0_235 = arith.constant 0 : index
    %c0_236 = arith.constant 0 : index
    %291 = vector.load %arg16[%c0_233, %c4_234, %c0_235, %c0_236] : memref<1x18x128x128xbf16, #tpu.memory_space<vmem>>, vector<1x1x128x128xbf16>
    %292 = vector.shape_cast %291 : vector<1x1x128x128xbf16> to vector<128x128xbf16>
    %cst_237 = arith.constant dense<0.000000e+00> : vector<32x128xf32>
    %293 = tpu.matmul %288, %292, %cst_237 {dimension_numbers = #tpu.dot_dimension_numbers<[1], [0], [0], [1], [0, 0, 1, 1], [], []>} : vector<32x128xbf16>, vector<128x128xbf16>, vector<32x128xf32> -> vector<32x128xf32>
    %c0_238 = arith.constant 0 : index
    %c3_239 = arith.constant 3 : index
    %c0_240 = arith.constant 0 : index
    %c0_241 = arith.constant 0 : index
    %294 = vector.load %arg16[%c0_238, %c3_239, %c0_240, %c0_241] : memref<1x18x128x128xbf16, #tpu.memory_space<vmem>>, vector<1x1x128x128xbf16>
    %295 = vector.shape_cast %294 : vector<1x1x128x128xbf16> to vector<128x128xbf16>
    %cst_242 = arith.constant dense<0.000000e+00> : vector<32x128xf32>
    %296 = tpu.matmul %288, %295, %cst_242 {dimension_numbers = #tpu.dot_dimension_numbers<[1], [0], [0], [1], [0, 0, 1, 1], [], []>} : vector<32x128xbf16>, vector<128x128xbf16>, vector<32x128xf32> -> vector<32x128xf32>
    %c0_243 = arith.constant 0 : index
    %c5_244 = arith.constant 5 : index
    %c0_245 = arith.constant 0 : index
    %c0_246 = arith.constant 0 : index
    %297 = vector.load %arg16[%c0_243, %c5_244, %c0_245, %c0_246] : memref<1x18x128x128xbf16, #tpu.memory_space<vmem>>, vector<1x1x128x128xbf16>
    %298 = vector.shape_cast %297 : vector<1x1x128x128xbf16> to vector<128x128xbf16>
    %cst_247 = arith.constant dense<0.000000e+00> : vector<32x128xf32>
    %299 = tpu.matmul %288, %298, %cst_247 {dimension_numbers = #tpu.dot_dimension_numbers<[1], [0], [0], [1], [0, 0, 1, 1], [], []>} : vector<32x128xbf16>, vector<128x128xbf16>, vector<32x128xf32> -> vector<32x128xf32>
    %c2_i32_248 = arith.constant 2 : i32
    %300 = tpu.dynamic_rotate %296 by %c2_i32_248 dim 0 : vector<32x128xf32>, i32 -> vector<32x128xf32>
    %301 = vector.broadcast %16 : vector<32x1xf32> to vector<32x128xf32>
    %302 = arith.mulf %300, %301 : vector<32x128xf32>
    %303 = arith.addf %293, %302 : vector<32x128xf32>
    %c30_i32_249 = arith.constant 30 : i32
    %304 = tpu.dynamic_rotate %299 by %c30_i32_249 dim 0 : vector<32x128xf32>, i32 -> vector<32x128xf32>
    %305 = vector.broadcast %28 : vector<32x1xf32> to vector<32x128xf32>
    %306 = arith.mulf %304, %305 : vector<32x128xf32>
    %307 = arith.addf %303, %306 : vector<32x128xf32>
    %308 = vector.broadcast %290 : vector<1x128xf32> to vector<32x128xf32>
    %309 = arith.addf %307, %308 : vector<32x128xf32>
    %cst_250 = arith.constant 0.000000e+00 : f32
    %310 = vector.broadcast %cst_250 : f32 to vector<32x128xf32>
    %311 = arith.maximumf %309, %310 : vector<32x128xf32>
    %312 = arith.truncf %311 : vector<32x128xf32> to vector<32x128xbf16>
    %c0_251 = arith.constant 0 : index
    %c1_252 = arith.constant 1 : index
    %c0_253 = arith.constant 0 : index
    %c0_254 = arith.constant 0 : index
    %313 = vector.load %arg18[%c0_251, %c1_252, %c0_253, %c0_254] : memref<1x6x128x128xbf16, #tpu.memory_space<vmem>>, vector<1x1x128x128xbf16>
    %314 = vector.shape_cast %313 : vector<1x1x128x128xbf16> to vector<128x128xbf16>
    %c0_255 = arith.constant 0 : index
    %c1_256 = arith.constant 1 : index
    %c0_257 = arith.constant 0 : index
    %c0_258 = arith.constant 0 : index
    %315 = vector.load %arg19[%c0_255, %c1_256, %c0_257, %c0_258] : memref<1x6x1x128xf32, #tpu.memory_space<vmem>>, vector<1x1x1x128xf32>
    %316 = vector.shape_cast %315 : vector<1x1x1x128xf32> to vector<1x128xf32>
    %cst_259 = arith.constant dense<0.000000e+00> : vector<32x128xf32>
    %317 = tpu.matmul %312, %314, %cst_259 {dimension_numbers = #tpu.dot_dimension_numbers<[1], [0], [0], [1], [0, 0, 1, 1], [], []>} : vector<32x128xbf16>, vector<128x128xbf16>, vector<32x128xf32> -> vector<32x128xf32>
    %318 = vector.broadcast %316 : vector<1x128xf32> to vector<32x128xf32>
    %319 = arith.addf %317, %318 : vector<32x128xf32>
    %320 = arith.addf %287, %319 : vector<32x128xf32>
    %321 = arith.mulf %320, %5 : vector<32x128xf32>
    %322 = arith.truncf %321 : vector<32x128xf32> to vector<32x128xbf16>
    %c0_260 = arith.constant 0 : index
    %c2_261 = arith.constant 2 : index
    %c0_262 = arith.constant 0 : index
    %c0_263 = arith.constant 0 : index
    %323 = vector.load %arg17[%c0_260, %c2_261, %c0_262, %c0_263] : memref<1x6x1x128xf32, #tpu.memory_space<vmem>>, vector<1x1x1x128xf32>
    %324 = vector.shape_cast %323 : vector<1x1x1x128xf32> to vector<1x128xf32>
    %c0_264 = arith.constant 0 : index
    %c7_265 = arith.constant 7 : index
    %c0_266 = arith.constant 0 : index
    %c0_267 = arith.constant 0 : index
    %325 = vector.load %arg16[%c0_264, %c7_265, %c0_266, %c0_267] : memref<1x18x128x128xbf16, #tpu.memory_space<vmem>>, vector<1x1x128x128xbf16>
    %326 = vector.shape_cast %325 : vector<1x1x128x128xbf16> to vector<128x128xbf16>
    %cst_268 = arith.constant dense<0.000000e+00> : vector<32x128xf32>
    %327 = tpu.matmul %322, %326, %cst_268 {dimension_numbers = #tpu.dot_dimension_numbers<[1], [0], [0], [1], [0, 0, 1, 1], [], []>} : vector<32x128xbf16>, vector<128x128xbf16>, vector<32x128xf32> -> vector<32x128xf32>
    %c0_269 = arith.constant 0 : index
    %c6_270 = arith.constant 6 : index
    %c0_271 = arith.constant 0 : index
    %c0_272 = arith.constant 0 : index
    %328 = vector.load %arg16[%c0_269, %c6_270, %c0_271, %c0_272] : memref<1x18x128x128xbf16, #tpu.memory_space<vmem>>, vector<1x1x128x128xbf16>
    %329 = vector.shape_cast %328 : vector<1x1x128x128xbf16> to vector<128x128xbf16>
    %cst_273 = arith.constant dense<0.000000e+00> : vector<32x128xf32>
    %330 = tpu.matmul %322, %329, %cst_273 {dimension_numbers = #tpu.dot_dimension_numbers<[1], [0], [0], [1], [0, 0, 1, 1], [], []>} : vector<32x128xbf16>, vector<128x128xbf16>, vector<32x128xf32> -> vector<32x128xf32>
    %c0_274 = arith.constant 0 : index
    %c8_275 = arith.constant 8 : index
    %c0_276 = arith.constant 0 : index
    %c0_277 = arith.constant 0 : index
    %331 = vector.load %arg16[%c0_274, %c8_275, %c0_276, %c0_277] : memref<1x18x128x128xbf16, #tpu.memory_space<vmem>>, vector<1x1x128x128xbf16>
    %332 = vector.shape_cast %331 : vector<1x1x128x128xbf16> to vector<128x128xbf16>
    %cst_278 = arith.constant dense<0.000000e+00> : vector<32x128xf32>
    %333 = tpu.matmul %322, %332, %cst_278 {dimension_numbers = #tpu.dot_dimension_numbers<[1], [0], [0], [1], [0, 0, 1, 1], [], []>} : vector<32x128xbf16>, vector<128x128xbf16>, vector<32x128xf32> -> vector<32x128xf32>
    %c4_i32_279 = arith.constant 4 : i32
    %334 = tpu.dynamic_rotate %330 by %c4_i32_279 dim 0 : vector<32x128xf32>, i32 -> vector<32x128xf32>
    %335 = vector.broadcast %20 : vector<32x1xf32> to vector<32x128xf32>
    %336 = arith.mulf %334, %335 : vector<32x128xf32>
    %337 = arith.addf %327, %336 : vector<32x128xf32>
    %c28_i32_280 = arith.constant 28 : i32
    %338 = tpu.dynamic_rotate %333 by %c28_i32_280 dim 0 : vector<32x128xf32>, i32 -> vector<32x128xf32>
    %339 = vector.broadcast %32 : vector<32x1xf32> to vector<32x128xf32>
    %340 = arith.mulf %338, %339 : vector<32x128xf32>
    %341 = arith.addf %337, %340 : vector<32x128xf32>
    %342 = vector.broadcast %324 : vector<1x128xf32> to vector<32x128xf32>
    %343 = arith.addf %341, %342 : vector<32x128xf32>
    %cst_281 = arith.constant 0.000000e+00 : f32
    %344 = vector.broadcast %cst_281 : f32 to vector<32x128xf32>
    %345 = arith.maximumf %343, %344 : vector<32x128xf32>
    %346 = arith.truncf %345 : vector<32x128xf32> to vector<32x128xbf16>
    %c0_282 = arith.constant 0 : index
    %c2_283 = arith.constant 2 : index
    %c0_284 = arith.constant 0 : index
    %c0_285 = arith.constant 0 : index
    %347 = vector.load %arg18[%c0_282, %c2_283, %c0_284, %c0_285] : memref<1x6x128x128xbf16, #tpu.memory_space<vmem>>, vector<1x1x128x128xbf16>
    %348 = vector.shape_cast %347 : vector<1x1x128x128xbf16> to vector<128x128xbf16>
    %c0_286 = arith.constant 0 : index
    %c2_287 = arith.constant 2 : index
    %c0_288 = arith.constant 0 : index
    %c0_289 = arith.constant 0 : index
    %349 = vector.load %arg19[%c0_286, %c2_287, %c0_288, %c0_289] : memref<1x6x1x128xf32, #tpu.memory_space<vmem>>, vector<1x1x1x128xf32>
    %350 = vector.shape_cast %349 : vector<1x1x1x128xf32> to vector<1x128xf32>
    %cst_290 = arith.constant dense<0.000000e+00> : vector<32x128xf32>
    %351 = tpu.matmul %346, %348, %cst_290 {dimension_numbers = #tpu.dot_dimension_numbers<[1], [0], [0], [1], [0, 0, 1, 1], [], []>} : vector<32x128xbf16>, vector<128x128xbf16>, vector<32x128xf32> -> vector<32x128xf32>
    %352 = vector.broadcast %350 : vector<1x128xf32> to vector<32x128xf32>
    %353 = arith.addf %351, %352 : vector<32x128xf32>
    %354 = arith.addf %321, %353 : vector<32x128xf32>
    %355 = arith.mulf %354, %5 : vector<32x128xf32>
    %356 = arith.truncf %355 : vector<32x128xf32> to vector<32x128xbf16>
    %c0_291 = arith.constant 0 : index
    %c0_292 = arith.constant 0 : index
    %c0_293 = arith.constant 0 : index
    %c0_294 = arith.constant 0 : index
    %357 = vector.load %arg20[%c0_291, %c0_292, %c0_293, %c0_294] : memref<1x2x128x128xbf16, #tpu.memory_space<vmem>>, vector<1x1x128x128xbf16>
    %358 = vector.shape_cast %357 : vector<1x1x128x128xbf16> to vector<128x128xbf16>
    %c0_295 = arith.constant 0 : index
    %c0_296 = arith.constant 0 : index
    %c0_297 = arith.constant 0 : index
    %c0_298 = arith.constant 0 : index
    %359 = vector.load %arg21[%c0_295, %c0_296, %c0_297, %c0_298] : memref<1x2x1x128xf32, #tpu.memory_space<vmem>>, vector<1x1x1x128xf32>
    %360 = vector.shape_cast %359 : vector<1x1x1x128xf32> to vector<1x128xf32>
    %cst_299 = arith.constant dense<0.000000e+00> : vector<32x128xf32>
    %361 = tpu.matmul %356, %358, %cst_299 {dimension_numbers = #tpu.dot_dimension_numbers<[1], [0], [0], [1], [0, 0, 1, 1], [], []>} : vector<32x128xbf16>, vector<128x128xbf16>, vector<32x128xf32> -> vector<32x128xf32>
    %362 = vector.broadcast %360 : vector<1x128xf32> to vector<32x128xf32>
    %363 = arith.addf %361, %362 : vector<32x128xf32>
    %364 = arith.mulf %363, %7 : vector<32x128xf32>
    %c0_300 = arith.constant 0 : index
    %c0_301 = arith.constant 0 : index
    %c1_302 = arith.constant 1 : index
    %c0_303 = arith.constant 0 : index
    %c0_304 = arith.constant 0 : index
    %365 = vector.load %arg22[%c0_300, %c0_301, %c1_302, %c0_303, %c0_304] : memref<1x1x3x32x128xf32, #tpu.memory_space<vmem>>, vector<1x1x1x32x128xf32>
    %366 = vector.shape_cast %365 : vector<1x1x1x32x128xf32> to vector<32x128xf32>
    %367 = vector.shape_cast %364 : vector<32x128xf32> to vector<1x1x1x32x128xf32>
    tpu.vector_store %arg22[%c0_300, %c0_301, %c1_302, %c0_303, %c0_304], %367 {strides = array<i32>} : memref<1x1x3x32x128xf32, #tpu.memory_space<vmem>>, vector<1x1x1x32x128xf32>,
    %cst_305 = arith.constant -1.000000e+30 : f32
    %368 = vector.broadcast %cst_305 : f32 to vector<32x128xf32>
    %369 = arith.select %35, %364, %368 : vector<32x128xi1>, vector<32x128xf32>
    %cst_306 = arith.constant dense<0xFF800000> : vector<32xf32>
    %370 = vector.multi_reduction <maximumf>, %369, %cst_306 [1] : vector<32x128xf32> to vector<32xf32>
    %371 = vector.shape_cast %370 : vector<32xf32> to vector<32x1xf32>
    %372 = vector.broadcast %371 : vector<32x1xf32> to vector<32x128xf32>
    %373 = arith.subf %369, %372 : vector<32x128xf32>
    %374 = math.exp %373 : vector<32x128xf32>
    %cst_307 = arith.constant dense<0.000000e+00> : vector<32xf32>
    %375 = vector.multi_reduction <add>, %374, %cst_307 [1] : vector<32x128xf32> to vector<32xf32>
    %376 = vector.shape_cast %375 : vector<32xf32> to vector<32x1xf32>
    %377 = tpu.reciprocal %376 : vector<32x1xf32> -> vector<32x1xf32>
    %378 = vector.broadcast %377 : vector<32x1xf32> to vector<32x128xf32>
    %379 = arith.mulf %374, %378 : vector<32x128xf32>
    %380 = arith.mulf %379, %7 : vector<32x128xf32>
    %381 = arith.truncf %380 : vector<32x128xf32> to vector<32x128xbf16>
    %c0_308 = arith.constant 0 : index
    %c1_309 = arith.constant 1 : index
    %c0_310 = arith.constant 0 : index
    %c0_311 = arith.constant 0 : index
    %382 = vector.load %arg14[%c0_308, %c1_309, %c0_310, %c0_311] : memref<1x2x128x128xbf16, #tpu.memory_space<vmem>>, vector<1x1x128x128xbf16>
    %383 = vector.shape_cast %382 : vector<1x1x128x128xbf16> to vector<128x128xbf16>
    %c0_312 = arith.constant 0 : index
    %c1_313 = arith.constant 1 : index
    %c0_314 = arith.constant 0 : index
    %c0_315 = arith.constant 0 : index
    %384 = vector.load %arg15[%c0_312, %c1_313, %c0_314, %c0_315] : memref<1x2x1x128xf32, #tpu.memory_space<vmem>>, vector<1x1x1x128xf32>
    %385 = vector.shape_cast %384 : vector<1x1x1x128xf32> to vector<1x128xf32>
    %cst_316 = arith.constant dense<0.000000e+00> : vector<32x128xf32>
    %386 = tpu.matmul %381, %383, %cst_316 {dimension_numbers = #tpu.dot_dimension_numbers<[1], [0], [0], [1], [0, 0, 1, 1], [], []>} : vector<32x128xbf16>, vector<128x128xbf16>, vector<32x128xf32> -> vector<32x128xf32>
    %387 = vector.broadcast %385 : vector<1x128xf32> to vector<32x128xf32>
    %388 = arith.addf %386, %387 : vector<32x128xf32>
    %389 = arith.truncf %388 : vector<32x128xf32> to vector<32x128xbf16>
    %c0_317 = arith.constant 0 : index
    %c3_318 = arith.constant 3 : index
    %c0_319 = arith.constant 0 : index
    %c0_320 = arith.constant 0 : index
    %390 = vector.load %arg17[%c0_317, %c3_318, %c0_319, %c0_320] : memref<1x6x1x128xf32, #tpu.memory_space<vmem>>, vector<1x1x1x128xf32>
    %391 = vector.shape_cast %390 : vector<1x1x1x128xf32> to vector<1x128xf32>
    %c0_321 = arith.constant 0 : index
    %c10 = arith.constant 10 : index
    %c0_322 = arith.constant 0 : index
    %c0_323 = arith.constant 0 : index
    %392 = vector.load %arg16[%c0_321, %c10, %c0_322, %c0_323] : memref<1x18x128x128xbf16, #tpu.memory_space<vmem>>, vector<1x1x128x128xbf16>
    %393 = vector.shape_cast %392 : vector<1x1x128x128xbf16> to vector<128x128xbf16>
    %cst_324 = arith.constant dense<0.000000e+00> : vector<32x128xf32>
    %394 = tpu.matmul %389, %393, %cst_324 {dimension_numbers = #tpu.dot_dimension_numbers<[1], [0], [0], [1], [0, 0, 1, 1], [], []>} : vector<32x128xbf16>, vector<128x128xbf16>, vector<32x128xf32> -> vector<32x128xf32>
    %c0_325 = arith.constant 0 : index
    %c9 = arith.constant 9 : index
    %c0_326 = arith.constant 0 : index
    %c0_327 = arith.constant 0 : index
    %395 = vector.load %arg16[%c0_325, %c9, %c0_326, %c0_327] : memref<1x18x128x128xbf16, #tpu.memory_space<vmem>>, vector<1x1x128x128xbf16>
    %396 = vector.shape_cast %395 : vector<1x1x128x128xbf16> to vector<128x128xbf16>
    %cst_328 = arith.constant dense<0.000000e+00> : vector<32x128xf32>
    %397 = tpu.matmul %389, %396, %cst_328 {dimension_numbers = #tpu.dot_dimension_numbers<[1], [0], [0], [1], [0, 0, 1, 1], [], []>} : vector<32x128xbf16>, vector<128x128xbf16>, vector<32x128xf32> -> vector<32x128xf32>
    %c0_329 = arith.constant 0 : index
    %c11 = arith.constant 11 : index
    %c0_330 = arith.constant 0 : index
    %c0_331 = arith.constant 0 : index
    %398 = vector.load %arg16[%c0_329, %c11, %c0_330, %c0_331] : memref<1x18x128x128xbf16, #tpu.memory_space<vmem>>, vector<1x1x128x128xbf16>
    %399 = vector.shape_cast %398 : vector<1x1x128x128xbf16> to vector<128x128xbf16>
    %cst_332 = arith.constant dense<0.000000e+00> : vector<32x128xf32>
    %400 = tpu.matmul %389, %399, %cst_332 {dimension_numbers = #tpu.dot_dimension_numbers<[1], [0], [0], [1], [0, 0, 1, 1], [], []>} : vector<32x128xbf16>, vector<128x128xbf16>, vector<32x128xf32> -> vector<32x128xf32>
    %c1_i32_333 = arith.constant 1 : i32
    %401 = tpu.dynamic_rotate %397 by %c1_i32_333 dim 0 : vector<32x128xf32>, i32 -> vector<32x128xf32>
    %402 = vector.broadcast %12 : vector<32x1xf32> to vector<32x128xf32>
    %403 = arith.mulf %401, %402 : vector<32x128xf32>
    %404 = arith.addf %394, %403 : vector<32x128xf32>
    %c31_i32_334 = arith.constant 31 : i32
    %405 = tpu.dynamic_rotate %400 by %c31_i32_334 dim 0 : vector<32x128xf32>, i32 -> vector<32x128xf32>
    %406 = vector.broadcast %24 : vector<32x1xf32> to vector<32x128xf32>
    %407 = arith.mulf %405, %406 : vector<32x128xf32>
    %408 = arith.addf %404, %407 : vector<32x128xf32>
    %409 = vector.broadcast %391 : vector<1x128xf32> to vector<32x128xf32>
    %410 = arith.addf %408, %409 : vector<32x128xf32>
    %cst_335 = arith.constant 0.000000e+00 : f32
    %411 = vector.broadcast %cst_335 : f32 to vector<32x128xf32>
    %412 = arith.maximumf %410, %411 : vector<32x128xf32>
    %413 = arith.truncf %412 : vector<32x128xf32> to vector<32x128xbf16>
    %c0_336 = arith.constant 0 : index
    %c3_337 = arith.constant 3 : index
    %c0_338 = arith.constant 0 : index
    %c0_339 = arith.constant 0 : index
    %414 = vector.load %arg18[%c0_336, %c3_337, %c0_338, %c0_339] : memref<1x6x128x128xbf16, #tpu.memory_space<vmem>>, vector<1x1x128x128xbf16>
    %415 = vector.shape_cast %414 : vector<1x1x128x128xbf16> to vector<128x128xbf16>
    %c0_340 = arith.constant 0 : index
    %c3_341 = arith.constant 3 : index
    %c0_342 = arith.constant 0 : index
    %c0_343 = arith.constant 0 : index
    %416 = vector.load %arg19[%c0_340, %c3_341, %c0_342, %c0_343] : memref<1x6x1x128xf32, #tpu.memory_space<vmem>>, vector<1x1x1x128xf32>
    %417 = vector.shape_cast %416 : vector<1x1x1x128xf32> to vector<1x128xf32>
    %cst_344 = arith.constant dense<0.000000e+00> : vector<32x128xf32>
    %418 = tpu.matmul %413, %415, %cst_344 {dimension_numbers = #tpu.dot_dimension_numbers<[1], [0], [0], [1], [0, 0, 1, 1], [], []>} : vector<32x128xbf16>, vector<128x128xbf16>, vector<32x128xf32> -> vector<32x128xf32>
    %419 = vector.broadcast %417 : vector<1x128xf32> to vector<32x128xf32>
    %420 = arith.addf %418, %419 : vector<32x128xf32>
    %421 = arith.addf %388, %420 : vector<32x128xf32>
    %422 = arith.mulf %421, %5 : vector<32x128xf32>
    %423 = arith.truncf %422 : vector<32x128xf32> to vector<32x128xbf16>
    %c0_345 = arith.constant 0 : index
    %c4_346 = arith.constant 4 : index
    %c0_347 = arith.constant 0 : index
    %c0_348 = arith.constant 0 : index
    %424 = vector.load %arg17[%c0_345, %c4_346, %c0_347, %c0_348] : memref<1x6x1x128xf32, #tpu.memory_space<vmem>>, vector<1x1x1x128xf32>
    %425 = vector.shape_cast %424 : vector<1x1x1x128xf32> to vector<1x128xf32>
    %c0_349 = arith.constant 0 : index
    %c13 = arith.constant 13 : index
    %c0_350 = arith.constant 0 : index
    %c0_351 = arith.constant 0 : index
    %426 = vector.load %arg16[%c0_349, %c13, %c0_350, %c0_351] : memref<1x18x128x128xbf16, #tpu.memory_space<vmem>>, vector<1x1x128x128xbf16>
    %427 = vector.shape_cast %426 : vector<1x1x128x128xbf16> to vector<128x128xbf16>
    %cst_352 = arith.constant dense<0.000000e+00> : vector<32x128xf32>
    %428 = tpu.matmul %423, %427, %cst_352 {dimension_numbers = #tpu.dot_dimension_numbers<[1], [0], [0], [1], [0, 0, 1, 1], [], []>} : vector<32x128xbf16>, vector<128x128xbf16>, vector<32x128xf32> -> vector<32x128xf32>
    %c0_353 = arith.constant 0 : index
    %c12 = arith.constant 12 : index
    %c0_354 = arith.constant 0 : index
    %c0_355 = arith.constant 0 : index
    %429 = vector.load %arg16[%c0_353, %c12, %c0_354, %c0_355] : memref<1x18x128x128xbf16, #tpu.memory_space<vmem>>, vector<1x1x128x128xbf16>
    %430 = vector.shape_cast %429 : vector<1x1x128x128xbf16> to vector<128x128xbf16>
    %cst_356 = arith.constant dense<0.000000e+00> : vector<32x128xf32>
    %431 = tpu.matmul %423, %430, %cst_356 {dimension_numbers = #tpu.dot_dimension_numbers<[1], [0], [0], [1], [0, 0, 1, 1], [], []>} : vector<32x128xbf16>, vector<128x128xbf16>, vector<32x128xf32> -> vector<32x128xf32>
    %c0_357 = arith.constant 0 : index
    %c14 = arith.constant 14 : index
    %c0_358 = arith.constant 0 : index
    %c0_359 = arith.constant 0 : index
    %432 = vector.load %arg16[%c0_357, %c14, %c0_358, %c0_359] : memref<1x18x128x128xbf16, #tpu.memory_space<vmem>>, vector<1x1x128x128xbf16>
    %433 = vector.shape_cast %432 : vector<1x1x128x128xbf16> to vector<128x128xbf16>
    %cst_360 = arith.constant dense<0.000000e+00> : vector<32x128xf32>
    %434 = tpu.matmul %423, %433, %cst_360 {dimension_numbers = #tpu.dot_dimension_numbers<[1], [0], [0], [1], [0, 0, 1, 1], [], []>} : vector<32x128xbf16>, vector<128x128xbf16>, vector<32x128xf32> -> vector<32x128xf32>
    %c2_i32_361 = arith.constant 2 : i32
    %435 = tpu.dynamic_rotate %431 by %c2_i32_361 dim 0 : vector<32x128xf32>, i32 -> vector<32x128xf32>
    %436 = vector.broadcast %16 : vector<32x1xf32> to vector<32x128xf32>
    %437 = arith.mulf %435, %436 : vector<32x128xf32>
    %438 = arith.addf %428, %437 : vector<32x128xf32>
    %c30_i32_362 = arith.constant 30 : i32
    %439 = tpu.dynamic_rotate %434 by %c30_i32_362 dim 0 : vector<32x128xf32>, i32 -> vector<32x128xf32>
    %440 = vector.broadcast %28 : vector<32x1xf32> to vector<32x128xf32>
    %441 = arith.mulf %439, %440 : vector<32x128xf32>
    %442 = arith.addf %438, %441 : vector<32x128xf32>
    %443 = vector.broadcast %425 : vector<1x128xf32> to vector<32x128xf32>
    %444 = arith.addf %442, %443 : vector<32x128xf32>
    %cst_363 = arith.constant 0.000000e+00 : f32
    %445 = vector.broadcast %cst_363 : f32 to vector<32x128xf32>
    %446 = arith.maximumf %444, %445 : vector<32x128xf32>
    %447 = arith.truncf %446 : vector<32x128xf32> to vector<32x128xbf16>
    %c0_364 = arith.constant 0 : index
    %c4_365 = arith.constant 4 : index
    %c0_366 = arith.constant 0 : index
    %c0_367 = arith.constant 0 : index
    %448 = vector.load %arg18[%c0_364, %c4_365, %c0_366, %c0_367] : memref<1x6x128x128xbf16, #tpu.memory_space<vmem>>, vector<1x1x128x128xbf16>
    %449 = vector.shape_cast %448 : vector<1x1x128x128xbf16> to vector<128x128xbf16>
    %c0_368 = arith.constant 0 : index
    %c4_369 = arith.constant 4 : index
    %c0_370 = arith.constant 0 : index
    %c0_371 = arith.constant 0 : index
    %450 = vector.load %arg19[%c0_368, %c4_369, %c0_370, %c0_371] : memref<1x6x1x128xf32, #tpu.memory_space<vmem>>, vector<1x1x1x128xf32>
    %451 = vector.shape_cast %450 : vector<1x1x1x128xf32> to vector<1x128xf32>
    %cst_372 = arith.constant dense<0.000000e+00> : vector<32x128xf32>
    %452 = tpu.matmul %447, %449, %cst_372 {dimension_numbers = #tpu.dot_dimension_numbers<[1], [0], [0], [1], [0, 0, 1, 1], [], []>} : vector<32x128xbf16>, vector<128x128xbf16>, vector<32x128xf32> -> vector<32x128xf32>
    %453 = vector.broadcast %451 : vector<1x128xf32> to vector<32x128xf32>
    %454 = arith.addf %452, %453 : vector<32x128xf32>
    %455 = arith.addf %422, %454 : vector<32x128xf32>
    %456 = arith.mulf %455, %5 : vector<32x128xf32>
    %457 = arith.truncf %456 : vector<32x128xf32> to vector<32x128xbf16>
    %c0_373 = arith.constant 0 : index
    %c5_374 = arith.constant 5 : index
    %c0_375 = arith.constant 0 : index
    %c0_376 = arith.constant 0 : index
    %458 = vector.load %arg17[%c0_373, %c5_374, %c0_375, %c0_376] : memref<1x6x1x128xf32, #tpu.memory_space<vmem>>, vector<1x1x1x128xf32>
    %459 = vector.shape_cast %458 : vector<1x1x1x128xf32> to vector<1x128xf32>
    %c0_377 = arith.constant 0 : index
    %c16 = arith.constant 16 : index
    %c0_378 = arith.constant 0 : index
    %c0_379 = arith.constant 0 : index
    %460 = vector.load %arg16[%c0_377, %c16, %c0_378, %c0_379] : memref<1x18x128x128xbf16, #tpu.memory_space<vmem>>, vector<1x1x128x128xbf16>
    %461 = vector.shape_cast %460 : vector<1x1x128x128xbf16> to vector<128x128xbf16>
    %cst_380 = arith.constant dense<0.000000e+00> : vector<32x128xf32>
    %462 = tpu.matmul %457, %461, %cst_380 {dimension_numbers = #tpu.dot_dimension_numbers<[1], [0], [0], [1], [0, 0, 1, 1], [], []>} : vector<32x128xbf16>, vector<128x128xbf16>, vector<32x128xf32> -> vector<32x128xf32>
    %c0_381 = arith.constant 0 : index
    %c15 = arith.constant 15 : index
    %c0_382 = arith.constant 0 : index
    %c0_383 = arith.constant 0 : index
    %463 = vector.load %arg16[%c0_381, %c15, %c0_382, %c0_383] : memref<1x18x128x128xbf16, #tpu.memory_space<vmem>>, vector<1x1x128x128xbf16>
    %464 = vector.shape_cast %463 : vector<1x1x128x128xbf16> to vector<128x128xbf16>
    %cst_384 = arith.constant dense<0.000000e+00> : vector<32x128xf32>
    %465 = tpu.matmul %457, %464, %cst_384 {dimension_numbers = #tpu.dot_dimension_numbers<[1], [0], [0], [1], [0, 0, 1, 1], [], []>} : vector<32x128xbf16>, vector<128x128xbf16>, vector<32x128xf32> -> vector<32x128xf32>
    %c0_385 = arith.constant 0 : index
    %c17 = arith.constant 17 : index
    %c0_386 = arith.constant 0 : index
    %c0_387 = arith.constant 0 : index
    %466 = vector.load %arg16[%c0_385, %c17, %c0_386, %c0_387] : memref<1x18x128x128xbf16, #tpu.memory_space<vmem>>, vector<1x1x128x128xbf16>
    %467 = vector.shape_cast %466 : vector<1x1x128x128xbf16> to vector<128x128xbf16>
    %cst_388 = arith.constant dense<0.000000e+00> : vector<32x128xf32>
    %468 = tpu.matmul %457, %467, %cst_388 {dimension_numbers = #tpu.dot_dimension_numbers<[1], [0], [0], [1], [0, 0, 1, 1], [], []>} : vector<32x128xbf16>, vector<128x128xbf16>, vector<32x128xf32> -> vector<32x128xf32>
    %c4_i32_389 = arith.constant 4 : i32
    %469 = tpu.dynamic_rotate %465 by %c4_i32_389 dim 0 : vector<32x128xf32>, i32 -> vector<32x128xf32>
    %470 = vector.broadcast %20 : vector<32x1xf32> to vector<32x128xf32>
    %471 = arith.mulf %469, %470 : vector<32x128xf32>
    %472 = arith.addf %462, %471 : vector<32x128xf32>
    %c28_i32_390 = arith.constant 28 : i32
    %473 = tpu.dynamic_rotate %468 by %c28_i32_390 dim 0 : vector<32x128xf32>, i32 -> vector<32x128xf32>
    %474 = vector.broadcast %32 : vector<32x1xf32> to vector<32x128xf32>
    %475 = arith.mulf %473, %474 : vector<32x128xf32>
    %476 = arith.addf %472, %475 : vector<32x128xf32>
    %477 = vector.broadcast %459 : vector<1x128xf32> to vector<32x128xf32>
    %478 = arith.addf %476, %477 : vector<32x128xf32>
    %cst_391 = arith.constant 0.000000e+00 : f32
    %479 = vector.broadcast %cst_391 : f32 to vector<32x128xf32>
    %480 = arith.maximumf %478, %479 : vector<32x128xf32>
    %481 = arith.truncf %480 : vector<32x128xf32> to vector<32x128xbf16>
    %c0_392 = arith.constant 0 : index
    %c5_393 = arith.constant 5 : index
    %c0_394 = arith.constant 0 : index
    %c0_395 = arith.constant 0 : index
    %482 = vector.load %arg18[%c0_392, %c5_393, %c0_394, %c0_395] : memref<1x6x128x128xbf16, #tpu.memory_space<vmem>>, vector<1x1x128x128xbf16>
    %483 = vector.shape_cast %482 : vector<1x1x128x128xbf16> to vector<128x128xbf16>
    %c0_396 = arith.constant 0 : index
    %c5_397 = arith.constant 5 : index
    %c0_398 = arith.constant 0 : index
    %c0_399 = arith.constant 0 : index
    %484 = vector.load %arg19[%c0_396, %c5_397, %c0_398, %c0_399] : memref<1x6x1x128xf32, #tpu.memory_space<vmem>>, vector<1x1x1x128xf32>
    %485 = vector.shape_cast %484 : vector<1x1x1x128xf32> to vector<1x128xf32>
    %cst_400 = arith.constant dense<0.000000e+00> : vector<32x128xf32>
    %486 = tpu.matmul %481, %483, %cst_400 {dimension_numbers = #tpu.dot_dimension_numbers<[1], [0], [0], [1], [0, 0, 1, 1], [], []>} : vector<32x128xbf16>, vector<128x128xbf16>, vector<32x128xf32> -> vector<32x128xf32>
    %487 = vector.broadcast %485 : vector<1x128xf32> to vector<32x128xf32>
    %488 = arith.addf %486, %487 : vector<32x128xf32>
    %489 = arith.addf %456, %488 : vector<32x128xf32>
    %490 = arith.mulf %489, %5 : vector<32x128xf32>
    %491 = arith.truncf %490 : vector<32x128xf32> to vector<32x128xbf16>
    %c0_401 = arith.constant 0 : index
    %c1_402 = arith.constant 1 : index
    %c0_403 = arith.constant 0 : index
    %c0_404 = arith.constant 0 : index
    %492 = vector.load %arg20[%c0_401, %c1_402, %c0_403, %c0_404] : memref<1x2x128x128xbf16, #tpu.memory_space<vmem>>, vector<1x1x128x128xbf16>
    %493 = vector.shape_cast %492 : vector<1x1x128x128xbf16> to vector<128x128xbf16>
    %c0_405 = arith.constant 0 : index
    %c1_406 = arith.constant 1 : index
    %c0_407 = arith.constant 0 : index
    %c0_408 = arith.constant 0 : index
    %494 = vector.load %arg21[%c0_405, %c1_406, %c0_407, %c0_408] : memref<1x2x1x128xf32, #tpu.memory_space<vmem>>, vector<1x1x1x128xf32>
    %495 = vector.shape_cast %494 : vector<1x1x1x128xf32> to vector<1x128xf32>
    %cst_409 = arith.constant dense<0.000000e+00> : vector<32x128xf32>
    %496 = tpu.matmul %491, %493, %cst_409 {dimension_numbers = #tpu.dot_dimension_numbers<[1], [0], [0], [1], [0, 0, 1, 1], [], []>} : vector<32x128xbf16>, vector<128x128xbf16>, vector<32x128xf32> -> vector<32x128xf32>
    %497 = vector.broadcast %495 : vector<1x128xf32> to vector<32x128xf32>
    %498 = arith.addf %496, %497 : vector<32x128xf32>
    %499 = arith.mulf %498, %7 : vector<32x128xf32>
    %c0_410 = arith.constant 0 : index
    %c0_411 = arith.constant 0 : index
    %c2_412 = arith.constant 2 : index
    %c0_413 = arith.constant 0 : index
    %c0_414 = arith.constant 0 : index
    %500 = vector.load %arg22[%c0_410, %c0_411, %c2_412, %c0_413, %c0_414] : memref<1x1x3x32x128xf32, #tpu.memory_space<vmem>>, vector<1x1x1x32x128xf32>
    %501 = vector.shape_cast %500 : vector<1x1x1x32x128xf32> to vector<32x128xf32>
    %502 = vector.shape_cast %499 : vector<32x128xf32> to vector<1x1x1x32x128xf32>
    tpu.vector_store %arg22[%c0_410, %c0_411, %c2_412, %c0_413, %c0_414], %502 {strides = array<i32>} : memref<1x1x3x32x128xf32, #tpu.memory_space<vmem>>, vector<1x1x1x32x128xf32>,
    return
  }
  func.func @transform_0(%arg0: i32, %arg1: i32) -> (i32, i32, i32) {
    %c0_i32 = arith.constant 0 : i32
    %c0_i32_0 = arith.constant 0 : i32
    %c0_i32_1 = arith.constant 0 : i32
    return %arg1, %c0_i32, %c0_i32_0 : i32, i32, i32
  }
  func.func @transform_1(%arg0: i32, %arg1: i32) -> (i32, i32, i32) {
    %c0_i32 = arith.constant 0 : i32
    %c0_i32_0 = arith.constant 0 : i32
    %c0_i32_1 = arith.constant 0 : i32
    return %arg1, %c0_i32, %c0_i32_0 : i32, i32, i32
  }
  func.func @transform_2(%arg0: i32, %arg1: i32) -> (i32, i32, i32) {
    %c0_i32 = arith.constant 0 : i32
    %c0_i32_0 = arith.constant 0 : i32
    %c0_i32_1 = arith.constant 0 : i32
    return %arg0, %c0_i32, %c0_i32_0 : i32, i32, i32
  }
  func.func @transform_3(%arg0: i32, %arg1: i32) -> (i32, i32, i32) {
    %c0_i32 = arith.constant 0 : i32
    %c0_i32_0 = arith.constant 0 : i32
    %c0_i32_1 = arith.constant 0 : i32
    return %arg0, %c0_i32, %c0_i32_0 : i32, i32, i32
  }
  func.func @transform_4(%arg0: i32, %arg1: i32) -> (i32, i32, i32, i32) {
    %c0_i32 = arith.constant 0 : i32
    %c0_i32_0 = arith.constant 0 : i32
    %c0_i32_1 = arith.constant 0 : i32
    %c0_i32_2 = arith.constant 0 : i32
    return %arg0, %c0_i32, %c0_i32_0, %c0_i32_1 : i32, i32, i32, i32
  }
  func.func @transform_5(%arg0: i32, %arg1: i32) -> (i32, i32, i32, i32) {
    %c0_i32 = arith.constant 0 : i32
    %c0_i32_0 = arith.constant 0 : i32
    %c0_i32_1 = arith.constant 0 : i32
    %c0_i32_2 = arith.constant 0 : i32
    return %arg0, %c0_i32, %c0_i32_0, %c0_i32_1 : i32, i32, i32, i32
  }
  func.func @transform_6(%arg0: i32, %arg1: i32) -> (i32, i32, i32, i32) {
    %c0_i32 = arith.constant 0 : i32
    %c0_i32_0 = arith.constant 0 : i32
    %c0_i32_1 = arith.constant 0 : i32
    %c0_i32_2 = arith.constant 0 : i32
    return %arg0, %c0_i32, %c0_i32_0, %c0_i32_1 : i32, i32, i32, i32
  }
  func.func @transform_7(%arg0: i32, %arg1: i32) -> (i32, i32, i32, i32) {
    %c0_i32 = arith.constant 0 : i32
    %c0_i32_0 = arith.constant 0 : i32
    %c0_i32_1 = arith.constant 0 : i32
    %c0_i32_2 = arith.constant 0 : i32
    return %arg0, %c0_i32, %c0_i32_0, %c0_i32_1 : i32, i32, i32, i32
  }
  func.func @transform_8(%arg0: i32, %arg1: i32) -> (i32, i32, i32, i32) {
    %c0_i32 = arith.constant 0 : i32
    %c0_i32_0 = arith.constant 0 : i32
    %c0_i32_1 = arith.constant 0 : i32
    %c0_i32_2 = arith.constant 0 : i32
    return %arg0, %c0_i32, %c0_i32_0, %c0_i32_1 : i32, i32, i32, i32
  }
  func.func @transform_9(%arg0: i32, %arg1: i32) -> (i32, i32, i32, i32) {
    %c0_i32 = arith.constant 0 : i32
    %c0_i32_0 = arith.constant 0 : i32
    %c0_i32_1 = arith.constant 0 : i32
    %c0_i32_2 = arith.constant 0 : i32
    return %arg0, %c0_i32, %c0_i32_0, %c0_i32_1 : i32, i32, i32, i32
  }
  func.func @transform_10(%arg0: i32, %arg1: i32) -> (i32, i32, i32) {
    %c0_i32 = arith.constant 0 : i32
    %c0_i32_0 = arith.constant 0 : i32
    %c0_i32_1 = arith.constant 0 : i32
    return %arg0, %c0_i32, %c0_i32_0 : i32, i32, i32
  }
  func.func @transform_11(%arg0: i32, %arg1: i32) -> (i32, i32, i32) {
    %c0_i32 = arith.constant 0 : i32
    %c0_i32_0 = arith.constant 0 : i32
    %c0_i32_1 = arith.constant 0 : i32
    return %arg0, %c0_i32, %c0_i32_0 : i32, i32, i32
  }
  func.func @transform_12(%arg0: i32, %arg1: i32) -> (i32, i32, i32, i32) {
    %c0_i32 = arith.constant 0 : i32
    %c0_i32_0 = arith.constant 0 : i32
    %c0_i32_1 = arith.constant 0 : i32
    %c0_i32_2 = arith.constant 0 : i32
    return %arg0, %c0_i32, %c0_i32_0, %c0_i32_1 : i32, i32, i32, i32
  }
  func.func @transform_13(%arg0: i32, %arg1: i32) -> (i32, i32, i32, i32) {
    %c0_i32 = arith.constant 0 : i32
    %c0_i32_0 = arith.constant 0 : i32
    %c0_i32_1 = arith.constant 0 : i32
    %c0_i32_2 = arith.constant 0 : i32
    return %arg0, %c0_i32, %c0_i32_0, %c0_i32_1 : i32, i32, i32, i32
  }
  func.func @transform_14(%arg0: i32, %arg1: i32) -> (i32, i32, i32, i32) {
    %c0_i32 = arith.constant 0 : i32
    %c0_i32_0 = arith.constant 0 : i32
    %c0_i32_1 = arith.constant 0 : i32
    %c0_i32_2 = arith.constant 0 : i32
    return %arg0, %c0_i32, %c0_i32_0, %c0_i32_1 : i32, i32, i32, i32
  }
  func.func @transform_15(%arg0: i32, %arg1: i32) -> (i32, i32, i32, i32) {
    %c0_i32 = arith.constant 0 : i32
    %c0_i32_0 = arith.constant 0 : i32
    %c0_i32_1 = arith.constant 0 : i32
    %c0_i32_2 = arith.constant 0 : i32
    return %arg0, %c0_i32, %c0_i32_0, %c0_i32_1 : i32, i32, i32, i32
  }
  func.func @transform_16(%arg0: i32, %arg1: i32) -> (i32, i32, i32, i32) {
    %c0_i32 = arith.constant 0 : i32
    %c0_i32_0 = arith.constant 0 : i32
    %c0_i32_1 = arith.constant 0 : i32
    %c0_i32_2 = arith.constant 0 : i32
    return %arg0, %c0_i32, %c0_i32_0, %c0_i32_1 : i32, i32, i32, i32
  }
  func.func @transform_17(%arg0: i32, %arg1: i32) -> (i32, i32, i32, i32) {
    %c0_i32 = arith.constant 0 : i32
    %c0_i32_0 = arith.constant 0 : i32
    %c0_i32_1 = arith.constant 0 : i32
    %c0_i32_2 = arith.constant 0 : i32
    return %arg0, %c0_i32, %c0_i32_0, %c0_i32_1 : i32, i32, i32, i32
  }
  func.func @transform_18(%arg0: i32, %arg1: i32) -> (i32, i32, i32, i32) {
    %c0_i32 = arith.constant 0 : i32
    %c0_i32_0 = arith.constant 0 : i32
    %c0_i32_1 = arith.constant 0 : i32
    %c0_i32_2 = arith.constant 0 : i32
    return %arg0, %c0_i32, %c0_i32_0, %c0_i32_1 : i32, i32, i32, i32
  }
  func.func @transform_19(%arg0: i32, %arg1: i32) -> (i32, i32, i32, i32) {
    %c0_i32 = arith.constant 0 : i32
    %c0_i32_0 = arith.constant 0 : i32
    %c0_i32_1 = arith.constant 0 : i32
    %c0_i32_2 = arith.constant 0 : i32
    return %arg0, %c0_i32, %c0_i32_0, %c0_i32_1 : i32, i32, i32, i32
  }
  func.func @transform_20(%arg0: i32, %arg1: i32) -> (i32, i32, i32, i32, i32) {
    %c0_i32 = arith.constant 0 : i32
    %c0_i32_0 = arith.constant 0 : i32
    %c0_i32_1 = arith.constant 0 : i32
    %c0_i32_2 = arith.constant 0 : i32
    return %arg0, %arg1, %c0_i32, %c0_i32_0, %c0_i32_1 : i32, i32, i32, i32, i32
  }
}

module attributes {stable_mosaic.version = 11 : i64} {
  func.func @kernel(%arg0: i32, %arg1: i32, %arg2: memref<1x32x128xf32, #tpu.memory_space<vmem>>, %arg3: memref<1x32x1xf32, #tpu.memory_space<vmem>>, %arg4: memref<1x128x128xbf16, #tpu.memory_space<vmem>>, %arg5: memref<1x1x128xf32, #tpu.memory_space<vmem>>, %arg6: memref<1x9x128x128xbf16, #tpu.memory_space<vmem>>, %arg7: memref<1x3x1x128xf32, #tpu.memory_space<vmem>>, %arg8: memref<1x9x128x128xbf16, #tpu.memory_space<vmem>>, %arg9: memref<1x3x1x128xf32, #tpu.memory_space<vmem>>, %arg10: memref<1x6x128x128xbf16, #tpu.memory_space<vmem>>, %arg11: memref<1x3x1x128xf32, #tpu.memory_space<vmem>>, %arg12: memref<1x128x128xbf16, #tpu.memory_space<vmem>>, %arg13: memref<1x1x128xf32, #tpu.memory_space<vmem>>, %arg14: memref<1x2x128x128xbf16, #tpu.memory_space<vmem>>, %arg15: memref<1x2x1x128xf32, #tpu.memory_space<vmem>>, %arg16: memref<1x18x128x128xbf16, #tpu.memory_space<vmem>>, %arg17: memref<1x6x1x128xf32, #tpu.memory_space<vmem>>, %arg18: memref<1x6x128x128xbf16, #tpu.memory_space<vmem>>, %arg19: memref<1x6x1x128xf32, #tpu.memory_space<vmem>>, %arg20: memref<1x2x128x128xbf16, #tpu.memory_space<vmem>>, %arg21: memref<1x2x1x128xf32, #tpu.memory_space<vmem>>, %arg22: memref<1x1x3x32x128xf32, #tpu.memory_space<vmem>>) attributes {dimension_semantics = [#tpu.dimension_semantics<parallel>, #tpu.dimension_semantics<parallel>], iteration_bounds = array<i64: 1, 2>, scalar_prefetch = 0 : i64, scratch_operands = 0 : i64, tpu.core_type = #tpu.core_type<tc>, window_params = [{transform_indices = @transform_0, window_bounds = array<i64: 1, 32, 128>}, {transform_indices = @transform_1, window_bounds = array<i64: 1, 32, 1>}, {transform_indices = @transform_2, window_bounds = array<i64: 1, 128, 128>}, {transform_indices = @transform_3, window_bounds = array<i64: 1, 1, 128>}, {transform_indices = @transform_4, window_bounds = array<i64: 1, 9, 128, 128>}, {transform_indices = @transform_5, window_bounds = array<i64: 1, 3, 1, 128>}, {transform_indices = @transform_6, window_bounds = array<i64: 1, 9, 128, 128>}, {transform_indices = @transform_7, window_bounds = array<i64: 1, 3, 1, 128>}, {transform_indices = @transform_8, window_bounds = array<i64: 1, 6, 128, 128>}, {transform_indices = @transform_9, window_bounds = array<i64: 1, 3, 1, 128>}, {transform_indices = @transform_10, window_bounds = array<i64: 1, 128, 128>}, {transform_indices = @transform_11, window_bounds = array<i64: 1, 1, 128>}, {transform_indices = @transform_12, window_bounds = array<i64: 1, 2, 128, 128>}, {transform_indices = @transform_13, window_bounds = array<i64: 1, 2, 1, 128>}, {transform_indices = @transform_14, window_bounds = array<i64: 1, 18, 128, 128>}, {transform_indices = @transform_15, window_bounds = array<i64: 1, 6, 1, 128>}, {transform_indices = @transform_16, window_bounds = array<i64: 1, 6, 128, 128>}, {transform_indices = @transform_17, window_bounds = array<i64: 1, 6, 1, 128>}, {transform_indices = @transform_18, window_bounds = array<i64: 1, 2, 128, 128>}, {transform_indices = @transform_19, window_bounds = array<i64: 1, 2, 1, 128>}, {transform_indices = @transform_20, window_bounds = array<i64: 1, 1, 3, 32, 128>}]} {
    %c0 = arith.constant 0 : index
    %c0_0 = arith.constant 0 : index
    %c0_1 = arith.constant 0 : index
    %0 = vector.load %arg2[%c0, %c0_0, %c0_1] : memref<1x32x128xf32, #tpu.memory_space<vmem>>, vector<1x32x128xf32>
    %1 = vector.shape_cast %0 : vector<1x32x128xf32> to vector<32x128xf32>
    %c0_2 = arith.constant 0 : index
    %c0_3 = arith.constant 0 : index
    %c0_4 = arith.constant 0 : index
    %2 = vector.load %arg3[%c0_2, %c0_3, %c0_4] : memref<1x32x1xf32, #tpu.memory_space<vmem>>, vector<1x32x1xf32>
    %3 = vector.shape_cast %2 : vector<1x32x1xf32> to vector<32x1xf32>
    %4 = vector.shape_cast %3 : vector<32x1xf32> to vector<32x1xf32>
    %5 = vector.broadcast %4 : vector<32x1xf32> to vector<32x128xf32>
    %6 = vector.shape_cast %3 : vector<32x1xf32> to vector<32x1xf32>
    %7 = vector.broadcast %6 : vector<32x1xf32> to vector<32x128xf32>
    %8 = tpu.iota {dimensions = array<i32: 0>} : vector<32x1xi32>
    %c1_i32 = arith.constant 1 : i32
    %9 = vector.broadcast %c1_i32 : i32 to vector<32x1xi32>
    %10 = arith.cmpi sge, %8, %9 : vector<32x1xi32>
    %11 = arith.extui %10 : vector<32x1xi1> to vector<32x1xi32>
    %12 = arith.sitofp %11 : vector<32x1xi32> to vector<32x1xf32>
    %c2_i32 = arith.constant 2 : i32
    %13 = vector.broadcast %c2_i32 : i32 to vector<32x1xi32>
    %14 = arith.cmpi sge, %8, %13 : vector<32x1xi32>
    %15 = arith.extui %14 : vector<32x1xi1> to vector<32x1xi32>
    %16 = arith.sitofp %15 : vector<32x1xi32> to vector<32x1xf32>
    %c4_i32 = arith.constant 4 : i32
    %17 = vector.broadcast %c4_i32 : i32 to vector<32x1xi32>
    %18 = arith.cmpi sge, %8, %17 : vector<32x1xi32>
    %19 = arith.extui %18 : vector<32x1xi1> to vector<32x1xi32>
    %20 = arith.sitofp %19 : vector<32x1xi32> to vector<32x1xf32>
    %c31_i32 = arith.constant 31 : i32
    %21 = vector.broadcast %c31_i32 : i32 to vector<32x1xi32>
    %22 = arith.cmpi slt, %8, %21 : vector<32x1xi32>
    %23 = arith.extui %22 : vector<32x1xi1> to vector<32x1xi32>
    %24 = arith.sitofp %23 : vector<32x1xi32> to vector<32x1xf32>
    %c30_i32 = arith.constant 30 : i32
    %25 = vector.broadcast %c30_i32 : i32 to vector<32x1xi32>
    %26 = arith.cmpi slt, %8, %25 : vector<32x1xi32>
    %27 = arith.extui %26 : vector<32x1xi1> to vector<32x1xi32>
    %28 = arith.sitofp %27 : vector<32x1xi32> to vector<32x1xf32>
    %c28_i32 = arith.constant 28 : i32
    %29 = vector.broadcast %c28_i32 : i32 to vector<32x1xi32>
    %30 = arith.cmpi slt, %8, %29 : vector<32x1xi32>
    %31 = arith.extui %30 : vector<32x1xi1> to vector<32x1xi32>
    %32 = arith.sitofp %31 : vector<32x1xi32> to vector<32x1xf32>
    %33 = tpu.iota {dimensions = array<i32: 1>} : vector<32x128xi32>
    %c8_i32 = arith.constant 8 : i32
    %34 = vector.broadcast %c8_i32 : i32 to vector<32x128xi32>
    %35 = arith.cmpi slt, %33, %34 : vector<32x128xi32>
    %36 = arith.truncf %1 : vector<32x128xf32> to vector<32x128xbf16>
    %c0_5 = arith.constant 0 : index
    %c0_6 = arith.constant 0 : index
    %c0_7 = arith.constant 0 : index
    %37 = vector.load %arg4[%c0_5, %c0_6, %c0_7] : memref<1x128x128xbf16, #tpu.memory_space<vmem>>, vector<1x128x128xbf16>
    %38 = vector.shape_cast %37 : vector<1x128x128xbf16> to vector<128x128xbf16>
    %c0_8 = arith.constant 0 : index
    %c0_9 = arith.constant 0 : index
    %c0_10 = arith.constant 0 : index
    %39 = vector.load %arg5[%c0_8, %c0_9, %c0_10] : memref<1x1x128xf32, #tpu.memory_space<vmem>>, vector<1x1x128xf32>
    %40 = vector.shape_cast %39 : vector<1x1x128xf32> to vector<1x128xf32>
    %cst = arith.constant dense<0.000000e+00> : vector<32x128xf32>
    %41 = tpu.matmul %36, %38, %cst {dimension_numbers = #tpu.dot_dimension_numbers<[1], [0], [0], [1], [0, 0, 1, 1], [], []>} : vector<32x128xbf16>, vector<128x128xbf16>, vector<32x128xf32> -> vector<32x128xf32>
    %42 = vector.broadcast %40 : vector<1x128xf32> to vector<32x128xf32>
    %43 = arith.addf %41, %42 : vector<32x128xf32>
    %44 = arith.truncf %43 : vector<32x128xf32> to vector<32x128xbf16>
    %c0_11 = arith.constant 0 : index
    %c0_12 = arith.constant 0 : index
    %c0_13 = arith.constant 0 : index
    %c0_14 = arith.constant 0 : index
    %45 = vector.load %arg7[%c0_11, %c0_12, %c0_13, %c0_14] : memref<1x3x1x128xf32, #tpu.memory_space<vmem>>, vector<1x1x1x128xf32>
    %46 = vector.shape_cast %45 : vector<1x1x1x128xf32> to vector<1x128xf32>
    %c0_15 = arith.constant 0 : index
    %c1 = arith.constant 1 : index
    %c0_16 = arith.constant 0 : index
    %c0_17 = arith.constant 0 : index
    %47 = vector.load %arg6[%c0_15, %c1, %c0_16, %c0_17] : memref<1x9x128x128xbf16, #tpu.memory_space<vmem>>, vector<1x1x128x128xbf16>
    %48 = vector.shape_cast %47 : vector<1x1x128x128xbf16> to vector<128x128xbf16>
    %cst_18 = arith.constant dense<0.000000e+00> : vector<32x128xf32>
    %49 = tpu.matmul %44, %48, %cst_18 {dimension_numbers = #tpu.dot_dimension_numbers<[1], [0], [0], [1], [0, 0, 1, 1], [], []>} : vector<32x128xbf16>, vector<128x128xbf16>, vector<32x128xf32> -> vector<32x128xf32>
    %c0_19 = arith.constant 0 : index
    %c0_20 = arith.constant 0 : index
    %c0_21 = arith.constant 0 : index
    %c0_22 = arith.constant 0 : index
    %50 = vector.load %arg6[%c0_19, %c0_20, %c0_21, %c0_22] : memref<1x9x128x128xbf16, #tpu.memory_space<vmem>>, vector<1x1x128x128xbf16>
    %51 = vector.shape_cast %50 : vector<1x1x128x128xbf16> to vector<128x128xbf16>
    %cst_23 = arith.constant dense<0.000000e+00> : vector<32x128xf32>
    %52 = tpu.matmul %44, %51, %cst_23 {dimension_numbers = #tpu.dot_dimension_numbers<[1], [0], [0], [1], [0, 0, 1, 1], [], []>} : vector<32x128xbf16>, vector<128x128xbf16>, vector<32x128xf32> -> vector<32x128xf32>
    %c0_24 = arith.constant 0 : index
    %c2 = arith.constant 2 : index
    %c0_25 = arith.constant 0 : index
    %c0_26 = arith.constant 0 : index
    %53 = vector.load %arg6[%c0_24, %c2, %c0_25, %c0_26] : memref<1x9x128x128xbf16, #tpu.memory_space<vmem>>, vector<1x1x128x128xbf16>
    %54 = vector.shape_cast %53 : vector<1x1x128x128xbf16> to vector<128x128xbf16>
    %cst_27 = arith.constant dense<0.000000e+00> : vector<32x128xf32>
    %55 = tpu.matmul %44, %54, %cst_27 {dimension_numbers = #tpu.dot_dimension_numbers<[1], [0], [0], [1], [0, 0, 1, 1], [], []>} : vector<32x128xbf16>, vector<128x128xbf16>, vector<32x128xf32> -> vector<32x128xf32>
    %c4_i32_28 = arith.constant 4 : i32
    %56 = tpu.dynamic_rotate %52 by %c4_i32_28 dim 0 : vector<32x128xf32>, i32 -> vector<32x128xf32>
    %57 = vector.broadcast %20 : vector<32x1xf32> to vector<32x128xf32>
    %58 = arith.mulf %56, %57 : vector<32x128xf32>
    %59 = arith.addf %49, %58 : vector<32x128xf32>
    %c28_i32_29 = arith.constant 28 : i32
    %60 = tpu.dynamic_rotate %55 by %c28_i32_29 dim 0 : vector<32x128xf32>, i32 -> vector<32x128xf32>
    %61 = vector.broadcast %32 : vector<32x1xf32> to vector<32x128xf32>
    %62 = arith.mulf %60, %61 : vector<32x128xf32>
    %63 = arith.addf %59, %62 : vector<32x128xf32>
    %64 = vector.broadcast %46 : vector<1x128xf32> to vector<32x128xf32>
    %65 = arith.addf %63, %64 : vector<32x128xf32>
    %c0_30 = arith.constant 0 : index
    %c0_31 = arith.constant 0 : index
    %c0_32 = arith.constant 0 : index
    %c0_33 = arith.constant 0 : index
    %66 = vector.load %arg9[%c0_30, %c0_31, %c0_32, %c0_33] : memref<1x3x1x128xf32, #tpu.memory_space<vmem>>, vector<1x1x1x128xf32>
    %67 = vector.shape_cast %66 : vector<1x1x1x128xf32> to vector<1x128xf32>
    %c0_34 = arith.constant 0 : index
    %c1_35 = arith.constant 1 : index
    %c0_36 = arith.constant 0 : index
    %c0_37 = arith.constant 0 : index
    %68 = vector.load %arg8[%c0_34, %c1_35, %c0_36, %c0_37] : memref<1x9x128x128xbf16, #tpu.memory_space<vmem>>, vector<1x1x128x128xbf16>
    %69 = vector.shape_cast %68 : vector<1x1x128x128xbf16> to vector<128x128xbf16>
    %cst_38 = arith.constant dense<0.000000e+00> : vector<32x128xf32>
    %70 = tpu.matmul %44, %69, %cst_38 {dimension_numbers = #tpu.dot_dimension_numbers<[1], [0], [0], [1], [0, 0, 1, 1], [], []>} : vector<32x128xbf16>, vector<128x128xbf16>, vector<32x128xf32> -> vector<32x128xf32>
    %c0_39 = arith.constant 0 : index
    %c0_40 = arith.constant 0 : index
    %c0_41 = arith.constant 0 : index
    %c0_42 = arith.constant 0 : index
    %71 = vector.load %arg8[%c0_39, %c0_40, %c0_41, %c0_42] : memref<1x9x128x128xbf16, #tpu.memory_space<vmem>>, vector<1x1x128x128xbf16>
    %72 = vector.shape_cast %71 : vector<1x1x128x128xbf16> to vector<128x128xbf16>
    %cst_43 = arith.constant dense<0.000000e+00> : vector<32x128xf32>
    %73 = tpu.matmul %44, %72, %cst_43 {dimension_numbers = #tpu.dot_dimension_numbers<[1], [0], [0], [1], [0, 0, 1, 1], [], []>} : vector<32x128xbf16>, vector<128x128xbf16>, vector<32x128xf32> -> vector<32x128xf32>
    %c0_44 = arith.constant 0 : index
    %c2_45 = arith.constant 2 : index
    %c0_46 = arith.constant 0 : index
    %c0_47 = arith.constant 0 : index
    %74 = vector.load %arg8[%c0_44, %c2_45, %c0_46, %c0_47] : memref<1x9x128x128xbf16, #tpu.memory_space<vmem>>, vector<1x1x128x128xbf16>
    %75 = vector.shape_cast %74 : vector<1x1x128x128xbf16> to vector<128x128xbf16>
    %cst_48 = arith.constant dense<0.000000e+00> : vector<32x128xf32>
    %76 = tpu.matmul %44, %75, %cst_48 {dimension_numbers = #tpu.dot_dimension_numbers<[1], [0], [0], [1], [0, 0, 1, 1], [], []>} : vector<32x128xbf16>, vector<128x128xbf16>, vector<32x128xf32> -> vector<32x128xf32>
    %c1_i32_49 = arith.constant 1 : i32
    %77 = tpu.dynamic_rotate %73 by %c1_i32_49 dim 0 : vector<32x128xf32>, i32 -> vector<32x128xf32>
    %78 = vector.broadcast %12 : vector<32x1xf32> to vector<32x128xf32>
    %79 = arith.mulf %77, %78 : vector<32x128xf32>
    %80 = arith.addf %70, %79 : vector<32x128xf32>
    %c31_i32_50 = arith.constant 31 : i32
    %81 = tpu.dynamic_rotate %76 by %c31_i32_50 dim 0 : vector<32x128xf32>, i32 -> vector<32x128xf32>
    %82 = vector.broadcast %24 : vector<32x1xf32> to vector<32x128xf32>
    %83 = arith.mulf %81, %82 : vector<32x128xf32>
    %84 = arith.addf %80, %83 : vector<32x128xf32>
    %85 = vector.broadcast %67 : vector<1x128xf32> to vector<32x128xf32>
    %86 = arith.addf %84, %85 : vector<32x128xf32>
    %87 = arith.truncf %65 : vector<32x128xf32> to vector<32x128xbf16>
    %c0_51 = arith.constant 0 : index
    %c0_52 = arith.constant 0 : index
    %c0_53 = arith.constant 0 : index
    %c0_54 = arith.constant 0 : index
    %88 = vector.load %arg10[%c0_51, %c0_52, %c0_53, %c0_54] : memref<1x6x128x128xbf16, #tpu.memory_space<vmem>>, vector<1x1x128x128xbf16>
    %89 = vector.shape_cast %88 : vector<1x1x128x128xbf16> to vector<128x128xbf16>
    %cst_55 = arith.constant dense<0.000000e+00> : vector<32x128xf32>
    %90 = tpu.matmul %87, %89, %cst_55 {dimension_numbers = #tpu.dot_dimension_numbers<[1], [0], [0], [1], [0, 0, 1, 1], [], []>} : vector<32x128xbf16>, vector<128x128xbf16>, vector<32x128xf32> -> vector<32x128xf32>
    %91 = arith.truncf %86 : vector<32x128xf32> to vector<32x128xbf16>
    %c0_56 = arith.constant 0 : index
    %c1_57 = arith.constant 1 : index
    %c0_58 = arith.constant 0 : index
    %c0_59 = arith.constant 0 : index
    %92 = vector.load %arg10[%c0_56, %c1_57, %c0_58, %c0_59] : memref<1x6x128x128xbf16, #tpu.memory_space<vmem>>, vector<1x1x128x128xbf16>
    %93 = vector.shape_cast %92 : vector<1x1x128x128xbf16> to vector<128x128xbf16>
    %cst_60 = arith.constant dense<0.000000e+00> : vector<32x128xf32>
    %94 = tpu.matmul %91, %93, %cst_60 {dimension_numbers = #tpu.dot_dimension_numbers<[1], [0], [0], [1], [0, 0, 1, 1], [], []>} : vector<32x128xbf16>, vector<128x128xbf16>, vector<32x128xf32> -> vector<32x128xf32>
    %95 = arith.addf %90, %94 : vector<32x128xf32>
    %c0_61 = arith.constant 0 : index
    %c0_62 = arith.constant 0 : index
    %c0_63 = arith.constant 0 : index
    %c0_64 = arith.constant 0 : index
    %96 = vector.load %arg11[%c0_61, %c0_62, %c0_63, %c0_64] : memref<1x3x1x128xf32, #tpu.memory_space<vmem>>, vector<1x1x1x128xf32>
    %97 = vector.shape_cast %96 : vector<1x1x1x128xf32> to vector<1x128xf32>
    %98 = vector.broadcast %97 : vector<1x128xf32> to vector<32x128xf32>
    %99 = arith.addf %95, %98 : vector<32x128xf32>
    %cst_65 = arith.constant 0.000000e+00 : f32
    %100 = vector.broadcast %cst_65 : f32 to vector<32x128xf32>
    %101 = arith.maximumf %99, %100 : vector<32x128xf32>
    %102 = arith.addf %101, %43 : vector<32x128xf32>
    %103 = arith.truncf %102 : vector<32x128xf32> to vector<32x128xbf16>
    %c0_66 = arith.constant 0 : index
    %c1_67 = arith.constant 1 : index
    %c0_68 = arith.constant 0 : index
    %c0_69 = arith.constant 0 : index
    %104 = vector.load %arg7[%c0_66, %c1_67, %c0_68, %c0_69] : memref<1x3x1x128xf32, #tpu.memory_space<vmem>>, vector<1x1x1x128xf32>
    %105 = vector.shape_cast %104 : vector<1x1x1x128xf32> to vector<1x128xf32>
    %c0_70 = arith.constant 0 : index
    %c4 = arith.constant 4 : index
    %c0_71 = arith.constant 0 : index
    %c0_72 = arith.constant 0 : index
    %106 = vector.load %arg6[%c0_70, %c4, %c0_71, %c0_72] : memref<1x9x128x128xbf16, #tpu.memory_space<vmem>>, vector<1x1x128x128xbf16>
    %107 = vector.shape_cast %106 : vector<1x1x128x128xbf16> to vector<128x128xbf16>
    %cst_73 = arith.constant dense<0.000000e+00> : vector<32x128xf32>
    %108 = tpu.matmul %103, %107, %cst_73 {dimension_numbers = #tpu.dot_dimension_numbers<[1], [0], [0], [1], [0, 0, 1, 1], [], []>} : vector<32x128xbf16>, vector<128x128xbf16>, vector<32x128xf32> -> vector<32x128xf32>
    %c0_74 = arith.constant 0 : index
    %c3 = arith.constant 3 : index
    %c0_75 = arith.constant 0 : index
    %c0_76 = arith.constant 0 : index
    %109 = vector.load %arg6[%c0_74, %c3, %c0_75, %c0_76] : memref<1x9x128x128xbf16, #tpu.memory_space<vmem>>, vector<1x1x128x128xbf16>
    %110 = vector.shape_cast %109 : vector<1x1x128x128xbf16> to vector<128x128xbf16>
    %cst_77 = arith.constant dense<0.000000e+00> : vector<32x128xf32>
    %111 = tpu.matmul %103, %110, %cst_77 {dimension_numbers = #tpu.dot_dimension_numbers<[1], [0], [0], [1], [0, 0, 1, 1], [], []>} : vector<32x128xbf16>, vector<128x128xbf16>, vector<32x128xf32> -> vector<32x128xf32>
    %c0_78 = arith.constant 0 : index
    %c5 = arith.constant 5 : index
    %c0_79 = arith.constant 0 : index
    %c0_80 = arith.constant 0 : index
    %112 = vector.load %arg6[%c0_78, %c5, %c0_79, %c0_80] : memref<1x9x128x128xbf16, #tpu.memory_space<vmem>>, vector<1x1x128x128xbf16>
    %113 = vector.shape_cast %112 : vector<1x1x128x128xbf16> to vector<128x128xbf16>
    %cst_81 = arith.constant dense<0.000000e+00> : vector<32x128xf32>
    %114 = tpu.matmul %103, %113, %cst_81 {dimension_numbers = #tpu.dot_dimension_numbers<[1], [0], [0], [1], [0, 0, 1, 1], [], []>} : vector<32x128xbf16>, vector<128x128xbf16>, vector<32x128xf32> -> vector<32x128xf32>
    %c2_i32_82 = arith.constant 2 : i32
    %115 = tpu.dynamic_rotate %111 by %c2_i32_82 dim 0 : vector<32x128xf32>, i32 -> vector<32x128xf32>
    %116 = vector.broadcast %16 : vector<32x1xf32> to vector<32x128xf32>
    %117 = arith.mulf %115, %116 : vector<32x128xf32>
    %118 = arith.addf %108, %117 : vector<32x128xf32>
    %c30_i32_83 = arith.constant 30 : i32
    %119 = tpu.dynamic_rotate %114 by %c30_i32_83 dim 0 : vector<32x128xf32>, i32 -> vector<32x128xf32>
    %120 = vector.broadcast %28 : vector<32x1xf32> to vector<32x128xf32>
    %121 = arith.mulf %119, %120 : vector<32x128xf32>
    %122 = arith.addf %118, %121 : vector<32x128xf32>
    %123 = vector.broadcast %105 : vector<1x128xf32> to vector<32x128xf32>
    %124 = arith.addf %122, %123 : vector<32x128xf32>
    %c0_84 = arith.constant 0 : index
    %c1_85 = arith.constant 1 : index
    %c0_86 = arith.constant 0 : index
    %c0_87 = arith.constant 0 : index
    %125 = vector.load %arg9[%c0_84, %c1_85, %c0_86, %c0_87] : memref<1x3x1x128xf32, #tpu.memory_space<vmem>>, vector<1x1x1x128xf32>
    %126 = vector.shape_cast %125 : vector<1x1x1x128xf32> to vector<1x128xf32>
    %c0_88 = arith.constant 0 : index
    %c4_89 = arith.constant 4 : index
    %c0_90 = arith.constant 0 : index
    %c0_91 = arith.constant 0 : index
    %127 = vector.load %arg8[%c0_88, %c4_89, %c0_90, %c0_91] : memref<1x9x128x128xbf16, #tpu.memory_space<vmem>>, vector<1x1x128x128xbf16>
    %128 = vector.shape_cast %127 : vector<1x1x128x128xbf16> to vector<128x128xbf16>
    %cst_92 = arith.constant dense<0.000000e+00> : vector<32x128xf32>
    %129 = tpu.matmul %103, %128, %cst_92 {dimension_numbers = #tpu.dot_dimension_numbers<[1], [0], [0], [1], [0, 0, 1, 1], [], []>} : vector<32x128xbf16>, vector<128x128xbf16>, vector<32x128xf32> -> vector<32x128xf32>
    %c0_93 = arith.constant 0 : index
    %c3_94 = arith.constant 3 : index
    %c0_95 = arith.constant 0 : index
    %c0_96 = arith.constant 0 : index
    %130 = vector.load %arg8[%c0_93, %c3_94, %c0_95, %c0_96] : memref<1x9x128x128xbf16, #tpu.memory_space<vmem>>, vector<1x1x128x128xbf16>
    %131 = vector.shape_cast %130 : vector<1x1x128x128xbf16> to vector<128x128xbf16>
    %cst_97 = arith.constant dense<0.000000e+00> : vector<32x128xf32>
    %132 = tpu.matmul %103, %131, %cst_97 {dimension_numbers = #tpu.dot_dimension_numbers<[1], [0], [0], [1], [0, 0, 1, 1], [], []>} : vector<32x128xbf16>, vector<128x128xbf16>, vector<32x128xf32> -> vector<32x128xf32>
    %c0_98 = arith.constant 0 : index
    %c5_99 = arith.constant 5 : index
    %c0_100 = arith.constant 0 : index
    %c0_101 = arith.constant 0 : index
    %133 = vector.load %arg8[%c0_98, %c5_99, %c0_100, %c0_101] : memref<1x9x128x128xbf16, #tpu.memory_space<vmem>>, vector<1x1x128x128xbf16>
    %134 = vector.shape_cast %133 : vector<1x1x128x128xbf16> to vector<128x128xbf16>
    %cst_102 = arith.constant dense<0.000000e+00> : vector<32x128xf32>
    %135 = tpu.matmul %103, %134, %cst_102 {dimension_numbers = #tpu.dot_dimension_numbers<[1], [0], [0], [1], [0, 0, 1, 1], [], []>} : vector<32x128xbf16>, vector<128x128xbf16>, vector<32x128xf32> -> vector<32x128xf32>
    %c2_i32_103 = arith.constant 2 : i32
    %136 = tpu.dynamic_rotate %132 by %c2_i32_103 dim 0 : vector<32x128xf32>, i32 -> vector<32x128xf32>
    %137 = vector.broadcast %16 : vector<32x1xf32> to vector<32x128xf32>
    %138 = arith.mulf %136, %137 : vector<32x128xf32>
    %139 = arith.addf %129, %138 : vector<32x128xf32>
    %c30_i32_104 = arith.constant 30 : i32
    %140 = tpu.dynamic_rotate %135 by %c30_i32_104 dim 0 : vector<32x128xf32>, i32 -> vector<32x128xf32>
    %141 = vector.broadcast %28 : vector<32x1xf32> to vector<32x128xf32>
    %142 = arith.mulf %140, %141 : vector<32x128xf32>
    %143 = arith.addf %139, %142 : vector<32x128xf32>
    %144 = vector.broadcast %126 : vector<1x128xf32> to vector<32x128xf32>
    %145 = arith.addf %143, %144 : vector<32x128xf32>
    %146 = arith.truncf %124 : vector<32x128xf32> to vector<32x128xbf16>
    %c0_105 = arith.constant 0 : index
    %c2_106 = arith.constant 2 : index
    %c0_107 = arith.constant 0 : index
    %c0_108 = arith.constant 0 : index
    %147 = vector.load %arg10[%c0_105, %c2_106, %c0_107, %c0_108] : memref<1x6x128x128xbf16, #tpu.memory_space<vmem>>, vector<1x1x128x128xbf16>
    %148 = vector.shape_cast %147 : vector<1x1x128x128xbf16> to vector<128x128xbf16>
    %cst_109 = arith.constant dense<0.000000e+00> : vector<32x128xf32>
    %149 = tpu.matmul %146, %148, %cst_109 {dimension_numbers = #tpu.dot_dimension_numbers<[1], [0], [0], [1], [0, 0, 1, 1], [], []>} : vector<32x128xbf16>, vector<128x128xbf16>, vector<32x128xf32> -> vector<32x128xf32>
    %150 = arith.truncf %145 : vector<32x128xf32> to vector<32x128xbf16>
    %c0_110 = arith.constant 0 : index
    %c3_111 = arith.constant 3 : index
    %c0_112 = arith.constant 0 : index
    %c0_113 = arith.constant 0 : index
    %151 = vector.load %arg10[%c0_110, %c3_111, %c0_112, %c0_113] : memref<1x6x128x128xbf16, #tpu.memory_space<vmem>>, vector<1x1x128x128xbf16>
    %152 = vector.shape_cast %151 : vector<1x1x128x128xbf16> to vector<128x128xbf16>
    %cst_114 = arith.constant dense<0.000000e+00> : vector<32x128xf32>
    %153 = tpu.matmul %150, %152, %cst_114 {dimension_numbers = #tpu.dot_dimension_numbers<[1], [0], [0], [1], [0, 0, 1, 1], [], []>} : vector<32x128xbf16>, vector<128x128xbf16>, vector<32x128xf32> -> vector<32x128xf32>
    %154 = arith.addf %149, %153 : vector<32x128xf32>
    %c0_115 = arith.constant 0 : index
    %c1_116 = arith.constant 1 : index
    %c0_117 = arith.constant 0 : index
    %c0_118 = arith.constant 0 : index
    %155 = vector.load %arg11[%c0_115, %c1_116, %c0_117, %c0_118] : memref<1x3x1x128xf32, #tpu.memory_space<vmem>>, vector<1x1x1x128xf32>
    %156 = vector.shape_cast %155 : vector<1x1x1x128xf32> to vector<1x128xf32>
    %157 = vector.broadcast %156 : vector<1x128xf32> to vector<32x128xf32>
    %158 = arith.addf %154, %157 : vector<32x128xf32>
    %cst_119 = arith.constant 0.000000e+00 : f32
    %159 = vector.broadcast %cst_119 : f32 to vector<32x128xf32>
    %160 = arith.maximumf %158, %159 : vector<32x128xf32>
    %161 = arith.addf %160, %102 : vector<32x128xf32>
    %162 = arith.truncf %161 : vector<32x128xf32> to vector<32x128xbf16>
    %c0_120 = arith.constant 0 : index
    %c2_121 = arith.constant 2 : index
    %c0_122 = arith.constant 0 : index
    %c0_123 = arith.constant 0 : index
    %163 = vector.load %arg7[%c0_120, %c2_121, %c0_122, %c0_123] : memref<1x3x1x128xf32, #tpu.memory_space<vmem>>, vector<1x1x1x128xf32>
    %164 = vector.shape_cast %163 : vector<1x1x1x128xf32> to vector<1x128xf32>
    %c0_124 = arith.constant 0 : index
    %c7 = arith.constant 7 : index
    %c0_125 = arith.constant 0 : index
    %c0_126 = arith.constant 0 : index
    %165 = vector.load %arg6[%c0_124, %c7, %c0_125, %c0_126] : memref<1x9x128x128xbf16, #tpu.memory_space<vmem>>, vector<1x1x128x128xbf16>
    %166 = vector.shape_cast %165 : vector<1x1x128x128xbf16> to vector<128x128xbf16>
    %cst_127 = arith.constant dense<0.000000e+00> : vector<32x128xf32>
    %167 = tpu.matmul %162, %166, %cst_127 {dimension_numbers = #tpu.dot_dimension_numbers<[1], [0], [0], [1], [0, 0, 1, 1], [], []>} : vector<32x128xbf16>, vector<128x128xbf16>, vector<32x128xf32> -> vector<32x128xf32>
    %c0_128 = arith.constant 0 : index
    %c6 = arith.constant 6 : index
    %c0_129 = arith.constant 0 : index
    %c0_130 = arith.constant 0 : index
    %168 = vector.load %arg6[%c0_128, %c6, %c0_129, %c0_130] : memref<1x9x128x128xbf16, #tpu.memory_space<vmem>>, vector<1x1x128x128xbf16>
    %169 = vector.shape_cast %168 : vector<1x1x128x128xbf16> to vector<128x128xbf16>
    %cst_131 = arith.constant dense<0.000000e+00> : vector<32x128xf32>
    %170 = tpu.matmul %162, %169, %cst_131 {dimension_numbers = #tpu.dot_dimension_numbers<[1], [0], [0], [1], [0, 0, 1, 1], [], []>} : vector<32x128xbf16>, vector<128x128xbf16>, vector<32x128xf32> -> vector<32x128xf32>
    %c0_132 = arith.constant 0 : index
    %c8 = arith.constant 8 : index
    %c0_133 = arith.constant 0 : index
    %c0_134 = arith.constant 0 : index
    %171 = vector.load %arg6[%c0_132, %c8, %c0_133, %c0_134] : memref<1x9x128x128xbf16, #tpu.memory_space<vmem>>, vector<1x1x128x128xbf16>
    %172 = vector.shape_cast %171 : vector<1x1x128x128xbf16> to vector<128x128xbf16>
    %cst_135 = arith.constant dense<0.000000e+00> : vector<32x128xf32>
    %173 = tpu.matmul %162, %172, %cst_135 {dimension_numbers = #tpu.dot_dimension_numbers<[1], [0], [0], [1], [0, 0, 1, 1], [], []>} : vector<32x128xbf16>, vector<128x128xbf16>, vector<32x128xf32> -> vector<32x128xf32>
    %c1_i32_136 = arith.constant 1 : i32
    %174 = tpu.dynamic_rotate %170 by %c1_i32_136 dim 0 : vector<32x128xf32>, i32 -> vector<32x128xf32>
    %175 = vector.broadcast %12 : vector<32x1xf32> to vector<32x128xf32>
    %176 = arith.mulf %174, %175 : vector<32x128xf32>
    %177 = arith.addf %167, %176 : vector<32x128xf32>
    %c31_i32_137 = arith.constant 31 : i32
    %178 = tpu.dynamic_rotate %173 by %c31_i32_137 dim 0 : vector<32x128xf32>, i32 -> vector<32x128xf32>
    %179 = vector.broadcast %24 : vector<32x1xf32> to vector<32x128xf32>
    %180 = arith.mulf %178, %179 : vector<32x128xf32>
    %181 = arith.addf %177, %180 : vector<32x128xf32>
    %182 = vector.broadcast %164 : vector<1x128xf32> to vector<32x128xf32>
    %183 = arith.addf %181, %182 : vector<32x128xf32>
    %c0_138 = arith.constant 0 : index
    %c2_139 = arith.constant 2 : index
    %c0_140 = arith.constant 0 : index
    %c0_141 = arith.constant 0 : index
    %184 = vector.load %arg9[%c0_138, %c2_139, %c0_140, %c0_141] : memref<1x3x1x128xf32, #tpu.memory_space<vmem>>, vector<1x1x1x128xf32>
    %185 = vector.shape_cast %184 : vector<1x1x1x128xf32> to vector<1x128xf32>
    %c0_142 = arith.constant 0 : index
    %c7_143 = arith.constant 7 : index
    %c0_144 = arith.constant 0 : index
    %c0_145 = arith.constant 0 : index
    %186 = vector.load %arg8[%c0_142, %c7_143, %c0_144, %c0_145] : memref<1x9x128x128xbf16, #tpu.memory_space<vmem>>, vector<1x1x128x128xbf16>
    %187 = vector.shape_cast %186 : vector<1x1x128x128xbf16> to vector<128x128xbf16>
    %cst_146 = arith.constant dense<0.000000e+00> : vector<32x128xf32>
    %188 = tpu.matmul %162, %187, %cst_146 {dimension_numbers = #tpu.dot_dimension_numbers<[1], [0], [0], [1], [0, 0, 1, 1], [], []>} : vector<32x128xbf16>, vector<128x128xbf16>, vector<32x128xf32> -> vector<32x128xf32>
    %c0_147 = arith.constant 0 : index
    %c6_148 = arith.constant 6 : index
    %c0_149 = arith.constant 0 : index
    %c0_150 = arith.constant 0 : index
    %189 = vector.load %arg8[%c0_147, %c6_148, %c0_149, %c0_150] : memref<1x9x128x128xbf16, #tpu.memory_space<vmem>>, vector<1x1x128x128xbf16>
    %190 = vector.shape_cast %189 : vector<1x1x128x128xbf16> to vector<128x128xbf16>
    %cst_151 = arith.constant dense<0.000000e+00> : vector<32x128xf32>
    %191 = tpu.matmul %162, %190, %cst_151 {dimension_numbers = #tpu.dot_dimension_numbers<[1], [0], [0], [1], [0, 0, 1, 1], [], []>} : vector<32x128xbf16>, vector<128x128xbf16>, vector<32x128xf32> -> vector<32x128xf32>
    %c0_152 = arith.constant 0 : index
    %c8_153 = arith.constant 8 : index
    %c0_154 = arith.constant 0 : index
    %c0_155 = arith.constant 0 : index
    %192 = vector.load %arg8[%c0_152, %c8_153, %c0_154, %c0_155] : memref<1x9x128x128xbf16, #tpu.memory_space<vmem>>, vector<1x1x128x128xbf16>
    %193 = vector.shape_cast %192 : vector<1x1x128x128xbf16> to vector<128x128xbf16>
    %cst_156 = arith.constant dense<0.000000e+00> : vector<32x128xf32>
    %194 = tpu.matmul %162, %193, %cst_156 {dimension_numbers = #tpu.dot_dimension_numbers<[1], [0], [0], [1], [0, 0, 1, 1], [], []>} : vector<32x128xbf16>, vector<128x128xbf16>, vector<32x128xf32> -> vector<32x128xf32>
    %c4_i32_157 = arith.constant 4 : i32
    %195 = tpu.dynamic_rotate %191 by %c4_i32_157 dim 0 : vector<32x128xf32>, i32 -> vector<32x128xf32>
    %196 = vector.broadcast %20 : vector<32x1xf32> to vector<32x128xf32>
    %197 = arith.mulf %195, %196 : vector<32x128xf32>
    %198 = arith.addf %188, %197 : vector<32x128xf32>
    %c28_i32_158 = arith.constant 28 : i32
    %199 = tpu.dynamic_rotate %194 by %c28_i32_158 dim 0 : vector<32x128xf32>, i32 -> vector<32x128xf32>
    %200 = vector.broadcast %32 : vector<32x1xf32> to vector<32x128xf32>
    %201 = arith.mulf %199, %200 : vector<32x128xf32>
    %202 = arith.addf %198, %201 : vector<32x128xf32>
    %203 = vector.broadcast %185 : vector<1x128xf32> to vector<32x128xf32>
    %204 = arith.addf %202, %203 : vector<32x128xf32>
    %205 = arith.truncf %183 : vector<32x128xf32> to vector<32x128xbf16>
    %c0_159 = arith.constant 0 : index
    %c4_160 = arith.constant 4 : index
    %c0_161 = arith.constant 0 : index
    %c0_162 = arith.constant 0 : index
    %206 = vector.load %arg10[%c0_159, %c4_160, %c0_161, %c0_162] : memref<1x6x128x128xbf16, #tpu.memory_space<vmem>>, vector<1x1x128x128xbf16>
    %207 = vector.shape_cast %206 : vector<1x1x128x128xbf16> to vector<128x128xbf16>
    %cst_163 = arith.constant dense<0.000000e+00> : vector<32x128xf32>
    %208 = tpu.matmul %205, %207, %cst_163 {dimension_numbers = #tpu.dot_dimension_numbers<[1], [0], [0], [1], [0, 0, 1, 1], [], []>} : vector<32x128xbf16>, vector<128x128xbf16>, vector<32x128xf32> -> vector<32x128xf32>
    %209 = arith.truncf %204 : vector<32x128xf32> to vector<32x128xbf16>
    %c0_164 = arith.constant 0 : index
    %c5_165 = arith.constant 5 : index
    %c0_166 = arith.constant 0 : index
    %c0_167 = arith.constant 0 : index
    %210 = vector.load %arg10[%c0_164, %c5_165, %c0_166, %c0_167] : memref<1x6x128x128xbf16, #tpu.memory_space<vmem>>, vector<1x1x128x128xbf16>
    %211 = vector.shape_cast %210 : vector<1x1x128x128xbf16> to vector<128x128xbf16>
    %cst_168 = arith.constant dense<0.000000e+00> : vector<32x128xf32>
    %212 = tpu.matmul %209, %211, %cst_168 {dimension_numbers = #tpu.dot_dimension_numbers<[1], [0], [0], [1], [0, 0, 1, 1], [], []>} : vector<32x128xbf16>, vector<128x128xbf16>, vector<32x128xf32> -> vector<32x128xf32>
    %213 = arith.addf %208, %212 : vector<32x128xf32>
    %c0_169 = arith.constant 0 : index
    %c2_170 = arith.constant 2 : index
    %c0_171 = arith.constant 0 : index
    %c0_172 = arith.constant 0 : index
    %214 = vector.load %arg11[%c0_169, %c2_170, %c0_171, %c0_172] : memref<1x3x1x128xf32, #tpu.memory_space<vmem>>, vector<1x1x1x128xf32>
    %215 = vector.shape_cast %214 : vector<1x1x1x128xf32> to vector<1x128xf32>
    %216 = vector.broadcast %215 : vector<1x128xf32> to vector<32x128xf32>
    %217 = arith.addf %213, %216 : vector<32x128xf32>
    %cst_173 = arith.constant 0.000000e+00 : f32
    %218 = vector.broadcast %cst_173 : f32 to vector<32x128xf32>
    %219 = arith.maximumf %217, %218 : vector<32x128xf32>
    %220 = arith.addf %219, %161 : vector<32x128xf32>
    %221 = arith.truncf %220 : vector<32x128xf32> to vector<32x128xbf16>
    %c0_174 = arith.constant 0 : index
    %c0_175 = arith.constant 0 : index
    %c0_176 = arith.constant 0 : index
    %222 = vector.load %arg12[%c0_174, %c0_175, %c0_176] : memref<1x128x128xbf16, #tpu.memory_space<vmem>>, vector<1x128x128xbf16>
    %223 = vector.shape_cast %222 : vector<1x128x128xbf16> to vector<128x128xbf16>
    %c0_177 = arith.constant 0 : index
    %c0_178 = arith.constant 0 : index
    %c0_179 = arith.constant 0 : index
    %224 = vector.load %arg13[%c0_177, %c0_178, %c0_179] : memref<1x1x128xf32, #tpu.memory_space<vmem>>, vector<1x1x128xf32>
    %225 = vector.shape_cast %224 : vector<1x1x128xf32> to vector<1x128xf32>
    %cst_180 = arith.constant dense<0.000000e+00> : vector<32x128xf32>
    %226 = tpu.matmul %221, %223, %cst_180 {dimension_numbers = #tpu.dot_dimension_numbers<[1], [0], [0], [1], [0, 0, 1, 1], [], []>} : vector<32x128xbf16>, vector<128x128xbf16>, vector<32x128xf32> -> vector<32x128xf32>
    %227 = vector.broadcast %225 : vector<1x128xf32> to vector<32x128xf32>
    %228 = arith.addf %226, %227 : vector<32x128xf32>
    %229 = arith.mulf %228, %7 : vector<32x128xf32>
    %c0_181 = arith.constant 0 : index
    %c0_182 = arith.constant 0 : index
    %c0_183 = arith.constant 0 : index
    %c0_184 = arith.constant 0 : index
    %c0_185 = arith.constant 0 : index
    %230 = vector.load %arg22[%c0_181, %c0_182, %c0_183, %c0_184, %c0_185] : memref<1x1x3x32x128xf32, #tpu.memory_space<vmem>>, vector<1x1x1x32x128xf32>
    %231 = vector.shape_cast %230 : vector<1x1x1x32x128xf32> to vector<32x128xf32>
    %232 = vector.shape_cast %229 : vector<32x128xf32> to vector<1x1x1x32x128xf32>
    tpu.vector_store %arg22[%c0_181, %c0_182, %c0_183, %c0_184, %c0_185], %232 {strides = array<i32>} : memref<1x1x3x32x128xf32, #tpu.memory_space<vmem>>, vector<1x1x1x32x128xf32>,
    %cst_186 = arith.constant -1.000000e+30 : f32
    %233 = vector.broadcast %cst_186 : f32 to vector<32x128xf32>
    %234 = arith.select %35, %229, %233 : vector<32x128xi1>, vector<32x128xf32>
    %cst_187 = arith.constant dense<0xFF800000> : vector<32xf32>
    %235 = vector.multi_reduction <maximumf>, %234, %cst_187 [1] : vector<32x128xf32> to vector<32xf32>
    %236 = vector.shape_cast %235 : vector<32xf32> to vector<32x1xf32>
    %237 = vector.broadcast %236 : vector<32x1xf32> to vector<32x128xf32>
    %238 = arith.subf %234, %237 : vector<32x128xf32>
    %239 = math.exp %238 : vector<32x128xf32>
    %cst_188 = arith.constant dense<0.000000e+00> : vector<32xf32>
    %240 = vector.multi_reduction <add>, %239, %cst_188 [1] : vector<32x128xf32> to vector<32xf32>
    %241 = vector.shape_cast %240 : vector<32xf32> to vector<32x1xf32>
    %242 = tpu.reciprocal %241 : vector<32x1xf32> -> vector<32x1xf32>
    %243 = vector.broadcast %242 : vector<32x1xf32> to vector<32x128xf32>
    %244 = arith.mulf %239, %243 : vector<32x128xf32>
    %245 = arith.mulf %244, %7 : vector<32x128xf32>
    %246 = arith.truncf %245 : vector<32x128xf32> to vector<32x128xbf16>
    %c0_189 = arith.constant 0 : index
    %c0_190 = arith.constant 0 : index
    %c0_191 = arith.constant 0 : index
    %c0_192 = arith.constant 0 : index
    %247 = vector.load %arg14[%c0_189, %c0_190, %c0_191, %c0_192] : memref<1x2x128x128xbf16, #tpu.memory_space<vmem>>, vector<1x1x128x128xbf16>
    %248 = vector.shape_cast %247 : vector<1x1x128x128xbf16> to vector<128x128xbf16>
    %c0_193 = arith.constant 0 : index
    %c0_194 = arith.constant 0 : index
    %c0_195 = arith.constant 0 : index
    %c0_196 = arith.constant 0 : index
    %249 = vector.load %arg15[%c0_193, %c0_194, %c0_195, %c0_196] : memref<1x2x1x128xf32, #tpu.memory_space<vmem>>, vector<1x1x1x128xf32>
    %250 = vector.shape_cast %249 : vector<1x1x1x128xf32> to vector<1x128xf32>
    %cst_197 = arith.constant dense<0.000000e+00> : vector<32x128xf32>
    %251 = tpu.matmul %246, %248, %cst_197 {dimension_numbers = #tpu.dot_dimension_numbers<[1], [0], [0], [1], [0, 0, 1, 1], [], []>} : vector<32x128xbf16>, vector<128x128xbf16>, vector<32x128xf32> -> vector<32x128xf32>
    %252 = vector.broadcast %250 : vector<1x128xf32> to vector<32x128xf32>
    %253 = arith.addf %251, %252 : vector<32x128xf32>
    %254 = arith.truncf %253 : vector<32x128xf32> to vector<32x128xbf16>
    %c0_198 = arith.constant 0 : index
    %c0_199 = arith.constant 0 : index
    %c0_200 = arith.constant 0 : index
    %c0_201 = arith.constant 0 : index
    %255 = vector.load %arg17[%c0_198, %c0_199, %c0_200, %c0_201] : memref<1x6x1x128xf32, #tpu.memory_space<vmem>>, vector<1x1x1x128xf32>
    %256 = vector.shape_cast %255 : vector<1x1x1x128xf32> to vector<1x128xf32>
    %c0_202 = arith.constant 0 : index
    %c1_203 = arith.constant 1 : index
    %c0_204 = arith.constant 0 : index
    %c0_205 = arith.constant 0 : index
    %257 = vector.load %arg16[%c0_202, %c1_203, %c0_204, %c0_205] : memref<1x18x128x128xbf16, #tpu.memory_space<vmem>>, vector<1x1x128x128xbf16>
    %258 = vector.shape_cast %257 : vector<1x1x128x128xbf16> to vector<128x128xbf16>
    %cst_206 = arith.constant dense<0.000000e+00> : vector<32x128xf32>
    %259 = tpu.matmul %254, %258, %cst_206 {dimension_numbers = #tpu.dot_dimension_numbers<[1], [0], [0], [1], [0, 0, 1, 1], [], []>} : vector<32x128xbf16>, vector<128x128xbf16>, vector<32x128xf32> -> vector<32x128xf32>
    %c0_207 = arith.constant 0 : index
    %c0_208 = arith.constant 0 : index
    %c0_209 = arith.constant 0 : index
    %c0_210 = arith.constant 0 : index
    %260 = vector.load %arg16[%c0_207, %c0_208, %c0_209, %c0_210] : memref<1x18x128x128xbf16, #tpu.memory_space<vmem>>, vector<1x1x128x128xbf16>
    %261 = vector.shape_cast %260 : vector<1x1x128x128xbf16> to vector<128x128xbf16>
    %cst_211 = arith.constant dense<0.000000e+00> : vector<32x128xf32>
    %262 = tpu.matmul %254, %261, %cst_211 {dimension_numbers = #tpu.dot_dimension_numbers<[1], [0], [0], [1], [0, 0, 1, 1], [], []>} : vector<32x128xbf16>, vector<128x128xbf16>, vector<32x128xf32> -> vector<32x128xf32>
    %c0_212 = arith.constant 0 : index
    %c2_213 = arith.constant 2 : index
    %c0_214 = arith.constant 0 : index
    %c0_215 = arith.constant 0 : index
    %263 = vector.load %arg16[%c0_212, %c2_213, %c0_214, %c0_215] : memref<1x18x128x128xbf16, #tpu.memory_space<vmem>>, vector<1x1x128x128xbf16>
    %264 = vector.shape_cast %263 : vector<1x1x128x128xbf16> to vector<128x128xbf16>
    %cst_216 = arith.constant dense<0.000000e+00> : vector<32x128xf32>
    %265 = tpu.matmul %254, %264, %cst_216 {dimension_numbers = #tpu.dot_dimension_numbers<[1], [0], [0], [1], [0, 0, 1, 1], [], []>} : vector<32x128xbf16>, vector<128x128xbf16>, vector<32x128xf32> -> vector<32x128xf32>
    %c1_i32_217 = arith.constant 1 : i32
    %266 = tpu.dynamic_rotate %262 by %c1_i32_217 dim 0 : vector<32x128xf32>, i32 -> vector<32x128xf32>
    %267 = vector.broadcast %12 : vector<32x1xf32> to vector<32x128xf32>
    %268 = arith.mulf %266, %267 : vector<32x128xf32>
    %269 = arith.addf %259, %268 : vector<32x128xf32>
    %c31_i32_218 = arith.constant 31 : i32
    %270 = tpu.dynamic_rotate %265 by %c31_i32_218 dim 0 : vector<32x128xf32>, i32 -> vector<32x128xf32>
    %271 = vector.broadcast %24 : vector<32x1xf32> to vector<32x128xf32>
    %272 = arith.mulf %270, %271 : vector<32x128xf32>
    %273 = arith.addf %269, %272 : vector<32x128xf32>
    %274 = vector.broadcast %256 : vector<1x128xf32> to vector<32x128xf32>
    %275 = arith.addf %273, %274 : vector<32x128xf32>
    %cst_219 = arith.constant 0.000000e+00 : f32
    %276 = vector.broadcast %cst_219 : f32 to vector<32x128xf32>
    %277 = arith.maximumf %275, %276 : vector<32x128xf32>
    %278 = arith.truncf %277 : vector<32x128xf32> to vector<32x128xbf16>
    %c0_220 = arith.constant 0 : index
    %c0_221 = arith.constant 0 : index
    %c0_222 = arith.constant 0 : index
    %c0_223 = arith.constant 0 : index
    %279 = vector.load %arg18[%c0_220, %c0_221, %c0_222, %c0_223] : memref<1x6x128x128xbf16, #tpu.memory_space<vmem>>, vector<1x1x128x128xbf16>
    %280 = vector.shape_cast %279 : vector<1x1x128x128xbf16> to vector<128x128xbf16>
    %c0_224 = arith.constant 0 : index
    %c0_225 = arith.constant 0 : index
    %c0_226 = arith.constant 0 : index
    %c0_227 = arith.constant 0 : index
    %281 = vector.load %arg19[%c0_224, %c0_225, %c0_226, %c0_227] : memref<1x6x1x128xf32, #tpu.memory_space<vmem>>, vector<1x1x1x128xf32>
    %282 = vector.shape_cast %281 : vector<1x1x1x128xf32> to vector<1x128xf32>
    %cst_228 = arith.constant dense<0.000000e+00> : vector<32x128xf32>
    %283 = tpu.matmul %278, %280, %cst_228 {dimension_numbers = #tpu.dot_dimension_numbers<[1], [0], [0], [1], [0, 0, 1, 1], [], []>} : vector<32x128xbf16>, vector<128x128xbf16>, vector<32x128xf32> -> vector<32x128xf32>
    %284 = vector.broadcast %282 : vector<1x128xf32> to vector<32x128xf32>
    %285 = arith.addf %283, %284 : vector<32x128xf32>
    %286 = arith.addf %253, %285 : vector<32x128xf32>
    %287 = arith.mulf %286, %5 : vector<32x128xf32>
    %288 = arith.truncf %287 : vector<32x128xf32> to vector<32x128xbf16>
    %c0_229 = arith.constant 0 : index
    %c1_230 = arith.constant 1 : index
    %c0_231 = arith.constant 0 : index
    %c0_232 = arith.constant 0 : index
    %289 = vector.load %arg17[%c0_229, %c1_230, %c0_231, %c0_232] : memref<1x6x1x128xf32, #tpu.memory_space<vmem>>, vector<1x1x1x128xf32>
    %290 = vector.shape_cast %289 : vector<1x1x1x128xf32> to vector<1x128xf32>
    %c0_233 = arith.constant 0 : index
    %c4_234 = arith.constant 4 : index
    %c0_235 = arith.constant 0 : index
    %c0_236 = arith.constant 0 : index
    %291 = vector.load %arg16[%c0_233, %c4_234, %c0_235, %c0_236] : memref<1x18x128x128xbf16, #tpu.memory_space<vmem>>, vector<1x1x128x128xbf16>
    %292 = vector.shape_cast %291 : vector<1x1x128x128xbf16> to vector<128x128xbf16>
    %cst_237 = arith.constant dense<0.000000e+00> : vector<32x128xf32>
    %293 = tpu.matmul %288, %292, %cst_237 {dimension_numbers = #tpu.dot_dimension_numbers<[1], [0], [0], [1], [0, 0, 1, 1], [], []>} : vector<32x128xbf16>, vector<128x128xbf16>, vector<32x128xf32> -> vector<32x128xf32>
    %c0_238 = arith.constant 0 : index
    %c3_239 = arith.constant 3 : index
    %c0_240 = arith.constant 0 : index
    %c0_241 = arith.constant 0 : index
    %294 = vector.load %arg16[%c0_238, %c3_239, %c0_240, %c0_241] : memref<1x18x128x128xbf16, #tpu.memory_space<vmem>>, vector<1x1x128x128xbf16>
    %295 = vector.shape_cast %294 : vector<1x1x128x128xbf16> to vector<128x128xbf16>
    %cst_242 = arith.constant dense<0.000000e+00> : vector<32x128xf32>
    %296 = tpu.matmul %288, %295, %cst_242 {dimension_numbers = #tpu.dot_dimension_numbers<[1], [0], [0], [1], [0, 0, 1, 1], [], []>} : vector<32x128xbf16>, vector<128x128xbf16>, vector<32x128xf32> -> vector<32x128xf32>
    %c0_243 = arith.constant 0 : index
    %c5_244 = arith.constant 5 : index
    %c0_245 = arith.constant 0 : index
    %c0_246 = arith.constant 0 : index
    %297 = vector.load %arg16[%c0_243, %c5_244, %c0_245, %c0_246] : memref<1x18x128x128xbf16, #tpu.memory_space<vmem>>, vector<1x1x128x128xbf16>
    %298 = vector.shape_cast %297 : vector<1x1x128x128xbf16> to vector<128x128xbf16>
    %cst_247 = arith.constant dense<0.000000e+00> : vector<32x128xf32>
    %299 = tpu.matmul %288, %298, %cst_247 {dimension_numbers = #tpu.dot_dimension_numbers<[1], [0], [0], [1], [0, 0, 1, 1], [], []>} : vector<32x128xbf16>, vector<128x128xbf16>, vector<32x128xf32> -> vector<32x128xf32>
    %c2_i32_248 = arith.constant 2 : i32
    %300 = tpu.dynamic_rotate %296 by %c2_i32_248 dim 0 : vector<32x128xf32>, i32 -> vector<32x128xf32>
    %301 = vector.broadcast %16 : vector<32x1xf32> to vector<32x128xf32>
    %302 = arith.mulf %300, %301 : vector<32x128xf32>
    %303 = arith.addf %293, %302 : vector<32x128xf32>
    %c30_i32_249 = arith.constant 30 : i32
    %304 = tpu.dynamic_rotate %299 by %c30_i32_249 dim 0 : vector<32x128xf32>, i32 -> vector<32x128xf32>
    %305 = vector.broadcast %28 : vector<32x1xf32> to vector<32x128xf32>
    %306 = arith.mulf %304, %305 : vector<32x128xf32>
    %307 = arith.addf %303, %306 : vector<32x128xf32>
    %308 = vector.broadcast %290 : vector<1x128xf32> to vector<32x128xf32>
    %309 = arith.addf %307, %308 : vector<32x128xf32>
    %cst_250 = arith.constant 0.000000e+00 : f32
    %310 = vector.broadcast %cst_250 : f32 to vector<32x128xf32>
    %311 = arith.maximumf %309, %310 : vector<32x128xf32>
    %312 = arith.truncf %311 : vector<32x128xf32> to vector<32x128xbf16>
    %c0_251 = arith.constant 0 : index
    %c1_252 = arith.constant 1 : index
    %c0_253 = arith.constant 0 : index
    %c0_254 = arith.constant 0 : index
    %313 = vector.load %arg18[%c0_251, %c1_252, %c0_253, %c0_254] : memref<1x6x128x128xbf16, #tpu.memory_space<vmem>>, vector<1x1x128x128xbf16>
    %314 = vector.shape_cast %313 : vector<1x1x128x128xbf16> to vector<128x128xbf16>
    %c0_255 = arith.constant 0 : index
    %c1_256 = arith.constant 1 : index
    %c0_257 = arith.constant 0 : index
    %c0_258 = arith.constant 0 : index
    %315 = vector.load %arg19[%c0_255, %c1_256, %c0_257, %c0_258] : memref<1x6x1x128xf32, #tpu.memory_space<vmem>>, vector<1x1x1x128xf32>
    %316 = vector.shape_cast %315 : vector<1x1x1x128xf32> to vector<1x128xf32>
    %cst_259 = arith.constant dense<0.000000e+00> : vector<32x128xf32>
    %317 = tpu.matmul %312, %314, %cst_259 {dimension_numbers = #tpu.dot_dimension_numbers<[1], [0], [0], [1], [0, 0, 1, 1], [], []>} : vector<32x128xbf16>, vector<128x128xbf16>, vector<32x128xf32> -> vector<32x128xf32>
    %318 = vector.broadcast %316 : vector<1x128xf32> to vector<32x128xf32>
    %319 = arith.addf %317, %318 : vector<32x128xf32>
    %320 = arith.addf %287, %319 : vector<32x128xf32>
    %321 = arith.mulf %320, %5 : vector<32x128xf32>
    %322 = arith.truncf %321 : vector<32x128xf32> to vector<32x128xbf16>
    %c0_260 = arith.constant 0 : index
    %c2_261 = arith.constant 2 : index
    %c0_262 = arith.constant 0 : index
    %c0_263 = arith.constant 0 : index
    %323 = vector.load %arg17[%c0_260, %c2_261, %c0_262, %c0_263] : memref<1x6x1x128xf32, #tpu.memory_space<vmem>>, vector<1x1x1x128xf32>
    %324 = vector.shape_cast %323 : vector<1x1x1x128xf32> to vector<1x128xf32>
    %c0_264 = arith.constant 0 : index
    %c7_265 = arith.constant 7 : index
    %c0_266 = arith.constant 0 : index
    %c0_267 = arith.constant 0 : index
    %325 = vector.load %arg16[%c0_264, %c7_265, %c0_266, %c0_267] : memref<1x18x128x128xbf16, #tpu.memory_space<vmem>>, vector<1x1x128x128xbf16>
    %326 = vector.shape_cast %325 : vector<1x1x128x128xbf16> to vector<128x128xbf16>
    %cst_268 = arith.constant dense<0.000000e+00> : vector<32x128xf32>
    %327 = tpu.matmul %322, %326, %cst_268 {dimension_numbers = #tpu.dot_dimension_numbers<[1], [0], [0], [1], [0, 0, 1, 1], [], []>} : vector<32x128xbf16>, vector<128x128xbf16>, vector<32x128xf32> -> vector<32x128xf32>
    %c0_269 = arith.constant 0 : index
    %c6_270 = arith.constant 6 : index
    %c0_271 = arith.constant 0 : index
    %c0_272 = arith.constant 0 : index
    %328 = vector.load %arg16[%c0_269, %c6_270, %c0_271, %c0_272] : memref<1x18x128x128xbf16, #tpu.memory_space<vmem>>, vector<1x1x128x128xbf16>
    %329 = vector.shape_cast %328 : vector<1x1x128x128xbf16> to vector<128x128xbf16>
    %cst_273 = arith.constant dense<0.000000e+00> : vector<32x128xf32>
    %330 = tpu.matmul %322, %329, %cst_273 {dimension_numbers = #tpu.dot_dimension_numbers<[1], [0], [0], [1], [0, 0, 1, 1], [], []>} : vector<32x128xbf16>, vector<128x128xbf16>, vector<32x128xf32> -> vector<32x128xf32>
    %c0_274 = arith.constant 0 : index
    %c8_275 = arith.constant 8 : index
    %c0_276 = arith.constant 0 : index
    %c0_277 = arith.constant 0 : index
    %331 = vector.load %arg16[%c0_274, %c8_275, %c0_276, %c0_277] : memref<1x18x128x128xbf16, #tpu.memory_space<vmem>>, vector<1x1x128x128xbf16>
    %332 = vector.shape_cast %331 : vector<1x1x128x128xbf16> to vector<128x128xbf16>
    %cst_278 = arith.constant dense<0.000000e+00> : vector<32x128xf32>
    %333 = tpu.matmul %322, %332, %cst_278 {dimension_numbers = #tpu.dot_dimension_numbers<[1], [0], [0], [1], [0, 0, 1, 1], [], []>} : vector<32x128xbf16>, vector<128x128xbf16>, vector<32x128xf32> -> vector<32x128xf32>
    %c4_i32_279 = arith.constant 4 : i32
    %334 = tpu.dynamic_rotate %330 by %c4_i32_279 dim 0 : vector<32x128xf32>, i32 -> vector<32x128xf32>
    %335 = vector.broadcast %20 : vector<32x1xf32> to vector<32x128xf32>
    %336 = arith.mulf %334, %335 : vector<32x128xf32>
    %337 = arith.addf %327, %336 : vector<32x128xf32>
    %c28_i32_280 = arith.constant 28 : i32
    %338 = tpu.dynamic_rotate %333 by %c28_i32_280 dim 0 : vector<32x128xf32>, i32 -> vector<32x128xf32>
    %339 = vector.broadcast %32 : vector<32x1xf32> to vector<32x128xf32>
    %340 = arith.mulf %338, %339 : vector<32x128xf32>
    %341 = arith.addf %337, %340 : vector<32x128xf32>
    %342 = vector.broadcast %324 : vector<1x128xf32> to vector<32x128xf32>
    %343 = arith.addf %341, %342 : vector<32x128xf32>
    %cst_281 = arith.constant 0.000000e+00 : f32
    %344 = vector.broadcast %cst_281 : f32 to vector<32x128xf32>
    %345 = arith.maximumf %343, %344 : vector<32x128xf32>
    %346 = arith.truncf %345 : vector<32x128xf32> to vector<32x128xbf16>
    %c0_282 = arith.constant 0 : index
    %c2_283 = arith.constant 2 : index
    %c0_284 = arith.constant 0 : index
    %c0_285 = arith.constant 0 : index
    %347 = vector.load %arg18[%c0_282, %c2_283, %c0_284, %c0_285] : memref<1x6x128x128xbf16, #tpu.memory_space<vmem>>, vector<1x1x128x128xbf16>
    %348 = vector.shape_cast %347 : vector<1x1x128x128xbf16> to vector<128x128xbf16>
    %c0_286 = arith.constant 0 : index
    %c2_287 = arith.constant 2 : index
    %c0_288 = arith.constant 0 : index
    %c0_289 = arith.constant 0 : index
    %349 = vector.load %arg19[%c0_286, %c2_287, %c0_288, %c0_289] : memref<1x6x1x128xf32, #tpu.memory_space<vmem>>, vector<1x1x1x128xf32>
    %350 = vector.shape_cast %349 : vector<1x1x1x128xf32> to vector<1x128xf32>
    %cst_290 = arith.constant dense<0.000000e+00> : vector<32x128xf32>
    %351 = tpu.matmul %346, %348, %cst_290 {dimension_numbers = #tpu.dot_dimension_numbers<[1], [0], [0], [1], [0, 0, 1, 1], [], []>} : vector<32x128xbf16>, vector<128x128xbf16>, vector<32x128xf32> -> vector<32x128xf32>
    %352 = vector.broadcast %350 : vector<1x128xf32> to vector<32x128xf32>
    %353 = arith.addf %351, %352 : vector<32x128xf32>
    %354 = arith.addf %321, %353 : vector<32x128xf32>
    %355 = arith.mulf %354, %5 : vector<32x128xf32>
    %356 = arith.truncf %355 : vector<32x128xf32> to vector<32x128xbf16>
    %c0_291 = arith.constant 0 : index
    %c0_292 = arith.constant 0 : index
    %c0_293 = arith.constant 0 : index
    %c0_294 = arith.constant 0 : index
    %357 = vector.load %arg20[%c0_291, %c0_292, %c0_293, %c0_294] : memref<1x2x128x128xbf16, #tpu.memory_space<vmem>>, vector<1x1x128x128xbf16>
    %358 = vector.shape_cast %357 : vector<1x1x128x128xbf16> to vector<128x128xbf16>
    %c0_295 = arith.constant 0 : index
    %c0_296 = arith.constant 0 : index
    %c0_297 = arith.constant 0 : index
    %c0_298 = arith.constant 0 : index
    %359 = vector.load %arg21[%c0_295, %c0_296, %c0_297, %c0_298] : memref<1x2x1x128xf32, #tpu.memory_space<vmem>>, vector<1x1x1x128xf32>
    %360 = vector.shape_cast %359 : vector<1x1x1x128xf32> to vector<1x128xf32>
    %cst_299 = arith.constant dense<0.000000e+00> : vector<32x128xf32>
    %361 = tpu.matmul %356, %358, %cst_299 {dimension_numbers = #tpu.dot_dimension_numbers<[1], [0], [0], [1], [0, 0, 1, 1], [], []>} : vector<32x128xbf16>, vector<128x128xbf16>, vector<32x128xf32> -> vector<32x128xf32>
    %362 = vector.broadcast %360 : vector<1x128xf32> to vector<32x128xf32>
    %363 = arith.addf %361, %362 : vector<32x128xf32>
    %364 = arith.mulf %363, %7 : vector<32x128xf32>
    %c0_300 = arith.constant 0 : index
    %c0_301 = arith.constant 0 : index
    %c1_302 = arith.constant 1 : index
    %c0_303 = arith.constant 0 : index
    %c0_304 = arith.constant 0 : index
    %365 = vector.load %arg22[%c0_300, %c0_301, %c1_302, %c0_303, %c0_304] : memref<1x1x3x32x128xf32, #tpu.memory_space<vmem>>, vector<1x1x1x32x128xf32>
    %366 = vector.shape_cast %365 : vector<1x1x1x32x128xf32> to vector<32x128xf32>
    %367 = vector.shape_cast %364 : vector<32x128xf32> to vector<1x1x1x32x128xf32>
    tpu.vector_store %arg22[%c0_300, %c0_301, %c1_302, %c0_303, %c0_304], %367 {strides = array<i32>} : memref<1x1x3x32x128xf32, #tpu.memory_space<vmem>>, vector<1x1x1x32x128xf32>,
    %cst_305 = arith.constant -1.000000e+30 : f32
    %368 = vector.broadcast %cst_305 : f32 to vector<32x128xf32>
    %369 = arith.select %35, %364, %368 : vector<32x128xi1>, vector<32x128xf32>
    %cst_306 = arith.constant dense<0xFF800000> : vector<32xf32>
    %370 = vector.multi_reduction <maximumf>, %369, %cst_306 [1] : vector<32x128xf32> to vector<32xf32>
    %371 = vector.shape_cast %370 : vector<32xf32> to vector<32x1xf32>
    %372 = vector.broadcast %371 : vector<32x1xf32> to vector<32x128xf32>
    %373 = arith.subf %369, %372 : vector<32x128xf32>
    %374 = math.exp %373 : vector<32x128xf32>
    %cst_307 = arith.constant dense<0.000000e+00> : vector<32xf32>
    %375 = vector.multi_reduction <add>, %374, %cst_307 [1] : vector<32x128xf32> to vector<32xf32>
    %376 = vector.shape_cast %375 : vector<32xf32> to vector<32x1xf32>
    %377 = tpu.reciprocal %376 : vector<32x1xf32> -> vector<32x1xf32>
    %378 = vector.broadcast %377 : vector<32x1xf32> to vector<32x128xf32>
    %379 = arith.mulf %374, %378 : vector<32x128xf32>
    %380 = arith.mulf %379, %7 : vector<32x128xf32>
    %381 = arith.truncf %380 : vector<32x128xf32> to vector<32x128xbf16>
    %c0_308 = arith.constant 0 : index
    %c1_309 = arith.constant 1 : index
    %c0_310 = arith.constant 0 : index
    %c0_311 = arith.constant 0 : index
    %382 = vector.load %arg14[%c0_308, %c1_309, %c0_310, %c0_311] : memref<1x2x128x128xbf16, #tpu.memory_space<vmem>>, vector<1x1x128x128xbf16>
    %383 = vector.shape_cast %382 : vector<1x1x128x128xbf16> to vector<128x128xbf16>
    %c0_312 = arith.constant 0 : index
    %c1_313 = arith.constant 1 : index
    %c0_314 = arith.constant 0 : index
    %c0_315 = arith.constant 0 : index
    %384 = vector.load %arg15[%c0_312, %c1_313, %c0_314, %c0_315] : memref<1x2x1x128xf32, #tpu.memory_space<vmem>>, vector<1x1x1x128xf32>
    %385 = vector.shape_cast %384 : vector<1x1x1x128xf32> to vector<1x128xf32>
    %cst_316 = arith.constant dense<0.000000e+00> : vector<32x128xf32>
    %386 = tpu.matmul %381, %383, %cst_316 {dimension_numbers = #tpu.dot_dimension_numbers<[1], [0], [0], [1], [0, 0, 1, 1], [], []>} : vector<32x128xbf16>, vector<128x128xbf16>, vector<32x128xf32> -> vector<32x128xf32>
    %387 = vector.broadcast %385 : vector<1x128xf32> to vector<32x128xf32>
    %388 = arith.addf %386, %387 : vector<32x128xf32>
    %389 = arith.truncf %388 : vector<32x128xf32> to vector<32x128xbf16>
    %c0_317 = arith.constant 0 : index
    %c3_318 = arith.constant 3 : index
    %c0_319 = arith.constant 0 : index
    %c0_320 = arith.constant 0 : index
    %390 = vector.load %arg17[%c0_317, %c3_318, %c0_319, %c0_320] : memref<1x6x1x128xf32, #tpu.memory_space<vmem>>, vector<1x1x1x128xf32>
    %391 = vector.shape_cast %390 : vector<1x1x1x128xf32> to vector<1x128xf32>
    %c0_321 = arith.constant 0 : index
    %c10 = arith.constant 10 : index
    %c0_322 = arith.constant 0 : index
    %c0_323 = arith.constant 0 : index
    %392 = vector.load %arg16[%c0_321, %c10, %c0_322, %c0_323] : memref<1x18x128x128xbf16, #tpu.memory_space<vmem>>, vector<1x1x128x128xbf16>
    %393 = vector.shape_cast %392 : vector<1x1x128x128xbf16> to vector<128x128xbf16>
    %cst_324 = arith.constant dense<0.000000e+00> : vector<32x128xf32>
    %394 = tpu.matmul %389, %393, %cst_324 {dimension_numbers = #tpu.dot_dimension_numbers<[1], [0], [0], [1], [0, 0, 1, 1], [], []>} : vector<32x128xbf16>, vector<128x128xbf16>, vector<32x128xf32> -> vector<32x128xf32>
    %c0_325 = arith.constant 0 : index
    %c9 = arith.constant 9 : index
    %c0_326 = arith.constant 0 : index
    %c0_327 = arith.constant 0 : index
    %395 = vector.load %arg16[%c0_325, %c9, %c0_326, %c0_327] : memref<1x18x128x128xbf16, #tpu.memory_space<vmem>>, vector<1x1x128x128xbf16>
    %396 = vector.shape_cast %395 : vector<1x1x128x128xbf16> to vector<128x128xbf16>
    %cst_328 = arith.constant dense<0.000000e+00> : vector<32x128xf32>
    %397 = tpu.matmul %389, %396, %cst_328 {dimension_numbers = #tpu.dot_dimension_numbers<[1], [0], [0], [1], [0, 0, 1, 1], [], []>} : vector<32x128xbf16>, vector<128x128xbf16>, vector<32x128xf32> -> vector<32x128xf32>
    %c0_329 = arith.constant 0 : index
    %c11 = arith.constant 11 : index
    %c0_330 = arith.constant 0 : index
    %c0_331 = arith.constant 0 : index
    %398 = vector.load %arg16[%c0_329, %c11, %c0_330, %c0_331] : memref<1x18x128x128xbf16, #tpu.memory_space<vmem>>, vector<1x1x128x128xbf16>
    %399 = vector.shape_cast %398 : vector<1x1x128x128xbf16> to vector<128x128xbf16>
    %cst_332 = arith.constant dense<0.000000e+00> : vector<32x128xf32>
    %400 = tpu.matmul %389, %399, %cst_332 {dimension_numbers = #tpu.dot_dimension_numbers<[1], [0], [0], [1], [0, 0, 1, 1], [], []>} : vector<32x128xbf16>, vector<128x128xbf16>, vector<32x128xf32> -> vector<32x128xf32>
    %c1_i32_333 = arith.constant 1 : i32
    %401 = tpu.dynamic_rotate %397 by %c1_i32_333 dim 0 : vector<32x128xf32>, i32 -> vector<32x128xf32>
    %402 = vector.broadcast %12 : vector<32x1xf32> to vector<32x128xf32>
    %403 = arith.mulf %401, %402 : vector<32x128xf32>
    %404 = arith.addf %394, %403 : vector<32x128xf32>
    %c31_i32_334 = arith.constant 31 : i32
    %405 = tpu.dynamic_rotate %400 by %c31_i32_334 dim 0 : vector<32x128xf32>, i32 -> vector<32x128xf32>
    %406 = vector.broadcast %24 : vector<32x1xf32> to vector<32x128xf32>
    %407 = arith.mulf %405, %406 : vector<32x128xf32>
    %408 = arith.addf %404, %407 : vector<32x128xf32>
    %409 = vector.broadcast %391 : vector<1x128xf32> to vector<32x128xf32>
    %410 = arith.addf %408, %409 : vector<32x128xf32>
    %cst_335 = arith.constant 0.000000e+00 : f32
    %411 = vector.broadcast %cst_335 : f32 to vector<32x128xf32>
    %412 = arith.maximumf %410, %411 : vector<32x128xf32>
    %413 = arith.truncf %412 : vector<32x128xf32> to vector<32x128xbf16>
    %c0_336 = arith.constant 0 : index
    %c3_337 = arith.constant 3 : index
    %c0_338 = arith.constant 0 : index
    %c0_339 = arith.constant 0 : index
    %414 = vector.load %arg18[%c0_336, %c3_337, %c0_338, %c0_339] : memref<1x6x128x128xbf16, #tpu.memory_space<vmem>>, vector<1x1x128x128xbf16>
    %415 = vector.shape_cast %414 : vector<1x1x128x128xbf16> to vector<128x128xbf16>
    %c0_340 = arith.constant 0 : index
    %c3_341 = arith.constant 3 : index
    %c0_342 = arith.constant 0 : index
    %c0_343 = arith.constant 0 : index
    %416 = vector.load %arg19[%c0_340, %c3_341, %c0_342, %c0_343] : memref<1x6x1x128xf32, #tpu.memory_space<vmem>>, vector<1x1x1x128xf32>
    %417 = vector.shape_cast %416 : vector<1x1x1x128xf32> to vector<1x128xf32>
    %cst_344 = arith.constant dense<0.000000e+00> : vector<32x128xf32>
    %418 = tpu.matmul %413, %415, %cst_344 {dimension_numbers = #tpu.dot_dimension_numbers<[1], [0], [0], [1], [0, 0, 1, 1], [], []>} : vector<32x128xbf16>, vector<128x128xbf16>, vector<32x128xf32> -> vector<32x128xf32>
    %419 = vector.broadcast %417 : vector<1x128xf32> to vector<32x128xf32>
    %420 = arith.addf %418, %419 : vector<32x128xf32>
    %421 = arith.addf %388, %420 : vector<32x128xf32>
    %422 = arith.mulf %421, %5 : vector<32x128xf32>
    %423 = arith.truncf %422 : vector<32x128xf32> to vector<32x128xbf16>
    %c0_345 = arith.constant 0 : index
    %c4_346 = arith.constant 4 : index
    %c0_347 = arith.constant 0 : index
    %c0_348 = arith.constant 0 : index
    %424 = vector.load %arg17[%c0_345, %c4_346, %c0_347, %c0_348] : memref<1x6x1x128xf32, #tpu.memory_space<vmem>>, vector<1x1x1x128xf32>
    %425 = vector.shape_cast %424 : vector<1x1x1x128xf32> to vector<1x128xf32>
    %c0_349 = arith.constant 0 : index
    %c13 = arith.constant 13 : index
    %c0_350 = arith.constant 0 : index
    %c0_351 = arith.constant 0 : index
    %426 = vector.load %arg16[%c0_349, %c13, %c0_350, %c0_351] : memref<1x18x128x128xbf16, #tpu.memory_space<vmem>>, vector<1x1x128x128xbf16>
    %427 = vector.shape_cast %426 : vector<1x1x128x128xbf16> to vector<128x128xbf16>
    %cst_352 = arith.constant dense<0.000000e+00> : vector<32x128xf32>
    %428 = tpu.matmul %423, %427, %cst_352 {dimension_numbers = #tpu.dot_dimension_numbers<[1], [0], [0], [1], [0, 0, 1, 1], [], []>} : vector<32x128xbf16>, vector<128x128xbf16>, vector<32x128xf32> -> vector<32x128xf32>
    %c0_353 = arith.constant 0 : index
    %c12 = arith.constant 12 : index
    %c0_354 = arith.constant 0 : index
    %c0_355 = arith.constant 0 : index
    %429 = vector.load %arg16[%c0_353, %c12, %c0_354, %c0_355] : memref<1x18x128x128xbf16, #tpu.memory_space<vmem>>, vector<1x1x128x128xbf16>
    %430 = vector.shape_cast %429 : vector<1x1x128x128xbf16> to vector<128x128xbf16>
    %cst_356 = arith.constant dense<0.000000e+00> : vector<32x128xf32>
    %431 = tpu.matmul %423, %430, %cst_356 {dimension_numbers = #tpu.dot_dimension_numbers<[1], [0], [0], [1], [0, 0, 1, 1], [], []>} : vector<32x128xbf16>, vector<128x128xbf16>, vector<32x128xf32> -> vector<32x128xf32>
    %c0_357 = arith.constant 0 : index
    %c14 = arith.constant 14 : index
    %c0_358 = arith.constant 0 : index
    %c0_359 = arith.constant 0 : index
    %432 = vector.load %arg16[%c0_357, %c14, %c0_358, %c0_359] : memref<1x18x128x128xbf16, #tpu.memory_space<vmem>>, vector<1x1x128x128xbf16>
    %433 = vector.shape_cast %432 : vector<1x1x128x128xbf16> to vector<128x128xbf16>
    %cst_360 = arith.constant dense<0.000000e+00> : vector<32x128xf32>
    %434 = tpu.matmul %423, %433, %cst_360 {dimension_numbers = #tpu.dot_dimension_numbers<[1], [0], [0], [1], [0, 0, 1, 1], [], []>} : vector<32x128xbf16>, vector<128x128xbf16>, vector<32x128xf32> -> vector<32x128xf32>
    %c2_i32_361 = arith.constant 2 : i32
    %435 = tpu.dynamic_rotate %431 by %c2_i32_361 dim 0 : vector<32x128xf32>, i32 -> vector<32x128xf32>
    %436 = vector.broadcast %16 : vector<32x1xf32> to vector<32x128xf32>
    %437 = arith.mulf %435, %436 : vector<32x128xf32>
    %438 = arith.addf %428, %437 : vector<32x128xf32>
    %c30_i32_362 = arith.constant 30 : i32
    %439 = tpu.dynamic_rotate %434 by %c30_i32_362 dim 0 : vector<32x128xf32>, i32 -> vector<32x128xf32>
    %440 = vector.broadcast %28 : vector<32x1xf32> to vector<32x128xf32>
    %441 = arith.mulf %439, %440 : vector<32x128xf32>
    %442 = arith.addf %438, %441 : vector<32x128xf32>
    %443 = vector.broadcast %425 : vector<1x128xf32> to vector<32x128xf32>
    %444 = arith.addf %442, %443 : vector<32x128xf32>
    %cst_363 = arith.constant 0.000000e+00 : f32
    %445 = vector.broadcast %cst_363 : f32 to vector<32x128xf32>
    %446 = arith.maximumf %444, %445 : vector<32x128xf32>
    %447 = arith.truncf %446 : vector<32x128xf32> to vector<32x128xbf16>
    %c0_364 = arith.constant 0 : index
    %c4_365 = arith.constant 4 : index
    %c0_366 = arith.constant 0 : index
    %c0_367 = arith.constant 0 : index
    %448 = vector.load %arg18[%c0_364, %c4_365, %c0_366, %c0_367] : memref<1x6x128x128xbf16, #tpu.memory_space<vmem>>, vector<1x1x128x128xbf16>
    %449 = vector.shape_cast %448 : vector<1x1x128x128xbf16> to vector<128x128xbf16>
    %c0_368 = arith.constant 0 : index
    %c4_369 = arith.constant 4 : index
    %c0_370 = arith.constant 0 : index
    %c0_371 = arith.constant 0 : index
    %450 = vector.load %arg19[%c0_368, %c4_369, %c0_370, %c0_371] : memref<1x6x1x128xf32, #tpu.memory_space<vmem>>, vector<1x1x1x128xf32>
    %451 = vector.shape_cast %450 : vector<1x1x1x128xf32> to vector<1x128xf32>
    %cst_372 = arith.constant dense<0.000000e+00> : vector<32x128xf32>
    %452 = tpu.matmul %447, %449, %cst_372 {dimension_numbers = #tpu.dot_dimension_numbers<[1], [0], [0], [1], [0, 0, 1, 1], [], []>} : vector<32x128xbf16>, vector<128x128xbf16>, vector<32x128xf32> -> vector<32x128xf32>
    %453 = vector.broadcast %451 : vector<1x128xf32> to vector<32x128xf32>
    %454 = arith.addf %452, %453 : vector<32x128xf32>
    %455 = arith.addf %422, %454 : vector<32x128xf32>
    %456 = arith.mulf %455, %5 : vector<32x128xf32>
    %457 = arith.truncf %456 : vector<32x128xf32> to vector<32x128xbf16>
    %c0_373 = arith.constant 0 : index
    %c5_374 = arith.constant 5 : index
    %c0_375 = arith.constant 0 : index
    %c0_376 = arith.constant 0 : index
    %458 = vector.load %arg17[%c0_373, %c5_374, %c0_375, %c0_376] : memref<1x6x1x128xf32, #tpu.memory_space<vmem>>, vector<1x1x1x128xf32>
    %459 = vector.shape_cast %458 : vector<1x1x1x128xf32> to vector<1x128xf32>
    %c0_377 = arith.constant 0 : index
    %c16 = arith.constant 16 : index
    %c0_378 = arith.constant 0 : index
    %c0_379 = arith.constant 0 : index
    %460 = vector.load %arg16[%c0_377, %c16, %c0_378, %c0_379] : memref<1x18x128x128xbf16, #tpu.memory_space<vmem>>, vector<1x1x128x128xbf16>
    %461 = vector.shape_cast %460 : vector<1x1x128x128xbf16> to vector<128x128xbf16>
    %cst_380 = arith.constant dense<0.000000e+00> : vector<32x128xf32>
    %462 = tpu.matmul %457, %461, %cst_380 {dimension_numbers = #tpu.dot_dimension_numbers<[1], [0], [0], [1], [0, 0, 1, 1], [], []>} : vector<32x128xbf16>, vector<128x128xbf16>, vector<32x128xf32> -> vector<32x128xf32>
    %c0_381 = arith.constant 0 : index
    %c15 = arith.constant 15 : index
    %c0_382 = arith.constant 0 : index
    %c0_383 = arith.constant 0 : index
    %463 = vector.load %arg16[%c0_381, %c15, %c0_382, %c0_383] : memref<1x18x128x128xbf16, #tpu.memory_space<vmem>>, vector<1x1x128x128xbf16>
    %464 = vector.shape_cast %463 : vector<1x1x128x128xbf16> to vector<128x128xbf16>
    %cst_384 = arith.constant dense<0.000000e+00> : vector<32x128xf32>
    %465 = tpu.matmul %457, %464, %cst_384 {dimension_numbers = #tpu.dot_dimension_numbers<[1], [0], [0], [1], [0, 0, 1, 1], [], []>} : vector<32x128xbf16>, vector<128x128xbf16>, vector<32x128xf32> -> vector<32x128xf32>
    %c0_385 = arith.constant 0 : index
    %c17 = arith.constant 17 : index
    %c0_386 = arith.constant 0 : index
    %c0_387 = arith.constant 0 : index
    %466 = vector.load %arg16[%c0_385, %c17, %c0_386, %c0_387] : memref<1x18x128x128xbf16, #tpu.memory_space<vmem>>, vector<1x1x128x128xbf16>
    %467 = vector.shape_cast %466 : vector<1x1x128x128xbf16> to vector<128x128xbf16>
    %cst_388 = arith.constant dense<0.000000e+00> : vector<32x128xf32>
    %468 = tpu.matmul %457, %467, %cst_388 {dimension_numbers = #tpu.dot_dimension_numbers<[1], [0], [0], [1], [0, 0, 1, 1], [], []>} : vector<32x128xbf16>, vector<128x128xbf16>, vector<32x128xf32> -> vector<32x128xf32>
    %c4_i32_389 = arith.constant 4 : i32
    %469 = tpu.dynamic_rotate %465 by %c4_i32_389 dim 0 : vector<32x128xf32>, i32 -> vector<32x128xf32>
    %470 = vector.broadcast %20 : vector<32x1xf32> to vector<32x128xf32>
    %471 = arith.mulf %469, %470 : vector<32x128xf32>
    %472 = arith.addf %462, %471 : vector<32x128xf32>
    %c28_i32_390 = arith.constant 28 : i32
    %473 = tpu.dynamic_rotate %468 by %c28_i32_390 dim 0 : vector<32x128xf32>, i32 -> vector<32x128xf32>
    %474 = vector.broadcast %32 : vector<32x1xf32> to vector<32x128xf32>
    %475 = arith.mulf %473, %474 : vector<32x128xf32>
    %476 = arith.addf %472, %475 : vector<32x128xf32>
    %477 = vector.broadcast %459 : vector<1x128xf32> to vector<32x128xf32>
    %478 = arith.addf %476, %477 : vector<32x128xf32>
    %cst_391 = arith.constant 0.000000e+00 : f32
    %479 = vector.broadcast %cst_391 : f32 to vector<32x128xf32>
    %480 = arith.maximumf %478, %479 : vector<32x128xf32>
    %481 = arith.truncf %480 : vector<32x128xf32> to vector<32x128xbf16>
    %c0_392 = arith.constant 0 : index
    %c5_393 = arith.constant 5 : index
    %c0_394 = arith.constant 0 : index
    %c0_395 = arith.constant 0 : index
    %482 = vector.load %arg18[%c0_392, %c5_393, %c0_394, %c0_395] : memref<1x6x128x128xbf16, #tpu.memory_space<vmem>>, vector<1x1x128x128xbf16>
    %483 = vector.shape_cast %482 : vector<1x1x128x128xbf16> to vector<128x128xbf16>
    %c0_396 = arith.constant 0 : index
    %c5_397 = arith.constant 5 : index
    %c0_398 = arith.constant 0 : index
    %c0_399 = arith.constant 0 : index
    %484 = vector.load %arg19[%c0_396, %c5_397, %c0_398, %c0_399] : memref<1x6x1x128xf32, #tpu.memory_space<vmem>>, vector<1x1x1x128xf32>
    %485 = vector.shape_cast %484 : vector<1x1x1x128xf32> to vector<1x128xf32>
    %cst_400 = arith.constant dense<0.000000e+00> : vector<32x128xf32>
    %486 = tpu.matmul %481, %483, %cst_400 {dimension_numbers = #tpu.dot_dimension_numbers<[1], [0], [0], [1], [0, 0, 1, 1], [], []>} : vector<32x128xbf16>, vector<128x128xbf16>, vector<32x128xf32> -> vector<32x128xf32>
    %487 = vector.broadcast %485 : vector<1x128xf32> to vector<32x128xf32>
    %488 = arith.addf %486, %487 : vector<32x128xf32>
    %489 = arith.addf %456, %488 : vector<32x128xf32>
    %490 = arith.mulf %489, %5 : vector<32x128xf32>
    %491 = arith.truncf %490 : vector<32x128xf32> to vector<32x128xbf16>
    %c0_401 = arith.constant 0 : index
    %c1_402 = arith.constant 1 : index
    %c0_403 = arith.constant 0 : index
    %c0_404 = arith.constant 0 : index
    %492 = vector.load %arg20[%c0_401, %c1_402, %c0_403, %c0_404] : memref<1x2x128x128xbf16, #tpu.memory_space<vmem>>, vector<1x1x128x128xbf16>
    %493 = vector.shape_cast %492 : vector<1x1x128x128xbf16> to vector<128x128xbf16>
    %c0_405 = arith.constant 0 : index
    %c1_406 = arith.constant 1 : index
    %c0_407 = arith.constant 0 : index
    %c0_408 = arith.constant 0 : index
    %494 = vector.load %arg21[%c0_405, %c1_406, %c0_407, %c0_408] : memref<1x2x1x128xf32, #tpu.memory_space<vmem>>, vector<1x1x1x128xf32>
    %495 = vector.shape_cast %494 : vector<1x1x1x128xf32> to vector<1x128xf32>
    %cst_409 = arith.constant dense<0.000000e+00> : vector<32x128xf32>
    %496 = tpu.matmul %491, %493, %cst_409 {dimension_numbers = #tpu.dot_dimension_numbers<[1], [0], [0], [1], [0, 0, 1, 1], [], []>} : vector<32x128xbf16>, vector<128x128xbf16>, vector<32x128xf32> -> vector<32x128xf32>
    %497 = vector.broadcast %495 : vector<1x128xf32> to vector<32x128xf32>
    %498 = arith.addf %496, %497 : vector<32x128xf32>
    %499 = arith.mulf %498, %7 : vector<32x128xf32>
    %c0_410 = arith.constant 0 : index
    %c0_411 = arith.constant 0 : index
    %c2_412 = arith.constant 2 : index
    %c0_413 = arith.constant 0 : index
    %c0_414 = arith.constant 0 : index
    %500 = vector.load %arg22[%c0_410, %c0_411, %c2_412, %c0_413, %c0_414] : memref<1x1x3x32x128xf32, #tpu.memory_space<vmem>>, vector<1x1x1x32x128xf32>
    %501 = vector.shape_cast %500 : vector<1x1x1x32x128xf32> to vector<32x128xf32>
    %502 = vector.shape_cast %499 : vector<32x128xf32> to vector<1x1x1x32x128xf32>
    tpu.vector_store %arg22[%c0_410, %c0_411, %c2_412, %c0_413, %c0_414], %502 {strides = array<i32>} : memref<1x1x3x32x128xf32, #tpu.memory_space<vmem>>, vector<1x1x1x32x128xf32>,
    return
  }
  func.func @transform_0(%arg0: i32, %arg1: i32) -> (i32, i32, i32) {
    %c0_i32 = arith.constant 0 : i32
    %c0_i32_0 = arith.constant 0 : i32
    %c0_i32_1 = arith.constant 0 : i32
    return %arg1, %c0_i32, %c0_i32_0 : i32, i32, i32
  }
  func.func @transform_1(%arg0: i32, %arg1: i32) -> (i32, i32, i32) {
    %c0_i32 = arith.constant 0 : i32
    %c0_i32_0 = arith.constant 0 : i32
    %c0_i32_1 = arith.constant 0 : i32
    return %arg1, %c0_i32, %c0_i32_0 : i32, i32, i32
  }
  func.func @transform_2(%arg0: i32, %arg1: i32) -> (i32, i32, i32) {
    %c0_i32 = arith.constant 0 : i32
    %c0_i32_0 = arith.constant 0 : i32
    %c0_i32_1 = arith.constant 0 : i32
    return %arg0, %c0_i32, %c0_i32_0 : i32, i32, i32
  }
  func.func @transform_3(%arg0: i32, %arg1: i32) -> (i32, i32, i32) {
    %c0_i32 = arith.constant 0 : i32
    %c0_i32_0 = arith.constant 0 : i32
    %c0_i32_1 = arith.constant 0 : i32
    return %arg0, %c0_i32, %c0_i32_0 : i32, i32, i32
  }
  func.func @transform_4(%arg0: i32, %arg1: i32) -> (i32, i32, i32, i32) {
    %c0_i32 = arith.constant 0 : i32
    %c0_i32_0 = arith.constant 0 : i32
    %c0_i32_1 = arith.constant 0 : i32
    %c0_i32_2 = arith.constant 0 : i32
    return %arg0, %c0_i32, %c0_i32_0, %c0_i32_1 : i32, i32, i32, i32
  }
  func.func @transform_5(%arg0: i32, %arg1: i32) -> (i32, i32, i32, i32) {
    %c0_i32 = arith.constant 0 : i32
    %c0_i32_0 = arith.constant 0 : i32
    %c0_i32_1 = arith.constant 0 : i32
    %c0_i32_2 = arith.constant 0 : i32
    return %arg0, %c0_i32, %c0_i32_0, %c0_i32_1 : i32, i32, i32, i32
  }
  func.func @transform_6(%arg0: i32, %arg1: i32) -> (i32, i32, i32, i32) {
    %c0_i32 = arith.constant 0 : i32
    %c0_i32_0 = arith.constant 0 : i32
    %c0_i32_1 = arith.constant 0 : i32
    %c0_i32_2 = arith.constant 0 : i32
    return %arg0, %c0_i32, %c0_i32_0, %c0_i32_1 : i32, i32, i32, i32
  }
  func.func @transform_7(%arg0: i32, %arg1: i32) -> (i32, i32, i32, i32) {
    %c0_i32 = arith.constant 0 : i32
    %c0_i32_0 = arith.constant 0 : i32
    %c0_i32_1 = arith.constant 0 : i32
    %c0_i32_2 = arith.constant 0 : i32
    return %arg0, %c0_i32, %c0_i32_0, %c0_i32_1 : i32, i32, i32, i32
  }
  func.func @transform_8(%arg0: i32, %arg1: i32) -> (i32, i32, i32, i32) {
    %c0_i32 = arith.constant 0 : i32
    %c0_i32_0 = arith.constant 0 : i32
    %c0_i32_1 = arith.constant 0 : i32
    %c0_i32_2 = arith.constant 0 : i32
    return %arg0, %c0_i32, %c0_i32_0, %c0_i32_1 : i32, i32, i32, i32
  }
  func.func @transform_9(%arg0: i32, %arg1: i32) -> (i32, i32, i32, i32) {
    %c0_i32 = arith.constant 0 : i32
    %c0_i32_0 = arith.constant 0 : i32
    %c0_i32_1 = arith.constant 0 : i32
    %c0_i32_2 = arith.constant 0 : i32
    return %arg0, %c0_i32, %c0_i32_0, %c0_i32_1 : i32, i32, i32, i32
  }
  func.func @transform_10(%arg0: i32, %arg1: i32) -> (i32, i32, i32) {
    %c0_i32 = arith.constant 0 : i32
    %c0_i32_0 = arith.constant 0 : i32
    %c0_i32_1 = arith.constant 0 : i32
    return %arg0, %c0_i32, %c0_i32_0 : i32, i32, i32
  }
  func.func @transform_11(%arg0: i32, %arg1: i32) -> (i32, i32, i32) {
    %c0_i32 = arith.constant 0 : i32
    %c0_i32_0 = arith.constant 0 : i32
    %c0_i32_1 = arith.constant 0 : i32
    return %arg0, %c0_i32, %c0_i32_0 : i32, i32, i32
  }
  func.func @transform_12(%arg0: i32, %arg1: i32) -> (i32, i32, i32, i32) {
    %c0_i32 = arith.constant 0 : i32
    %c0_i32_0 = arith.constant 0 : i32
    %c0_i32_1 = arith.constant 0 : i32
    %c0_i32_2 = arith.constant 0 : i32
    return %arg0, %c0_i32, %c0_i32_0, %c0_i32_1 : i32, i32, i32, i32
  }
  func.func @transform_13(%arg0: i32, %arg1: i32) -> (i32, i32, i32, i32) {
    %c0_i32 = arith.constant 0 : i32
    %c0_i32_0 = arith.constant 0 : i32
    %c0_i32_1 = arith.constant 0 : i32
    %c0_i32_2 = arith.constant 0 : i32
    return %arg0, %c0_i32, %c0_i32_0, %c0_i32_1 : i32, i32, i32, i32
  }
  func.func @transform_14(%arg0: i32, %arg1: i32) -> (i32, i32, i32, i32) {
    %c0_i32 = arith.constant 0 : i32
    %c0_i32_0 = arith.constant 0 : i32
    %c0_i32_1 = arith.constant 0 : i32
    %c0_i32_2 = arith.constant 0 : i32
    return %arg0, %c0_i32, %c0_i32_0, %c0_i32_1 : i32, i32, i32, i32
  }
  func.func @transform_15(%arg0: i32, %arg1: i32) -> (i32, i32, i32, i32) {
    %c0_i32 = arith.constant 0 : i32
    %c0_i32_0 = arith.constant 0 : i32
    %c0_i32_1 = arith.constant 0 : i32
    %c0_i32_2 = arith.constant 0 : i32
    return %arg0, %c0_i32, %c0_i32_0, %c0_i32_1 : i32, i32, i32, i32
  }
  func.func @transform_16(%arg0: i32, %arg1: i32) -> (i32, i32, i32, i32) {
    %c0_i32 = arith.constant 0 : i32
    %c0_i32_0 = arith.constant 0 : i32
    %c0_i32_1 = arith.constant 0 : i32
    %c0_i32_2 = arith.constant 0 : i32
    return %arg0, %c0_i32, %c0_i32_0, %c0_i32_1 : i32, i32, i32, i32
  }
  func.func @transform_17(%arg0: i32, %arg1: i32) -> (i32, i32, i32, i32) {
    %c0_i32 = arith.constant 0 : i32
    %c0_i32_0 = arith.constant 0 : i32
    %c0_i32_1 = arith.constant 0 : i32
    %c0_i32_2 = arith.constant 0 : i32
    return %arg0, %c0_i32, %c0_i32_0, %c0_i32_1 : i32, i32, i32, i32
  }
  func.func @transform_18(%arg0: i32, %arg1: i32) -> (i32, i32, i32, i32) {
    %c0_i32 = arith.constant 0 : i32
    %c0_i32_0 = arith.constant 0 : i32
    %c0_i32_1 = arith.constant 0 : i32
    %c0_i32_2 = arith.constant 0 : i32
    return %arg0, %c0_i32, %c0_i32_0, %c0_i32_1 : i32, i32, i32, i32
  }
  func.func @transform_19(%arg0: i32, %arg1: i32) -> (i32, i32, i32, i32) {
    %c0_i32 = arith.constant 0 : i32
    %c0_i32_0 = arith.constant 0 : i32
    %c0_i32_1 = arith.constant 0 : i32
    %c0_i32_2 = arith.constant 0 : i32
    return %arg0, %c0_i32, %c0_i32_0, %c0_i32_1 : i32, i32, i32, i32
  }
  func.func @transform_20(%arg0: i32, %arg1: i32) -> (i32, i32, i32, i32, i32) {
    %c0_i32 = arith.constant 0 : i32
    %c0_i32_0 = arith.constant 0 : i32
    %c0_i32_1 = arith.constant 0 : i32
    %c0_i32_2 = arith.constant 0 : i32
    return %arg0, %arg1, %c0_i32, %c0_i32_0, %c0_i32_1 : i32, i32, i32, i32, i32
  }
}

</mosaic_0001>

<bundles_post_ra>
// kernel: lf_mh_ms_tcn2_fwd.2
= control target key start
LH: loop header
LB: loop body
LE: loop exit
PB: predicated region body
PF: predicated region fallthrough
CT: control target
= control target key end

     0   :  { %s12770_s0 = inlined_call_operand.vmem [shape: f32[2,32,128], index: 0, kind: input, shape index: {}]   ;;  %s12771_s1 = inlined_call_operand.vmem [shape: f32[2,32,1], index: 1, kind: input, shape index: {}]   ;;  %s12772_s2 = inlined_call_operand.hbm [shape: bf16[2,128,128], index: 2, kind: input, shape index: {}]   ;;  %s12773_s3 = inlined_call_operand.hbm [shape: f32[2,1,128], index: 3, kind: input, shape index: {}]   ;;  %s12774_s4 = inlined_call_operand.hbm [shape: bf16[2,9,128,128], index: 4, kind: input, shape index: {}]   ;;  %s12775_s5 = inlined_call_operand.hbm [shape: f32[2,3,1,128], index: 5, kind: input, shape index: {}]   ;;  %s12776_s6 = inlined_call_operand.hbm [shape: bf16[2,9,128,128], index: 6, kind: input, shape index: {}]   ;;  %s12777_s7 = inlined_call_operand.hbm [shape: f32[2,3,1,128], index: 7, kind: input, shape index: {}]   ;;  %s12778_s8 = inlined_call_operand.hbm [shape: bf16[2,6,128,128], index: 8, kind: input, shape index: {}]   ;;  %s12779_s9 = inlined_call_operand.hbm [shape: f32[2,3,1,128], index: 9, kind: input, shape index: {}]   ;;  %s12780_s10 = inlined_call_operand.hbm [shape: bf16[2,128,128], index: 10, kind: input, shape index: {}]   ;;  %s12781_s11 = inlined_call_operand.hbm [shape: f32[2,1,128], index: 11, kind: input, shape index: {}]   ;;  %s12782_s12 = inlined_call_operand.hbm [shape: bf16[2,2,128,128], index: 12, kind: input, shape index: {}]   ;;  %s12783_s13 = inlined_call_operand.hbm [shape: f32[2,2,1,128], index: 13, kind: input, shape index: {}]   ;;  %s12784_s14 = inlined_call_operand.hbm [shape: bf16[2,18,128,128], index: 14, kind: input, shape index: {}]   ;;  %s12785_s15 = inlined_call_operand.hbm [shape: f32[2,6,1,128], index: 15, kind: input, shape index: {}]   ;;  %s12786_s16 = inlined_call_operand.hbm [shape: bf16[2,6,128,128], index: 16, kind: input, shape index: {}]   ;;  %s12787_s17 = inlined_call_operand.hbm [shape: f32[2,6,1,128], index: 17, kind: input, shape index: {}]   ;;  %s12788_s18 = inlined_call_operand.hbm [shape: bf16[2,2,128,128], index: 18, kind: input, shape index: {}]   ;;  %s12789_s19 = inlined_call_operand.hbm [shape: f32[2,2,1,128], index: 19, kind: input, shape index: {}]   ;;  %s12790_s20 = inlined_call_operand.vmem [shape: f32[2,2,3,32,128], index: 20, kind: output, shape index: {}]  }
   0x1   :  { %12815 = sst [smem:[#allocation50_spill]] %s12770_s0 }
   0x2   :  { %12816 = sst [smem:[#allocation51_spill]] %s12771_s1 }
   0x3   :  { %12817 = sst [smem:[#allocation52_spill]] %s12772_s2 }
   0x4   :  { %12818 = sst [smem:[#allocation53_spill]] %s12773_s3 }
   0x5   :  { %12819 = sst [smem:[#allocation54_spill]] %s12774_s4 }
   0x6   :  { %12820 = sst [smem:[#allocation55_spill]] %s12775_s5 }
   0x7   :  { %12821 = sst [smem:[#allocation56_spill]] %s12776_s6 }
   0x8   :  { %12822 = sst [smem:[#allocation57_spill]] %s12777_s7 }
   0x9   :  { %12823 = sst [smem:[#allocation58_spill]] %s12778_s8 }
   0xa   :  { %12824 = sst [smem:[#allocation59_spill]] %s12779_s9 }
   0xb   :  { %12825 = sst [smem:[#allocation60_spill]] %s12780_s10 }
   0xc   :  { %12826 = sst [smem:[#allocation61_spill]] %s12781_s11 }
   0xd   :  { %12827 = sst [smem:[#allocation62_spill]] %s12782_s12 }
   0xe   :  { %12828 = sst [smem:[#allocation63_spill]] %s12783_s13 }
   0xf   :  { %12829 = sst [smem:[#allocation64_spill]] %s12788_s18 }
  0x10   :  { %12830 = sst [smem:[#allocation65_spill]] %s12789_s19 }
  0x11   :  { %12831 = sst [smem:[#allocation66_spill]] %s12790_s20 }
  0x12   :  { %25 = vsyncpa [#allocation3], 0 }
  0x13   :  { %27 = vsyncpa [#allocation3 + $0x1], 0 }
  0x14   :  { %28 = vsyncpa [#allocation5], 0 }
  0x15   :  { %30 = vsyncpa [#allocation5 + $0x1], 0 }
  0x16   :  { %31 = vsyncpa [#allocation8], 0 }
  0x17   :  { %33 = vsyncpa [#allocation8 + $0x1], 0 }
  0x18   :  { %34 = vsyncpa [#allocation11], 0 }
  0x19   :  { %36 = vsyncpa [#allocation11 + $0x1], 0 }
  0x1a   :  { %37 = vsyncpa [#allocation14], 0 }
  0x1b   :  { %39 = vsyncpa [#allocation14 + $0x1], 0 }
  0x1c   :  { %40 = vsyncpa [#allocation17], 0 }
  0x1d   :  { %42 = vsyncpa [#allocation17 + $0x1], 0 }
  0x1e   :  { %43 = vsyncpa [#allocation20], 0 }
  0x1f   :  { %45 = vsyncpa [#allocation20 + $0x1], 0 }
  0x20   :  { %46 = vsyncpa [#allocation23], 0 }
  0x21   :  { %48 = vsyncpa [#allocation23 + $0x1], 0 }
  0x22   :  { %49 = vsyncpa [#allocation26], 0 }
  0x23   :  { %51 = vsyncpa [#allocation26 + $0x1], 0 }
  0x24   :  { %52 = vsyncpa [#allocation29], 0 }
  0x25   :  { %54 = vsyncpa [#allocation29 + $0x1], 0  ;;  %s11280_s1 = smov 0   ;;  %s11282_s22 = smov 0  }
  0x26   :  { %s11284_s23 = smov 0   ;;  %s11286_s24 = smov 0  }
  0x27   :  { %s11288_s2 = smov 0   ;;  %s11290_s25 = smov 0  }
  0x28   :  { %s11292_s3 = smov 0   ;;  %s11294_s26 = smov 0  }
  0x29 LB: > { %12832 = sst [smem:[#allocation40_spill]] %s11143_s22  ;;  %s69_s27 = sadd.s32 1, %s11159_s25  ;;  %s11167_s26 = sphi %s11294_s26, %s60_s26   ;;  %s11163_s3 = sphi %s11292_s3, %s12895_s3   ;;  %s11159_s25 = sphi %s11290_s25, %s12892_s25   ;;  %s11155_s2 = sphi %s11288_s2, %s12894_s2   ;;  %s11151_s24 = sphi %s11286_s24, %s12891_s24   ;;  %s11147_s23 = sphi %s11284_s23, %s12890_s23   ;;  %s11143_s22 = sphi %s11282_s22, %s12889_s22   ;;  %s11139_s1 = sphi %s11280_s1, %s12888_s1  }
  0x2a   : > { %12833 = sst [smem:[#allocation41_spill]] %s11147_s23  ;;  %p70_p0 = scmp.ge.s32.totalorder %s69_s27, 2 }
  0x2b   : > { %12834 = sst [smem:[#allocation42_spill]] %s11151_s24  ;;  %s72_s28 = sadd.s32 1, %s11163_s3 }
  0x2c   : > { %12835 = sst [smem:[#allocation43_spill]] %s11155_s2  ;;  %s12791_s4 = sadd.s32 4294967295, %s11167_s26  }
  0x2d   : > { %12836 = sst [smem:[#allocation44_spill]] %s11159_s25  ;;  %p138_p1 = scmp.ne.s32.totalorder %s11147_s23, %s11143_s22 }
  0x2e   : > { %12837 = sst [smem:[#allocation45_spill]] %s11167_s26  ;;  %s12897_s27 = smov (%p70_p0, %s69_s27), 0 }
  0x2f   : > { %12838 = sst [smem:[#allocation46_spill]] %s12897_s27  ;;  %s12899_s28 = smov (!%p70_p0, %s72_s28), %s11163_s3 }
  0x30   : > { %p139_p2 = scmp.eq.s32.totalorder %s11167_s26, 0  ;;  %p144_p3 = scmp.ne.s32.totalorder %s11143_s22, %s11139_s1 }
  0x31   : > { %p74_p4 = scmp.ge.s32.totalorder %s12899_s28, 2  ;;  %p145_p5 = scmp.eq.s32.totalorder %s12791_s4, 0 }
  0x32   : > { %p11330_p6 = por %p139_p2, %p138_p1  ;;  %s131_s21 = sadd.s32 1, %s11147_s23 }
  0x33   : > { %s12901_s28 = smov (%p74_p4, %s12899_s28), 0  ;;  %p11336_p7 = por %p145_p5, %p144_p3 }
  0x34   : > { %12840 = sst [smem:[#allocation47_spill]] %s12901_s28  ;;  %s128_s0 = ssub.s32 %s11163_s3, %s12901_s28 }
  0x35   : > { %s12841_s30 = scalar_select %p11336_p7, 1, 0 }
  0x36   : > { %p129_p8 = scmp.eq.s32.totalorder %s128_s0, 0  ;;  %p7397_p9 = scmp.ge.s32.totalorder %s11167_s26, 4 }
  0x37   : > { %12842 = sst [smem:[#allocation48_spill]] %s12841_s30  ;;  %s11348_s1 = sand.u32 (!%p7397_p9), 1, %s11147_s23  }
  0x38   : > { %s11344_s27 = scalar_select %p129_p8, %s11147_s23, %s131_s21  }
  0x39   : > { %634 = sbr.rel (%p7397_p9) target bundleno = 143 (0x8f), region = 16  ;;  %s11351_s4 = sand.u32 (!%p7397_p9), 1, %s11167_s26  }
  0x3a   : > { %12843 = sst [smem:[#allocation49_spill]] %s11344_s27  ;;  %s679_s21 = scalar_lea.vmem (!%p7397_p9), [#allocation4], %s11348_s1 }
  0x3b   : > { %s12844_s20 = sld [smem:[#allocation53_spill]] (!%p7397_p9)  ;;  %s686_s27 = sshll.u32 (!%p7397_p9), %s679_s21, 4  ;;  %s687_s27 = int_to_ptr.vmem [resolvable:$true] %s686_s27 }
  0x3c   : > { %s12802_s23 = scalar_lea.sflag (!%p7397_p9), [#allocation5], %s11351_s4  ;;  %s10369_s24 = smul.u32 (!%p7397_p9), 3, %s11348_s1 }
  0x3d   : > { %s10370_s30 = smul.u32 (!%p7397_p9), 3, %s11163_s3  ;;  %s12845_s5 = sld [smem:[#allocation55_spill]] (!%p7397_p9) }
  0x3e   : > { %s12803_s21 = scalar_lea.sflag [#allocation8], %s11351_s4  ;;  %s12811_s19 = smov 16  }
  0x3f   : > { %s12812_s18 = smov 1   ;;  %s12846_s7 = sld [smem:[#allocation57_spill]] }
  0x40   : > { %s12847_s9 = sld [smem:[#allocation59_spill]] }
  0x41   : > { %s682_s0 = scalar_lea.hbm %s12844_s20, %s11163_s3  ;;  %s719_s20 = scalar_lea.vmem [#allocation7], %s10369_s24 }
  0x42   : > { %s684_s2 = sshll.u32 %s682_s0, 4  ;;  %s726_s28 = sshll.u32 %s719_s20, 4  ;;  %s685_s2 = int_to_ptr.hbm [resolvable:$true] %s684_s2  ;;  %s727_s28 = int_to_ptr.vmem [resolvable:$true] %s726_s28 }
  0x43   : > { %10395 = dma.hbm_to_vmem [thread:$0]  (%p11330_p6), %s685_s2, 16, %s687_s27, %s12802_s23  }
  0x44   : > { %s723_s25 = scalar_lea.hbm %s12845_s5, %s10370_s30  ;;  %s762_s27 = scalar_lea.vmem [#allocation10], %s10369_s24 }
  0x45   : > { %s724_s0 = sshll.u32 %s723_s25, 4  ;;  %s766_s26 = scalar_lea.hbm %s12846_s7, %s10370_s30  ;;  %s725_s0 = int_to_ptr.hbm [resolvable:$true] %s724_s0 }
  0x46   : > { %10397 = dma.hbm_to_vmem [thread:$0]  (%p11330_p6), %s725_s0, 48, %s727_s28, %s12803_s21, %s12811_s19, %s12811_s19, %s12812_s18  }
  0x47   : > { %s769_s25 = sshll.u32 %s762_s27, 4  ;;  %s767_s20 = sshll.u32 %s766_s26, 4  ;;  %s770_s25 = int_to_ptr.vmem [resolvable:$true] %s769_s25  ;;  %s768_s20 = int_to_ptr.hbm [resolvable:$true] %s767_s20 }
  0x48   : > { %s12805_s23 = scalar_lea.sflag [#allocation11], %s11351_s4  ;;  %s809_s22 = scalar_lea.hbm %s12847_s9, %s10370_s30 }
  0x49   : > { %10399 = dma.hbm_to_vmem [thread:$0]  (%p11330_p6), %s768_s20, 48, %s770_s25, %s12805_s23, %s12811_s19, %s12811_s19, %s12812_s18  }
  0x4a   : > { %s810_s2 = sshll.u32 %s809_s22, 4  ;;  %s805_s26 = scalar_lea.vmem [#allocation13], %s10369_s24  ;;  %s811_s2 = int_to_ptr.hbm [resolvable:$true] %s810_s2 }
  0x4b   : > { %s812_s27 = sshll.u32 %s805_s26, 4  ;;  %s12804_s21 = scalar_lea.sflag [#allocation14], %s11351_s4  ;;  %s813_s27 = int_to_ptr.vmem [resolvable:$true] %s812_s27 }
  0x4c   : > { %10401 = dma.hbm_to_vmem [thread:$0]  (%p11330_p6), %s811_s2, 48, %s813_s27, %s12804_s21, %s12811_s19, %s12811_s19, %s12812_s18  }
  0x4d   : > { %s12848_s11 = sld [smem:[#allocation61_spill]]  ;;  %s847_s28 = scalar_lea.vmem [#allocation16], %s11348_s1 }
  0x4e   : > { %s854_s24 = sshll.u32 %s847_s28, 4  ;;  %s12808_s22 = scalar_lea.sflag [#allocation17], %s11351_s4  ;;  %s855_s24 = int_to_ptr.vmem [resolvable:$true] %s854_s24 }
  0x4f   : > { %s12806_s26 = sshll.u32 %s11348_s1, 1  ;;  %s12807_s2 = sshll.u32 %s11163_s3, 1 }
  0x50   : > { %s12849_s13 = sld [smem:[#allocation63_spill]]  ;;  %s887_s28 = scalar_lea.vmem [#allocation19], %s12806_s26 }
  0x51   : > { %s12809_s23 = scalar_lea.sflag [#allocation20], %s11351_s4  ;;  %s7398_s5 = sshll.u32 %s11348_s1, 6 }
  0x52   : > { %s11171_s7 = smov 64   ;;  %s11172_s9 = smov 4  }
  0x53   : > { %s850_s30 = scalar_lea.hbm %s12848_s11, %s11163_s3  ;;  %s12851_s10 = sld [smem:[#allocation60_spill]] }
  0x54   : > { %s852_s0 = sshll.u32 %s850_s30, 4  ;;  %s894_s30 = sshll.u32 %s887_s28, 4  ;;  %s853_s0 = int_to_ptr.hbm [resolvable:$true] %s852_s0  ;;  %s895_s30 = int_to_ptr.vmem [resolvable:$true] %s894_s30 }
  0x55   : > { %10403 = dma.hbm_to_vmem [thread:$0]  (%p11330_p6), %s853_s0, 16, %s855_s24, %s12808_s22  }
  0x56   : > { %s891_s20 = scalar_lea.hbm %s12849_s13, %s12807_s2  ;;  %s10381_s24 = smul.u32 6, %s11348_s1 }
  0x57   : > { %s892_s21 = sshll.u32 %s891_s20, 4  ;;  %s10382_s0 = smul.u32 6, %s11163_s3  ;;  %s893_s21 = int_to_ptr.hbm [resolvable:$true] %s892_s21 }
  0x58   : > { %10405 = dma.hbm_to_vmem [thread:$0]  (%p11330_p6), %s893_s21, 32, %s895_s30, %s12809_s23, %s12811_s19, %s12811_s19, %s12812_s18  }
  0x59   : > { %s934_s20 = scalar_lea.hbm %s12785_s15, %s10382_s0  ;;  %s930_s28 = scalar_lea.vmem [#allocation22], %s10381_s24 }
  0x5a   : > { %s937_s26 = sshll.u32 %s930_s28, 4  ;;  %s935_s2 = sshll.u32 %s934_s20, 4  ;;  %s938_s26 = int_to_ptr.vmem [resolvable:$true] %s937_s26  ;;  %s936_s2 = int_to_ptr.hbm [resolvable:$true] %s935_s2 }
  0x5b   : > { %s977_s21 = scalar_lea.hbm %s12787_s17, %s10382_s0  ;;  %s12810_s30 = scalar_lea.sflag [#allocation23], %s11351_s4 }
  0x5c   : > { %10407 = dma.hbm_to_vmem [thread:$0]  (%p11330_p6), %s936_s2, 96, %s938_s26, %s12810_s30, %s12811_s19, %s12811_s19, %s12812_s18  }
  0x5d   : > { %s978_s27 = sshll.u32 %s977_s21, 4  ;;  %s973_s25 = scalar_lea.vmem [#allocation25], %s10381_s24  ;;  %s979_s27 = int_to_ptr.hbm [resolvable:$true] %s978_s27 }
  0x5e   : > { %s980_s23 = sshll.u32 %s973_s25, 4  ;;  %s12813_s20 = scalar_lea.sflag [#allocation26], %s11351_s4  ;;  %s981_s23 = int_to_ptr.vmem [resolvable:$true] %s980_s23 }
  0x5f   : > { %10409 = dma.hbm_to_vmem [thread:$0]  (%p11330_p6), %s979_s27, 96, %s981_s23, %s12813_s20, %s12811_s19, %s12811_s19, %s12812_s18  }
  0x60   : > { %s9913_s22 = sshll.u32 %s11163_s3, 6  ;;  %s12850_s26 = sld [smem:[#allocation52_spill]] }
  0x61   : > { %s658_s24 = scalar_lea.vmem [#allocation2], %s7398_s5  ;;  %s655_s30 = scalar_lea.sflag [#allocation3], %s11348_s1 }
  0x62   : > { %s666_s21 = sshll.u32 %s658_s24, 4  ;;  %s831_s0 = scalar_lea.hbm %s12851_s10, %s9913_s22  ;;  %s667_s21 = int_to_ptr.vmem [resolvable:$true] %s666_s21 }
  0x63   : > { %s826_s28 = scalar_lea.vmem [#allocation15], %s7398_s5  ;;  %s832_s24 = sshll.u32 %s831_s0, 4  ;;  %s11465_s24 = int_to_ptr.hbm [resolvable:$true] %s832_s24 }
  0x64   : > { %s10368_s19 = smul.u32 576, %s11163_s3  ;;  %s12852_s11 = sld [smem:[#allocation54_spill]] }
  0x65   : > { %s12853_s6 = sld [smem:[#allocation56_spill]]  ;;  %s12854_s27 = scalar_lea.sflag [#allocation5], %s11351_s4 }
  0x66   : > { %s663_s2 = scalar_lea.hbm %s12850_s26, %s9913_s22  ;;  %s834_s26 = sshll.u32 %s826_s28, 4  ;;  %s835_s26 = int_to_ptr.vmem [resolvable:$true] %s834_s26 }
  0x67   : > { %s664_s25 = sshll.u32 %s663_s2, 4  ;;  %s10367_s2 = smul.u32 576, %s11348_s1  ;;  %s665_s25 = int_to_ptr.hbm [resolvable:$true] %s664_s25 }
  0x68   : > { %10394 = dma.hbm_to_vmem [thread:$0]  (%p11330_p6), %s665_s25, 1024, %s667_s21, %s655_s30, %s11171_s7, %s11171_s7, %s11172_s9  }
  0x69   : > { %s697_s30 = scalar_lea.vmem [#allocation6], %s10367_s2  ;;  %s10376_s0 = smul.u32 384, %s11163_s3 }
  0x6a   : > { %s702_s13 = scalar_lea.hbm %s12852_s11, %s10368_s19  ;;  %s705_s21 = sshll.u32 %s697_s30, 4  ;;  %s706_s21 = int_to_ptr.vmem [resolvable:$true] %s705_s21 }
  0x6b   : > { %s703_s25 = sshll.u32 %s702_s13, 4  ;;  %s745_s23 = scalar_lea.hbm %s12853_s6, %s10368_s19  ;;  %s704_s25 = int_to_ptr.hbm [resolvable:$true] %s703_s25 }
  0x6c   : > { %10396 = dma.hbm_to_vmem [thread:$0]  (%p11330_p6), %s704_s25, 9216, %s706_s21, %s12854_s27, %s11171_s7, %s11171_s7, %s11172_s9  }
  0x6d   : > { %s746_s18 = sshll.u32 %s745_s23, 4  ;;  %s740_s11 = scalar_lea.vmem [#allocation9], %s10367_s2  ;;  %s747_s18 = int_to_ptr.hbm [resolvable:$true] %s746_s18 }
  0x6e   : > { %s748_s20 = sshll.u32 %s740_s11, 4  ;;  %s12855_s13 = scalar_lea.sflag [#allocation8], %s11351_s4  ;;  %s749_s20 = int_to_ptr.vmem [resolvable:$true] %s748_s20 }
  0x6f   : > { %10398 = dma.hbm_to_vmem [thread:$0]  (%p11330_p6), %s747_s18, 9216, %s749_s20, %s12855_s13, %s11171_s7, %s11171_s7, %s11172_s9  }
  0x70   : > { %s10375_s19 = smul.u32 384, %s11348_s1  ;;  %s12814_s28 = sshll.u32 %s11348_s1, 7 }
  0x71   : > { %s12856_s8 = sld [smem:[#allocation58_spill]]  ;;  %s9915_s23 = sshll.u32 %s11163_s3, 7 }
  0x72   : > { %s783_s25 = scalar_lea.vmem [#allocation12], %s10375_s19  ;;  %s12857_s27 = scalar_lea.sflag [#allocation11], %s11351_s4 }
  0x73   : > { %s791_s5 = sshll.u32 %s783_s25, 4  ;;  %s12858_s18 = scalar_lea.sflag [#allocation14], %s11351_s4  ;;  %s792_s5 = int_to_ptr.vmem [resolvable:$true] %s791_s5 }
  0x74   : > { %10402 = dma.hbm_to_vmem [thread:$0]  (%p11330_p6), %s11465_s24, 1024, %s835_s26, %s12858_s18, %s11171_s7, %s11171_s7, %s11172_s9  }
  0x75   : > { %s12859_s12 = sld [smem:[#allocation62_spill]]  ;;  %s865_s2 = scalar_lea.vmem [#allocation18], %s12814_s28 }
  0x76   : > { %s873_s30 = sshll.u32 %s865_s2, 4  ;;  %s10379_s25 = smul.u32 1152, %s11348_s1  ;;  %s874_s30 = int_to_ptr.vmem [resolvable:$true] %s873_s30 }
  0x77   : > { %s788_s21 = scalar_lea.hbm %s12856_s8, %s10376_s0  ;;  %s12860_s26 = scalar_lea.sflag [#allocation17], %s11351_s4 }
  0x78   : > { %s789_s22 = sshll.u32 %s788_s21, 4  ;;  %s10380_s24 = smul.u32 1152, %s11163_s3  ;;  %s790_s22 = int_to_ptr.hbm [resolvable:$true] %s789_s22 }
  0x79   : > { %10400 = dma.hbm_to_vmem [thread:$0]  (%p11330_p6), %s790_s22, 6144, %s792_s5, %s12857_s27, %s11171_s7, %s11171_s7, %s11172_s9  }
  0x7a   : > { %s908_s5 = scalar_lea.vmem [#allocation21], %s10379_s25  ;;  %s913_s11 = scalar_lea.hbm %s12784_s14, %s10380_s24 }
  0x7b   : > { %s870_s13 = scalar_lea.hbm %s12859_s12, %s9915_s23  ;;  %s916_s22 = sshll.u32 %s908_s5, 4  ;;  %s917_s22 = int_to_ptr.vmem [resolvable:$true] %s916_s22 }
  0x7c   : > { %s871_s21 = sshll.u32 %s870_s13, 4  ;;  %s914_s20 = sshll.u32 %s913_s11, 4  ;;  %s872_s21 = int_to_ptr.hbm [resolvable:$true] %s871_s21  ;;  %s915_s20 = int_to_ptr.hbm [resolvable:$true] %s914_s20 }
  0x7d   : > { %10404 = dma.hbm_to_vmem [thread:$0]  (%p11330_p6), %s872_s21, 2048, %s874_s30, %s12860_s26, %s11171_s7, %s11171_s7, %s11172_s9  }
  0x7e   : > { %s956_s28 = scalar_lea.hbm %s12786_s16, %s10376_s0  ;;  %s12861_s21 = scalar_lea.sflag [#allocation20], %s11351_s4 }
  0x7f   : > { %s957_s30 = sshll.u32 %s956_s28, 4  ;;  %s951_s25 = scalar_lea.vmem [#allocation24], %s10375_s19  ;;  %s958_s30 = int_to_ptr.hbm [resolvable:$true] %s957_s30 }
  0x80   : > { %10406 = dma.hbm_to_vmem [thread:$0]  (%p11330_p6), %s915_s20, 18432, %s917_s22, %s12861_s21, %s11171_s7, %s11171_s7, %s11172_s9  }
  0x81   : > { %s959_s26 = sshll.u32 %s951_s25, 4  ;;  %s12862_s0 = scalar_lea.sflag [#allocation23], %s11351_s4  ;;  %s960_s26 = int_to_ptr.vmem [resolvable:$true] %s959_s26 }
  0x82   : > { %10408 = dma.hbm_to_vmem [thread:$0]  (%p11330_p6), %s958_s30, 6144, %s960_s26, %s12862_s0, %s11171_s7, %s11171_s7, %s11172_s9  }
  0x83   : > { %s12863_s5 = sld [smem:[#allocation64_spill]]  ;;  %s12864_s18 = sshll.u32 %s11348_s1, 7 }
  0x84   : > { %s994_s22 = scalar_lea.vmem [#allocation27], %s12864_s18  ;;  %s12865_s19 = scalar_lea.sflag [#allocation26], %s11351_s4 }
  0x85   : > { %s1002_s11 = sshll.u32 %s994_s22, 4  ;;  %s12866_s13 = sshll.u32 %s11163_s3, 1  ;;  %s1003_s11 = int_to_ptr.vmem [resolvable:$true] %s1002_s11 }
  0x86   : > { %s12867_s21 = sld [smem:[#allocation65_spill]]  ;;  %s12868_s0 = sshll.u32 %s11348_s1, 1 }
  0x87   : > { %s1013_s24 = scalar_lea.sflag [#allocation29], %s11348_s1 }
  0x89   : > { %s999_s27 = scalar_lea.hbm %s12863_s5, %s9915_s23  ;;  %s1016_s23 = scalar_lea.vmem [#allocation28], %s12868_s0 }
  0x8a   : > { %s1000_s20 = sshll.u32 %s999_s27, 4  ;;  %s1023_s28 = sshll.u32 %s1016_s23, 4  ;;  %s1001_s20 = int_to_ptr.hbm [resolvable:$true] %s1000_s20  ;;  %s1024_s28 = int_to_ptr.vmem [resolvable:$true] %s1023_s28 }
  0x8b   : > { %10410 = dma.hbm_to_vmem [thread:$0]  (%p11330_p6), %s1001_s20, 2048, %s1003_s11, %s12865_s19, %s11171_s7, %s11171_s7, %s11172_s9  }
  0x8c   : > { %s1020_s25 = scalar_lea.hbm %s12867_s21, %s12866_s13  ;;  %s12869_s5 = smov 1  }
  0x8d   : > { %s1021_s26 = sshll.u32 %s1020_s25, 4  ;;  %s12870_s27 = smov 16   ;;  %s1022_s26 = int_to_ptr.hbm [resolvable:$true] %s1021_s26 }
  0x8e   : > { %10411 = dma.hbm_to_vmem [thread:$0]  (%p11330_p6), %s1022_s26, 32, %s1024_s28, %s1013_s24, %s12870_s27, %s12870_s27, %s12869_s5  }
  0x8f PF: > { %s12871_s4 = sld [smem:[#allocation45_spill]] }
  0x95   : > { %p7419_p10 = scmp.ge.s32.totalorder %s12871_s4, 1  ;;  %p1031_p11 = scmp.lt.s32.totalorder %s12871_s4, 5 }
  0x97   : > { %p1032_p12 = pnand %p7419_p10, %p1031_p11 }
  0x98   : > { %s12872_s7 = sld [smem:[#allocation40_spill]] (!%p1032_p12) }
  0x99   : > { %1035 = sbr.rel (%p1032_p12) target bundleno = 4501 (0x1195), region = 100 }
  0x9e   : > { %s11579_s18 = sand.u32 1, %s12872_s7  }
  0x9f   : > { %s7420_s22 = sshll.u32 %s11579_s18, 6  ;;  %s1038_s1 = scalar_lea.sflag [#allocation3], %s11579_s18 }
  0xa0   : > { %s11583_s29 = scalar_lea.vmem [#allocation2], %s7420_s22 }
  0xa1   : > { %11098 = dma.done.wait (%p11336_p7), %s1038_s1, 1024  }
  0xa2   : > { %11100 = vsyncadd (%p11336_p7), %s1038_s1, 4294966272  ;;  %s12874_s11 = sld [smem:[#allocation45_spill]] }
  0xa8   : > { %s12875_s20 = sadd.s32 4294967295, %s12874_s11  }
  0xa9   : > { %s11591_s19 = sand.u32 1, %s12875_s20  }
  0xaa   : > { %s1048_s13 = scalar_lea.sflag [#allocation5], %s11591_s19 }
  0xab   : > { %11102 = dma.done.wait (%p11336_p7), %s1048_s13, 9232  }
  0xac   : > { %11104 = vsyncadd (%p11336_p7), %s1048_s13, 4294958064  ;;  %s10387_s30 = smul.u32 576, %s11579_s18  ;;  %s1067_s26 = scalar_lea.sflag [#allocation8], %s11591_s19 }
  0xad   : > { %s10388_s21 = smul.u32 3, %s11579_s18 }
  0xae   : > { %s11601_s25 = scalar_lea.vmem [#allocation6], %s10387_s30 }
  0xaf   : > { %s11604_s0 = scalar_lea.vmem [#allocation7], %s10388_s21 }
  0xb0   : > { %11106 = dma.done.wait (%p11336_p7), %s1067_s26, 9264  }
  0xb1   : > { %11108 = vsyncadd (%p11336_p7), %s1067_s26, 4294958032  ;;  %s11610_s23 = scalar_lea.vmem [#allocation9], %s10387_s30  ;;  %s1087_s28 = scalar_lea.sflag [#allocation11], %s11591_s19 }
  0xb2   : > { %s11613_s24 = scalar_lea.vmem [#allocation10], %s10388_s21 }
  0xb3   : > { %11110 = dma.done.wait (%p11336_p7), %s1087_s28, 6192  }
  0xb4   : > { %11112 = vsyncadd (%p11336_p7), %s1087_s28, 4294961104  ;;  %s10389_s5 = smul.u32 384, %s11579_s18  ;;  %s1107_s4 = scalar_lea.sflag [#allocation14], %s11591_s19 }
  0xb5   : > { %s11623_s7 = scalar_lea.vmem [#allocation13], %s10388_s21 }
  0xb6   : > { %s11620_s27 = scalar_lea.vmem [#allocation12], %s10389_s5 }
  0xb7   : > { %11114 = dma.done.wait (%p11336_p7), %s1107_s4, 1072  }
  0xb8   : > { %11116 = vsyncadd (%p11336_p7), %s1107_s4, 4294966224  ;;  %s11629_s1 = scalar_lea.vmem [#allocation15], %s7420_s22  ;;  %s1127_s11 = scalar_lea.sflag [#allocation17], %s11591_s19 }
  0xb9   : > { %11118 = dma.done.wait (%p11336_p7), %s1127_s11, 2064  }
  0xba   : > { %11120 = vsyncadd (%p11336_p7), %s1127_s11, 4294965232  ;;  %s7422_s13 = sshll.u32 %s11579_s18, 7  ;;  %s7423_s30 = sshll.u32 %s11579_s18, 1 }
  0xbb   : > { %s11639_s21 = scalar_lea.vmem [#allocation18], %s7422_s13  ;;  %s1146_s26 = scalar_lea.sflag [#allocation20], %s11591_s19 }
  0xbc   : > { %s11642_s28 = scalar_lea.vmem [#allocation19], %s7423_s30 }
  0xbd   : > { %11122 = dma.done.wait (%p11336_p7), %s1146_s26, 18464  }
  0xbe   : > { %11124 = vsyncadd (%p11336_p7), %s1146_s26, 4294948832  ;;  %s10390_s22 = smul.u32 1152, %s11579_s18  ;;  %s1166_s20 = scalar_lea.sflag [#allocation23], %s11591_s19 }
  0xbf   : > { %s10391_s4 = smul.u32 6, %s11579_s18 }
  0xc0   : > { %s11650_s11 = scalar_lea.vmem [#allocation21], %s10390_s22 }
  0xc1   : > { %s11653_s2 = scalar_lea.vmem [#allocation22], %s10391_s4 }
  0xc2   : > { %11126 = dma.done.wait (%p11336_p7), %s1166_s20, 6240  }
  0xc3   : > { %11128 = vsyncadd (%p11336_p7), %s1166_s20, 4294961056  ;;  %s11659_s6 = scalar_lea.vmem [#allocation24], %s10389_s5  ;;  %s1186_s26 = scalar_lea.sflag [#allocation26], %s11591_s19 }
  0xc4   : > { %s11662_s8 = scalar_lea.vmem [#allocation25], %s10391_s4 }
  0xc5   : > { %11130 = dma.done.wait (%p11336_p7), %s1186_s26, 2144  }
  0xc6   : > { %11132 = vsyncadd (%p11336_p7), %s1186_s26, 4294965152  ;;  %s11668_s22 = scalar_lea.vmem [#allocation27], %s7422_s13  ;;  %s1206_s10 = scalar_lea.sflag [#allocation29], %s11579_s18 }
  0xc7   : > { %s11671_s12 = scalar_lea.vmem [#allocation28], %s7423_s30 }
  0xc8   : > { %11134 = dma.done.wait (%p11336_p7), %s1206_s10, 32  }
  0xc9   : > { %11136 = vsyncadd (%p11336_p7), %s1206_s10, 4294967264  ;;  %s12876_s19 = sld [smem:[#allocation42_spill]]  ;;  %v9926_v0 = vld [vmem:[%s11583_s29 + $0x38] sm:$0xff]  ;;  %v9925_v1 = vld [vmem:[%s11583_s29 + $0x30] sm:$0xff]  ;;  %s12881_s4 = scalar_lea.vmem [#allocation16], %s11579_s18 }
  0xca   : > { %1561 = vmatpush.bf16.msra.mxu0 %v9926_v0  ;;  %v9924_v2 = vld [vmem:[%s11583_s29 + $0x28] sm:$0xff]  ;;  %v9923_v3 = vld [vmem:[%s11583_s29 + $0x20] sm:$0xff]  ;;  %v9922_v4 = vld [vmem:[%s11583_s29 + $0x18] sm:$0xff]  ;;  %s12877_s20 = sld [smem:[#allocation50_spill]] }
  0xcb   : > { %v9942_v5 = vld [vmem:[%s11601_s25 + $0x38] sm:$0xff]  ;;  %v9921_v8 = vld [vmem:[%s11583_s29 + $0x10] sm:$0xff]  ;;  %v9920_v12 = vld [vmem:[%s11583_s29 + $0x8] sm:$0xff]  ;;  %s12882_s5 = sld [smem:[#allocation66_spill]] }
  0xcc   : > { %v9950_v6 = vld [vmem:[%s11601_s25 + $0xb8] sm:$0xff]  ;;  %1664 = vmatpush.bf16.msra.mxu1 %v9942_v5  ;;  %v9941_v9 = vld [vmem:[%s11601_s25 + $0x30] sm:$0xff]  ;;  %v9940_v13 = vld [vmem:[%s11601_s25 + $0x28] sm:$0xff] }
  0xcd   : > { %v9934_v7 = vld [vmem:[%s11601_s25 + $0x78] sm:$0xff]  ;;  %1748 = vmatpush.bf16.msra.mxu2 %v9950_v6  ;;  %v9949_v10 = vld [vmem:[%s11601_s25 + $0xb0] sm:$0xff]  ;;  %v9948_v14 = vld [vmem:[%s11601_s25 + $0xa8] sm:$0xff] }
  0xce   : > { %1562 = vmatpush.bf16.msra.mxu0 %v9925_v1  ;;  %1828 = vmatpush.bf16.msra.mxu3 %v9934_v7  ;;  %v9933_v11 = vld [vmem:[%s11601_s25 + $0x70] sm:$0xff]  ;;  %v9932_v15 = vld [vmem:[%s11601_s25 + $0x68] sm:$0xff]  ;;  %v9919_v16 = vld [vmem:[%s11583_s29] sm:$0xff]  ;;  %s12878_s29 = scalar_lea.vmem [#allocation4], %s11579_s18 }
  0xcf   : > { %p1364_p13 = scmp.lt.s32.totalorder %s12876_s19, 1  ;;  %v9966_v19 = vld [vmem:[%s11610_s23 + $0x38] sm:$0xff]  ;;  %v9965_v24 = vld [vmem:[%s11610_s23 + $0x30] sm:$0xff]  ;;  %v9964_v28 = vld [vmem:[%s11610_s23 + $0x28] sm:$0xff] }
  0xd0   : > { %1665 = vmatpush.bf16.msra.mxu1 %v9941_v9  ;;  %v9939_v20 = vld [vmem:[%s11601_s25 + $0x20] sm:$0xff]  ;;  %v9938_v25 = vld [vmem:[%s11601_s25 + $0x18] sm:$0xff]  ;;  %v9937_v34 = vld [vmem:[%s11601_s25 + $0x10] sm:$0xff] }
  0xd1   : > { %s12903_s19 = smov (!%p1364_p13, %s12876_s19), 1  ;;  %1749 = vmatpush.bf16.msra.mxu2 %v9949_v10  ;;  %v9947_v21 = vld [vmem:[%s11601_s25 + $0xa0] sm:$0xff]  ;;  %v9946_v26 = vld [vmem:[%s11601_s25 + $0x98] sm:$0xff]  ;;  %v9945_v35 = vld [vmem:[%s11601_s25 + $0x90] sm:$0xff] }
  0xd2   : > { %1563 = vmatpush.bf16.msra.mxu0 %v9924_v2  ;;  %s9917_s10 = sshll.u32 %s12903_s19, 5  ;;  %1829 = vmatpush.bf16.msra.mxu3 %v9933_v11  ;;  %v9931_v22 = vld [vmem:[%s11601_s25 + $0x60] sm:$0xff]  ;;  %v9930_v27 = vld [vmem:[%s11601_s25 + $0x58] sm:$0xff]  ;;  %v9929_v36 = vld [vmem:[%s11601_s25 + $0x50] sm:$0xff] }
  0xd3   : > { %s11700_s13 = scalar_lea.vmem %s12877_s20, %s9917_s10  ;;  %v9963_v29 = vld [vmem:[%s11610_s23 + $0x20] sm:$0xff]  ;;  %v9962_v32 = vld [vmem:[%s11610_s23 + $0x18] sm:$0xff]  ;;  %v9961_v37 = vld [vmem:[%s11610_s23 + $0x10] sm:$0xff] }
  0xd4   : > { %v1383_v17 = vld [vmem:[%s11700_s13] sm:$0xff]  ;;  %v1384_v18 = vld [vmem:[%s11700_s13 + $0x8] sm:$0xff]  ;;  %1666 = vmatpush.bf16.msra.mxu1 %v9940_v13  ;;  %v1385_v30 = vld [vmem:[%s11700_s13 + $0x10] sm:$0xff] }
  0xd5   : > { %1750 = vmatpush.bf16.msra.mxu2 %v9948_v14  ;;  %v1491_v23 = vpack.c.bf16 %v1384_v18, %v1383_v17  ;;  %v1386_v31 = vld [vmem:[%s11700_s13 + $0x18] sm:$0xff]  ;;  %v9936_v38 = vld [vmem:[%s11601_s25 + $0x8] sm:$0xff]  ;;  %v9935_v42 = vld [vmem:[%s11601_s25] sm:$0xff] }
  0xd6   : > { %1564 = vmatpush.bf16.msra.mxu0 %v9923_v3  ;;  %1830 = vmatpush.bf16.msra.mxu3 %v9932_v15  ;;  %v1492_v33 = vpack.c.bf16 %v1386_v31, %v1385_v30  ;;  %v9944_v39 = vld [vmem:[%s11601_s25 + $0x88] sm:$0xff]  ;;  %v9943_v43 = vld [vmem:[%s11601_s25 + $0x80] sm:$0xff]  ;;  %v9973_v48 = vld [vmem:[%s11610_s23 + $0xb0] sm:$0xff]  ;;  %v1411_v30 = vlaneseq }
  0xd7   : > { %v9928_v40 = vld [vmem:[%s11601_s25 + $0x48] sm:$0xff]  ;;  %v9927_v44 = vld [vmem:[%s11601_s25 + $0x40] sm:$0xff]  ;;  %v9957_v49 = vld [vmem:[%s11610_s23 + $0x70] sm:$0xff] }
  0xd8   : > { %1667 = vmatpush.bf16.msra.mxu1 %v9939_v20  ;;  %v9960_v41 = vld [vmem:[%s11610_s23 + $0x8] sm:$0xff]  ;;  %v9959_v45 = vld [vmem:[%s11610_s23] sm:$0xff]  ;;  %v9974_v46 = vld [vmem:[%s11610_s23 + $0xb8] sm:$0xff] }
  0xd9   : > { %1751 = vmatpush.bf16.msra.mxu2 %v9947_v21  ;;  %v9958_v47 = vld [vmem:[%s11610_s23 + $0x78] sm:$0xff]  ;;  %v9972_v50 = vld [vmem:[%s11610_s23 + $0xa8] sm:$0xff]  ;;  %v9971_v52 = vld [vmem:[%s11610_s23 + $0xa0] sm:$0xff] }
  0xda   : > { %1565 = vmatpush.bf16.msra.mxu0 %v9922_v4  ;;  %1831 = vmatpush.bf16.msra.mxu3 %v9931_v22  ;;  %v9956_v51 = vld [vmem:[%s11610_s23 + $0x68] sm:$0xff]  ;;  %v9955_v53 = vld [vmem:[%s11610_s23 + $0x60] sm:$0xff]  ;;  %v9970_v54 = vld [vmem:[%s11610_s23 + $0x98] sm:$0xff] }
  0xdb   : > { %v9954_v55 = vld [vmem:[%s11610_s23 + $0x58] sm:$0xff]  ;;  %v9969_v56 = vld [vmem:[%s11610_s23 + $0x90] sm:$0xff]  ;;  %v9968_v59 = vld [vmem:[%s11610_s23 + $0x88] sm:$0xff] }
  0xdc   : > { %1668 = vmatpush.bf16.msra.mxu1 %v9938_v25  ;;  %v9953_v57 = vld [vmem:[%s11610_s23 + $0x50] sm:$0xff]  ;;  %v9952_v60 = vld [vmem:[%s11610_s23 + $0x48] sm:$0xff]  ;;  %v10502_v61 = vld [vmem:[%s12878_s29] ss:$0 sm:$0xff] }
  0xdd   : > { %1752 = vmatpush.bf16.msra.mxu2 %v9946_v26  ;;  %v9967_v62 = vld [vmem:[%s11610_s23 + $0x80] sm:$0xff]  ;;  %v9981_v10 = vld [vmem:[%s11620_s27 + $0x30] sm:$0xff]  ;;  %v9980_v11 = vld [vmem:[%s11620_s27 + $0x28] sm:$0xff] }
  0xde   : > { %1566 = vmatpush.bf16.msra.mxu0 %v9921_v8  ;;  %1832 = vmatpush.bf16.msra.mxu3 %v9930_v27  ;;  %v9951_v63 = vld [vmem:[%s11610_s23 + $0x40] sm:$0xff]  ;;  %v9977_v15 = vld [vmem:[%s11620_s27 + $0x10] sm:$0xff]  ;;  %v9976_v17 = vld [vmem:[%s11620_s27 + $0x8] sm:$0xff] }
  0xdf   : > { %v9982_v9 = vld [vmem:[%s11620_s27 + $0x38] sm:$0xff]  ;;  %v9975_v20 = vld [vmem:[%s11620_s27] sm:$0xff] }
  0xe0   : > { %1669 = vmatpush.bf16.msra.mxu1 %v9937_v34  ;;  %v9978_v13 = vld [vmem:[%s11620_s27 + $0x18] sm:$0xff]  ;;  %v11785_v34 = vshrl.u32 %v1411_v30, 7 }
  0xe1   : > { %1753 = vmatpush.bf16.msra.mxu2 %v9945_v35  ;;  %v9990_v14 = vld [vmem:[%s11620_s27 + $0x78] sm:$0xff] }
  0xe2   : > { %1567 = vmatpush.bf16.msra.mxu0 %v9920_v12  ;;  %1833 = vmatpush.bf16.msra.mxu3 %v9929_v36  ;;  %v9979_v12 = vld [vmem:[%s11620_s27 + $0x20] sm:$0xff]  ;;  %v9986_v26 = vld [vmem:[%s11620_s27 + $0x58] sm:$0xff]  ;;  %vm1440_vm0 = vcmp.ge.s32.totalorder %v11785_v34, 4  ;;  %vm1771_vm1 = vcmp.lt.s32.totalorder %v11785_v34, 4  ;;  %vm1416_vm3 = vcmp.ge.s32.totalorder %v11785_v34, 1  ;;  %vm2059_vm4 = vcmp.lt.s32.totalorder %v11785_v34, 1 }
  0xe3   : > { %v9983_v36 = vld [vmem:[%s11620_s27 + $0x40] sm:$0xff]  ;;  %vm2139_vm5 = vcmp.lt.s32.totalorder %v11785_v34, 7  ;;  %vm1428_vm7 = vcmp.ge.s32.totalorder %v11785_v34, 2  ;;  %vm2539_vm8 = vcmp.lt.s32.totalorder %v11785_v34, 2  ;;  %vm2619_vm9 = vcmp.lt.s32.totalorder %v11785_v34, 6 }
  0xe4   : > { %1670 = vmatpush.bf16.msra.mxu1 %v9936_v38 }
  0xe5   : > { %1754 = vmatpush.bf16.msra.mxu2 %v9944_v39 }
  0xe6   : > { %1568 = vmatpush.bf16.msra.mxu0 %v9919_v16  ;;  %1834 = vmatpush.bf16.msra.mxu3 %v9928_v40  ;;  %v9989_v16 = vld [vmem:[%s11620_s27 + $0x70] sm:$0xff] }
  0xe8   : > { %1671 = vmatpush.bf16.msra.mxu1 %v9935_v42  ;;  %v11173_v42 = vmov 0.0  }
  0xe9   : > { %1569 = vmatmul.bf16.vlgmr.msra.gmra.mxu0 %v1491_v23  ;;  %1755 = vmatpush.bf16.msra.mxu2 %v9943_v43  ;;  %v9987_v23 = vld [vmem:[%s11620_s27 + $0x60] sm:$0xff]  ;;  %v11792_v43 = vsel %vm1440_vm0, 1.0, %v11173_v42 }
  0xea   : > { %1952 = vmatpush.bf16.msrb.mxu0 %v9966_v19  ;;  %1835 = vmatpush.bf16.msra.mxu3 %v9927_v44  ;;  %v9988_v19 = vld [vmem:[%s11620_s27 + $0x68] sm:$0xff] }
  0xec   : > { %2036 = vmatpush.bf16.msrb.mxu1 %v9974_v46 }
  0xed   : > { %2116 = vmatpush.bf16.msrb.mxu2 %v9958_v47 }
  0xee   : > { %1953 = vmatpush.bf16.msrb.mxu0 %v9965_v24  ;;  %2244 = vmatpush.bf16.msrb.mxu3 %v9990_v14 }
  0xf0   : > { %2037 = vmatpush.bf16.msrb.mxu1 %v9973_v48 }
  0xf1   : > { %2117 = vmatpush.bf16.msrb.mxu2 %v9957_v49 }
  0xf2   : > { %1954 = vmatpush.bf16.msrb.mxu0 %v9964_v28  ;;  %2245 = vmatpush.bf16.msrb.mxu3 %v9989_v16  ;;  %v9985_v28 = vld [vmem:[%s11620_s27 + $0x50] sm:$0xff] }
  0xf4   : > { %2038 = vmatpush.bf16.msrb.mxu1 %v9972_v50 }
  0xf5   : > { %2118 = vmatpush.bf16.msrb.mxu2 %v9956_v51 }
  0xf6   : > { %1955 = vmatpush.bf16.msrb.mxu0 %v9963_v29  ;;  %2246 = vmatpush.bf16.msrb.mxu3 %v9988_v19 }
  0xf8   : > { %2039 = vmatpush.bf16.msrb.mxu1 %v9971_v52 }
  0xf9   : > { %1574 = vmatmul.bf16.gmra.mxu0 %v1492_v33  ;;  %2119 = vmatpush.bf16.msrb.mxu2 %v9955_v53 }
  0xfa   : > { %1956 = vmatpush.bf16.msrb.mxu0 %v9962_v32  ;;  %2247 = vmatpush.bf16.msrb.mxu3 %v9987_v23  ;;  %v9984_v32 = vld [vmem:[%s11620_s27 + $0x48] sm:$0xff] }
  0xfc   : > { %2040 = vmatpush.bf16.msrb.mxu1 %v9970_v54  ;;  %v10503_v54 = vld [vmem:[%s11604_s0] ss:$0 sm:$0xff] }
  0xfd   : > { %2120 = vmatpush.bf16.msrb.mxu2 %v9954_v55 }
  0xfe   : > { %1957 = vmatpush.bf16.msrb.mxu0 %v9961_v37  ;;  %2248 = vmatpush.bf16.msrb.mxu3 %v9986_v26 }
 0x100   : > { %2041 = vmatpush.bf16.msrb.mxu1 %v9969_v56 }
 0x101   : > { %2121 = vmatpush.bf16.msrb.mxu2 %v9953_v57  ;;  %v11805_v57 = vadd.s32 24, %v11785_v34 }
 0x102   : > { %1958 = vmatpush.bf16.msrb.mxu0 %v9960_v41  ;;  %2249 = vmatpush.bf16.msrb.mxu3 %v9985_v28 }
 0x103   : > { %vm1479_vm2 = vcmp.lt.s32.totalorder %v11805_v57, 28  ;;  %vm1455_vm6 = vcmp.lt.s32.totalorder %v11805_v57, 31  ;;  %vm1467_vm10 = vcmp.lt.s32.totalorder %v11805_v57, 30 }
 0x104   : > { %2042 = vmatpush.bf16.msrb.mxu1 %v9968_v59 }
 0x105   : > { %2122 = vmatpush.bf16.msrb.mxu2 %v9952_v60 }
 0x106   : > { %1959 = vmatpush.bf16.msrb.mxu0 %v9959_v45  ;;  %2250 = vmatpush.bf16.msrb.mxu3 %v9984_v32 }
 0x108   : > { %2043 = vmatpush.bf16.msrb.mxu1 %v9967_v62 }
 0x109   : > { %2123 = vmatpush.bf16.msrb.mxu2 %v9951_v63 }
 0x10a   : > { %2311 = vmatpush.bf16.msra.mxu0 %v9982_v9  ;;  %2251 = vmatpush.bf16.msrb.mxu3 %v9983_v36 }
 0x10e   : > { %2312 = vmatpush.bf16.msra.mxu0 %v9981_v10 }
 0x112   : > { %2313 = vmatpush.bf16.msra.mxu0 %v9980_v11 }
 0x116   : > { %2314 = vmatpush.bf16.msra.mxu0 %v9979_v12 }
 0x11a   : > { %2315 = vmatpush.bf16.msra.mxu0 %v9978_v13 }
 0x11e   : > { %2316 = vmatpush.bf16.msra.mxu0 %v9977_v15 }
 0x122   : > { %2317 = vmatpush.bf16.msra.mxu0 %v9976_v17  ;;  %v11821_v17 = vsel %vm1416_vm3, 1.0, %v11173_v42 }
 0x126   : > { %2318 = vmatpush.bf16.msra.mxu0 %v9975_v20 }
 0x166   : > { %v1570_v58 = vpop.f32.mrf.mxu0 }
 0x167   : > { %v11751_v1 = vadd.f32 %v10502_v61, %v1570_v58 }
 0x16e   : > { %v1572_v0 = vpop.f32.mrf.mxu0 }
 0x16f   : > { %v11753_v2 = vadd.f32 %v10502_v61, %v1572_v0 }
 0x171   : > { %v1580_v3 = vpack.c.bf16 %v11753_v2, %v11751_v1 }
 0x173   : > { %1672 = vmatmul.bf16.vlgmr.msra.gmra.mxu1 %v1580_v3  ;;  %1756 = vmatmul.bf16.vlgmr.msra.gmra.mxu2 %v1580_v3 }
 0x174   : > { %1836 = vmatmul.bf16.vlgmr.msra.gmra.mxu3 %v1580_v3  ;;  %1960 = vmatmul.bf16.vlgmr.msrb.gmra.mxu0 %v1580_v3 }
 0x176   : > { %v1575_v4 = vpop.f32.mrf.mxu0 }
 0x177   : > { %v11757_v6 = vadd.f32 %v10502_v61, %v1575_v4 }
 0x17e   : > { %v1577_v5 = vpop.f32.mrf.mxu0 }
 0x17f   : > { %v11759_v7 = vadd.f32 %v10502_v61, %v1577_v5  ;;  %v11813_v5 = vsel %vm1479_vm2, 1.0, %v11173_v42 }
 0x181   : > { %v1581_v8 = vpack.c.bf16 %v11759_v7, %v11757_v6 }
 0x183   : > { %1677 = vmatmul.bf16.gmra.mxu1 %v1581_v8  ;;  %1761 = vmatmul.bf16.gmra.mxu2 %v1581_v8 }
 0x184   : > { %1841 = vmatmul.bf16.gmra.mxu3 %v1581_v8  ;;  %1965 = vmatmul.bf16.gmra.mxu0 %v1581_v8 }
 0x193   : > { %2044 = vmatmul.bf16.vlgmr.msrb.gmra.mxu1 %v1580_v3  ;;  %2124 = vmatmul.bf16.vlgmr.msrb.gmra.mxu2 %v1580_v3 }
 0x1a3   : > { %2049 = vmatmul.bf16.gmra.mxu1 %v1581_v8  ;;  %2129 = vmatmul.bf16.gmra.mxu2 %v1581_v8 }
 0x1f0   : > { %v1673_v18 = vpop.f32.mrf.mxu1 }
 0x1f1   : > { %v11774_v21 = vpop.f32.mrf.mxu0  ;;  %v1767_v40 = vrot.slane %v1673_v18, 4 }
 0x1f2   : > { %v2055_v14 = vrot.slane %v11774_v21, 7 }
 0x1f6   : > { %v1757_v22 = vpop.f32.mrf.mxu2 }
 0x1f7   : > { %v1837_v25 = vpop.f32.mrf.mxu3  ;;  %v1847_v51 = vrot.slane %v1757_v22, 4 }
 0x1f8   : > { %v11777_v24 = vpop.f32.mrf.mxu1 }
 0x1f9   : > { %v11781_v29 = vpop.f32.mrf.mxu0  ;;  %v1768_v37 = vrot.slane %v11777_v24, 4 }
 0x1fa   : > { %v2056_v24 = vrot.slane %v11781_v29, 7 }
 0x1fb   : > { %v1774_v46 = vsel %vm1771_vm1, %v1767_v40, %v1768_v37 }
 0x1fc   : > { %v2062_v36 = vsel %vm2059_vm4, %v2055_v14, %v2056_v24 }
 0x1fe   : > { %v1759_v27 = vpop.f32.mrf.mxu2 }
 0x1ff   : > { %v1839_v33 = vpop.f32.mrf.mxu3  ;;  %v1848_v41 = vrot.slane %v1759_v27, 4 }
 0x200   : > { %v1678_v31 = vpop.f32.mrf.mxu1  ;;  %v1840_v49 = vadd.f32 %v1839_v33, %v1774_v46 }
 0x201   : > { %v11794_v45 = vpop.f32.mrf.mxu0  ;;  %v1853_v58 = vsel %vm1771_vm1, %v1847_v51, %v1848_v41  ;;  %v1769_v9 = vrot.slane %v1678_v31, 4 }
 0x203   : > { %v1773_v18 = vsel %vm1771_vm1, %v1768_v37, %v1769_v9 }
 0x206   : > { %v1762_v35 = vpop.f32.mrf.mxu2 }
 0x207   : > { %v1849_v38 = vrot.slane %v1762_v35, 4  ;;  %v1842_v52 = vpop.f32.mrf.mxu3 }
 0x208   : > { %v1680_v39 = vpop.f32.mrf.mxu1  ;;  %v1843_v21 = vadd.f32 %v1842_v52, %v1773_v18  ;;  %v10004_v18 = vld [vmem:[%s11601_s25 + $0xe8] sm:$0xff] }
 0x209   : > { %v1770_v44 = vrot.slane %v1680_v39, 4  ;;  %v1852_v47 = vsel %vm1771_vm1, %v1848_v41, %v1849_v38  ;;  %v1968_v0 = vpop.f32.mrf.mxu0  ;;  %v10504_v41 = vld [vmem:[%s11613_s24] ss:$0 sm:$0xff] }
 0x20a   : > { %v1860_v53 = vadd.f32 %v1852_v47, %v1840_v49  ;;  %v2058_v10 = vrot.slane %v1968_v0, 7 }
 0x20b   : > { %v1775_v48 = vsel %vm1771_vm1, %v1770_v44, %v1767_v40  ;;  %v1772_v15 = vsel %vm1771_vm1, %v1769_v9, %v1770_v44  ;;  %v10006_v9 = vld [vmem:[%s11601_s25 + $0xf8] sm:$0xff] }
 0x20c   : > { %v1776_v50 = vmul.f32 %v11792_v43, %v1775_v48  ;;  %v1867_v62 = vadd.f32 %v10503_v54, %v1860_v53  ;;  %v2063_v20 = vsel %vm2059_vm4, %v2058_v10, %v2055_v14  ;;  %v2057_v53 = vrot.slane %v11794_v45, 7  ;;  %2432 = vmatpush.bf16.msra.mxu1 %v10006_v9  ;;  %v10013_v14 = vld [vmem:[%s11601_s25 + $0x170] sm:$0xff] }
 0x20d   : > { %v2064_v26 = vmul.f32 %v11821_v17, %v2063_v20  ;;  %v9996_v20 = vld [vmem:[%s11601_s25 + $0x128] sm:$0xff] }
 0x20e   : > { %v1838_v55 = vadd.f32 %v1837_v25, %v1776_v50  ;;  %v1764_v56 = vpop.f32.mrf.mxu2  ;;  %v10032_v9 = vld [vmem:[%s11610_s23 + $0x148] sm:$0xff] }
 0x20f   : > { %v1850_v61 = vrot.slane %v1764_v56, 4  ;;  %v1844_v11 = vpop.f32.mrf.mxu3  ;;  %v2060_v56 = vsel %vm2059_vm4, %v2057_v53, %v2058_v10  ;;  %v10014_v10 = vld [vmem:[%s11601_s25 + $0x178] sm:$0xff] }
 0x210   : > { %v1859_v59 = vadd.f32 %v1853_v58, %v1838_v55  ;;  %v2045_v60 = vpop.f32.mrf.mxu1  ;;  %v1845_v16 = vadd.f32 %v1844_v11, %v1772_v15  ;;  %v11845_v55 = vsel %vm1455_vm6, 1.0, %v11173_v42  ;;  %v9998_v11 = vld [vmem:[%s11601_s25 + $0x138] sm:$0xff]  ;;  %2516 = vmatpush.bf16.msra.mxu2 %v10014_v10  ;;  %v9997_v15 = vld [vmem:[%s11601_s25 + $0x130] sm:$0xff] }
 0x211   : > { %v1854_v4 = vsel %vm1771_vm1, %v1850_v61, %v1847_v51  ;;  %v1851_v19 = vsel %vm1771_vm1, %v1849_v38, %v1850_v61  ;;  %v2135_v25 = vrot.slane %v2045_v60, 1  ;;  %2596 = vmatpush.bf16.msra.mxu3 %v9998_v11  ;;  %v10016_v10 = vld [vmem:[%s11610_s23 + $0x108] sm:$0xff] }
 0x212   : > { %v1866_v63 = vadd.f32 %v10503_v54, %v1859_v59  ;;  %v1858_v12 = vmul.f32 %v11813_v5, %v1854_v4  ;;  %v1861_v28 = vadd.f32 %v1851_v19, %v1843_v21  ;;  %v2061_v59 = vsel %vm2059_vm4, %v2056_v24, %v2057_v53  ;;  %v10012_v19 = vld [vmem:[%s11601_s25 + $0x168] sm:$0xff]  ;;  %v10003_v21 = vld [vmem:[%s11601_s25 + $0xe0] sm:$0xff] }
 0x213   : > { %v9995_v24 = vld [vmem:[%s11601_s25 + $0x120] sm:$0xff]  ;;  %v10020_v53 = vld [vmem:[%s11610_s23 + $0x128] sm:$0xff] }
 0x214   : > { %v2159_v3 = vpack.c.bf16 %v1867_v62, %v1866_v63  ;;  %v1862_v23 = vadd.f32 %v1858_v12, %v1845_v16  ;;  %v1868_v40 = vadd.f32 %v10503_v54, %v1861_v28  ;;  %v10030_v12 = vld [vmem:[%s11610_s23 + $0xf8] sm:$0xff]  ;;  %v10029_v16 = vld [vmem:[%s11610_s23 + $0xf0] sm:$0xff]  ;;  %2517 = vmatpush.bf16.msra.mxu2 %v10013_v14 }
 0x215   : > { %2723 = vmatpush.bf16.msrb.mxu0 %v10030_v12  ;;  %2597 = vmatpush.bf16.msra.mxu3 %v9997_v15  ;;  %v9994_v28 = vld [vmem:[%s11601_s25 + $0x118] sm:$0xff]  ;;  %v10031_v15 = vld [vmem:[%s11610_s23 + $0x140] sm:$0xff] }
 0x216   : > { %v2125_v8 = vpop.f32.mrf.mxu2  ;;  %2319 = vmatmul.bf16.vlgmr.msra.gmra.mxu0 %v2159_v3  ;;  %v1869_v35 = vadd.f32 %v10503_v54, %v1862_v23  ;;  %v10011_v23 = vld [vmem:[%s11601_s25 + $0x160] sm:$0xff] }
 0x217   : > { %v2126_v32 = vadd.f32 %v2125_v8, %v2064_v26  ;;  %v10002_v26 = vld [vmem:[%s11601_s25 + $0xd8] sm:$0xff] }
 0x218   : > { %v2047_v13 = vpop.f32.mrf.mxu1  ;;  %v2160_v46 = vpack.c.bf16 %v1869_v35, %v1868_v40  ;;  %2518 = vmatpush.bf16.msra.mxu2 %v10012_v19  ;;  %v9993_v35 = vld [vmem:[%s11601_s25 + $0x110] sm:$0xff] }
 0x219   : > { %v2136_v22 = vrot.slane %v2047_v13, 1  ;;  %v10005_v13 = vld [vmem:[%s11601_s25 + $0xf0] sm:$0xff]  ;;  %2724 = vmatpush.bf16.msrb.mxu0 %v10029_v16  ;;  %2598 = vmatpush.bf16.msra.mxu3 %v9996_v20  ;;  %v10015_v16 = vld [vmem:[%s11610_s23 + $0x100] sm:$0xff] }
 0x21a   : > { %2433 = vmatpush.bf16.msra.mxu1 %v10005_v13  ;;  %v10024_v40 = vld [vmem:[%s11610_s23 + $0xc8] sm:$0xff] }
 0x21b   : > { %v2142_v31 = vsel %vm2139_vm5, %v2135_v25, %v2136_v22 }
 0x21c   : > { %v2148_v38 = vadd.f32 %v2142_v31, %v2126_v32  ;;  %2519 = vmatpush.bf16.msra.mxu2 %v10011_v23  ;;  %v10026_v31 = vld [vmem:[%s11610_s23 + $0xd8] sm:$0xff]  ;;  %v10001_v32 = vld [vmem:[%s11601_s25 + $0xd0] sm:$0xff] }
 0x21d   : > { %2599 = vmatpush.bf16.msra.mxu3 %v9995_v24 }
 0x21e   : > { %v2127_v27 = vpop.f32.mrf.mxu2  ;;  %v2155_v48 = vadd.f32 %v10504_v41, %v2148_v38  ;;  %2434 = vmatpush.bf16.msra.mxu1 %v10004_v18  ;;  %v10008_v38 = vld [vmem:[%s11601_s25 + $0x148] sm:$0xff] }
 0x21f   : > { %v2128_v39 = vadd.f32 %v2127_v27, %v2062_v36  ;;  %v10010_v27 = vld [vmem:[%s11601_s25 + $0x158] sm:$0xff] }
 0x220   : > { %v2050_v33 = vpop.f32.mrf.mxu1  ;;  %2520 = vmatpush.bf16.msra.mxu2 %v10010_v27  ;;  %v10025_v36 = vld [vmem:[%s11610_s23 + $0xd0] sm:$0xff] }
 0x221   : > { %v2137_v37 = vrot.slane %v2050_v33, 1  ;;  %2600 = vmatpush.bf16.msra.mxu3 %v9994_v28  ;;  %v10009_v33 = vld [vmem:[%s11601_s25 + $0x150] sm:$0xff] }
 0x222   : > { %2435 = vmatpush.bf16.msra.mxu1 %v10003_v21 }
 0x223   : > { %v2141_v29 = vsel %vm2139_vm5, %v2136_v22, %v2137_v37  ;;  %v10028_v22 = vld [vmem:[%s11610_s23 + $0xe8] sm:$0xff] }
 0x224   : > { %v2149_v44 = vadd.f32 %v2141_v29, %v2128_v39  ;;  %2725 = vmatpush.bf16.msrb.mxu0 %v10028_v22  ;;  %2521 = vmatpush.bf16.msra.mxu2 %v10009_v33  ;;  %v9992_v39 = vld [vmem:[%s11601_s25 + $0x108] sm:$0xff]  ;;  %v10007_v29 = vld [vmem:[%s11601_s25 + $0x140] sm:$0xff]  ;;  %v10044_v33 = vld [vmem:[%s11620_s27 + $0xa8] sm:$0xff] }
 0x225   : > { %2601 = vmatpush.bf16.msra.mxu3 %v9993_v35  ;;  %v10043_v35 = vld [vmem:[%s11620_s27 + $0xa0] sm:$0xff] }
 0x226   : > { %v2130_v47 = vpop.f32.mrf.mxu2  ;;  %2324 = vmatmul.bf16.gmra.mxu0 %v2160_v46  ;;  %v2156_v49 = vadd.f32 %v10504_v41, %v2149_v44  ;;  %2436 = vmatpush.bf16.msra.mxu1 %v10002_v26  ;;  %v9991_v44 = vld [vmem:[%s11601_s25 + $0x100] sm:$0xff] }
 0x227   : > { %v2131_v62 = vadd.f32 %v2130_v47, %v2061_v59  ;;  %v10023_v46 = vld [vmem:[%s11610_s23 + $0xc0] sm:$0xff]  ;;  %v10038_v47 = vld [vmem:[%s11610_s23 + $0x178] sm:$0xff] }
 0x228   : > { %v2052_v50 = vpop.f32.mrf.mxu1  ;;  %v2177_v51 = vpack.c.bf16 %v2156_v49, %v2155_v48  ;;  %2522 = vmatpush.bf16.msra.mxu2 %v10008_v38  ;;  %v10022_v48 = vld [vmem:[%s11610_s23 + $0x138] sm:$0xff]  ;;  %v10037_v49 = vld [vmem:[%s11610_s23 + $0x170] sm:$0xff] }
 0x229   : > { %v2138_v52 = vrot.slane %v2052_v50, 1  ;;  %2602 = vmatpush.bf16.msra.mxu3 %v9992_v39  ;;  %v10021_v50 = vld [vmem:[%s11610_s23 + $0x130] sm:$0xff] }
 0x22a   : > { %2252 = vmatmul.bf16.vlgmr.msrb.gmra.mxu3 %v2177_v51  ;;  %2437 = vmatpush.bf16.msra.mxu1 %v10001_v32  ;;  %v10041_v38 = vld [vmem:[%s11620_s27 + $0x90] sm:$0xff] }
 0x22b   : > { %v2143_v54 = vsel %vm2139_vm5, %v2138_v52, %v2135_v25  ;;  %v2140_v45 = vsel %vm2139_vm5, %v2137_v37, %v2138_v52  ;;  %v10027_v25 = vld [vmem:[%s11610_s23 + $0xe0] sm:$0xff]  ;;  %v10036_v52 = vld [vmem:[%s11610_s23 + $0x168] sm:$0xff]  ;;  %v10053_v39 = vld [vmem:[%s11620_s27 + $0xf0] sm:$0xff] }
 0x22c   : > { %v2147_v61 = vmul.f32 %v11845_v55, %v2143_v54  ;;  %v2150_v0 = vadd.f32 %v2140_v45, %v2131_v62  ;;  %2726 = vmatpush.bf16.msrb.mxu0 %v10027_v25  ;;  %v10000_v37 = vld [vmem:[%s11601_s25 + $0xc8] sm:$0xff]  ;;  %2523 = vmatpush.bf16.msra.mxu2 %v10007_v29  ;;  %v10018_v62 = vld [vmem:[%s11610_s23 + $0x118] sm:$0xff]  ;;  %v10052_v29 = vld [vmem:[%s11620_s27 + $0xe8] sm:$0xff] }
 0x22d   : > { %2603 = vmatpush.bf16.msra.mxu3 %v9991_v44  ;;  %v10505_v45 = vld [vmem:[%s11623_s7] ss:$0 sm:$0xff] }
 0x22e   : > { %v2132_v58 = vpop.f32.mrf.mxu2  ;;  %v2157_v4 = vadd.f32 %v10504_v41, %v2150_v0  ;;  %2438 = vmatpush.bf16.msra.mxu1 %v10000_v37  ;;  %v10017_v0 = vld [vmem:[%s11610_s23 + $0x110] sm:$0xff]  ;;  %v10054_v37 = vld [vmem:[%s11620_s27 + $0xf8] sm:$0xff]  ;;  %v10039_v44 = vld [vmem:[%s11620_s27 + $0x80] sm:$0xff] }
 0x22f   : > { %v2133_v60 = vadd.f32 %v2132_v58, %v2060_v56  ;;  %v10035_v56 = vld [vmem:[%s11610_s23 + $0x160] sm:$0xff] }
 0x230   : > { %2727 = vmatpush.bf16.msrb.mxu0 %v10026_v31  ;;  %2886 = vmatpush.bf16.msrb.mxu2 %v10022_v48  ;;  %v10019_v58 = vld [vmem:[%s11610_s23 + $0x120] sm:$0xff] }
 0x231   : > { %v2151_v63 = vadd.f32 %v2147_v61, %v2133_v60  ;;  %v10034_v61 = vld [vmem:[%s11610_s23 + $0x158] sm:$0xff]  ;;  %3014 = vmatpush.bf16.msrb.mxu3 %v10054_v37  ;;  %v10051_v48 = vld [vmem:[%s11620_s27 + $0xe0] sm:$0xff] }
 0x233   : > { %v2158_v3 = vadd.f32 %v10504_v41, %v2151_v63  ;;  %v9999_v41 = vld [vmem:[%s11601_s25 + $0xc0] sm:$0xff]  ;;  %v10033_v63 = vld [vmem:[%s11610_s23 + $0x150] sm:$0xff] }
 0x234   : > { %2728 = vmatpush.bf16.msrb.mxu0 %v10025_v36  ;;  %2439 = vmatpush.bf16.msra.mxu1 %v9999_v41  ;;  %v10042_v36 = vld [vmem:[%s11620_s27 + $0x98] sm:$0xff] }
 0x235   : > { %v2178_v8 = vpack.c.bf16 %v2158_v3, %v2157_v4  ;;  %2887 = vmatpush.bf16.msrb.mxu2 %v10021_v50  ;;  %3015 = vmatpush.bf16.msrb.mxu3 %v10053_v39 }
 0x238   : > { %2729 = vmatpush.bf16.msrb.mxu0 %v10024_v40  ;;  %2807 = vmatpush.bf16.msrb.mxu1 %v10038_v47  ;;  %v10040_v40 = vld [vmem:[%s11620_s27 + $0x88] sm:$0xff] }
 0x239   : > { %2888 = vmatpush.bf16.msrb.mxu2 %v10020_v53  ;;  %3016 = vmatpush.bf16.msrb.mxu3 %v10052_v29  ;;  %v10049_v53 = vld [vmem:[%s11620_s27 + $0xd0] sm:$0xff] }
 0x23a   : > { %2257 = vmatmul.bf16.gmra.mxu3 %v2178_v8 }
 0x23c   : > { %2730 = vmatpush.bf16.msrb.mxu0 %v10023_v46  ;;  %2808 = vmatpush.bf16.msrb.mxu1 %v10037_v49 }
 0x23d   : > { %2889 = vmatpush.bf16.msrb.mxu2 %v10019_v58  ;;  %3017 = vmatpush.bf16.msrb.mxu3 %v10051_v48 }
 0x240   : > { %2809 = vmatpush.bf16.msrb.mxu1 %v10036_v52 }
 0x241   : > { %2890 = vmatpush.bf16.msrb.mxu2 %v10018_v62  ;;  %v10047_v62 = vld [vmem:[%s11620_s27 + $0xc0] sm:$0xff] }
 0x244   : > { %2810 = vmatpush.bf16.msrb.mxu1 %v10035_v56 }
 0x245   : > { %2891 = vmatpush.bf16.msrb.mxu2 %v10017_v0 }
 0x248   : > { %2811 = vmatpush.bf16.msrb.mxu1 %v10034_v61 }
 0x249   : > { %2892 = vmatpush.bf16.msrb.mxu2 %v10016_v10 }
 0x24c   : > { %2812 = vmatpush.bf16.msrb.mxu1 %v10033_v63 }
 0x24d   : > { %2893 = vmatpush.bf16.msrb.mxu2 %v10015_v16 }
 0x250   : > { %2813 = vmatpush.bf16.msrb.mxu1 %v10032_v9 }
 0x254   : > { %2814 = vmatpush.bf16.msrb.mxu1 %v10031_v15 }
 0x293   : > { %v2320_v51 = vpop.f32.mrf.mxu0 }
 0x29b   : > { %v2322_v60 = vpop.f32.mrf.mxu0 }
 0x2a3   : > { %v2325_v14 = vpop.f32.mrf.mxu0 }
 0x2ab   : > { %v2327_v24 = vpop.f32.mrf.mxu0 }
 0x2ad   : > { %v2253_v54 = vpop.f32.mrf.mxu3 }
 0x2ae   : > { %v2321_v59 = vadd.f32 %v2320_v51, %v2253_v54  ;;  %v10050_v51 = vld [vmem:[%s11620_s27 + $0xd8] sm:$0xff] }
 0x2af   : > { %3018 = vmatpush.bf16.msrb.mxu3 %v10050_v51 }
 0x2b0   : > { %v2334_v3 = vadd.f32 %v10505_v45, %v2321_v59  ;;  %v10048_v59 = vld [vmem:[%s11620_s27 + $0xc8] sm:$0xff] }
 0x2b2   : > { %v2338_v11 = vmax.f32 %v2334_v3, 0.0 }
 0x2b3   : > { %3019 = vmatpush.bf16.msrb.mxu3 %v10049_v53 }
 0x2b4   : > { %v11904_v18 = vadd.f32 %v2338_v11, %v11751_v1 }
 0x2b5   : > { %v2255_v4 = vpop.f32.mrf.mxu3 }
 0x2b6   : > { %v2323_v8 = vadd.f32 %v2322_v60, %v2255_v4 }
 0x2b7   : > { %3020 = vmatpush.bf16.msrb.mxu3 %v10048_v59 }
 0x2b8   : > { %v2335_v12 = vadd.f32 %v10505_v45, %v2323_v8  ;;  %v11942_v8 = vsel %vm1428_vm7, 1.0, %v11173_v42 }
 0x2ba   : > { %v2339_v13 = vmax.f32 %v2335_v12, 0.0 }
 0x2bb   : > { %3021 = vmatpush.bf16.msrb.mxu3 %v10047_v62 }
 0x2bc   : > { %v11907_v19 = vadd.f32 %v2339_v13, %v11753_v2 }
 0x2bd   : > { %v2258_v20 = vpop.f32.mrf.mxu3 }
 0x2be   : > { %v2346_v22 = vpack.c.bf16 %v11907_v19, %v11904_v18  ;;  %v2326_v21 = vadd.f32 %v2325_v14, %v2258_v20 }
 0x2c0   : > { %2440 = vmatmul.bf16.vlgmr.msra.gmra.mxu1 %v2346_v22  ;;  %2524 = vmatmul.bf16.vlgmr.msra.gmra.mxu2 %v2346_v22  ;;  %v2336_v23 = vadd.f32 %v10505_v45, %v2326_v21 }
 0x2c1   : > { %2604 = vmatmul.bf16.vlgmr.msra.gmra.mxu3 %v2346_v22  ;;  %2731 = vmatmul.bf16.vlgmr.msrb.gmra.mxu0 %v2346_v22 }
 0x2c2   : > { %v2340_v26 = vmax.f32 %v2336_v23, 0.0 }
 0x2c4   : > { %v11912_v28 = vadd.f32 %v2340_v26, %v11757_v6  ;;  %v10046_v6 = vld [vmem:[%s11620_s27 + $0xb8] sm:$0xff] }
 0x2c5   : > { %v2260_v25 = vpop.f32.mrf.mxu3  ;;  %3081 = vmatpush.bf16.msra.mxu0 %v10046_v6 }
 0x2c6   : > { %v2328_v1 = vadd.f32 %v2327_v24, %v2260_v25 }
 0x2c8   : > { %v2337_v2 = vadd.f32 %v10505_v45, %v2328_v1 }
 0x2ca   : > { %v2341_v27 = vmax.f32 %v2337_v2, 0.0 }
 0x2cc   : > { %v11915_v31 = vadd.f32 %v2341_v27, %v11759_v7  ;;  %v10045_v7 = vld [vmem:[%s11620_s27 + $0xb0] sm:$0xff] }
 0x2cd   : > { %3082 = vmatpush.bf16.msra.mxu0 %v10045_v7 }
 0x2ce   : > { %v2347_v32 = vpack.c.bf16 %v11915_v31, %v11912_v28 }
 0x2d0   : > { %2445 = vmatmul.bf16.gmra.mxu1 %v2347_v32  ;;  %2529 = vmatmul.bf16.gmra.mxu2 %v2347_v32 }
 0x2d1   : > { %2609 = vmatmul.bf16.gmra.mxu3 %v2347_v32  ;;  %2736 = vmatmul.bf16.gmra.mxu0 %v2347_v32 }
 0x2d2   : > { %3083 = vmatpush.bf16.msra.mxu0 %v10044_v33  ;;  %v11961_v33 = vsel %vm1467_vm10, 1.0, %v11173_v42 }
 0x2d6   : > { %3084 = vmatpush.bf16.msra.mxu0 %v10043_v35 }
 0x2da   : > { %3085 = vmatpush.bf16.msra.mxu0 %v10042_v36 }
 0x2de   : > { %3086 = vmatpush.bf16.msra.mxu0 %v10041_v38 }
 0x2e0   : > { %2815 = vmatmul.bf16.vlgmr.msrb.gmra.mxu1 %v2346_v22  ;;  %2894 = vmatmul.bf16.vlgmr.msrb.gmra.mxu2 %v2346_v22  ;;  %v10506_v22 = vld [vmem:[%s11604_s0 + $0x1] ss:$0 sm:$0xff] }
 0x2e2   : > { %3087 = vmatpush.bf16.msra.mxu0 %v10040_v40 }
 0x2e6   : > { %3088 = vmatpush.bf16.msra.mxu0 %v10039_v44 }
 0x2f0   : > { %2820 = vmatmul.bf16.gmra.mxu1 %v2347_v32  ;;  %2899 = vmatmul.bf16.gmra.mxu2 %v2347_v32 }
 0x33d   : > { %v2441_v41 = vpop.f32.mrf.mxu1 }
 0x33e   : > { %v11930_v46 = vpop.f32.mrf.mxu0  ;;  %v2535_v0 = vrot.slane %v2441_v41, 6 }
 0x33f   : > { %v2826_v41 = vrot.slane %v11930_v46, 6 }
 0x343   : > { %v2525_v47 = vpop.f32.mrf.mxu2 }
 0x344   : > { %v2605_v50 = vpop.f32.mrf.mxu3  ;;  %v2615_v15 = vrot.slane %v2525_v47, 2 }
 0x345   : > { %v2443_v49 = vpop.f32.mrf.mxu1 }
 0x346   : > { %v11935_v54 = vpop.f32.mrf.mxu0  ;;  %v2536_v60 = vrot.slane %v2443_v49, 6 }
 0x347   : > { %v2827_v51 = vrot.slane %v11935_v54, 6 }
 0x348   : > { %v2542_v10 = vsel %vm2539_vm8, %v2535_v0, %v2536_v60 }
 0x34b   : > { %v2527_v52 = vpop.f32.mrf.mxu2 }
 0x34c   : > { %v2607_v58 = vpop.f32.mrf.mxu3  ;;  %v2616_v3 = vrot.slane %v2527_v52, 2 }
 0x34d   : > { %v2446_v56 = vpop.f32.mrf.mxu1  ;;  %v2608_v13 = vadd.f32 %v2607_v58, %v2542_v10 }
 0x34e   : > { %v11945_v9 = vpop.f32.mrf.mxu0  ;;  %v2622_v24 = vsel %vm2619_vm9, %v2615_v15, %v2616_v3  ;;  %v2537_v36 = vrot.slane %v2446_v56, 6 }
 0x350   : > { %v2541_v44 = vsel %vm2539_vm8, %v2536_v60, %v2537_v36 }
 0x353   : > { %v2530_v45 = vpop.f32.mrf.mxu2 }
 0x354   : > { %v2617_v61 = vrot.slane %v2530_v45, 2  ;;  %v2610_v16 = vpop.f32.mrf.mxu3 }
 0x355   : > { %v2448_v63 = vpop.f32.mrf.mxu1  ;;  %v2611_v49 = vadd.f32 %v2610_v16, %v2541_v44  ;;  %v10068_v44 = vld [vmem:[%s11601_s25 + $0x1a8] sm:$0xff] }
 0x356   : > { %v2538_v4 = vrot.slane %v2448_v63, 6  ;;  %v2621_v11 = vsel %vm2619_vm9, %v2616_v3, %v2617_v61  ;;  %v2739_v32 = vpop.f32.mrf.mxu0 }
 0x357   : > { %v2629_v20 = vadd.f32 %v2621_v11, %v2608_v13  ;;  %v2829_v37 = vrot.slane %v2739_v32, 6 }
 0x358   : > { %v2543_v12 = vsel %vm2539_vm8, %v2538_v4, %v2535_v0  ;;  %v2540_v57 = vsel %vm2539_vm8, %v2537_v36, %v2538_v4  ;;  %v10507_v0 = vld [vmem:[%s11613_s24 + $0x1] ss:$0 sm:$0xff]  ;;  %v10070_v36 = vld [vmem:[%s11601_s25 + $0x1b8] sm:$0xff] }
 0x359   : > { %v2544_v14 = vmul.f32 %v11942_v8, %v2543_v12  ;;  %v2636_v2 = vadd.f32 %v10506_v22, %v2629_v20  ;;  %v2833_v47 = vsel %vm2539_vm8, %v2829_v37, %v2826_v41  ;;  %3203 = vmatpush.bf16.msra.mxu1 %v10070_v36  ;;  %v10096_v36 = vld [vmem:[%s11610_s23 + $0x208] sm:$0xff] }
 0x35a   : > { %v2834_v52 = vmul.f32 %v11942_v8, %v2833_v47  ;;  %v10060_v47 = vld [vmem:[%s11601_s25 + $0x1e8] sm:$0xff] }
 0x35b   : > { %v2532_v21 = vpop.f32.mrf.mxu2  ;;  %v2606_v23 = vadd.f32 %v2605_v50, %v2544_v14 }
 0x35c   : > { %v2618_v26 = vrot.slane %v2532_v21, 2  ;;  %v2612_v38 = vpop.f32.mrf.mxu3  ;;  %v2828_v21 = vrot.slane %v11945_v9, 6 }
 0x35d   : > { %v2816_v25 = vpop.f32.mrf.mxu1  ;;  %v2628_v1 = vadd.f32 %v2622_v24, %v2606_v23  ;;  %v2613_v29 = vadd.f32 %v2612_v38, %v2540_v57  ;;  %v10062_v38 = vld [vmem:[%s11601_s25 + $0x1f8] sm:$0xff]  ;;  %v10061_v57 = vld [vmem:[%s11601_s25 + $0x1f0] sm:$0xff] }
 0x35e   : > { %v2623_v7 = vsel %vm2619_vm9, %v2618_v26, %v2615_v15  ;;  %v2620_v42 = vsel %vm2619_vm9, %v2617_v61, %v2618_v26  ;;  %v2905_v46 = vrot.slane %v2816_v25, 2  ;;  %v2832_v61 = vsel %vm2539_vm8, %v2826_v41, %v2827_v51  ;;  %3366 = vmatpush.bf16.msra.mxu3 %v10062_v38  ;;  %v10077_v41 = vld [vmem:[%s11601_s25 + $0x230] sm:$0xff] }
 0x35f   : > { %v2635_v27 = vadd.f32 %v10506_v22, %v2628_v1  ;;  %v2627_v39 = vmul.f32 %v11961_v33, %v2623_v7  ;;  %v2630_v56 = vadd.f32 %v2620_v42, %v2611_v49  ;;  %v2830_v23 = vsel %vm2539_vm8, %v2828_v21, %v2829_v37  ;;  %v10078_v37 = vld [vmem:[%s11601_s25 + $0x238] sm:$0xff]  ;;  %v10076_v42 = vld [vmem:[%s11601_s25 + $0x228] sm:$0xff]  ;;  %v10067_v49 = vld [vmem:[%s11601_s25 + $0x1a0] sm:$0xff] }
 0x360   : > { %v2831_v25 = vsel %vm2539_vm8, %v2827_v51, %v2828_v21  ;;  %3287 = vmatpush.bf16.msra.mxu2 %v10078_v37  ;;  %v10059_v51 = vld [vmem:[%s11601_s25 + $0x1e0] sm:$0xff]  ;;  %v10084_v21 = vld [vmem:[%s11610_s23 + $0x1e8] sm:$0xff] }
 0x361   : > { %v2928_v6 = vpack.c.bf16 %v2636_v2, %v2635_v27  ;;  %v2631_v50 = vadd.f32 %v2627_v39, %v2613_v29  ;;  %v2637_v4 = vadd.f32 %v10506_v22, %v2630_v56  ;;  %v10094_v39 = vld [vmem:[%s11610_s23 + $0x1b8] sm:$0xff]  ;;  %v10093_v29 = vld [vmem:[%s11610_s23 + $0x1b0] sm:$0xff]  ;;  %v10080_v37 = vld [vmem:[%s11610_s23 + $0x1c8] sm:$0xff] }
 0x362   : > { %3492 = vmatpush.bf16.msrb.mxu0 %v10094_v39  ;;  %3367 = vmatpush.bf16.msra.mxu3 %v10061_v57  ;;  %v10058_v56 = vld [vmem:[%s11601_s25 + $0x1d8] sm:$0xff]  ;;  %v10095_v57 = vld [vmem:[%s11610_s23 + $0x200] sm:$0xff] }
 0x363   : > { %v2895_v35 = vpop.f32.mrf.mxu2  ;;  %3089 = vmatmul.bf16.vlgmr.msra.gmra.mxu0 %v2928_v6  ;;  %v2638_v60 = vadd.f32 %v10506_v22, %v2631_v50  ;;  %v10075_v50 = vld [vmem:[%s11601_s25 + $0x220] sm:$0xff] }
 0x364   : > { %v2896_v59 = vadd.f32 %v2895_v35, %v2834_v52  ;;  %3288 = vmatpush.bf16.msra.mxu2 %v10077_v41  ;;  %v10066_v52 = vld [vmem:[%s11601_s25 + $0x198] sm:$0xff] }
 0x365   : > { %v2818_v40 = vpop.f32.mrf.mxu1  ;;  %v2929_v11 = vpack.c.bf16 %v2638_v60, %v2637_v4  ;;  %v10057_v60 = vld [vmem:[%s11601_s25 + $0x1d0] sm:$0xff]  ;;  %v10063_v4 = vld [vmem:[%s11601_s25 + $0x180] sm:$0xff] }
 0x366   : > { %v2906_v48 = vrot.slane %v2818_v40, 2  ;;  %v10069_v40 = vld [vmem:[%s11601_s25 + $0x1b0] sm:$0xff]  ;;  %3493 = vmatpush.bf16.msrb.mxu0 %v10093_v29  ;;  %3368 = vmatpush.bf16.msra.mxu3 %v10060_v47  ;;  %v10079_v29 = vld [vmem:[%s11610_s23 + $0x1c0] sm:$0xff] }
 0x367   : > { %3204 = vmatpush.bf16.msra.mxu1 %v10069_v40 }
 0x368   : > { %v2911_v58 = vsel %vm2619_vm9, %v2905_v46, %v2906_v48  ;;  %3289 = vmatpush.bf16.msra.mxu2 %v10076_v42 }
 0x369   : > { %v2917_v63 = vadd.f32 %v2911_v58, %v2896_v59  ;;  %v10090_v58 = vld [vmem:[%s11610_s23 + $0x198] sm:$0xff]  ;;  %v10065_v59 = vld [vmem:[%s11601_s25 + $0x190] sm:$0xff] }
 0x36a   : > { %3369 = vmatpush.bf16.msra.mxu3 %v10059_v51 }
 0x36b   : > { %v2897_v53 = vpop.f32.mrf.mxu2  ;;  %v2924_v12 = vadd.f32 %v10507_v0, %v2917_v63  ;;  %3205 = vmatpush.bf16.msra.mxu1 %v10068_v44  ;;  %v10072_v63 = vld [vmem:[%s11601_s25 + $0x208] sm:$0xff] }
 0x36c   : > { %v2898_v3 = vadd.f32 %v2897_v53, %v2832_v61  ;;  %3290 = vmatpush.bf16.msra.mxu2 %v10075_v50  ;;  %v10074_v53 = vld [vmem:[%s11601_s25 + $0x218] sm:$0xff] }
 0x36d   : > { %v2821_v45 = vpop.f32.mrf.mxu1  ;;  %v10089_v61 = vld [vmem:[%s11610_s23 + $0x190] sm:$0xff] }
 0x36e   : > { %v2907_v62 = vrot.slane %v2821_v45, 2  ;;  %3370 = vmatpush.bf16.msra.mxu3 %v10058_v56  ;;  %v10073_v45 = vld [vmem:[%s11601_s25 + $0x210] sm:$0xff] }
 0x36f   : > { %3206 = vmatpush.bf16.msra.mxu1 %v10067_v49 }
 0x370   : > { %v2910_v54 = vsel %vm2619_vm9, %v2906_v48, %v2907_v62  ;;  %v10092_v48 = vld [vmem:[%s11610_s23 + $0x1a8] sm:$0xff]  ;;  %3291 = vmatpush.bf16.msra.mxu2 %v10074_v53 }
 0x371   : > { %v2918_v10 = vadd.f32 %v2910_v54, %v2898_v3  ;;  %3494 = vmatpush.bf16.msrb.mxu0 %v10092_v48  ;;  %v10088_v3 = vld [vmem:[%s11610_s23 + $0x188] sm:$0xff]  ;;  %v10071_v54 = vld [vmem:[%s11601_s25 + $0x200] sm:$0xff] }
 0x372   : > { %3371 = vmatpush.bf16.msra.mxu3 %v10057_v60  ;;  %v10107_v60 = vld [vmem:[%s11620_s27 + $0x120] sm:$0xff] }
 0x373   : > { %v2925_v13 = vadd.f32 %v10507_v0, %v2918_v10  ;;  %v2900_v14 = vpop.f32.mrf.mxu2  ;;  %3094 = vmatmul.bf16.gmra.mxu0 %v2929_v11  ;;  %3207 = vmatpush.bf16.msra.mxu1 %v10066_v52  ;;  %v10055_v10 = vld [vmem:[%s11601_s25 + $0x1c0] sm:$0xff] }
 0x374   : > { %v2901_v9 = vadd.f32 %v2900_v14, %v2831_v25  ;;  %3292 = vmatpush.bf16.msra.mxu2 %v10073_v45  ;;  %v10087_v11 = vld [vmem:[%s11610_s23 + $0x180] sm:$0xff]  ;;  %v10101_v14 = vld [vmem:[%s11610_s23 + $0x230] sm:$0xff] }
 0x375   : > { %v2823_v15 = vpop.f32.mrf.mxu1  ;;  %v2947_v16 = vpack.c.bf16 %v2925_v13, %v2924_v12  ;;  %v10102_v12 = vld [vmem:[%s11610_s23 + $0x238] sm:$0xff]  ;;  %v10108_v45 = vld [vmem:[%s11620_s27 + $0x128] sm:$0xff] }
 0x376   : > { %v2908_v20 = vrot.slane %v2823_v15, 2  ;;  %v10086_v13 = vld [vmem:[%s11610_s23 + $0x1f8] sm:$0xff]  ;;  %v10085_v15 = vld [vmem:[%s11610_s23 + $0x1f0] sm:$0xff] }
 0x377   : > { %3022 = vmatmul.bf16.vlgmr.msrb.gmra.mxu3 %v2947_v16  ;;  %3208 = vmatpush.bf16.msra.mxu1 %v10065_v59 }
 0x378   : > { %v2912_v22 = vsel %vm2619_vm9, %v2908_v20, %v2905_v46  ;;  %v2909_v1 = vsel %vm2619_vm9, %v2907_v62, %v2908_v20  ;;  %v10091_v46 = vld [vmem:[%s11610_s23 + $0x1a0] sm:$0xff]  ;;  %3293 = vmatpush.bf16.msra.mxu2 %v10072_v63  ;;  %v10100_v20 = vld [vmem:[%s11610_s23 + $0x228] sm:$0xff]  ;;  %v10105_v63 = vld [vmem:[%s11620_s27 + $0x110] sm:$0xff] }
 0x379   : > { %v2916_v2 = vmul.f32 %v11961_v33, %v2912_v22  ;;  %v2919_v32 = vadd.f32 %v2909_v1, %v2901_v9  ;;  %3495 = vmatpush.bf16.msrb.mxu0 %v10091_v46  ;;  %v10064_v62 = vld [vmem:[%s11601_s25 + $0x188] sm:$0xff]  ;;  %v10082_v9 = vld [vmem:[%s11610_s23 + $0x1d8] sm:$0xff] }
 0x37a   : > { %v10508_v1 = vld [vmem:[%s11623_s7 + $0x1] ss:$0 sm:$0xff] }
 0x37b   : > { %v2902_v24 = vpop.f32.mrf.mxu2  ;;  %v2926_v7 = vadd.f32 %v10507_v0, %v2919_v32  ;;  %3209 = vmatpush.bf16.msra.mxu1 %v10064_v62  ;;  %v10081_v32 = vld [vmem:[%s11610_s23 + $0x1d0] sm:$0xff]  ;;  %v10118_v62 = vld [vmem:[%s11620_s27 + $0x178] sm:$0xff] }
 0x37c   : > { %v2903_v26 = vadd.f32 %v2902_v24, %v2830_v23  ;;  %3294 = vmatpush.bf16.msra.mxu2 %v10071_v54  ;;  %v10099_v23 = vld [vmem:[%s11610_s23 + $0x220] sm:$0xff]  ;;  %v10116_v54 = vld [vmem:[%s11620_s27 + $0x168] sm:$0xff] }
 0x37d   : > { %3496 = vmatpush.bf16.msrb.mxu0 %v10090_v58  ;;  %v10083_v24 = vld [vmem:[%s11610_s23 + $0x1e0] sm:$0xff] }
 0x37e   : > { %v2920_v27 = vadd.f32 %v2916_v2, %v2903_v26  ;;  %v10098_v2 = vld [vmem:[%s11610_s23 + $0x218] sm:$0xff] }
 0x37f   : > { %3210 = vmatpush.bf16.msra.mxu1 %v10063_v4 }
 0x380   : > { %v2927_v6 = vadd.f32 %v10507_v0, %v2920_v27  ;;  %v10056_v0 = vld [vmem:[%s11601_s25 + $0x1c8] sm:$0xff]  ;;  %3655 = vmatpush.bf16.msrb.mxu2 %v10086_v13  ;;  %v10097_v27 = vld [vmem:[%s11610_s23 + $0x210] sm:$0xff]  ;;  %s12879_s23 = sld [smem:[#allocation51_spill]] }
 0x381   : > { %3497 = vmatpush.bf16.msrb.mxu0 %v10089_v61  ;;  %3372 = vmatpush.bf16.msra.mxu3 %v10056_v0  ;;  %v10106_v61 = vld [vmem:[%s11620_s27 + $0x118] sm:$0xff]  ;;  %v10117_v0 = vld [vmem:[%s11620_s27 + $0x170] sm:$0xff]  ;;  %v10115_v13 = vld [vmem:[%s11620_s27 + $0x160] sm:$0xff] }
 0x382   : > { %v2948_v35 = vpack.c.bf16 %v2927_v6, %v2926_v7 }
 0x383   : > { %3576 = vmatpush.bf16.msrb.mxu1 %v10102_v12 }
 0x384   : > { %3656 = vmatpush.bf16.msrb.mxu2 %v10085_v15 }
 0x385   : > { %3498 = vmatpush.bf16.msrb.mxu0 %v10088_v3  ;;  %3373 = vmatpush.bf16.msra.mxu3 %v10055_v10  ;;  %v10104_v3 = vld [vmem:[%s11620_s27 + $0x108] sm:$0xff]  ;;  %v10103_v10 = vld [vmem:[%s11620_s27 + $0x100] sm:$0xff] }
 0x387   : > { %3027 = vmatmul.bf16.gmra.mxu3 %v2948_v35  ;;  %3577 = vmatpush.bf16.msrb.mxu1 %v10101_v14 }
 0x388   : > { %3657 = vmatpush.bf16.msrb.mxu2 %v10084_v21  ;;  %v10113_v21 = vld [vmem:[%s11620_s27 + $0x150] sm:$0xff] }
 0x389   : > { %3499 = vmatpush.bf16.msrb.mxu0 %v10087_v11  ;;  %3783 = vmatpush.bf16.msrb.mxu3 %v10118_v62 }
 0x38b   : > { %3578 = vmatpush.bf16.msrb.mxu1 %v10100_v20 }
 0x38c   : > { %3658 = vmatpush.bf16.msrb.mxu2 %v10083_v24 }
 0x38d   : > { %3784 = vmatpush.bf16.msrb.mxu3 %v10117_v0 }
 0x38f   : > { %3579 = vmatpush.bf16.msrb.mxu1 %v10099_v23 }
 0x390   : > { %3659 = vmatpush.bf16.msrb.mxu2 %v10082_v9  ;;  %v10111_v9 = vld [vmem:[%s11620_s27 + $0x140] sm:$0xff] }
 0x391   : > { %3785 = vmatpush.bf16.msrb.mxu3 %v10116_v54 }
 0x393   : > { %3580 = vmatpush.bf16.msrb.mxu1 %v10098_v2 }
 0x394   : > { %3660 = vmatpush.bf16.msrb.mxu2 %v10081_v32 }
 0x395   : > { %3786 = vmatpush.bf16.msrb.mxu3 %v10115_v13 }
 0x397   : > { %3581 = vmatpush.bf16.msrb.mxu1 %v10097_v27 }
 0x398   : > { %3661 = vmatpush.bf16.msrb.mxu2 %v10080_v37 }
 0x39b   : > { %3582 = vmatpush.bf16.msrb.mxu1 %v10096_v36 }
 0x39c   : > { %3662 = vmatpush.bf16.msrb.mxu2 %v10079_v29 }
 0x39f   : > { %3583 = vmatpush.bf16.msrb.mxu1 %v10095_v57 }
 0x3e0   : > { %v3090_v16 = vpop.f32.mrf.mxu0 }
 0x3e8   : > { %v3092_v26 = vpop.f32.mrf.mxu0 }
 0x3f0   : > { %v3095_v41 = vpop.f32.mrf.mxu0 }
 0x3f8   : > { %v3097_v51 = vpop.f32.mrf.mxu0 }
 0x3fa   : > { %v3023_v22 = vpop.f32.mrf.mxu3 }
 0x3fb   : > { %v3091_v25 = vadd.f32 %v3090_v16, %v3023_v22  ;;  %v10114_v16 = vld [vmem:[%s11620_s27 + $0x158] sm:$0xff] }
 0x3fc   : > { %3787 = vmatpush.bf16.msrb.mxu3 %v10114_v16 }
 0x3fd   : > { %v3105_v6 = vadd.f32 %v10508_v1, %v3091_v25  ;;  %v10112_v25 = vld [vmem:[%s11620_s27 + $0x148] sm:$0xff] }
 0x3ff   : > { %v3109_v38 = vmax.f32 %v3105_v6, 0.0 }
 0x400   : > { %3788 = vmatpush.bf16.msrb.mxu3 %v10113_v21 }
 0x401   : > { %v12042_v44 = vadd.f32 %v3109_v38, %v11904_v18 }
 0x402   : > { %v3025_v7 = vpop.f32.mrf.mxu3 }
 0x403   : > { %v3093_v35 = vadd.f32 %v3092_v26, %v3025_v7 }
 0x404   : > { %3789 = vmatpush.bf16.msrb.mxu3 %v10112_v25 }
 0x405   : > { %v3106_v39 = vadd.f32 %v10508_v1, %v3093_v35 }
 0x407   : > { %v3110_v40 = vmax.f32 %v3106_v39, 0.0 }
 0x408   : > { %3790 = vmatpush.bf16.msrb.mxu3 %v10111_v9 }
 0x409   : > { %v12045_v42 = vadd.f32 %v3110_v40, %v11907_v19 }
 0x40a   : > { %v3028_v47 = vpop.f32.mrf.mxu3 }
 0x40b   : > { %v3117_v48 = vpack.c.bf16 %v12045_v42, %v12042_v44  ;;  %v3096_v49 = vadd.f32 %v3095_v41, %v3028_v47  ;;  %v10509_v47 = vld [vmem:[%s11604_s0 + $0x2] ss:$0 sm:$0xff] }
 0x40d   : > { %3211 = vmatmul.bf16.vlgmr.msra.gmra.mxu1 %v3117_v48  ;;  %3295 = vmatmul.bf16.vlgmr.msra.gmra.mxu2 %v3117_v48  ;;  %v3107_v50 = vadd.f32 %v10508_v1, %v3096_v49 }
 0x40e   : > { %3374 = vmatmul.bf16.vlgmr.msra.gmra.mxu3 %v3117_v48  ;;  %3500 = vmatmul.bf16.vlgmr.msrb.gmra.mxu0 %v3117_v48 }
 0x40f   : > { %v3111_v52 = vmax.f32 %v3107_v50, 0.0 }
 0x411   : > { %v12050_v56 = vadd.f32 %v3111_v52, %v11912_v28  ;;  %v10110_v28 = vld [vmem:[%s11620_s27 + $0x138] sm:$0xff] }
 0x412   : > { %v3030_v46 = vpop.f32.mrf.mxu3  ;;  %3850 = vmatpush.bf16.msra.mxu0 %v10110_v28 }
 0x413   : > { %v3098_v18 = vadd.f32 %v3097_v51, %v3030_v46 }
 0x415   : > { %v3108_v19 = vadd.f32 %v10508_v1, %v3098_v18 }
 0x417   : > { %v3112_v53 = vmax.f32 %v3108_v19, 0.0 }
 0x419   : > { %v12053_v58 = vadd.f32 %v3112_v53, %v11915_v31  ;;  %v10109_v31 = vld [vmem:[%s11620_s27 + $0x130] sm:$0xff]  ;;  %s12880_s27 = sld [smem:[#allocation43_spill]] }
 0x41a   : > { %3851 = vmatpush.bf16.msra.mxu0 %v10109_v31 }
 0x41b   : > { %v3118_v59 = vpack.c.bf16 %v12053_v58, %v12050_v56 }
 0x41d   : > { %3216 = vmatmul.bf16.gmra.mxu1 %v3118_v59  ;;  %3300 = vmatmul.bf16.gmra.mxu2 %v3118_v59 }
 0x41e   : > { %3379 = vmatmul.bf16.gmra.mxu3 %v3118_v59  ;;  %3505 = vmatmul.bf16.gmra.mxu0 %v3118_v59 }
 0x41f   : > { %3852 = vmatpush.bf16.msra.mxu0 %v10108_v45  ;;  %p1374_p0 = scmp.lt.s32.totalorder %s12880_s27, 1 }
 0x421   : > { %s12905_s27 = smov (!%p1374_p0, %s12880_s27), 1 }
 0x423   : > { %3853 = vmatpush.bf16.msra.mxu0 %v10107_v60 }
 0x427   : > { %3854 = vmatpush.bf16.msra.mxu0 %v10106_v61 }
 0x42b   : > { %3855 = vmatpush.bf16.msra.mxu0 %v10105_v63 }
 0x42d   : > { %3584 = vmatmul.bf16.vlgmr.msrb.gmra.mxu1 %v3117_v48  ;;  %3663 = vmatmul.bf16.vlgmr.msrb.gmra.mxu2 %v3117_v48 }
 0x42f   : > { %3856 = vmatpush.bf16.msra.mxu0 %v10104_v3 }
 0x433   : > { %3857 = vmatpush.bf16.msra.mxu0 %v10103_v10 }
 0x43d   : > { %3589 = vmatmul.bf16.gmra.mxu1 %v3118_v59  ;;  %3668 = vmatmul.bf16.gmra.mxu2 %v3118_v59 }
 0x48a   : > { %v3212_v4 = vpop.f32.mrf.mxu1 }
 0x48b   : > { %v12068_v11 = vpop.f32.mrf.mxu0  ;;  %v3306_v32 = vrot.slane %v3212_v4, 7 }
 0x48c   : > { %v3595_v0 = vrot.slane %v12068_v11, 4 }
 0x490   : > { %v3296_v12 = vpop.f32.mrf.mxu2 }
 0x491   : > { %v3375_v15 = vpop.f32.mrf.mxu3  ;;  %v3385_v41 = vrot.slane %v3296_v12, 1 }
 0x492   : > { %v3214_v14 = vpop.f32.mrf.mxu1 }
 0x493   : > { %v12073_v22 = vpop.f32.mrf.mxu0  ;;  %v3307_v26 = vrot.slane %v3214_v14, 7 }
 0x494   : > { %v3596_v16 = vrot.slane %v12073_v22, 4 }
 0x495   : > { %v3312_v36 = vsel %vm2059_vm4, %v3306_v32, %v3307_v26 }
 0x498   : > { %v3298_v20 = vpop.f32.mrf.mxu2 }
 0x499   : > { %v3377_v24 = vpop.f32.mrf.mxu3  ;;  %v3386_v6 = vrot.slane %v3298_v20, 1 }
 0x49a   : > { %v3217_v23 = vpop.f32.mrf.mxu1  ;;  %v3378_v39 = vadd.f32 %v3377_v24, %v3312_v36 }
 0x49b   : > { %v12077_v35 = vpop.f32.mrf.mxu0  ;;  %v3391_v50 = vsel %vm2139_vm5, %v3385_v41, %v3386_v6  ;;  %v3308_v45 = vrot.slane %v3217_v23, 7 }
 0x49d   : > { %v3311_v54 = vsel %vm2059_vm4, %v3307_v26, %v3308_v45 }
 0x4a0   : > { %v3301_v1 = vpop.f32.mrf.mxu2 }
 0x4a1   : > { %v3387_v2 = vrot.slane %v3301_v1, 1  ;;  %v3380_v57 = vpop.f32.mrf.mxu3 }
 0x4a2   : > { %v3219_v27 = vpop.f32.mrf.mxu1  ;;  %v3381_v14 = vadd.f32 %v3380_v57, %v3311_v54 }
 0x4a3   : > { %v3309_v7 = vrot.slane %v3219_v27, 7  ;;  %v3390_v37 = vsel %vm2139_vm5, %v3386_v6, %v3387_v2  ;;  %v3508_v53 = vpop.f32.mrf.mxu0 }
 0x4a4   : > { %v3398_v29 = vadd.f32 %v3390_v37, %v3378_v39  ;;  %v3598_v60 = vrot.slane %v3508_v53, 4 }
 0x4a5   : > { %v3313_v38 = vsel %vm2059_vm4, %v3309_v7, %v3306_v32  ;;  %v3310_v3 = vsel %vm2059_vm4, %v3308_v45, %v3309_v7  ;;  %v10510_v32 = vld [vmem:[%s11613_s24 + $0x2] ss:$0 sm:$0xff]  ;;  %s1373_s24 = scalar_lea.vmem %s12879_s23, %s9917_s10 }
 0x4a6   : > { %v3314_v40 = vmul.f32 %v11821_v17, %v3313_v38  ;;  %v3405_v52 = vadd.f32 %v10509_v47, %v3398_v29  ;;  %v3602_v12 = vsel %vm1771_vm1, %v3598_v60, %v3595_v0  ;;  %v10126_v45 = vld [vmem:[%s11629_s1 + $0x38] sm:$0xff]  ;;  %v1387_v54 = vld [vmem:[%s1373_s24] sm:$0xff] }
 0x4a7   : > { %v3603_v21 = vmul.f32 %v11792_v43, %v3602_v12  ;;  %3956 = vmatpush.bf16.msra.mxu1 %v10126_v45 }
 0x4a8   : > { %v3376_v48 = vadd.f32 %v3375_v15, %v3314_v40  ;;  %v3303_v49 = vpop.f32.mrf.mxu2 }
 0x4a9   : > { %v3388_v18 = vrot.slane %v3303_v49, 1  ;;  %v3382_v61 = vpop.f32.mrf.mxu3 }
 0x4aa   : > { %v3397_v51 = vadd.f32 %v3391_v50, %v3376_v48  ;;  %v3585_v46 = vpop.f32.mrf.mxu1  ;;  %v3383_v4 = vadd.f32 %v3382_v61, %v3310_v3  ;;  %v3597_v48 = vrot.slane %v12077_v35, 4  ;;  %v10124_v61 = vld [vmem:[%s11629_s1 + $0x28] sm:$0xff] }
 0x4ab   : > { %v3392_v28 = vsel %vm2139_vm5, %v3388_v18, %v3385_v41  ;;  %v3389_v10 = vsel %vm2139_vm5, %v3387_v2, %v3388_v18  ;;  %v3674_v11 = vrot.slane %v3585_v46, 4  ;;  %v3601_v2 = vsel %vm1771_vm1, %v3595_v0, %v3596_v16  ;;  %v10121_v0 = vld [vmem:[%s11629_s1 + $0x10] sm:$0xff]  ;;  %v10120_v3 = vld [vmem:[%s11629_s1 + $0x8] sm:$0xff] }
 0x4ac   : > { %v3404_v19 = vadd.f32 %v10509_v47, %v3397_v51  ;;  %v3396_v62 = vmul.f32 %v11845_v55, %v3392_v28  ;;  %v3399_v20 = vadd.f32 %v3389_v10, %v3381_v14  ;;  %v3600_v51 = vsel %vm1771_vm1, %v3596_v16, %v3597_v48  ;;  %v10511_v16 = vld [vmem:[%s11623_s7 + $0x2] ss:$0 sm:$0xff]  ;;  %s10392_s7 = smul.u32 12, %s12903_s19 }
 0x4ad   : > { %v11174_v10 = vmov 0  }
 0x4ae   : > { %v3697_v59 = vpack.c.bf16 %v3405_v52, %v3404_v19  ;;  %v3400_v15 = vadd.f32 %v3396_v62, %v3383_v4  ;;  %v3406_v7 = vadd.f32 %v10509_v47, %v3399_v20  ;;  %v10123_v62 = vld [vmem:[%s11629_s1 + $0x20] sm:$0xff]  ;;  %10500 = vset.pattern.permute.xlu0 %v11174_v10  ;;  %10501 = vset.pattern.permute.xlu1 %v11174_v10 }
 0x4af   : > { %v10119_v4 = vld [vmem:[%s11629_s1] sm:$0xff]  ;;  %1393 = vperm.xlu0 %10500, %v1387_v54  }
 0x4b0   : > { %v3664_v31 = vpop.f32.mrf.mxu2  ;;  %3858 = vmatmul.bf16.vlgmr.msra.gmra.mxu0 %v3697_v59  ;;  %v3407_v25 = vadd.f32 %v10509_v47, %v3400_v15  ;;  %v3599_v47 = vsel %vm1771_vm1, %v3597_v48, %v3598_v60  ;;  %v10125_v60 = vld [vmem:[%s11629_s1 + $0x30] sm:$0xff]  ;;  %v10512_v48 = vld [vmem:[%s12881_s4] ss:$0 sm:$0xff]  ;;  %v10134_v54 = vld [vmem:[%s11639_s21 + $0x38] sm:$0xff] }
 0x4b1   : > { %v3665_v1 = vadd.f32 %v3664_v31, %v3603_v21  ;;  %3957 = vmatpush.bf16.msra.mxu1 %v10125_v60  ;;  %4149 = vmatpush.bf16.msra.mxu2 %v10134_v54  ;;  %v10140_v54 = vld [vmem:[%s11650_s11 + $0x68] sm:$0xff] }
 0x4b2   : > { %v3587_v63 = vpop.f32.mrf.mxu1  ;;  %v3698_v37 = vpack.c.bf16 %v3407_v25, %v3406_v7  ;;  %v1390_v25 = vld [vmem:[%s1373_s24 + $0x18] sm:$0xff] }
 0x4b3   : > { %v3675_v13 = vrot.slane %v3587_v63, 4  ;;  %v10122_v63 = vld [vmem:[%s11629_s1 + $0x18] sm:$0xff]  ;;  %s10393_s1 = smul.u32 24, %s12905_s27 }
 0x4b5   : > { %v3680_v24 = vsel %vm1771_vm1, %v3674_v11, %v3675_v13  ;;  %3958 = vmatpush.bf16.msra.mxu1 %v10124_v61  ;;  %s1380_s30 = sadd.s32 %s10393_s1, %s10392_s7 }
 0x4b6   : > { %v3686_v27 = vadd.f32 %v3680_v24, %v3665_v1  ;;  %s7430_s26 = sshll.u32 %s1380_s30, 3 }
 0x4b7   : > { %s12151_s20 = scalar_lea.vmem %s12882_s5, %s7430_s26 }
 0x4b8   : > { %v3666_v23 = vpop.f32.mrf.mxu2  ;;  %v3693_v38 = vadd.f32 %v10510_v32, %v3686_v27 }
 0x4b9   : > { %v3667_v6 = vadd.f32 %v3666_v23, %v3601_v2  ;;  %3959 = vmatpush.bf16.msra.mxu1 %v10123_v62 }
 0x4ba   : > { %v3590_v26 = vpop.f32.mrf.mxu1 }
 0x4bb   : > { %v3676_v9 = vrot.slane %v3590_v26, 4 }
 0x4bd   : > { %v3679_v22 = vsel %vm1771_vm1, %v3675_v13, %v3676_v9  ;;  %3960 = vmatpush.bf16.msra.mxu1 %v10122_v63  ;;  %v1388_v13 = vld [vmem:[%s1373_s24 + $0x8] sm:$0xff] }
 0x4be   : > { %v3687_v36 = vadd.f32 %v3679_v22, %v3667_v6  ;;  %1398 = vperm.xlu0 %10500, %v1388_v13  }
 0x4c0   : > { %v3694_v39 = vadd.f32 %v10510_v32, %v3687_v36  ;;  %v3669_v40 = vpop.f32.mrf.mxu2  ;;  %3863 = vmatmul.bf16.gmra.mxu0 %v3698_v37 }
 0x4c1   : > { %v3670_v35 = vadd.f32 %v3669_v40, %v3600_v51  ;;  %3961 = vmatpush.bf16.msra.mxu1 %v10121_v0 }
 0x4c2   : > { %v3592_v41 = vpop.f32.mrf.mxu1  ;;  %v3716_v57 = vpack.c.bf16 %v3694_v39, %v3693_v38 }
 0x4c3   : > { %v3677_v29 = vrot.slane %v3592_v41, 4 }
 0x4c4   : > { %3791 = vmatmul.bf16.vlgmr.msrb.gmra.mxu3 %v3716_v57 }
 0x4c5   : > { %v3681_v49 = vsel %vm1771_vm1, %v3677_v29, %v3674_v11  ;;  %v3678_v46 = vsel %vm1771_vm1, %v3676_v9, %v3677_v29  ;;  %3962 = vmatpush.bf16.msra.mxu1 %v10120_v3  ;;  %v1389_v11 = vld [vmem:[%s1373_s24 + $0x10] sm:$0xff] }
 0x4c6   : > { %v3685_v52 = vmul.f32 %v11813_v5, %v3681_v49  ;;  %v3688_v53 = vadd.f32 %v3678_v46, %v3670_v35  ;;  %1403 = vperm.xlu1 %10501, %v1389_v11   ;;  %v12144_v49 = vand.u32 127, %v1411_v30 }
 0x4c8   : > { %v3671_v50 = vpop.f32.mrf.mxu2  ;;  %v3695_v28 = vadd.f32 %v10510_v32, %v3688_v53  ;;  %vm1490_vm11 = vcmp.lt.s32.totalorder %v12144_v49, 8 }
 0x4c9   : > { %v3672_v18 = vadd.f32 %v3671_v50, %v3599_v47  ;;  %3963 = vmatpush.bf16.msra.mxu1 %v10119_v4 }
 0x4cb   : > { %v3689_v19 = vadd.f32 %v3685_v52, %v3672_v18 }
 0x4cd   : > { %v3696_v59 = vadd.f32 %v10510_v32, %v3689_v19 }
 0x4ce   : > { %1408 = vperm.xlu1 %10501, %v1390_v25  }
 0x4cf   : > { %v3717_v31 = vpack.c.bf16 %v3696_v59, %v3695_v28 }
 0x4d4   : > { %3796 = vmatmul.bf16.gmra.mxu3 %v3717_v31 }
 0x521   : > { %v12146_v47 = vpop.permute.xlu0 %1393 }
 0x52d   : > { %v3859_v12 = vpop.f32.mrf.mxu0 }
 0x530   : > { %v12158_v18 = vpop.permute.xlu0 %1398 }
 0x535   : > { %v3861_v20 = vpop.f32.mrf.mxu0 }
 0x538   : > { %v12164_v19 = vpop.permute.xlu1 %1403 }
 0x53d   : > { %v3864_v9 = vpop.f32.mrf.mxu0 }
 0x540   : > { %v12170_v61 = vpop.permute.xlu1 %1408 }
 0x545   : > { %v3866_v37 = vpop.f32.mrf.mxu0 }
 0x547   : > { %v3792_v14 = vpop.f32.mrf.mxu3 }
 0x548   : > { %v3860_v15 = vadd.f32 %v3859_v12, %v3792_v14 }
 0x54a   : > { %v3874_v21 = vadd.f32 %v10511_v16, %v3860_v15 }
 0x54c   : > { %v3878_v1 = vmax.f32 %v3874_v21, 0.0 }
 0x54e   : > { %v3882_v27 = vadd.f32 %v3878_v1, %v12042_v44 }
 0x54f   : > { %v3794_v23 = vpop.f32.mrf.mxu3 }
 0x550   : > { %v3862_v24 = vadd.f32 %v3861_v20, %v3794_v23 }
 0x552   : > { %v3875_v26 = vadd.f32 %v10511_v16, %v3862_v24 }
 0x554   : > { %v3879_v2 = vmax.f32 %v3875_v26, 0.0  ;;  %v10133_v26 = vld [vmem:[%s11639_s21 + $0x30] sm:$0xff] }
 0x555   : > { %4150 = vmatpush.bf16.msra.mxu2 %v10133_v26  ;;  %v10139_v26 = vld [vmem:[%s11650_s11 + $0x60] sm:$0xff] }
 0x556   : > { %v3883_v32 = vadd.f32 %v3879_v2, %v12045_v42  ;;  %v10132_v2 = vld [vmem:[%s11639_s21 + $0x28] sm:$0xff] }
 0x557   : > { %v3797_v6 = vpop.f32.mrf.mxu3 }
 0x558   : > { %v3886_v7 = vpack.c.bf16 %v3883_v32, %v3882_v27  ;;  %v3865_v22 = vadd.f32 %v3864_v9, %v3797_v6  ;;  %v10131_v9 = vld [vmem:[%s11639_s21 + $0x20] sm:$0xff]  ;;  %v10130_v27 = vld [vmem:[%s11639_s21 + $0x18] sm:$0xff]  ;;  %v10129_v32 = vld [vmem:[%s11639_s21 + $0x10] sm:$0xff] }
 0x559   : > { %4151 = vmatpush.bf16.msra.mxu2 %v10132_v2  ;;  %v10128_v6 = vld [vmem:[%s11639_s21 + $0x8] sm:$0xff] }
 0x55a   : > { %3964 = vmatmul.bf16.vlgmr.msra.gmra.mxu1 %v3886_v7  ;;  %v3876_v36 = vadd.f32 %v10511_v16, %v3865_v22  ;;  %v10127_v7 = vld [vmem:[%s11639_s21] sm:$0xff] }
 0x55c   : > { %v3880_v40 = vmax.f32 %v3876_v36, 0.0 }
 0x55d   : > { %4152 = vmatpush.bf16.msra.mxu2 %v10131_v9 }
 0x55e   : > { %v3884_v29 = vadd.f32 %v3880_v40, %v12050_v56 }
 0x55f   : > { %v3799_v38 = vpop.f32.mrf.mxu3 }
 0x560   : > { %v3867_v39 = vadd.f32 %v3866_v37, %v3799_v38 }
 0x561   : > { %4153 = vmatpush.bf16.msra.mxu2 %v10130_v27 }
 0x562   : > { %v3877_v41 = vadd.f32 %v10511_v16, %v3867_v39 }
 0x564   : > { %v3881_v57 = vmax.f32 %v3877_v41, 0.0 }
 0x565   : > { %4154 = vmatpush.bf16.msra.mxu2 %v10129_v32 }
 0x566   : > { %v3885_v44 = vadd.f32 %v3881_v57, %v12053_v58 }
 0x568   : > { %v3887_v42 = vpack.c.bf16 %v3885_v44, %v3884_v29 }
 0x569   : > { %4155 = vmatpush.bf16.msra.mxu2 %v10128_v6  ;;  %v10154_v6 = vld [vmem:[%s11650_s11 + $0x98] sm:$0xff] }
 0x56a   : > { %3969 = vmatmul.bf16.gmra.mxu1 %v3887_v42 }
 0x56d   : > { %4156 = vmatpush.bf16.msra.mxu2 %v10127_v7 }
 0x5d7   : > { %v3965_v50 = vpop.f32.mrf.mxu1 }
 0x5d8   : > { %v3966_v51 = vadd.f32 %v10512_v48, %v3965_v50  ;;  %v10150_v50 = vld [vmem:[%s11650_s11 + $0x38] sm:$0xff] }
 0x5d9   : > { %4252 = vmatpush.bf16.msra.mxu3 %v10150_v50 }
 0x5da   : > { %v3975_v56 = vmul.f32 %v3966_v51, %v12146_v47  ;;  %v10158_v51 = vld [vmem:[%s11650_s11 + $0xb8] sm:$0xff] }
 0x5db   : > { %4336 = vmatpush.bf16.msrb.mxu0 %v10158_v51 }
 0x5dc   : > { %v3983_v30 = vsel %vm1490_vm11, %v3975_v56, -1e+30  ;;  %3979 = vst [vmem:[%s12151_s20] sm:$0xff] %v3975_v56  ;;  %v10142_v56 = vld [vmem:[%s11650_s11 + $0x78] sm:$0xff] }
 0x5dd   : > { %3987 = vmax.xlane.f32.xlu2 %v3983_v30  ;;  %4415 = vmatpush.bf16.msrb.mxu1 %v10142_v56 }
 0x5df   : > { %v3967_v58 = vpop.f32.mrf.mxu1 }
 0x5e0   : > { %v3968_v46 = vadd.f32 %v10512_v48, %v3967_v58 }
 0x5e2   : > { %v3976_v52 = vmul.f32 %v3968_v46, %v12158_v18 }
 0x5e4   : > { %3980 = vst [vmem:[%s12151_s20 + $0x8] sm:$0xff] %v3976_v52  ;;  %v3984_v35 = vsel %vm1490_vm11, %v3976_v52, -1e+30  ;;  %v10149_v52 = vld [vmem:[%s11650_s11 + $0x30] sm:$0xff] }
 0x5e5   : > { %3989 = vmax.xlane.f32.xlu2 %v3984_v35  ;;  %4253 = vmatpush.bf16.msra.mxu3 %v10149_v52 }
 0x5e7   : > { %v3970_v53 = vpop.f32.mrf.mxu1 }
 0x5e8   : > { %v3971_v59 = vadd.f32 %v10512_v48, %v3970_v53 }
 0x5ea   : > { %v3977_v28 = vmul.f32 %v3971_v59, %v12164_v19 }
 0x5ec   : > { %v3985_v31 = vsel %vm1490_vm11, %v3977_v28, -1e+30  ;;  %3981 = vst [vmem:[%s12151_s20 + $0x10] sm:$0xff] %v3977_v28  ;;  %v10141_v28 = vld [vmem:[%s11650_s11 + $0x70] sm:$0xff] }
 0x5ed   : > { %3991 = vmax.xlane.f32.xlu0 %v3985_v31  ;;  %4416 = vmatpush.bf16.msrb.mxu1 %v10141_v28  ;;  %v10137_v28 = vld [vmem:[%s11650_s11 + $0x50] sm:$0xff] }
 0x5ef   : > { %v3972_v45 = vpop.f32.mrf.mxu1 }
 0x5f0   : > { %v3973_v60 = vadd.f32 %v10512_v48, %v3972_v45 }
 0x5f1   : > { %4417 = vmatpush.bf16.msrb.mxu1 %v10140_v54 }
 0x5f2   : > { %v3978_v62 = vmul.f32 %v3973_v60, %v12170_v61 }
 0x5f4   : > { %v3986_v63 = vsel %vm1490_vm11, %v3978_v62, -1e+30  ;;  %3982 = vst [vmem:[%s12151_s20 + $0x18] sm:$0xff] %v3978_v62 }
 0x5f5   : > { %3993 = vmax.xlane.f32.xlu1 %v3986_v63  ;;  %4418 = vmatpush.bf16.msrb.mxu1 %v10139_v26  ;;  %v10163_v26 = vld [vmem:[%s11659_s6 + $0x20] sm:$0xff] }
 0x650   : > { %v3988_v0 = vpop.xlane.xlu2 %3987 }
 0x651   : > { %v3995_v3 = vsub.f32 %v3983_v30, %v3988_v0  ;;  %v10156_v0 = vld [vmem:[%s11650_s11 + $0xa8] sm:$0xff] }
 0x653   : > { %v3999_v4 = vmul.f32 1.442695, %v3995_v3 }
 0x655   : > { %10529 = vpow2.f32 %v3999_v4 }
 0x658   : > { %v3990_v10 = vpop.xlane.xlu2 %3989 }
 0x659   : > { %v3996_v12 = vsub.f32 %v3984_v35, %v3990_v10  ;;  %v10157_v35 = vld [vmem:[%s11650_s11 + $0xb0] sm:$0xff] }
 0x65a   : > { %4337 = vmatpush.bf16.msrb.mxu0 %v10157_v35 }
 0x65b   : > { %v12177_v13 = vpop.eup %10529  ;;  %v4001_v14 = vmul.f32 1.442695, %v3996_v12 }
 0x65c   : > { %4007 = vadd.xlane.f32.xlu2 %v12177_v13 }
 0x65d   : > { %10531 = vpow2.f32 %v4001_v14 }
 0x65e   : > { %4338 = vmatpush.bf16.msrb.mxu0 %v10156_v0  ;;  %v10513_v0 = vld [vmem:[%s11642_s28] ss:$0 sm:$0xff] }
 0x660   : > { %v3992_v15 = vpop.xlane.xlu0 %3991 }
 0x661   : > { %v3997_v16 = vsub.f32 %v3985_v31, %v3992_v15 }
 0x663   : > { %v12180_v11 = vpop.eup %10531  ;;  %v4003_v20 = vmul.f32 1.442695, %v3997_v16 }
 0x664   : > { %4009 = vadd.xlane.f32.xlu2 %v12180_v11 }
 0x665   : > { %10533 = vpow2.f32 %v4003_v20 }
 0x668   : > { %v3994_v21 = vpop.xlane.xlu1 %3993 }
 0x669   : > { %v3998_v23 = vsub.f32 %v3986_v63, %v3994_v21  ;;  %v10148_v63 = vld [vmem:[%s11650_s11 + $0x28] sm:$0xff] }
 0x66a   : > { %4254 = vmatpush.bf16.msra.mxu3 %v10148_v63 }
 0x66b   : > { %v12183_v24 = vpop.eup %10533  ;;  %v4005_v25 = vmul.f32 1.442695, %v3998_v23  ;;  %v10147_v23 = vld [vmem:[%s11650_s11 + $0x20] sm:$0xff] }
 0x66c   : > { %4011 = vadd.xlane.f32.xlu2 %v12183_v24 }
 0x66d   : > { %10535 = vpow2.f32 %v4005_v25  ;;  %v10155_v25 = vld [vmem:[%s11650_s11 + $0xa0] sm:$0xff] }
 0x66e   : > { %4255 = vmatpush.bf16.msra.mxu3 %v10147_v23  ;;  %4339 = vmatpush.bf16.msrb.mxu0 %v10155_v25  ;;  %v10165_v23 = vld [vmem:[%s11659_s6 + $0x30] sm:$0xff]  ;;  %v10164_v25 = vld [vmem:[%s11659_s6 + $0x28] sm:$0xff] }
 0x672   : > { %4340 = vmatpush.bf16.msrb.mxu0 %v10154_v6 }
 0x673   : > { %v12186_v1 = vpop.eup %10535 }
 0x674   : > { %4013 = vadd.xlane.f32.xlu2 %v12186_v1 }
 0x6cf   : > { %v4008_v22 = vpop.xlane.xlu2 %4007 }
 0x6d0   : > { %10537 = vrcp.f32 %v4008_v22  ;;  %v4026_v29 = vand.u32 2147483648, %v4008_v22  ;;  %vm4020_vm13 = vweird.f32 %v4008_v22  ;;  %v4024_v44 = vand.u32 2147483647, %v4008_v22 }
 0x6d2   : > { %v4027_v53 = vor.u32 1.1754944e-38, %v4026_v29  ;;  %vm4025_vm15 = vcmp.eq.f32.partialorder %v4024_v44, 8.507059e+37 }
 0x6d6   : > { %v10538_v36 = vpop.eup %10537 }
 0x6d7   : > { %v4016_v37 = vmul.f32 %v10538_v36, %v4008_v22  ;;  %v4010_v38 = vpop.xlane.xlu2 %4009  ;;  %vm4021_vm12 = vweird.f32 %v10538_v36 }
 0x6d8   : > { %10539 = vrcp.f32 %v4010_v38  ;;  %vm12201_vm14 = vmor %vm4020_vm13, %vm4021_vm12  ;;  %v4040_v59 = vand.u32 2147483648, %v4010_v38  ;;  %v4038_v45 = vand.u32 2147483647, %v4010_v38  ;;  %vm4034_vm2 = vweird.f32 %v4010_v38 }
 0x6d9   : > { %v4017_v39 = vsub.f32 1.0, %v4016_v37 }
 0x6da   : > { %v4041_v4 = vor.u32 1.1754944e-38, %v4040_v59  ;;  %vm4039_vm6 = vcmp.eq.f32.partialorder %v4038_v45, 8.507059e+37  ;;  %v10153_v59 = vld [vmem:[%s11650_s11 + $0x90] sm:$0xff]  ;;  %v10136_v45 = vld [vmem:[%s11650_s11 + $0x48] sm:$0xff] }
 0x6db   : > { %v4018_v40 = vmul.f32 %v10538_v36, %v4017_v39  ;;  %4341 = vmatpush.bf16.msrb.mxu0 %v10153_v59 }
 0x6dd   : > { %v4019_v41 = vadd.f32 %v10538_v36, %v4018_v40 }
 0x6de   : > { %v10540_v57 = vpop.eup %10539 }
 0x6df   : > { %v4030_v42 = vmul.f32 %v10540_v57, %v4010_v38  ;;  %v12196_v48 = vpop.xlane.xlu2 %4011  ;;  %v4023_v58 = vsel %vm12201_vm14, %v10538_v36, %v4019_v41  ;;  %vm4035_vm0 = vweird.f32 %v10540_v57  ;;  %v10138_v36 = vld [vmem:[%s11650_s11 + $0x58] sm:$0xff] }
 0x6e0   : > { %10541 = vrcp.f32 %v12196_v48  ;;  %v4028_v60 = vsel %vm4025_vm15, %v4027_v53, %v4023_v58  ;;  %vm4036_vm3 = vmor %vm4034_vm2, %vm4035_vm0  ;;  %v4054_v22 = vand.u32 2147483648, %v12196_v48  ;;  %vm4048_vm10 = vweird.f32 %v12196_v48  ;;  %4419 = vmatpush.bf16.msrb.mxu1 %v10138_v36  ;;  %v10145_v53 = vld [vmem:[%s11650_s11 + $0x10] sm:$0xff] }
 0x6e1   : > { %v4031_v46 = vsub.f32 1.0, %v4030_v42  ;;  %v4071_v10 = vmul.f32 %v12177_v13, %v4028_v60  ;;  %v4052_v37 = vand.u32 2147483647, %v12196_v48  ;;  %v10151_v60 = vld [vmem:[%s11650_s11 + $0x80] sm:$0xff] }
 0x6e2   : > { %v4055_v41 = vor.u32 1.1754944e-38, %v4054_v22 }
 0x6e3   : > { %v4032_v31 = vmul.f32 %v10540_v57, %v4031_v46  ;;  %v4075_v2 = vmul.f32 %v4071_v10, %v12146_v47  ;;  %vm4053_vm13 = vcmp.eq.f32.partialorder %v4052_v37, 8.507059e+37 }
 0x6e4   : > { %4420 = vmatpush.bf16.msrb.mxu1 %v10137_v28  ;;  %v10514_v28 = vld [vmem:[%s11653_s2] ss:$0 sm:$0xff] }
 0x6e5   : > { %v4033_v62 = vadd.f32 %v10540_v57, %v4032_v31  ;;  %v10144_v31 = vld [vmem:[%s11650_s11 + $0x8] sm:$0xff] }
 0x6e6   : > { %v10542_v3 = vpop.eup %10541 }
 0x6e7   : > { %v4037_v12 = vsel %vm4036_vm3, %v10540_v57, %v4033_v62  ;;  %v4044_v14 = vmul.f32 %v10542_v3, %v12196_v48  ;;  %v4014_v15 = vpop.xlane.xlu2 %4013  ;;  %vm4049_vm7 = vweird.f32 %v10542_v3  ;;  %v10135_v62 = vld [vmem:[%s11650_s11 + $0x40] sm:$0xff] }
 0x6e8   : > { %v4042_v16 = vsel %vm4039_vm6, %v4041_v4, %v4037_v12  ;;  %10543 = vrcp.f32 %v4014_v15  ;;  %vm4050_vm12 = vmor %vm4048_vm10, %vm4049_vm7  ;;  %v4068_v57 = vand.u32 2147483648, %v4014_v15  ;;  %v4066_v44 = vand.u32 2147483647, %v4014_v15  ;;  %4421 = vmatpush.bf16.msrb.mxu1 %v10136_v45 }
 0x6e9   : > { %v4072_v20 = vmul.f32 %v12180_v11, %v4042_v16  ;;  %v4045_v21 = vsub.f32 1.0, %v4044_v14  ;;  %v10146_v11 = vld [vmem:[%s11650_s11 + $0x18] sm:$0xff]  ;;  %vm4062_vm15 = vweird.f32 %v4014_v15 }
 0x6ea   : > { %4256 = vmatpush.bf16.msra.mxu3 %v10146_v11  ;;  %v4069_v48 = vor.u32 1.1754944e-38, %v4068_v57  ;;  %vm4067_vm2 = vcmp.eq.f32.partialorder %v4066_v44, 8.507059e+37  ;;  %v10159_v11 = vld [vmem:[%s11659_s6] sm:$0xff] }
 0x6eb   : > { %v4046_v13 = vmul.f32 %v10542_v3, %v4045_v21  ;;  %v4076_v9 = vmul.f32 %v4072_v20, %v12158_v18  ;;  %v10166_v21 = vld [vmem:[%s11659_s6 + $0x38] sm:$0xff] }
 0x6ec   : > { %4422 = vmatpush.bf16.msrb.mxu1 %v10135_v62  ;;  %4531 = vmatpush.bf16.msrb.mxu2 %v10166_v21  ;;  %v10188_v62 = vld [vmem:[%s11650_s11 + $0x168] sm:$0xff]  ;;  %v10179_v21 = vld [vmem:[%s11650_s11 + $0xe0] sm:$0xff] }
 0x6ed   : > { %v4047_v27 = vadd.f32 %v10542_v3, %v4046_v13  ;;  %v4079_v32 = vpack.c.bf16 %v4076_v9, %v4075_v2  ;;  %v10162_v13 = vld [vmem:[%s11659_s6 + $0x18] sm:$0xff]  ;;  %v10161_v2 = vld [vmem:[%s11659_s6 + $0x10] sm:$0xff] }
 0x6ee   : > { %v10544_v7 = vpop.eup %10543  ;;  %4257 = vmatpush.bf16.msra.mxu3 %v10145_v53  ;;  %v10173_v53 = vld [vmem:[%s11650_s11 + $0x130] sm:$0xff] }
 0x6ef   : > { %v4058_v38 = vmul.f32 %v10544_v7, %v4014_v15  ;;  %4157 = vmatmul.bf16.vlgmr.msra.gmra.mxu2 %v4079_v32  ;;  %v4051_v40 = vsel %vm4050_vm12, %v10542_v3, %v4047_v27  ;;  %vm4063_vm14 = vweird.f32 %v10544_v7  ;;  %v10160_v32 = vld [vmem:[%s11659_s6 + $0x8] sm:$0xff] }
 0x6f0   : > { %v4056_v42 = vsel %vm4053_vm13, %v4055_v41, %v4051_v40  ;;  %vm4064_vm0 = vmor %vm4062_vm15, %vm4063_vm14  ;;  %4532 = vmatpush.bf16.msrb.mxu2 %v10165_v23  ;;  %v10187_v23 = vld [vmem:[%s11650_s11 + $0x160] sm:$0xff] }
 0x6f1   : > { %v4059_v39 = vsub.f32 1.0, %v4058_v38  ;;  %v4073_v56 = vmul.f32 %v12183_v24, %v4056_v42  ;;  %v10152_v24 = vld [vmem:[%s11650_s11 + $0x88] sm:$0xff] }
 0x6f2   : > { %4258 = vmatpush.bf16.msra.mxu3 %v10144_v31  ;;  %4342 = vmatpush.bf16.msrb.mxu0 %v10152_v24 }
 0x6f3   : > { %v4060_v29 = vmul.f32 %v10544_v7, %v4059_v39  ;;  %v4077_v46 = vmul.f32 %v4073_v56, %v12164_v19 }
 0x6f4   : > { %4533 = vmatpush.bf16.msrb.mxu2 %v10164_v25 }
 0x6f5   : > { %v4061_v50 = vadd.f32 %v10544_v7, %v4060_v29 }
 0x6f6   : > { %4343 = vmatpush.bf16.msrb.mxu0 %v10151_v60  ;;  %v10180_v60 = vld [vmem:[%s11650_s11 + $0xe8] sm:$0xff] }
 0x6f7   : > { %v4065_v51 = vsel %vm4064_vm0, %v10544_v7, %v4061_v50  ;;  %v10182_v50 = vld [vmem:[%s11650_s11 + $0xf8] sm:$0xff] }
 0x6f8   : > { %v4070_v30 = vsel %vm4067_vm2, %v4069_v48, %v4065_v51  ;;  %4534 = vmatpush.bf16.msrb.mxu2 %v10163_v26  ;;  %v10190_v48 = vld [vmem:[%s11650_s11 + $0x178] sm:$0xff]  ;;  %v10171_v26 = vld [vmem:[%s11650_s11 + $0x120] sm:$0xff] }
 0x6f9   : > { %v4074_v58 = vmul.f32 %v12186_v1, %v4070_v30  ;;  %v10143_v1 = vld [vmem:[%s11650_s11] sm:$0xff]  ;;  %v10174_v51 = vld [vmem:[%s11650_s11 + $0x138] sm:$0xff] }
 0x6fa   : > { %4259 = vmatpush.bf16.msra.mxu3 %v10143_v1  ;;  %4728 = vmatpush.bf16.msra.mxu0 %v10190_v48  ;;  %v10170_v48 = vld [vmem:[%s11650_s11 + $0x118] sm:$0xff] }
 0x6fb   : > { %v4078_v52 = vmul.f32 %v4074_v58, %v12170_v61  ;;  %v10181_v58 = vld [vmem:[%s11650_s11 + $0xf0] sm:$0xff]  ;;  %4807 = vmatpush.bf16.msra.mxu1 %v10174_v51 }
 0x6fc   : > { %4535 = vmatpush.bf16.msrb.mxu2 %v10162_v13  ;;  %v10185_v51 = vld [vmem:[%s11650_s11 + $0x150] sm:$0xff] }
 0x6fd   : > { %v4080_v35 = vpack.c.bf16 %v4078_v52, %v4077_v46  ;;  %v10189_v46 = vld [vmem:[%s11650_s11 + $0x170] sm:$0xff] }
 0x6fe   : > { %4644 = vmatpush.bf16.msrb.mxu3 %v10182_v50  ;;  %4729 = vmatpush.bf16.msra.mxu0 %v10189_v46  ;;  %v10186_v50 = vld [vmem:[%s11650_s11 + $0x158] sm:$0xff]  ;;  %v10168_v46 = vld [vmem:[%s11650_s11 + $0x108] sm:$0xff] }
 0x6ff   : > { %4162 = vmatmul.bf16.gmra.mxu2 %v4080_v35  ;;  %4808 = vmatpush.bf16.msra.mxu1 %v10173_v53  ;;  %v10167_v53 = vld [vmem:[%s11650_s11 + $0x100] sm:$0xff] }
 0x700   : > { %4536 = vmatpush.bf16.msrb.mxu2 %v10161_v2 }
 0x702   : > { %4645 = vmatpush.bf16.msrb.mxu3 %v10181_v58  ;;  %4730 = vmatpush.bf16.msra.mxu0 %v10188_v62  ;;  %v10184_v58 = vld [vmem:[%s11650_s11 + $0x148] sm:$0xff] }
 0x704   : > { %4537 = vmatpush.bf16.msrb.mxu2 %v10160_v32 }
 0x706   : > { %4646 = vmatpush.bf16.msrb.mxu3 %v10180_v60  ;;  %4731 = vmatpush.bf16.msra.mxu0 %v10187_v23 }
 0x708   : > { %4538 = vmatpush.bf16.msrb.mxu2 %v10159_v11 }
 0x70a   : > { %4647 = vmatpush.bf16.msrb.mxu3 %v10179_v21  ;;  %4732 = vmatpush.bf16.msra.mxu0 %v10186_v50 }
 0x70e   : > { %4733 = vmatpush.bf16.msra.mxu0 %v10185_v51  ;;  %v10206_v51 = vld [vmem:[%s11650_s11 + $0x1f8] sm:$0xff] }
 0x712   : > { %4734 = vmatpush.bf16.msra.mxu0 %v10184_v58  ;;  %v10213_v58 = vld [vmem:[%s11650_s11 + $0x1b0] sm:$0xff] }
 0x772   : > { %v4158_v63 = vpop.f32.mrf.mxu2 }
 0x773   : > { %v12242_v4 = vadd.f32 %v10513_v0, %v4158_v63 }
 0x77a   : > { %v4160_v3 = vpop.f32.mrf.mxu2 }
 0x77b   : > { %v12244_v54 = vadd.f32 %v10513_v0, %v4160_v3 }
 0x77d   : > { %v4168_v10 = vpack.c.bf16 %v12244_v54, %v12242_v4 }
 0x77f   : > { %4260 = vmatmul.bf16.vlgmr.msra.gmra.mxu3 %v4168_v10  ;;  %4344 = vmatmul.bf16.vlgmr.msrb.gmra.mxu0 %v4168_v10 }
 0x780   : > { %4423 = vmatmul.bf16.vlgmr.msrb.gmra.mxu1 %v4168_v10 }
 0x782   : > { %v4163_v12 = vpop.f32.mrf.mxu2 }
 0x783   : > { %v12248_v15 = vadd.f32 %v10513_v0, %v4163_v12 }
 0x78a   : > { %v4165_v14 = vpop.f32.mrf.mxu2 }
 0x78b   : > { %v12250_v16 = vadd.f32 %v10513_v0, %v4165_v14  ;;  %v10172_v0 = vld [vmem:[%s11650_s11 + $0x128] sm:$0xff] }
 0x78c   : > { %4809 = vmatpush.bf16.msra.mxu1 %v10172_v0 }
 0x78d   : > { %v4169_v20 = vpack.c.bf16 %v12250_v16, %v12248_v15 }
 0x78f   : > { %4265 = vmatmul.bf16.gmra.mxu3 %v4169_v20  ;;  %4349 = vmatmul.bf16.gmra.mxu0 %v4169_v20 }
 0x790   : > { %4428 = vmatmul.bf16.gmra.mxu1 %v4169_v20 }
 0x791   : > { %4810 = vmatpush.bf16.msra.mxu1 %v10171_v26  ;;  %v10195_v26 = vld [vmem:[%s11659_s6 + $0x60] sm:$0xff] }
 0x795   : > { %4811 = vmatpush.bf16.msra.mxu1 %v10170_v48  ;;  %v10214_v48 = vld [vmem:[%s11650_s11 + $0x1b8] sm:$0xff] }
 0x7fc   : > { %v12260_v9 = vpop.f32.mrf.mxu0 }
 0x7fd   : > { %v4424_v6 = vpop.f32.mrf.mxu1  ;;  %v4434_v24 = vrot.slane %v12260_v9, 1 }
 0x802   : > { %v4261_v27 = vpop.f32.mrf.mxu3 }
 0x803   : > { %v4355_v40 = vrot.slane %v4261_v27, 7 }
 0x804   : > { %v4347_v7 = vpop.f32.mrf.mxu0 }
 0x805   : > { %v4426_v37 = vpop.f32.mrf.mxu1  ;;  %v4435_v29 = vrot.slane %v4347_v7, 1 }
 0x807   : > { %v4440_v63 = vsel %vm2139_vm5, %v4434_v24, %v4435_v29 }
 0x80a   : > { %v4263_v22 = vpop.f32.mrf.mxu3 }
 0x80b   : > { %v4356_v38 = vrot.slane %v4263_v22, 7 }
 0x80c   : > { %v4350_v39 = vpop.f32.mrf.mxu0 }
 0x80d   : > { %v4361_v41 = vsel %vm2059_vm4, %v4355_v40, %v4356_v38  ;;  %v4436_v57 = vrot.slane %v4350_v39, 1  ;;  %v4429_v52 = vpop.f32.mrf.mxu1 }
 0x80e   : > { %v4427_v44 = vadd.f32 %v4426_v37, %v4361_v41 }
 0x80f   : > { %v4439_v56 = vsel %vm2139_vm5, %v4435_v29, %v4436_v57 }
 0x810   : > { %v4447_v59 = vadd.f32 %v4439_v56, %v4427_v44  ;;  %v10169_v56 = vld [vmem:[%s11650_s11 + $0x110] sm:$0xff] }
 0x811   : > { %4812 = vmatpush.bf16.msra.mxu1 %v10169_v56 }
 0x812   : > { %v4266_v36 = vpop.f32.mrf.mxu3  ;;  %v4454_v3 = vadd.f32 %v10514_v28, %v4447_v59 }
 0x813   : > { %v4357_v12 = vrot.slane %v4266_v36, 7 }
 0x814   : > { %v4352_v45 = vpop.f32.mrf.mxu0  ;;  %v4458_v13 = vmax.f32 %v4454_v3, 0.0 }
 0x815   : > { %v4437_v14 = vrot.slane %v4352_v45, 1  ;;  %v4360_v9 = vsel %vm2059_vm4, %v4356_v38, %v4357_v12  ;;  %v4431_v32 = vpop.f32.mrf.mxu1  ;;  %4813 = vmatpush.bf16.msra.mxu1 %v10168_v46  ;;  %v10221_v46 = vld [vmem:[%s11650_s11 + $0x230] sm:$0xff] }
 0x816   : > { %v4430_v7 = vadd.f32 %v4429_v52, %v4360_v9  ;;  %v10175_v52 = vld [vmem:[%s11650_s11 + $0xc0] sm:$0xff] }
 0x817   : > { %v4441_v27 = vsel %vm2139_vm5, %v4437_v14, %v4434_v24  ;;  %v4438_v36 = vsel %vm2139_vm5, %v4436_v57, %v4437_v14  ;;  %v10177_v57 = vld [vmem:[%s11650_s11 + $0xd0] sm:$0xff] }
 0x818   : > { %v4445_v22 = vmul.f32 %v11845_v55, %v4441_v27  ;;  %v4448_v38 = vadd.f32 %v4438_v36, %v4430_v7 }
 0x819   : > { %4814 = vmatpush.bf16.msra.mxu1 %v10167_v53  ;;  %v10205_v53 = vld [vmem:[%s11650_s11 + $0x1f0] sm:$0xff] }
 0x81a   : > { %v4268_v42 = vpop.f32.mrf.mxu3 }
 0x81b   : > { %v4358_v30 = vrot.slane %v4268_v42, 7  ;;  %v10178_v42 = vld [vmem:[%s11650_s11 + $0xd8] sm:$0xff] }
 0x81c   : > { %4648 = vmatpush.bf16.msrb.mxu3 %v10178_v42 }
 0x81d   : > { %v4362_v35 = vsel %vm2059_vm4, %v4358_v30, %v4355_v40  ;;  %v4359_v25 = vsel %vm2059_vm4, %v4357_v12, %v4358_v30  ;;  %v4455_v40 = vadd.f32 %v10514_v28, %v4448_v38  ;;  %v10176_v30 = vld [vmem:[%s11650_s11 + $0xc8] sm:$0xff]  ;;  %5201 = vmatpush.bf16.msrb.mxu1 %v10206_v51  ;;  %v10217_v51 = vld [vmem:[%s11650_s11 + $0x210] sm:$0xff] }
 0x81e   : > { %v4363_v31 = vmul.f32 %v11821_v17, %v4362_v35  ;;  %v4432_v11 = vadd.f32 %v4431_v32, %v4359_v25  ;;  %v10183_v35 = vld [vmem:[%s11650_s11 + $0x140] sm:$0xff]  ;;  %v10192_v32 = vld [vmem:[%s11659_s6 + $0x48] sm:$0xff] }
 0x81f   : > { %v4459_v29 = vmax.f32 %v4455_v40, 0.0  ;;  %4735 = vmatpush.bf16.msra.mxu0 %v10183_v35  ;;  %v10198_v25 = vld [vmem:[%s11659_s6 + $0x78] sm:$0xff] }
 0x820   : > { %v4425_v1 = vadd.f32 %v4424_v6, %v4363_v31  ;;  %v4449_v37 = vadd.f32 %v4445_v22, %v4432_v11  ;;  %4649 = vmatpush.bf16.msrb.mxu3 %v10177_v57  ;;  %4925 = vmatpush.bf16.msra.mxu2 %v10198_v25  ;;  %v10191_v11 = vld [vmem:[%s11659_s6 + $0x40] sm:$0xff]  ;;  %v10222_v57 = vld [vmem:[%s11650_s11 + $0x238] sm:$0xff]  ;;  %v10211_v25 = vld [vmem:[%s11650_s11 + $0x1a0] sm:$0xff] }
 0x821   : > { %5202 = vmatpush.bf16.msrb.mxu1 %v10205_v53  ;;  %v10199_v53 = vld [vmem:[%s11650_s11 + $0x1c0] sm:$0xff] }
 0x822   : > { %v4446_v10 = vadd.f32 %v4440_v63, %v4425_v1  ;;  %v4456_v39 = vadd.f32 %v10514_v28, %v4449_v37 }
 0x823   : > { %5122 = vmatpush.bf16.msrb.mxu0 %v10222_v57  ;;  %v10202_v57 = vld [vmem:[%s11650_s11 + $0x1d8] sm:$0xff] }
 0x824   : > { %v4453_v20 = vadd.f32 %v10514_v28, %v4446_v10  ;;  %v4460_v41 = vmax.f32 %v4456_v39, 0.0  ;;  %4650 = vmatpush.bf16.msrb.mxu3 %v10176_v30  ;;  %v10515_v28 = vld [vmem:[%s11662_s8] ss:$0 sm:$0xff] }
 0x826   : > { %v4457_v2 = vmax.f32 %v4453_v20, 0.0  ;;  %v4462_v44 = vpack.c.bf16 %v4460_v41, %v4459_v29 }
 0x827   : > { %5123 = vmatpush.bf16.msrb.mxu0 %v10221_v46  ;;  %v10200_v46 = vld [vmem:[%s11650_s11 + $0x1c8] sm:$0xff] }
 0x828   : > { %v4461_v6 = vpack.c.bf16 %v4458_v13, %v4457_v2  ;;  %4651 = vmatpush.bf16.msrb.mxu3 %v10175_v52  ;;  %v10194_v13 = vld [vmem:[%s11659_s6 + $0x58] sm:$0xff]  ;;  %v10193_v2 = vld [vmem:[%s11659_s6 + $0x50] sm:$0xff] }
 0x82a   : > { %4539 = vmatmul.bf16.vlgmr.msrb.gmra.mxu2 %v4461_v6 }
 0x82c   : > { %5038 = vmatpush.bf16.msra.mxu3 %v10214_v48  ;;  %v10218_v48 = vld [vmem:[%s11650_s11 + $0x218] sm:$0xff] }
 0x830   : > { %5039 = vmatpush.bf16.msra.mxu3 %v10213_v58  ;;  %v10216_v58 = vld [vmem:[%s11650_s11 + $0x208] sm:$0xff] }
 0x83a   : > { %4544 = vmatmul.bf16.gmra.mxu2 %v4462_v44 }
 0x8ad   : > { %v4540_v59 = vpop.f32.mrf.mxu2 }
 0x8ae   : > { %v4541_v31 = vadd.f32 %v10515_v28, %v4540_v59 }
 0x8b0   : > { %v4550_v45 = vadd.f32 %v4541_v31, %v12242_v4 }
 0x8b2   : > { %v12312_v62 = vmul.f32 %v4550_v45, %v12146_v47 }
 0x8b5   : > { %v4542_v24 = vpop.f32.mrf.mxu2 }
 0x8b6   : > { %v4543_v1 = vadd.f32 %v10515_v28, %v4542_v24 }
 0x8b8   : > { %v4551_v60 = vadd.f32 %v4543_v1, %v12244_v54 }
 0x8ba   : > { %v12315_v63 = vmul.f32 %v4551_v60, %v12158_v18  ;;  %v10212_v60 = vld [vmem:[%s11650_s11 + $0x1a8] sm:$0xff] }
 0x8bb   : > { %5040 = vmatpush.bf16.msra.mxu3 %v10212_v60 }
 0x8bc   : > { %v4558_v0 = vpack.c.bf16 %v12315_v63, %v12312_v62 }
 0x8bd   : > { %v4545_v3 = vpop.f32.mrf.mxu2 }
 0x8be   : > { %4652 = vmatmul.bf16.vlgmr.msrb.gmra.mxu3 %v4558_v0  ;;  %4736 = vmatmul.bf16.vlgmr.msra.gmra.mxu0 %v4558_v0  ;;  %v4546_v4 = vadd.f32 %v10515_v28, %v4545_v3 }
 0x8bf   : > { %4815 = vmatmul.bf16.vlgmr.msra.gmra.mxu1 %v4558_v0  ;;  %v10220_v0 = vld [vmem:[%s11650_s11 + $0x228] sm:$0xff]  ;;  %5041 = vmatpush.bf16.msra.mxu3 %v10211_v25 }
 0x8c0   : > { %v4552_v54 = vadd.f32 %v4546_v4, %v12248_v15  ;;  %v10197_v15 = vld [vmem:[%s11659_s6 + $0x70] sm:$0xff]  ;;  %v10204_v4 = vld [vmem:[%s11650_s11 + $0x1e8] sm:$0xff]  ;;  %5124 = vmatpush.bf16.msrb.mxu0 %v10220_v0 }
 0x8c1   : > { %4926 = vmatpush.bf16.msra.mxu2 %v10197_v15  ;;  %v10219_v15 = vld [vmem:[%s11650_s11 + $0x220] sm:$0xff]  ;;  %5203 = vmatpush.bf16.msrb.mxu1 %v10204_v4 }
 0x8c2   : > { %v12322_v20 = vmul.f32 %v4552_v54, %v12164_v19 }
 0x8c4   : > { %5125 = vmatpush.bf16.msrb.mxu0 %v10219_v15 }
 0x8c5   : > { %v4547_v10 = vpop.f32.mrf.mxu2 }
 0x8c6   : > { %v4548_v12 = vadd.f32 %v10515_v28, %v4547_v10  ;;  %v10516_v28 = vld [vmem:[%s11653_s2 + $0x1] ss:$0 sm:$0xff] }
 0x8c8   : > { %v4553_v14 = vadd.f32 %v4548_v12, %v12250_v16  ;;  %v10196_v16 = vld [vmem:[%s11659_s6 + $0x68] sm:$0xff]  ;;  %5126 = vmatpush.bf16.msrb.mxu0 %v10218_v48 }
 0x8c9   : > { %4927 = vmatpush.bf16.msra.mxu2 %v10196_v16 }
 0x8ca   : > { %v12325_v21 = vmul.f32 %v4553_v14, %v12170_v61 }
 0x8cc   : > { %v4559_v23 = vpack.c.bf16 %v12325_v21, %v12322_v20  ;;  %5127 = vmatpush.bf16.msrb.mxu0 %v10217_v51 }
 0x8cd   : > { %4928 = vmatpush.bf16.msra.mxu2 %v10195_v26  ;;  %v10203_v26 = vld [vmem:[%s11650_s11 + $0x1e0] sm:$0xff] }
 0x8ce   : > { %4657 = vmatmul.bf16.gmra.mxu3 %v4559_v23  ;;  %4741 = vmatmul.bf16.gmra.mxu0 %v4559_v23 }
 0x8cf   : > { %4820 = vmatmul.bf16.gmra.mxu1 %v4559_v23 }
 0x8d0   : > { %5204 = vmatpush.bf16.msrb.mxu1 %v10203_v26  ;;  %5128 = vmatpush.bf16.msrb.mxu0 %v10216_v58  ;;  %v10227_v26 = vld [vmem:[%s11659_s6 + $0xa0] sm:$0xff] }
 0x8d1   : > { %4929 = vmatpush.bf16.msra.mxu2 %v10194_v13 }
 0x8d4   : > { %5205 = vmatpush.bf16.msrb.mxu1 %v10202_v57  ;;  %v10238_v57 = vld [vmem:[%s11668_s22 + $0x38] sm:$0xff] }
 0x8d5   : > { %4930 = vmatpush.bf16.msra.mxu2 %v10193_v2 }
 0x8d9   : > { %4931 = vmatpush.bf16.msra.mxu2 %v10192_v32 }
 0x8dd   : > { %4932 = vmatpush.bf16.msra.mxu2 %v10191_v11 }
 0x93b   : > { %v12335_v9 = vpop.f32.mrf.mxu0 }
 0x93c   : > { %v4816_v6 = vpop.f32.mrf.mxu1  ;;  %v4826_v24 = vrot.slane %v12335_v9, 2 }
 0x941   : > { %v4653_v27 = vpop.f32.mrf.mxu3 }
 0x942   : > { %v4747_v40 = vrot.slane %v4653_v27, 6 }
 0x943   : > { %v4739_v7 = vpop.f32.mrf.mxu0 }
 0x944   : > { %v4818_v37 = vpop.f32.mrf.mxu1  ;;  %v4827_v44 = vrot.slane %v4739_v7, 2 }
 0x946   : > { %v4832_v3 = vsel %vm2619_vm9, %v4826_v24, %v4827_v44 }
 0x949   : > { %v4655_v22 = vpop.f32.mrf.mxu3 }
 0x94a   : > { %v4748_v38 = vrot.slane %v4655_v22, 6 }
 0x94b   : > { %v4742_v39 = vpop.f32.mrf.mxu0 }
 0x94c   : > { %v4753_v41 = vsel %vm2539_vm8, %v4747_v40, %v4748_v38  ;;  %v4828_v29 = vrot.slane %v4742_v39, 2  ;;  %v4821_v52 = vpop.f32.mrf.mxu1 }
 0x94d   : > { %v4819_v42 = vadd.f32 %v4818_v37, %v4753_v41 }
 0x94e   : > { %v4831_v56 = vsel %vm2619_vm9, %v4827_v44, %v4828_v29 }
 0x94f   : > { %v4839_v59 = vadd.f32 %v4831_v56, %v4819_v42  ;;  %v10201_v56 = vld [vmem:[%s11650_s11 + $0x1d0] sm:$0xff] }
 0x950   : > { %5206 = vmatpush.bf16.msrb.mxu1 %v10201_v56  ;;  %v10237_v56 = vld [vmem:[%s11668_s22 + $0x30] sm:$0xff] }
 0x951   : > { %v4658_v36 = vpop.f32.mrf.mxu3  ;;  %v4846_v10 = vadd.f32 %v10516_v28, %v4839_v59 }
 0x952   : > { %v4749_v12 = vrot.slane %v4658_v36, 6 }
 0x953   : > { %v4744_v45 = vpop.f32.mrf.mxu0  ;;  %v4850_v13 = vmax.f32 %v4846_v10, 0.0 }
 0x954   : > { %v4829_v14 = vrot.slane %v4744_v45, 2  ;;  %v4752_v9 = vsel %vm2539_vm8, %v4748_v38, %v4749_v12  ;;  %v4823_v32 = vpop.f32.mrf.mxu1  ;;  %5207 = vmatpush.bf16.msrb.mxu1 %v10200_v46 }
 0x955   : > { %v4822_v7 = vadd.f32 %v4821_v52, %v4752_v9  ;;  %v10207_v52 = vld [vmem:[%s11650_s11 + $0x180] sm:$0xff] }
 0x956   : > { %v4833_v27 = vsel %vm2619_vm9, %v4829_v14, %v4826_v24  ;;  %v4830_v36 = vsel %vm2619_vm9, %v4828_v29, %v4829_v14  ;;  %v10209_v29 = vld [vmem:[%s11650_s11 + $0x190] sm:$0xff] }
 0x957   : > { %v4837_v22 = vmul.f32 %v11961_v33, %v4833_v27  ;;  %v4840_v38 = vadd.f32 %v4830_v36, %v4822_v7 }
 0x958   : > { %5208 = vmatpush.bf16.msrb.mxu1 %v10199_v53 }
 0x959   : > { %v4660_v50 = vpop.f32.mrf.mxu3 }
 0x95a   : > { %v4750_v30 = vrot.slane %v4660_v50, 6  ;;  %v10210_v50 = vld [vmem:[%s11650_s11 + $0x198] sm:$0xff] }
 0x95b   : > { %5042 = vmatpush.bf16.msra.mxu3 %v10210_v50 }
 0x95c   : > { %v4754_v35 = vsel %vm2539_vm8, %v4750_v30, %v4747_v40  ;;  %v4751_v16 = vsel %vm2539_vm8, %v4749_v12, %v4750_v30  ;;  %v4847_v40 = vadd.f32 %v10516_v28, %v4840_v38  ;;  %v10208_v30 = vld [vmem:[%s11650_s11 + $0x188] sm:$0xff] }
 0x95d   : > { %v4755_v31 = vmul.f32 %v11942_v8, %v4754_v35  ;;  %v4824_v11 = vadd.f32 %v4823_v32, %v4751_v16  ;;  %v10215_v35 = vld [vmem:[%s11650_s11 + $0x200] sm:$0xff]  ;;  %v10224_v32 = vld [vmem:[%s11659_s6 + $0x88] sm:$0xff] }
 0x95e   : > { %v4851_v44 = vmax.f32 %v4847_v40, 0.0  ;;  %5129 = vmatpush.bf16.msrb.mxu0 %v10215_v35  ;;  %v10230_v16 = vld [vmem:[%s11659_s6 + $0xb8] sm:$0xff] }
 0x95f   : > { %v4817_v1 = vadd.f32 %v4816_v6, %v4755_v31  ;;  %v4841_v37 = vadd.f32 %v4837_v22, %v4824_v11  ;;  %5043 = vmatpush.bf16.msra.mxu3 %v10209_v29  ;;  %5319 = vmatpush.bf16.msrb.mxu2 %v10230_v16  ;;  %v10223_v11 = vld [vmem:[%s11659_s6 + $0x80] sm:$0xff] }
 0x961   : > { %v4838_v54 = vadd.f32 %v4832_v3, %v4817_v1  ;;  %v4848_v39 = vadd.f32 %v10516_v28, %v4841_v37 }
 0x963   : > { %v4845_v23 = vadd.f32 %v10516_v28, %v4838_v54  ;;  %v4852_v41 = vmax.f32 %v4848_v39, 0.0  ;;  %5044 = vmatpush.bf16.msra.mxu3 %v10208_v30  ;;  %v10517_v28 = vld [vmem:[%s11662_s8 + $0x1] ss:$0 sm:$0xff] }
 0x965   : > { %v4849_v2 = vmax.f32 %v4845_v23, 0.0  ;;  %v4854_v42 = vpack.c.bf16 %v4852_v41, %v4851_v44 }
 0x967   : > { %v4853_v6 = vpack.c.bf16 %v4850_v13, %v4849_v2  ;;  %5045 = vmatpush.bf16.msra.mxu3 %v10207_v52  ;;  %v10226_v13 = vld [vmem:[%s11659_s6 + $0x98] sm:$0xff]  ;;  %v10225_v2 = vld [vmem:[%s11659_s6 + $0x90] sm:$0xff] }
 0x968   : > { %v10518_v52 = vld [vmem:[%s11653_s2 + $0x2] ss:$0 sm:$0xff] }
 0x969   : > { %4933 = vmatmul.bf16.vlgmr.msra.gmra.mxu2 %v4853_v6 }
 0x96b   : > { %5416 = vmatpush.bf16.msrb.mxu3 %v10238_v57 }
 0x96f   : > { %5417 = vmatpush.bf16.msrb.mxu3 %v10237_v56 }
 0x979   : > { %4938 = vmatmul.bf16.gmra.mxu2 %v4854_v42 }
 0x9ec   : > { %v4934_v59 = vpop.f32.mrf.mxu2 }
 0x9ed   : > { %v4935_v31 = vadd.f32 %v10517_v28, %v4934_v59 }
 0x9ef   : > { %v4944_v45 = vadd.f32 %v4935_v31, %v12312_v62  ;;  %v10236_v31 = vld [vmem:[%s11668_s22 + $0x28] sm:$0xff] }
 0x9f0   : > { %5418 = vmatpush.bf16.msrb.mxu3 %v10236_v31 }
 0x9f1   : > { %v12387_v0 = vmul.f32 %v4944_v45, %v12146_v47 }
 0x9f4   : > { %v4936_v24 = vpop.f32.mrf.mxu2 }
 0x9f5   : > { %v4937_v1 = vadd.f32 %v10517_v28, %v4936_v24 }
 0x9f7   : > { %v4945_v60 = vadd.f32 %v4937_v1, %v12315_v63 }
 0x9f9   : > { %v12390_v3 = vmul.f32 %v4945_v60, %v12158_v18 }
 0x9fb   : > { %v4952_v4 = vpack.c.bf16 %v12390_v3, %v12387_v0 }
 0x9fc   : > { %v4939_v10 = vpop.f32.mrf.mxu2 }
 0x9fd   : > { %5046 = vmatmul.bf16.vlgmr.msra.gmra.mxu3 %v4952_v4  ;;  %5130 = vmatmul.bf16.vlgmr.msrb.gmra.mxu0 %v4952_v4  ;;  %v4940_v62 = vadd.f32 %v10517_v28, %v4939_v10 }
 0x9fe   : > { %5209 = vmatmul.bf16.vlgmr.msrb.gmra.mxu1 %v4952_v4 }
 0x9ff   : > { %v4946_v63 = vadd.f32 %v4940_v62, %v12322_v20  ;;  %v10229_v20 = vld [vmem:[%s11659_s6 + $0xb0] sm:$0xff] }
 0xa00   : > { %5320 = vmatpush.bf16.msrb.mxu2 %v10229_v20  ;;  %v10235_v62 = vld [vmem:[%s11668_s22 + $0x20] sm:$0xff] }
 0xa01   : > { %v12397_v23 = vmul.f32 %v4946_v63, %v12164_v19  ;;  %5419 = vmatpush.bf16.msrb.mxu3 %v10235_v62 }
 0xa04   : > { %v4941_v54 = vpop.f32.mrf.mxu2 }
 0xa05   : > { %v4942_v12 = vadd.f32 %v10517_v28, %v4941_v54 }
 0xa07   : > { %v4947_v14 = vadd.f32 %v4942_v12, %v12325_v21  ;;  %v10228_v21 = vld [vmem:[%s11659_s6 + $0xa8] sm:$0xff] }
 0xa08   : > { %5321 = vmatpush.bf16.msrb.mxu2 %v10228_v21 }
 0xa09   : > { %v12400_v25 = vmul.f32 %v4947_v14, %v12170_v61 }
 0xa0b   : > { %v4953_v15 = vpack.c.bf16 %v12400_v25, %v12397_v23 }
 0xa0c   : > { %5322 = vmatpush.bf16.msrb.mxu2 %v10227_v26 }
 0xa0d   : > { %5051 = vmatmul.bf16.gmra.mxu3 %v4953_v15  ;;  %5135 = vmatmul.bf16.gmra.mxu0 %v4953_v15 }
 0xa0e   : > { %5214 = vmatmul.bf16.gmra.mxu1 %v4953_v15 }
 0xa10   : > { %5323 = vmatpush.bf16.msrb.mxu2 %v10226_v13 }
 0xa14   : > { %5324 = vmatpush.bf16.msrb.mxu2 %v10225_v2 }
 0xa18   : > { %5325 = vmatpush.bf16.msrb.mxu2 %v10224_v32 }
 0xa1c   : > { %5326 = vmatpush.bf16.msrb.mxu2 %v10223_v11 }
 0xa7a   : > { %v5131_v9 = vpop.f32.mrf.mxu0 }
 0xa7b   : > { %v5210_v6 = vpop.f32.mrf.mxu1  ;;  %v5220_v53 = vrot.slane %v5131_v9, 4 }
 0xa80   : > { %v5047_v27 = vpop.f32.mrf.mxu3 }
 0xa81   : > { %v5141_v40 = vrot.slane %v5047_v27, 4 }
 0xa82   : > { %v5133_v7 = vpop.f32.mrf.mxu0 }
 0xa83   : > { %v5212_v37 = vpop.f32.mrf.mxu1  ;;  %v5221_v42 = vrot.slane %v5133_v7, 4 }
 0xa85   : > { %v5226_v24 = vsel %vm1771_vm1, %v5220_v53, %v5221_v42 }
 0xa88   : > { %v5049_v22 = vpop.f32.mrf.mxu3 }
 0xa89   : > { %v5142_v38 = vrot.slane %v5049_v22, 4 }
 0xa8a   : > { %v5136_v39 = vpop.f32.mrf.mxu0 }
 0xa8b   : > { %v5147_v41 = vsel %vm1771_vm1, %v5141_v40, %v5142_v38  ;;  %v5222_v44 = vrot.slane %v5136_v39, 4  ;;  %v5215_v30 = vpop.f32.mrf.mxu1  ;;  %v10231_v39 = vld [vmem:[%s11668_s22] sm:$0xff] }
 0xa8c   : > { %v5213_v50 = vadd.f32 %v5212_v37, %v5147_v41  ;;  %v10233_v37 = vld [vmem:[%s11668_s22 + $0x10] sm:$0xff] }
 0xa8d   : > { %v5225_v29 = vsel %vm1771_vm1, %v5221_v42, %v5222_v44  ;;  %v10519_v41 = vld [vmem:[%s11662_s8 + $0x2] ss:$0 sm:$0xff] }
 0xa8e   : > { %v5233_v46 = vadd.f32 %v5225_v29, %v5213_v50 }
 0xa90   : > { %v5052_v36 = vpop.f32.mrf.mxu3  ;;  %v5240_v45 = vadd.f32 %v10518_v52, %v5233_v46 }
 0xa91   : > { %v5143_v60 = vrot.slane %v5052_v36, 4  ;;  %v10234_v36 = vld [vmem:[%s11668_s22 + $0x18] sm:$0xff] }
 0xa92   : > { %v5138_v59 = vpop.f32.mrf.mxu0  ;;  %v5244_v63 = vmax.f32 %v5240_v45, 0.0  ;;  %5420 = vmatpush.bf16.msrb.mxu3 %v10234_v36 }
 0xa93   : > { %v5223_v4 = vrot.slane %v5138_v59, 4  ;;  %v5146_v14 = vsel %vm1771_vm1, %v5142_v38, %v5143_v60  ;;  %v5217_v16 = vpop.f32.mrf.mxu1  ;;  %v10232_v38 = vld [vmem:[%s11668_s22 + $0x8] sm:$0xff] }
 0xa94   : > { %v5216_v26 = vadd.f32 %v5215_v30, %v5146_v14 }
 0xa95   : > { %v5227_v15 = vsel %vm1771_vm1, %v5223_v4, %v5220_v53  ;;  %v5224_v2 = vsel %vm1771_vm1, %v5222_v44, %v5223_v4 }
 0xa96   : > { %v5231_v13 = vmul.f32 %v11813_v5, %v5227_v15  ;;  %v5234_v27 = vadd.f32 %v5224_v2, %v5216_v26  ;;  %5421 = vmatpush.bf16.msrb.mxu3 %v10233_v37 }
 0xa98   : > { %v5054_v48 = vpop.f32.mrf.mxu3  ;;  %v5241_v11 = vadd.f32 %v10518_v52, %v5234_v27 }
 0xa99   : > { %v5144_v51 = vrot.slane %v5054_v48, 4 }
 0xa9a   : > { %v5245_v7 = vmax.f32 %v5241_v11, 0.0  ;;  %5422 = vmatpush.bf16.msrb.mxu3 %v10232_v38 }
 0xa9b   : > { %v5148_v58 = vsel %vm1771_vm1, %v5144_v51, %v5141_v40  ;;  %v5145_v54 = vsel %vm1771_vm1, %v5143_v60, %v5144_v51 }
 0xa9c   : > { %v5149_v35 = vmul.f32 %v11792_v43, %v5148_v58  ;;  %v5218_v20 = vadd.f32 %v5217_v16, %v5145_v54 }
 0xa9e   : > { %v5211_v28 = vadd.f32 %v5210_v6, %v5149_v35  ;;  %v5235_v9 = vadd.f32 %v5231_v13, %v5218_v20  ;;  %5423 = vmatpush.bf16.msrb.mxu3 %v10231_v39  ;;  %v10246_v13 = vld [vmem:[%s11639_s21 + $0x78] sm:$0xff] }
 0xa9f   : > { %5612 = vmatpush.bf16.msra.mxu0 %v10246_v13 }
 0xaa0   : > { %v5232_v1 = vadd.f32 %v5226_v24, %v5211_v28  ;;  %v5242_v32 = vadd.f32 %v10518_v52, %v5235_v9  ;;  %v10520_v28 = vld [vmem:[%s11671_s12] ss:$0 sm:$0xff] }
 0xaa2   : > { %v5239_v10 = vadd.f32 %v10518_v52, %v5232_v1  ;;  %v5246_v6 = vmax.f32 %v5242_v32, 0.0 }
 0xaa4   : > { %v5243_v12 = vmax.f32 %v5239_v10, 0.0  ;;  %v5248_v22 = vpack.c.bf16 %v5246_v6, %v5245_v7 }
 0xaa6   : > { %v5247_v21 = vpack.c.bf16 %v5244_v63, %v5243_v12 }
 0xaa8   : > { %5327 = vmatmul.bf16.vlgmr.msrb.gmra.mxu2 %v5247_v21 }
 0xab8   : > { %5332 = vmatmul.bf16.gmra.mxu2 %v5248_v22 }
 0xb2b   : > { %v5328_v40 = vpop.f32.mrf.mxu2 }
 0xb2c   : > { %v5329_v44 = vadd.f32 %v10519_v41, %v5328_v40  ;;  %v10245_v40 = vld [vmem:[%s11639_s21 + $0x70] sm:$0xff] }
 0xb2d   : > { %5613 = vmatpush.bf16.msra.mxu0 %v10245_v40 }
 0xb2e   : > { %v5338_v50 = vadd.f32 %v5329_v44, %v12387_v0  ;;  %v10243_v44 = vld [vmem:[%s11639_s21 + $0x60] sm:$0xff] }
 0xb30   : > { %v5342_v29 = vmul.f32 %v5338_v50, %v12146_v47  ;;  %v10241_v50 = vld [vmem:[%s11639_s21 + $0x50] sm:$0xff] }
 0xb33   : > { %v5330_v42 = vpop.f32.mrf.mxu2 }
 0xb34   : > { %v5331_v48 = vadd.f32 %v10519_v41, %v5330_v42  ;;  %v10242_v42 = vld [vmem:[%s11639_s21 + $0x58] sm:$0xff] }
 0xb36   : > { %v5339_v57 = vadd.f32 %v5331_v48, %v12390_v3  ;;  %v10240_v48 = vld [vmem:[%s11639_s21 + $0x48] sm:$0xff] }
 0xb38   : > { %v5343_v51 = vmul.f32 %v5339_v57, %v12158_v18  ;;  %v10239_v57 = vld [vmem:[%s11639_s21 + $0x40] sm:$0xff] }
 0xb3a   : > { %v5346_v56 = vpack.c.bf16 %v5343_v51, %v5342_v29 }
 0xb3b   : > { %v5333_v30 = vpop.f32.mrf.mxu2 }
 0xb3c   : > { %5424 = vmatmul.bf16.vlgmr.msrb.gmra.mxu3 %v5346_v56  ;;  %v5334_v58 = vadd.f32 %v10519_v41, %v5333_v30 }
 0xb3e   : > { %v5340_v52 = vadd.f32 %v5334_v58, %v12397_v23 }
 0xb40   : > { %v5344_v53 = vmul.f32 %v5340_v52, %v12164_v19 }
 0xb43   : > { %v5335_v46 = vpop.f32.mrf.mxu2 }
 0xb44   : > { %v5336_v35 = vadd.f32 %v10519_v41, %v5335_v46  ;;  %v10244_v41 = vld [vmem:[%s11639_s21 + $0x68] sm:$0xff] }
 0xb45   : > { %5614 = vmatpush.bf16.msra.mxu0 %v10244_v41 }
 0xb46   : > { %v5341_v0 = vadd.f32 %v5336_v35, %v12400_v25 }
 0xb48   : > { %v5345_v3 = vmul.f32 %v5341_v0, %v12170_v61 }
 0xb49   : > { %5615 = vmatpush.bf16.msra.mxu0 %v10243_v44 }
 0xb4a   : > { %v5347_v59 = vpack.c.bf16 %v5345_v3, %v5344_v53 }
 0xb4c   : > { %5429 = vmatmul.bf16.gmra.mxu3 %v5347_v59 }
 0xb4d   : > { %5616 = vmatpush.bf16.msra.mxu0 %v10242_v42 }
 0xb51   : > { %5617 = vmatpush.bf16.msra.mxu0 %v10241_v50  ;;  %v10266_v50 = vld [vmem:[%s11650_s11 + $0x2d8] sm:$0xff] }
 0xb55   : > { %5618 = vmatpush.bf16.msra.mxu0 %v10240_v48 }
 0xb59   : > { %5619 = vmatpush.bf16.msra.mxu0 %v10239_v57 }
 0xbbf   : > { %v5425_v31 = vpop.f32.mrf.mxu3 }
 0xbc0   : > { %v5426_v24 = vadd.f32 %v10520_v28, %v5425_v31  ;;  %v10270_v31 = vld [vmem:[%s11650_s11 + $0x2f8] sm:$0xff] }
 0xbc1   : > { %5801 = vmatpush.bf16.msra.mxu2 %v10270_v31 }
 0xbc2   : > { %v5435_v45 = vmul.f32 %v5426_v24, %v12146_v47  ;;  %v10254_v24 = vld [vmem:[%s11650_s11 + $0x2b8] sm:$0xff] }
 0xbc3   : > { %5880 = vmatpush.bf16.msra.mxu3 %v10254_v24 }
 0xbc4   : > { %v5444_v1 = vsel %vm1490_vm11, %v5435_v45, -1e+30  ;;  %9223 = vst [vmem:[%s12151_s20 + $0x20] sm:$0xff] %v5435_v45 }
 0xbc5   : > { %5448 = vmax.xlane.f32.xlu2 %v5444_v1 }
 0xbc7   : > { %v5427_v23 = vpop.f32.mrf.mxu3 }
 0xbc8   : > { %v5428_v25 = vadd.f32 %v10520_v28, %v5427_v23 }
 0xbca   : > { %v5436_v60 = vmul.f32 %v5428_v25, %v12158_v18  ;;  %v10261_v25 = vld [vmem:[%s11650_s11 + $0x270] sm:$0xff] }
 0xbcc   : > { %9224 = vst [vmem:[%s12151_s20 + $0x28] sm:$0xff] %v5436_v60  ;;  %v5445_v4 = vsel %vm1490_vm11, %v5436_v60, -1e+30  ;;  %v10269_v60 = vld [vmem:[%s11650_s11 + $0x2f0] sm:$0xff] }
 0xbcd   : > { %5450 = vmax.xlane.f32.xlu2 %v5445_v4  ;;  %5802 = vmatpush.bf16.msra.mxu2 %v10269_v60  ;;  %v10257_v60 = vld [vmem:[%s11650_s11 + $0x250] sm:$0xff] }
 0xbcf   : > { %v5430_v10 = vpop.f32.mrf.mxu3 }
 0xbd0   : > { %v5431_v62 = vadd.f32 %v10520_v28, %v5430_v10 }
 0xbd2   : > { %v5437_v54 = vmul.f32 %v5431_v62, %v12164_v19  ;;  %v10253_v62 = vld [vmem:[%s11650_s11 + $0x2b0] sm:$0xff] }
 0xbd3   : > { %5881 = vmatpush.bf16.msra.mxu3 %v10253_v62  ;;  %v10256_v62 = vld [vmem:[%s11650_s11 + $0x248] sm:$0xff] }
 0xbd4   : > { %v5446_v63 = vsel %vm1490_vm11, %v5437_v54, -1e+30  ;;  %9225 = vst [vmem:[%s12151_s20 + $0x30] sm:$0xff] %v5437_v54 }
 0xbd5   : > { %5452 = vmax.xlane.f32.xlu0 %v5446_v63 }
 0xbd7   : > { %v5432_v12 = vpop.f32.mrf.mxu3 }
 0xbd8   : > { %v5433_v14 = vadd.f32 %v10520_v28, %v5432_v12  ;;  %v10262_v28 = vld [vmem:[%s11650_s11 + $0x278] sm:$0xff] }
 0xbd9   : > { %5717 = vmatpush.bf16.msra.mxu1 %v10262_v28 }
 0xbda   : > { %v5438_v15 = vmul.f32 %v5433_v14, %v12170_v61 }
 0xbdc   : > { %v5447_v16 = vsel %vm1490_vm11, %v5438_v15, -1e+30  ;;  %9226 = vst [vmem:[%s12151_s20 + $0x38] sm:$0xff] %v5438_v15  ;;  %v10260_v15 = vld [vmem:[%s11650_s11 + $0x268] sm:$0xff] }
 0xbdd   : > { %5454 = vmax.xlane.f32.xlu1 %v5447_v16  ;;  %5718 = vmatpush.bf16.msra.mxu1 %v10261_v25 }
 0xbe1   : > { %5719 = vmatpush.bf16.msra.mxu1 %v10260_v15  ;;  %v10521_v15 = vld [vmem:[%s11642_s28 + $0x1] ss:$0 sm:$0xff] }
 0xc38   : > { %v5449_v20 = vpop.xlane.xlu2 %5448 }
 0xc39   : > { %v5456_v21 = vsub.f32 %v5444_v1, %v5449_v20 }
 0xc3b   : > { %v5460_v26 = vmul.f32 1.442695, %v5456_v21 }
 0xc3d   : > { %10545 = vpow2.f32 %v5460_v26  ;;  %v10252_v26 = vld [vmem:[%s11650_s11 + $0x2a8] sm:$0xff] }
 0xc3e   : > { %5882 = vmatpush.bf16.msra.mxu3 %v10252_v26 }
 0xc40   : > { %v5451_v2 = vpop.xlane.xlu2 %5450 }
 0xc41   : > { %v5457_v9 = vsub.f32 %v5445_v4, %v5451_v2 }
 0xc43   : > { %v12466_v27 = vpop.eup %10545  ;;  %v5462_v32 = vmul.f32 1.442695, %v5457_v9 }
 0xc44   : > { %5468 = vadd.xlane.f32.xlu2 %v12466_v27 }
 0xc45   : > { %10547 = vpow2.f32 %v5462_v32 }
 0xc48   : > { %v5453_v11 = vpop.xlane.xlu0 %5452 }
 0xc49   : > { %v5458_v49 = vsub.f32 %v5446_v63, %v5453_v11 }
 0xc4b   : > { %v12469_v6 = vpop.eup %10547  ;;  %v5464_v7 = vmul.f32 1.442695, %v5458_v49 }
 0xc4c   : > { %5470 = vadd.xlane.f32.xlu0 %v12469_v6 }
 0xc4d   : > { %10549 = vpow2.f32 %v5464_v7 }
 0xc50   : > { %v5455_v22 = vpop.xlane.xlu1 %5454 }
 0xc51   : > { %v5459_v36 = vsub.f32 %v5447_v16, %v5455_v22  ;;  %v10268_v16 = vld [vmem:[%s11650_s11 + $0x2e8] sm:$0xff]  ;;  %v10259_v22 = vld [vmem:[%s11650_s11 + $0x260] sm:$0xff] }
 0xc52   : > { %5803 = vmatpush.bf16.msra.mxu2 %v10268_v16  ;;  %5720 = vmatpush.bf16.msra.mxu1 %v10259_v22  ;;  %v10276_v22 = vld [vmem:[%s11659_s6 + $0xe8] sm:$0xff] }
 0xc53   : > { %v12472_v37 = vpop.eup %10549  ;;  %v5466_v38 = vmul.f32 1.442695, %v5459_v36  ;;  %v10267_v36 = vld [vmem:[%s11650_s11 + $0x2e0] sm:$0xff] }
 0xc54   : > { %5472 = vadd.xlane.f32.xlu1 %v12472_v37 }
 0xc55   : > { %10551 = vpow2.f32 %v5466_v38  ;;  %v10251_v38 = vld [vmem:[%s11650_s11 + $0x2a0] sm:$0xff] }
 0xc56   : > { %5804 = vmatpush.bf16.msra.mxu2 %v10267_v36  ;;  %5883 = vmatpush.bf16.msra.mxu3 %v10251_v38  ;;  %v10275_v36 = vld [vmem:[%s11659_s6 + $0xe0] sm:$0xff]  ;;  %v10274_v38 = vld [vmem:[%s11659_s6 + $0xd8] sm:$0xff] }
 0xc5a   : > { %5805 = vmatpush.bf16.msra.mxu2 %v10266_v50 }
 0xc5b   : > { %v12475_v39 = vpop.eup %10551 }
 0xc5c   : > { %5474 = vadd.xlane.f32.xlu2 %v12475_v39 }
 0xcb7   : > { %v5469_v29 = vpop.xlane.xlu2 %5468 }
 0xcb8   : > { %10553 = vrcp.f32 %v5469_v29  ;;  %v5487_v0 = vand.u32 2147483648, %v5469_v29  ;;  %vm5481_vm3 = vweird.f32 %v5469_v29  ;;  %v5485_v53 = vand.u32 2147483647, %v5469_v29 }
 0xcba   : > { %v5488_v4 = vor.u32 1.1754944e-38, %v5487_v0  ;;  %vm5486_vm7 = vcmp.eq.f32.partialorder %v5485_v53, 8.507059e+37 }
 0xcbe   : > { %v10554_v51 = vpop.eup %10553 }
 0xcbf   : > { %v5477_v56 = vmul.f32 %v10554_v51, %v5469_v29  ;;  %v5471_v30 = vpop.xlane.xlu0 %5470  ;;  %vm5482_vm11 = vweird.f32 %v10554_v51  ;;  %v10250_v29 = vld [vmem:[%s11650_s11 + $0x298] sm:$0xff] }
 0xcc0   : > { %10555 = vrcp.f32 %v5471_v30  ;;  %vm12490_vm6 = vmor %vm5481_vm3, %vm5482_vm11  ;;  %v5501_v10 = vand.u32 2147483648, %v5471_v30  ;;  %v5499_v63 = vand.u32 2147483647, %v5471_v30  ;;  %vm5495_vm12 = vweird.f32 %v5471_v30  ;;  %5884 = vmatpush.bf16.msra.mxu3 %v10250_v29 }
 0xcc1   : > { %v5478_v58 = vsub.f32 1.0, %v5477_v56 }
 0xcc2   : > { %v5502_v21 = vor.u32 1.1754944e-38, %v5501_v10  ;;  %vm5500_vm14 = vcmp.eq.f32.partialorder %v5499_v63, 8.507059e+37  ;;  %v10249_v10 = vld [vmem:[%s11650_s11 + $0x290] sm:$0xff]  ;;  %v10263_v63 = vld [vmem:[%s11650_s11 + $0x2c0] sm:$0xff] }
 0xcc3   : > { %v5479_v46 = vmul.f32 %v10554_v51, %v5478_v58 }
 0xcc4   : > { %5885 = vmatpush.bf16.msra.mxu3 %v10249_v10 }
 0xcc5   : > { %v5480_v52 = vadd.f32 %v10554_v51, %v5479_v46 }
 0xcc6   : > { %v10556_v35 = vpop.eup %10555 }
 0xcc7   : > { %v5491_v3 = vmul.f32 %v10556_v35, %v5471_v30  ;;  %v12485_v59 = vpop.xlane.xlu1 %5472  ;;  %v5484_v1 = vsel %vm12490_vm6, %v10554_v51, %v5480_v52  ;;  %vm5496_vm10 = vweird.f32 %v10556_v35 }
 0xcc8   : > { %10557 = vrcp.f32 %v12485_v59  ;;  %v5489_v12 = vsel %vm5486_vm7, %v5488_v4, %v5484_v1  ;;  %vm5497_vm13 = vmor %vm5495_vm12, %vm5496_vm10  ;;  %v5515_v57 = vand.u32 2147483648, %v12485_v59  ;;  %vm5509_vm0 = vweird.f32 %v12485_v59  ;;  %v10265_v4 = vld [vmem:[%s11650_s11 + $0x2d0] sm:$0xff] }
 0xcc9   : > { %v5492_v23 = vsub.f32 1.0, %v5491_v3  ;;  %v5532_v13 = vmul.f32 %v12466_v27, %v5489_v12  ;;  %v5513_v51 = vand.u32 2147483647, %v12485_v59  ;;  %5806 = vmatpush.bf16.msra.mxu2 %v10265_v4  ;;  %v10247_v12 = vld [vmem:[%s11650_s11 + $0x280] sm:$0xff] }
 0xcca   : > { %v5516_v46 = vor.u32 1.1754944e-38, %v5515_v57  ;;  %v10522_v4 = vld [vmem:[%s11653_s2 + $0x3] ss:$0 sm:$0xff] }
 0xccb   : > { %v5493_v54 = vmul.f32 %v10556_v35, %v5492_v23  ;;  %v5536_v41 = vmul.f32 %v5532_v13, %v12146_v47  ;;  %vm5514_vm11 = vcmp.eq.f32.partialorder %v5513_v51, 8.507059e+37 }
 0xccd   : > { %v5494_v14 = vadd.f32 %v10556_v35, %v5493_v54  ;;  %v10248_v54 = vld [vmem:[%s11650_s11 + $0x288] sm:$0xff] }
 0xcce   : > { %v10558_v20 = vpop.eup %10557  ;;  %5886 = vmatpush.bf16.msra.mxu3 %v10248_v54 }
 0xccf   : > { %v5498_v2 = vsel %vm5497_vm13, %v10556_v35, %v5494_v14  ;;  %v5505_v9 = vmul.f32 %v10558_v20, %v12485_v59  ;;  %v5475_v32 = vpop.xlane.xlu2 %5474  ;;  %vm5510_vm15 = vweird.f32 %v10558_v20 }
 0xcd0   : > { %v5503_v11 = vsel %vm5500_vm14, %v5502_v21, %v5498_v2  ;;  %10559 = vrcp.f32 %v5475_v32  ;;  %vm5511_vm2 = vmor %vm5509_vm0, %vm5510_vm15  ;;  %v5529_v52 = vand.u32 2147483648, %v5475_v32  ;;  %v5527_v0 = vand.u32 2147483647, %v5475_v32 }
 0xcd1   : > { %v5533_v49 = vmul.f32 %v12469_v6, %v5503_v11  ;;  %v5506_v7 = vsub.f32 1.0, %v5505_v9  ;;  %v10258_v6 = vld [vmem:[%s11650_s11 + $0x258] sm:$0xff]  ;;  %vm5523_vm6 = vweird.f32 %v5475_v32 }
 0xcd2   : > { %5721 = vmatpush.bf16.msra.mxu1 %v10258_v6  ;;  %v5530_v59 = vor.u32 1.1754944e-38, %v5529_v52  ;;  %vm5528_vm10 = vcmp.eq.f32.partialorder %v5527_v0, 8.507059e+37  ;;  %5887 = vmatpush.bf16.msra.mxu3 %v10247_v12  ;;  %v10302_v0 = vld [vmem:[%s11650_s11 + $0x3b8] sm:$0xff] }
 0xcd3   : > { %v5537_v27 = vmul.f32 %v5533_v49, %v12158_v18  ;;  %v5507_v40 = vmul.f32 %v10558_v20, %v5506_v7  ;;  %v10278_v49 = vld [vmem:[%s11659_s6 + $0xf8] sm:$0xff]  ;;  %v10277_v7 = vld [vmem:[%s11659_s6 + $0xf0] sm:$0xff] }
 0xcd4   : > { %5998 = vmatpush.bf16.msrb.mxu0 %v10278_v49  ;;  %v10283_v49 = vld [vmem:[%s11650_s11 + $0x360] sm:$0xff] }
 0xcd5   : > { %v5508_v44 = vadd.f32 %v10558_v20, %v5507_v40  ;;  %v5540_v42 = vpack.c.bf16 %v5537_v27, %v5536_v41  ;;  %v10273_v27 = vld [vmem:[%s11659_s6 + $0xd0] sm:$0xff]  ;;  %v10272_v41 = vld [vmem:[%s11659_s6 + $0xc8] sm:$0xff] }
 0xcd6   : > { %v10560_v48 = vpop.eup %10559  ;;  %5722 = vmatpush.bf16.msra.mxu1 %v10257_v60 }
 0xcd7   : > { %v5519_v56 = vmul.f32 %v10560_v48, %v5475_v32  ;;  %5620 = vmatmul.bf16.vlgmr.msra.gmra.mxu0 %v5540_v42  ;;  %v5512_v30 = vsel %vm5511_vm2, %v10558_v20, %v5508_v44  ;;  %vm5524_vm3 = vweird.f32 %v10560_v48  ;;  %v10271_v44 = vld [vmem:[%s11659_s6 + $0xc0] sm:$0xff] }
 0xcd8   : > { %v5517_v53 = vsel %vm5514_vm11, %v5516_v46, %v5512_v30  ;;  %vm5525_vm7 = vmor %vm5523_vm6, %vm5524_vm3  ;;  %5999 = vmatpush.bf16.msrb.mxu0 %v10277_v7 }
 0xcd9   : > { %v5520_v58 = vsub.f32 1.0, %v5519_v56  ;;  %v5534_v31 = vmul.f32 %v12472_v37, %v5517_v53  ;;  %v10264_v37 = vld [vmem:[%s11650_s11 + $0x2c8] sm:$0xff]  ;;  %v10286_v53 = vld [vmem:[%s11650_s11 + $0x378] sm:$0xff] }
 0xcda   : > { %5723 = vmatpush.bf16.msra.mxu1 %v10256_v62  ;;  %5807 = vmatpush.bf16.msra.mxu2 %v10264_v37 }
 0xcdb   : > { %v5521_v35 = vmul.f32 %v10560_v48, %v5520_v58  ;;  %v5538_v1 = vmul.f32 %v5534_v31, %v12164_v19  ;;  %6274 = vmatpush.bf16.msrb.mxu3 %v10286_v53  ;;  %v10281_v53 = vld [vmem:[%s11650_s11 + $0x350] sm:$0xff] }
 0xcdc   : > { %6000 = vmatpush.bf16.msrb.mxu0 %v10276_v22 }
 0xcdd   : > { %v5522_v3 = vadd.f32 %v10560_v48, %v5521_v35  ;;  %v10294_v35 = vld [vmem:[%s11650_s11 + $0x338] sm:$0xff] }
 0xcde   : > { %5808 = vmatpush.bf16.msra.mxu2 %v10263_v63  ;;  %v10300_v63 = vld [vmem:[%s11650_s11 + $0x3a8] sm:$0xff] }
 0xcdf   : > { %v5526_v28 = vsel %vm5525_vm7, %v10560_v48, %v5522_v3 }
 0xce0   : > { %v5531_v24 = vsel %vm5528_vm10, %v5530_v59, %v5526_v28  ;;  %6001 = vmatpush.bf16.msrb.mxu0 %v10275_v36 }
 0xce1   : > { %v5535_v45 = vmul.f32 %v12475_v39, %v5531_v24  ;;  %v10255_v39 = vld [vmem:[%s11650_s11 + $0x240] sm:$0xff]  ;;  %v10293_v24 = vld [vmem:[%s11650_s11 + $0x330] sm:$0xff] }
 0xce2   : > { %5724 = vmatpush.bf16.msra.mxu1 %v10255_v39  ;;  %6195 = vmatpush.bf16.msrb.mxu2 %v10302_v0  ;;  %v10292_v39 = vld [vmem:[%s11650_s11 + $0x328] sm:$0xff]  ;;  %v10297_v0 = vld [vmem:[%s11650_s11 + $0x390] sm:$0xff] }
 0xce3   : > { %v5539_v23 = vmul.f32 %v5535_v45, %v12170_v61  ;;  %v10301_v45 = vld [vmem:[%s11650_s11 + $0x3b0] sm:$0xff] }
 0xce4   : > { %6002 = vmatpush.bf16.msrb.mxu0 %v10274_v38 }
 0xce5   : > { %v5541_v25 = vpack.c.bf16 %v5539_v23, %v5538_v1 }
 0xce6   : > { %6111 = vmatpush.bf16.msrb.mxu1 %v10294_v35  ;;  %6196 = vmatpush.bf16.msrb.mxu2 %v10301_v45  ;;  %v10282_v35 = vld [vmem:[%s11650_s11 + $0x358] sm:$0xff]  ;;  %v10279_v45 = vld [vmem:[%s11650_s11 + $0x340] sm:$0xff] }
 0xce7   : > { %5625 = vmatmul.bf16.gmra.mxu0 %v5541_v25  ;;  %v10285_v25 = vld [vmem:[%s11650_s11 + $0x370] sm:$0xff] }
 0xce8   : > { %6003 = vmatpush.bf16.msrb.mxu0 %v10273_v27  ;;  %6275 = vmatpush.bf16.msrb.mxu3 %v10285_v25 }
 0xcea   : > { %6112 = vmatpush.bf16.msrb.mxu1 %v10293_v24  ;;  %6197 = vmatpush.bf16.msrb.mxu2 %v10300_v63  ;;  %v10295_v24 = vld [vmem:[%s11650_s11 + $0x380] sm:$0xff] }
 0xcec   : > { %6004 = vmatpush.bf16.msrb.mxu0 %v10272_v41 }
 0xcee   : > { %6113 = vmatpush.bf16.msrb.mxu1 %v10292_v39 }
 0xcf0   : > { %6005 = vmatpush.bf16.msrb.mxu0 %v10271_v44 }
 0xd54   : > { %v5621_v14 = vpop.f32.mrf.mxu0 }
 0xd55   : > { %v12531_v20 = vadd.f32 %v10521_v15, %v5621_v14 }
 0xd5c   : > { %v5623_v16 = vpop.f32.mrf.mxu0 }
 0xd5d   : > { %v12533_v21 = vadd.f32 %v10521_v15, %v5623_v16 }
 0xd5f   : > { %v5631_v26 = vpack.c.bf16 %v12533_v21, %v12531_v20 }
 0xd61   : > { %5725 = vmatmul.bf16.vlgmr.msra.gmra.mxu1 %v5631_v26  ;;  %5809 = vmatmul.bf16.vlgmr.msra.gmra.mxu2 %v5631_v26 }
 0xd62   : > { %5888 = vmatmul.bf16.vlgmr.msra.gmra.mxu3 %v5631_v26 }
 0xd64   : > { %v5626_v13 = vpop.f32.mrf.mxu0 }
 0xd65   : > { %v12537_v9 = vadd.f32 %v10521_v15, %v5626_v13 }
 0xd6c   : > { %v5628_v2 = vpop.f32.mrf.mxu0 }
 0xd6d   : > { %v12539_v32 = vadd.f32 %v10521_v15, %v5628_v2  ;;  %v10284_v15 = vld [vmem:[%s11650_s11 + $0x368] sm:$0xff]  ;;  %v10299_v2 = vld [vmem:[%s11650_s11 + $0x3a0] sm:$0xff] }
 0xd6e   : > { %6276 = vmatpush.bf16.msrb.mxu3 %v10284_v15  ;;  %6198 = vmatpush.bf16.msrb.mxu2 %v10299_v2  ;;  %v10307_v2 = vld [vmem:[%s11659_s6 + $0x120] sm:$0xff] }
 0xd6f   : > { %v5632_v11 = vpack.c.bf16 %v12539_v32, %v12537_v9 }
 0xd71   : > { %5730 = vmatmul.bf16.gmra.mxu1 %v5632_v11  ;;  %5814 = vmatmul.bf16.gmra.mxu2 %v5632_v11 }
 0xd72   : > { %5893 = vmatmul.bf16.gmra.mxu3 %v5632_v11 }
 0xd73   : > { %6277 = vmatpush.bf16.msrb.mxu3 %v10283_v49  ;;  %v10305_v49 = vld [vmem:[%s11659_s6 + $0x110] sm:$0xff] }
 0xd77   : > { %6278 = vmatpush.bf16.msrb.mxu3 %v10282_v35 }
 0xd7b   : > { %6279 = vmatpush.bf16.msrb.mxu3 %v10281_v53  ;;  %v10325_v53 = vld [vmem:[%s11650_s11 + $0x3f0] sm:$0xff] }
 0xdde   : > { %v5726_v40 = vpop.f32.mrf.mxu1 }
 0xddf   : > { %v5820_v30 = vrot.slane %v5726_v40, 7 }
 0xde4   : > { %v5810_v42 = vpop.f32.mrf.mxu2 }
 0xde5   : > { %v5889_v6 = vpop.f32.mrf.mxu3  ;;  %v5899_v62 = vrot.slane %v5810_v42, 1 }
 0xde6   : > { %v12551_v50 = vpop.f32.mrf.mxu1 }
 0xde7   : > { %v5821_v51 = vrot.slane %v12551_v50, 7 }
 0xde9   : > { %v5826_v3 = vsel %vm2059_vm4, %v5820_v30, %v5821_v51 }
 0xdec   : > { %v5812_v48 = vpop.f32.mrf.mxu2 }
 0xded   : > { %v5891_v29 = vpop.f32.mrf.mxu3  ;;  %v5900_v58 = vrot.slane %v5812_v48, 1 }
 0xdee   : > { %v5731_v57 = vpop.f32.mrf.mxu1  ;;  %v5892_v31 = vadd.f32 %v5891_v29, %v5826_v3  ;;  %v10288_v3 = vld [vmem:[%s11650_s11 + $0x308] sm:$0xff] }
 0xdef   : > { %v5905_v12 = vsel %vm2139_vm5, %v5899_v62, %v5900_v58  ;;  %v5822_v36 = vrot.slane %v5731_v57, 7 }
 0xdf1   : > { %v5825_v42 = vsel %vm2059_vm4, %v5821_v51, %v5822_v36  ;;  %v10298_v51 = vld [vmem:[%s11650_s11 + $0x398] sm:$0xff] }
 0xdf2   : > { %6199 = vmatpush.bf16.msrb.mxu2 %v10298_v51 }
 0xdf4   : > { %v5815_v56 = vpop.f32.mrf.mxu2 }
 0xdf5   : > { %v5901_v46 = vrot.slane %v5815_v56, 1  ;;  %v5894_v1 = vpop.f32.mrf.mxu3 }
 0xdf6   : > { %v5733_v52 = vpop.f32.mrf.mxu1  ;;  %6200 = vmatpush.bf16.msrb.mxu2 %v10297_v0  ;;  %v10333_v0 = vld [vmem:[%s11650_s11 + $0x470] sm:$0xff] }
 0xdf7   : > { %v5904_v59 = vsel %vm2139_vm5, %v5900_v58, %v5901_v46  ;;  %v5823_v28 = vrot.slane %v5733_v52, 7  ;;  %v10290_v52 = vld [vmem:[%s11650_s11 + $0x318] sm:$0xff] }
 0xdf8   : > { %v5912_v60 = vadd.f32 %v5904_v59, %v5892_v31  ;;  %v10296_v59 = vld [vmem:[%s11650_s11 + $0x388] sm:$0xff]  ;;  %v10287_v31 = vld [vmem:[%s11650_s11 + $0x300] sm:$0xff] }
 0xdf9   : > { %v5827_v23 = vsel %vm2059_vm4, %v5823_v28, %v5820_v30  ;;  %v5824_v41 = vsel %vm2059_vm4, %v5822_v36, %v5823_v28  ;;  %v10280_v28 = vld [vmem:[%s11650_s11 + $0x348] sm:$0xff] }
 0xdfa   : > { %v5828_v10 = vmul.f32 %v11821_v17, %v5827_v23  ;;  %v5919_v16 = vadd.f32 %v10522_v4, %v5912_v60  ;;  %v10291_v17 = vld [vmem:[%s11650_s11 + $0x320] sm:$0xff]  ;;  %6201 = vmatpush.bf16.msrb.mxu2 %v10296_v59  ;;  %6280 = vmatpush.bf16.msrb.mxu3 %v10280_v28  ;;  %v10523_v23 = vld [vmem:[%s11662_s8 + $0x3] ss:$0 sm:$0xff] }
 0xdfb   : > { %6114 = vmatpush.bf16.msrb.mxu1 %v10291_v17  ;;  %v10309_v17 = vld [vmem:[%s11659_s6 + $0x130] sm:$0xff]  ;;  %v10303_v36 = vld [vmem:[%s11659_s6 + $0x100] sm:$0xff] }
 0xdfc   : > { %v5890_v37 = vadd.f32 %v5889_v6, %v5828_v10  ;;  %v5817_v54 = vpop.f32.mrf.mxu2  ;;  %v5923_v7 = vmax.f32 %v5919_v16, 0.0  ;;  %v10317_v28 = vld [vmem:[%s11650_s11 + $0x430] sm:$0xff] }
 0xdfd   : > { %v5902_v14 = vrot.slane %v5817_v54, 1  ;;  %v5896_v38 = vpop.f32.mrf.mxu3 }
 0xdfe   : > { %v5911_v26 = vadd.f32 %v5905_v12, %v5890_v37  ;;  %v5897_v44 = vadd.f32 %v5896_v38, %v5824_v41  ;;  %6202 = vmatpush.bf16.msrb.mxu2 %v10295_v24  ;;  %6281 = vmatpush.bf16.msrb.mxu3 %v10279_v45  ;;  %v10524_v24 = vld [vmem:[%s11653_s2 + $0x4] ss:$0 sm:$0xff] }
 0xdff   : > { %v5906_v11 = vsel %vm2139_vm5, %v5902_v14, %v5899_v62  ;;  %v5903_v6 = vsel %vm2139_vm5, %v5901_v46, %v5902_v14  ;;  %6115 = vmatpush.bf16.msrb.mxu1 %v10290_v52  ;;  %v10289_v46 = vld [vmem:[%s11650_s11 + $0x310] sm:$0xff] }
 0xe00   : > { %v5918_v13 = vadd.f32 %v10522_v4, %v5911_v26  ;;  %v5910_v27 = vmul.f32 %v11845_v55, %v5906_v11  ;;  %v5895_v55 = vadd.f32 %v5894_v1, %v5825_v42  ;;  %v10306_v11 = vld [vmem:[%s11659_s6 + $0x118] sm:$0xff] }
 0xe02   : > { %v5922_v22 = vmax.f32 %v5918_v13, 0.0  ;;  %v5914_v50 = vadd.f32 %v5910_v27, %v5897_v44  ;;  %v5913_v48 = vadd.f32 %v5903_v6, %v5895_v55 }
 0xe03   : > { %6116 = vmatpush.bf16.msrb.mxu1 %v10289_v46 }
 0xe04   : > { %v5926_v40 = vpack.c.bf16 %v5923_v7, %v5922_v22  ;;  %v5921_v57 = vadd.f32 %v10522_v4, %v5914_v50  ;;  %v5920_v29 = vadd.f32 %v10522_v4, %v5913_v48  ;;  %v10304_v22 = vld [vmem:[%s11659_s6 + $0x108] sm:$0xff] }
 0xe06   : > { %6006 = vmatmul.bf16.vlgmr.msrb.gmra.mxu0 %v5926_v40  ;;  %v5925_v56 = vmax.f32 %v5921_v57, 0.0  ;;  %v5924_v30 = vmax.f32 %v5920_v29, 0.0 }
 0xe07   : > { %6117 = vmatpush.bf16.msrb.mxu1 %v10288_v3 }
 0xe08   : > { %v5927_v58 = vpack.c.bf16 %v5925_v56, %v5924_v30  ;;  %v10334_v56 = vld [vmem:[%s11650_s11 + $0x478] sm:$0xff] }
 0xe09   : > { %v10326_v30 = vld [vmem:[%s11650_s11 + $0x3f8] sm:$0xff]  ;;  %6589 = vmatpush.bf16.msra.mxu2 %v10334_v56  ;;  %v10313_v56 = vld [vmem:[%s11650_s11 + $0x410] sm:$0xff] }
 0xe0b   : > { %6118 = vmatpush.bf16.msrb.mxu1 %v10287_v31 }
 0xe0d   : > { %6590 = vmatpush.bf16.msra.mxu2 %v10333_v0 }
 0xe0f   : > { %6505 = vmatpush.bf16.msra.mxu1 %v10326_v30  ;;  %v10328_v30 = vld [vmem:[%s11650_s11 + $0x448] sm:$0xff] }
 0xe13   : > { %6506 = vmatpush.bf16.msra.mxu1 %v10325_v53  ;;  %v10525_v53 = vld [vmem:[%s11662_s8 + $0x4] ss:$0 sm:$0xff] }
 0xe16   : > { %6011 = vmatmul.bf16.gmra.mxu0 %v5927_v58  ;;  %v10318_v58 = vld [vmem:[%s11650_s11 + $0x438] sm:$0xff] }
 0xe17   : > { %6668 = vmatpush.bf16.msra.mxu3 %v10318_v58  ;;  %v10320_v58 = vld [vmem:[%s11650_s11 + $0x3c8] sm:$0xff] }
 0xe1b   : > { %6669 = vmatpush.bf16.msra.mxu3 %v10317_v28 }
 0xe83   : > { %v6007_v1 = vpop.f32.mrf.mxu0 }
 0xe84   : > { %v6008_v25 = vadd.f32 %v10523_v23, %v6007_v1 }
 0xe86   : > { %v6017_v4 = vadd.f32 %v6008_v25, %v12531_v20 }
 0xe88   : > { %v12601_v37 = vmul.f32 %v6017_v4, %v12146_v47  ;;  %v10324_v4 = vld [vmem:[%s11650_s11 + $0x3e8] sm:$0xff] }
 0xe89   : > { %6507 = vmatpush.bf16.msra.mxu1 %v10324_v4 }
 0xe8b   : > { %v6009_v60 = vpop.f32.mrf.mxu0 }
 0xe8c   : > { %v6010_v10 = vadd.f32 %v10523_v23, %v6009_v60  ;;  %v10332_v60 = vld [vmem:[%s11650_s11 + $0x468] sm:$0xff] }
 0xe8d   : > { %6591 = vmatpush.bf16.msra.mxu2 %v10332_v60 }
 0xe8e   : > { %v6018_v62 = vadd.f32 %v6010_v10, %v12533_v21 }
 0xe90   : > { %v12604_v54 = vmul.f32 %v6018_v62, %v12158_v18 }
 0xe92   : > { %v6025_v39 = vpack.c.bf16 %v12604_v54, %v12601_v37 }
 0xe93   : > { %v6012_v63 = vpop.f32.mrf.mxu0 }
 0xe94   : > { %6119 = vmatmul.bf16.vlgmr.msrb.gmra.mxu1 %v6025_v39  ;;  %6203 = vmatmul.bf16.vlgmr.msrb.gmra.mxu2 %v6025_v39  ;;  %v6013_v20 = vadd.f32 %v10523_v23, %v6012_v63 }
 0xe95   : > { %6282 = vmatmul.bf16.vlgmr.msrb.gmra.mxu3 %v6025_v39  ;;  %v10316_v39 = vld [vmem:[%s11650_s11 + $0x428] sm:$0xff] }
 0xe96   : > { %v6019_v21 = vadd.f32 %v6013_v20, %v12537_v9  ;;  %v10310_v9 = vld [vmem:[%s11659_s6 + $0x138] sm:$0xff]  ;;  %6670 = vmatpush.bf16.msra.mxu3 %v10316_v39 }
 0xe97   : > { %6392 = vmatpush.bf16.msra.mxu0 %v10310_v9 }
 0xe98   : > { %v12611_v16 = vmul.f32 %v6019_v21, %v12164_v19  ;;  %v10323_v21 = vld [vmem:[%s11650_s11 + $0x3e0] sm:$0xff] }
 0xe99   : > { %6508 = vmatpush.bf16.msra.mxu1 %v10323_v21  ;;  %v10337_v21 = vld [vmem:[%s11659_s6 + $0x150] sm:$0xff] }
 0xe9b   : > { %v6014_v12 = vpop.f32.mrf.mxu0  ;;  %6393 = vmatpush.bf16.msra.mxu0 %v10309_v17 }
 0xe9c   : > { %v6015_v14 = vadd.f32 %v10523_v23, %v6014_v12 }
 0xe9e   : > { %v6020_v15 = vadd.f32 %v6015_v14, %v12539_v32  ;;  %v10308_v32 = vld [vmem:[%s11659_s6 + $0x128] sm:$0xff] }
 0xe9f   : > { %6394 = vmatpush.bf16.msra.mxu0 %v10308_v32 }
 0xea0   : > { %v12614_v26 = vmul.f32 %v6020_v15, %v12170_v61  ;;  %v10315_v15 = vld [vmem:[%s11650_s11 + $0x420] sm:$0xff] }
 0xea1   : > { %6671 = vmatpush.bf16.msra.mxu3 %v10315_v15  ;;  %v10336_v15 = vld [vmem:[%s11659_s6 + $0x148] sm:$0xff] }
 0xea2   : > { %v6026_v13 = vpack.c.bf16 %v12614_v26, %v12611_v16 }
 0xea3   : > { %6395 = vmatpush.bf16.msra.mxu0 %v10307_v2 }
 0xea4   : > { %6124 = vmatmul.bf16.gmra.mxu1 %v6026_v13  ;;  %6208 = vmatmul.bf16.gmra.mxu2 %v6026_v13 }
 0xea5   : > { %6287 = vmatmul.bf16.gmra.mxu3 %v6026_v13 }
 0xea7   : > { %6396 = vmatpush.bf16.msra.mxu0 %v10306_v11 }
 0xeab   : > { %6397 = vmatpush.bf16.msra.mxu0 %v10305_v49 }
 0xeaf   : > { %6398 = vmatpush.bf16.msra.mxu0 %v10304_v22 }
 0xeb3   : > { %6399 = vmatpush.bf16.msra.mxu0 %v10303_v36 }
 0xf11   : > { %v6120_v7 = vpop.f32.mrf.mxu1 }
 0xf12   : > { %v6214_v50 = vrot.slane %v6120_v7, 6 }
 0xf17   : > { %v6204_v38 = vpop.f32.mrf.mxu2 }
 0xf18   : > { %v6283_v27 = vpop.f32.mrf.mxu3  ;;  %v6293_v1 = vrot.slane %v6204_v38, 2 }
 0xf19   : > { %v12626_v40 = vpop.f32.mrf.mxu1 }
 0xf1a   : > { %v6215_v6 = vrot.slane %v12626_v40, 6 }
 0xf1c   : > { %v6220_v52 = vsel %vm2539_vm8, %v6214_v50, %v6215_v6 }
 0xf1f   : > { %v6206_v41 = vpop.f32.mrf.mxu2 }
 0xf20   : > { %v6285_v42 = vpop.f32.mrf.mxu3  ;;  %v6294_v48 = vrot.slane %v6206_v41, 2 }
 0xf21   : > { %v6125_v44 = vpop.f32.mrf.mxu1  ;;  %v6286_v46 = vadd.f32 %v6285_v42, %v6220_v52  ;;  %v10312_v52 = vld [vmem:[%s11650_s11 + $0x408] sm:$0xff] }
 0xf22   : > { %v6299_v10 = vsel %vm2619_vm9, %v6293_v1, %v6294_v48  ;;  %v6216_v17 = vrot.slane %v6125_v44, 6 }
 0xf24   : > { %v6219_v22 = vsel %vm2539_vm8, %v6215_v6, %v6216_v17  ;;  %v10322_v6 = vld [vmem:[%s11650_s11 + $0x3d8] sm:$0xff] }
 0xf25   : > { %6509 = vmatpush.bf16.msra.mxu1 %v10322_v6 }
 0xf27   : > { %v6209_v55 = vpop.f32.mrf.mxu2 }
 0xf28   : > { %v6295_v57 = vrot.slane %v6209_v55, 2  ;;  %v6288_v3 = vpop.f32.mrf.mxu3 }
 0xf29   : > { %v6127_v29 = vpop.f32.mrf.mxu1 }
 0xf2a   : > { %v6298_v51 = vsel %vm2619_vm9, %v6294_v48, %v6295_v57  ;;  %v6217_v35 = vrot.slane %v6127_v29, 6  ;;  %v10314_v48 = vld [vmem:[%s11650_s11 + $0x418] sm:$0xff]  ;;  %v10321_v29 = vld [vmem:[%s11650_s11 + $0x3d0] sm:$0xff] }
 0xf2b   : > { %v6306_v31 = vadd.f32 %v6298_v51, %v6286_v46  ;;  %6672 = vmatpush.bf16.msra.mxu3 %v10314_v48  ;;  %6510 = vmatpush.bf16.msra.mxu1 %v10321_v29  ;;  %v10327_v51 = vld [vmem:[%s11650_s11 + $0x440] sm:$0xff] }
 0xf2c   : > { %v6221_v59 = vsel %vm2539_vm8, %v6217_v35, %v6214_v50  ;;  %v6218_v49 = vsel %vm2539_vm8, %v6216_v17, %v6217_v35  ;;  %v10330_v50 = vld [vmem:[%s11650_s11 + $0x458] sm:$0xff]  ;;  %v10319_v35 = vld [vmem:[%s11650_s11 + $0x3c0] sm:$0xff] }
 0xf2d   : > { %v6222_v45 = vmul.f32 %v11942_v8, %v6221_v59  ;;  %v6313_v63 = vadd.f32 %v10524_v24, %v6306_v31  ;;  %v10331_v8 = vld [vmem:[%s11650_s11 + $0x460] sm:$0xff] }
 0xf2e   : > { %6592 = vmatpush.bf16.msra.mxu2 %v10331_v8  ;;  %v10311_v46 = vld [vmem:[%s11650_s11 + $0x400] sm:$0xff] }
 0xf2f   : > { %v6284_v23 = vadd.f32 %v6283_v27, %v6222_v45  ;;  %v6211_v25 = vpop.f32.mrf.mxu2  ;;  %v6317_v13 = vmax.f32 %v6313_v63, 0.0  ;;  %6673 = vmatpush.bf16.msra.mxu3 %v10313_v56  ;;  %6511 = vmatpush.bf16.msra.mxu1 %v10320_v58  ;;  %v10338_v8 = vld [vmem:[%s11659_s6 + $0x158] sm:$0xff] }
 0xf30   : > { %v6296_v62 = vrot.slane %v6211_v25, 2  ;;  %v6290_v32 = vpop.f32.mrf.mxu3  ;;  %v10526_v58 = vld [vmem:[%s11653_s2 + $0x5] ss:$0 sm:$0xff] }
 0xf31   : > { %v6305_v20 = vadd.f32 %v6299_v10, %v6284_v23  ;;  %v6291_v7 = vadd.f32 %v6290_v32, %v6218_v49  ;;  %v10349_v49 = vld [vmem:[%s11668_s22 + $0x70] sm:$0xff] }
 0xf32   : > { %v6300_v14 = vsel %vm2619_vm9, %v6296_v62, %v6293_v1  ;;  %v6297_v36 = vsel %vm2619_vm9, %v6295_v57, %v6296_v62  ;;  %6593 = vmatpush.bf16.msra.mxu2 %v10330_v50  ;;  %v10329_v57 = vld [vmem:[%s11650_s11 + $0x450] sm:$0xff] }
 0xf33   : > { %v6312_v12 = vadd.f32 %v10524_v24, %v6305_v20  ;;  %v6304_v2 = vmul.f32 %v11961_v33, %v6300_v14  ;;  %v6289_v33 = vadd.f32 %v6288_v3, %v6219_v22  ;;  %6674 = vmatpush.bf16.msra.mxu3 %v10312_v52  ;;  %6512 = vmatpush.bf16.msra.mxu1 %v10319_v35  ;;  %v10342_v20 = vld [vmem:[%s11659_s6 + $0x178] sm:$0xff] }
 0xf34   : > { %6786 = vmatpush.bf16.msrb.mxu0 %v10342_v20 }
 0xf35   : > { %v6316_v9 = vmax.f32 %v6312_v12, 0.0  ;;  %v6308_v38 = vadd.f32 %v6304_v2, %v6291_v7  ;;  %v6307_v27 = vadd.f32 %v6297_v36, %v6289_v33  ;;  %v10339_v12 = vld [vmem:[%s11659_s6 + $0x160] sm:$0xff]  ;;  %v10348_v36 = vld [vmem:[%s11668_s22 + $0x68] sm:$0xff] }
 0xf36   : > { %6594 = vmatpush.bf16.msra.mxu2 %v10329_v57  ;;  %v10350_v2 = vld [vmem:[%s11668_s22 + $0x78] sm:$0xff] }
 0xf37   : > { %v6320_v11 = vpack.c.bf16 %v6317_v13, %v6316_v9  ;;  %v6315_v40 = vadd.f32 %v10524_v24, %v6308_v38  ;;  %v6314_v41 = vadd.f32 %v10524_v24, %v6307_v27  ;;  %6675 = vmatpush.bf16.msra.mxu3 %v10311_v46  ;;  %v10335_v13 = vld [vmem:[%s11659_s6 + $0x140] sm:$0xff]  ;;  %6885 = vmatpush.bf16.msrb.mxu1 %v10350_v2  ;;  %v10347_v27 = vld [vmem:[%s11668_s22 + $0x60] sm:$0xff] }
 0xf39   : > { %6400 = vmatmul.bf16.vlgmr.msra.gmra.mxu0 %v6320_v11  ;;  %v6319_v44 = vmax.f32 %v6315_v40, 0.0  ;;  %v6318_v42 = vmax.f32 %v6314_v41, 0.0 }
 0xf3a   : > { %6595 = vmatpush.bf16.msra.mxu2 %v10328_v30 }
 0xf3b   : > { %v6321_v55 = vpack.c.bf16 %v6319_v44, %v6318_v42  ;;  %10359 = vmatpush.bf16.msrb.mxu3 %v10350_v2  ;;  %6886 = vmatpush.bf16.msrb.mxu1 %v10349_v49 }
 0xf3e   : > { %6596 = vmatpush.bf16.msra.mxu2 %v10327_v51 }
 0xf3f   : > { %10360 = vmatpush.bf16.msrb.mxu3 %v10349_v49  ;;  %6887 = vmatpush.bf16.msrb.mxu1 %v10348_v36 }
 0xf42   : > { %10351 = vmatpush.bf16.msrb.mxu2 %v10342_v20 }
 0xf43   : > { %10361 = vmatpush.bf16.msrb.mxu3 %v10348_v36  ;;  %6888 = vmatpush.bf16.msrb.mxu1 %v10347_v27 }
 0xf47   : > { %10362 = vmatpush.bf16.msrb.mxu3 %v10347_v27 }
 0xf49   : > { %6405 = vmatmul.bf16.gmra.mxu0 %v6321_v55 }
 0xfb6   : > { %v6401_v0 = vpop.f32.mrf.mxu0 }
 0xfb7   : > { %v6402_v3 = vadd.f32 %v10525_v53, %v6401_v0 }
 0xfb9   : > { %v6411_v28 = vadd.f32 %v6402_v3, %v12601_v37 }
 0xfbb   : > { %v12676_v45 = vmul.f32 %v6411_v28, %v12146_v47 }
 0xfbe   : > { %v6403_v59 = vpop.f32.mrf.mxu0 }
 0xfbf   : > { %v6404_v31 = vadd.f32 %v10525_v53, %v6403_v59 }
 0xfc1   : > { %v6412_v24 = vadd.f32 %v6404_v31, %v12604_v54 }
 0xfc3   : > { %v12679_v1 = vmul.f32 %v6412_v24, %v12158_v18 }
 0xfc5   : > { %v6419_v23 = vpack.c.bf16 %v12679_v1, %v12676_v45 }
 0xfc6   : > { %v6406_v25 = vpop.f32.mrf.mxu0 }
 0xfc7   : > { %6513 = vmatmul.bf16.vlgmr.msra.gmra.mxu1 %v6419_v23  ;;  %6597 = vmatmul.bf16.vlgmr.msra.gmra.mxu2 %v6419_v23  ;;  %v6407_v60 = vadd.f32 %v10525_v53, %v6406_v25 }
 0xfc8   : > { %6676 = vmatmul.bf16.vlgmr.msra.gmra.mxu3 %v6419_v23 }
 0xfc9   : > { %v6413_v54 = vadd.f32 %v6407_v60, %v12611_v16  ;;  %v10341_v16 = vld [vmem:[%s11659_s6 + $0x170] sm:$0xff] }
 0xfca   : > { %6787 = vmatpush.bf16.msrb.mxu0 %v10341_v16  ;;  %10352 = vmatpush.bf16.msrb.mxu2 %v10341_v16 }
 0xfcb   : > { %v12686_v62 = vmul.f32 %v6413_v54, %v12164_v19 }
 0xfce   : > { %v6408_v37 = vpop.f32.mrf.mxu0 }
 0xfcf   : > { %v6409_v4 = vadd.f32 %v10525_v53, %v6408_v37 }
 0xfd1   : > { %v6414_v10 = vadd.f32 %v6409_v4, %v12614_v26  ;;  %v10340_v26 = vld [vmem:[%s11659_s6 + $0x168] sm:$0xff] }
 0xfd2   : > { %6788 = vmatpush.bf16.msrb.mxu0 %v10340_v26  ;;  %10353 = vmatpush.bf16.msrb.mxu2 %v10340_v26 }
 0xfd3   : > { %v12689_v39 = vmul.f32 %v6414_v10, %v12170_v61 }
 0xfd5   : > { %v6420_v63 = vpack.c.bf16 %v12689_v39, %v12686_v62 }
 0xfd6   : > { %6789 = vmatpush.bf16.msrb.mxu0 %v10339_v12  ;;  %10354 = vmatpush.bf16.msrb.mxu2 %v10339_v12 }
 0xfd7   : > { %6518 = vmatmul.bf16.gmra.mxu1 %v6420_v63  ;;  %6602 = vmatmul.bf16.gmra.mxu2 %v6420_v63 }
 0xfd8   : > { %6681 = vmatmul.bf16.gmra.mxu3 %v6420_v63 }
 0xfda   : > { %6790 = vmatpush.bf16.msrb.mxu0 %v10338_v8  ;;  %10355 = vmatpush.bf16.msrb.mxu2 %v10338_v8 }
 0xfde   : > { %6791 = vmatpush.bf16.msrb.mxu0 %v10337_v21  ;;  %10356 = vmatpush.bf16.msrb.mxu2 %v10337_v21 }
 0xfe2   : > { %6792 = vmatpush.bf16.msrb.mxu0 %v10336_v15  ;;  %10357 = vmatpush.bf16.msrb.mxu2 %v10336_v15  ;;  %v10345_v15 = vld [vmem:[%s11668_s22 + $0x50] sm:$0xff] }
 0xfe6   : > { %6793 = vmatpush.bf16.msrb.mxu0 %v10335_v13  ;;  %10358 = vmatpush.bf16.msrb.mxu2 %v10335_v13  ;;  %v10343_v13 = vld [vmem:[%s11668_s22 + $0x40] sm:$0xff] }
0x1044   : > { %v6514_v14 = vpop.f32.mrf.mxu1 }
0x1045   : > { %v6608_v40 = vrot.slane %v6514_v14, 4  ;;  %v10346_v14 = vld [vmem:[%s11668_s22 + $0x58] sm:$0xff] }
0x1046   : > { %6889 = vmatpush.bf16.msrb.mxu1 %v10346_v14  ;;  %10363 = vmatpush.bf16.msrb.mxu3 %v10346_v14 }
0x104a   : > { %v6598_v9 = vpop.f32.mrf.mxu2  ;;  %6890 = vmatpush.bf16.msrb.mxu1 %v10345_v15  ;;  %10364 = vmatpush.bf16.msrb.mxu3 %v10345_v15 }
0x104b   : > { %v6677_v17 = vpop.f32.mrf.mxu3  ;;  %v6687_v51 = vrot.slane %v6598_v9, 4 }
0x104c   : > { %v6516_v32 = vpop.f32.mrf.mxu1 }
0x104d   : > { %v6609_v33 = vrot.slane %v6516_v32, 4 }
0x104f   : > { %v6614_v50 = vsel %vm1771_vm1, %v6608_v40, %v6609_v33 }
0x1052   : > { %v6600_v11 = vpop.f32.mrf.mxu2 }
0x1053   : > { %v6679_v7 = vpop.f32.mrf.mxu3  ;;  %v6688_v41 = vrot.slane %v6600_v11, 4 }
0x1054   : > { %v6519_v22 = vpop.f32.mrf.mxu1  ;;  %v6680_v57 = vadd.f32 %v6679_v7, %v6614_v50  ;;  %v10528_v50 = vld [vmem:[%s11671_s12 + $0x1] ss:$0 sm:$0xff] }
0x1055   : > { %v6610_v29 = vrot.slane %v6519_v22, 4  ;;  %v6693_v0 = vsel %vm1771_vm1, %v6687_v51, %v6688_v41 }
0x1057   : > { %v6613_v53 = vsel %vm1771_vm1, %v6609_v33, %v6610_v29 }
0x105a   : > { %v6603_v38 = vpop.f32.mrf.mxu2 }
0x105b   : > { %v6689_v44 = vrot.slane %v6603_v38, 4  ;;  %v6682_v42 = vpop.f32.mrf.mxu3 }
0x105c   : > { %v6521_v55 = vpop.f32.mrf.mxu1  ;;  %v6683_v31 = vadd.f32 %v6682_v42, %v6613_v53 }
0x105d   : > { %v6692_v6 = vsel %vm1771_vm1, %v6688_v41, %v6689_v44  ;;  %v6611_v48 = vrot.slane %v6521_v55, 4 }
0x105e   : > { %v6700_v30 = vadd.f32 %v6692_v6, %v6680_v57 }
0x105f   : > { %v6615_v56 = vsel %vm1771_vm1, %v6611_v48, %v6608_v40  ;;  %v6612_v25 = vsel %vm1771_vm1, %v6610_v29, %v6611_v48 }
0x1060   : > { %v6616_v52 = vmul.f32 %v11792_v43, %v6615_v56  ;;  %v6707_v28 = vadd.f32 %v10526_v58, %v6700_v30 }
0x1062   : > { %v6678_v35 = vadd.f32 %v6677_v17, %v6616_v52  ;;  %v6605_v46 = vpop.f32.mrf.mxu2  ;;  %v6711_v10 = vmax.f32 %v6707_v28, 0.0  ;;  %v10527_v17 = vld [vmem:[%s11662_s8 + $0x5] ss:$0 sm:$0xff] }
0x1063   : > { %v6690_v3 = vrot.slane %v6605_v46, 4  ;;  %v6684_v59 = vpop.f32.mrf.mxu3 }
0x1064   : > { %v6699_v24 = vadd.f32 %v6693_v0, %v6678_v35  ;;  %v6685_v54 = vadd.f32 %v6684_v59, %v6612_v25 }
0x1065   : > { %v6691_v23 = vsel %vm1771_vm1, %v6689_v44, %v6690_v3  ;;  %v6694_v43 = vsel %vm1771_vm1, %v6690_v3, %v6687_v51 }
0x1066   : > { %v6706_v60 = vadd.f32 %v10526_v58, %v6699_v24  ;;  %v6701_v37 = vadd.f32 %v6691_v23, %v6683_v31  ;;  %v6698_v4 = vmul.f32 %v11813_v5, %v6694_v43  ;;  %v10344_v5 = vld [vmem:[%s11668_s22 + $0x48] sm:$0xff] }
0x1067   : > { %6891 = vmatpush.bf16.msrb.mxu1 %v10344_v5  ;;  %10365 = vmatpush.bf16.msrb.mxu3 %v10344_v5 }
0x1068   : > { %v6710_v63 = vmax.f32 %v6706_v60, 0.0  ;;  %v6708_v20 = vadd.f32 %v10526_v58, %v6701_v37  ;;  %v6702_v16 = vadd.f32 %v6698_v4, %v6685_v54 }
0x106a   : > { %v6709_v26 = vadd.f32 %v10526_v58, %v6702_v16  ;;  %v6714_v12 = vpack.c.bf16 %v6711_v10, %v6710_v63  ;;  %v6712_v8 = vmax.f32 %v6708_v20, 0.0 }
0x106b   : > { %6892 = vmatpush.bf16.msrb.mxu1 %v10343_v13  ;;  %10366 = vmatpush.bf16.msrb.mxu3 %v10343_v13 }
0x106c   : > { %v6713_v21 = vmax.f32 %v6709_v26, 0.0  ;;  %6794 = vmatmul.bf16.vlgmr.msrb.gmra.mxu0 %v6714_v12 }
0x106e   : > { %v6715_v34 = vpack.c.bf16 %v6713_v21, %v6712_v8 }
0x1070   : > { %6799 = vmatmul.bf16.vlgmr.msrb.gmra.mxu2 %v6715_v34 }
0x10e9   : > { %v6795_v9 = vpop.f32.mrf.mxu0 }
0x10ea   : > { %v6796_v32 = vadd.f32 %v10527_v17, %v6795_v9 }
0x10ec   : > { %v6805_v11 = vadd.f32 %v6796_v32, %v12676_v45 }
0x10ee   : > { %v6809_v36 = vmul.f32 %v6805_v11, %v12146_v47 }
0x10f1   : > { %v6797_v2 = vpop.f32.mrf.mxu0 }
0x10f2   : > { %v6798_v49 = vadd.f32 %v10527_v17, %v6797_v2 }
0x10f3   : > { %v6800_v7 = vpop.f32.mrf.mxu2 }
0x10f4   : > { %v6806_v22 = vadd.f32 %v6798_v49, %v12679_v1  ;;  %v6801_v27 = vadd.f32 %v10527_v17, %v6800_v7 }
0x10f6   : > { %v6810_v33 = vmul.f32 %v6806_v22, %v12158_v18  ;;  %v6807_v41 = vadd.f32 %v6801_v27, %v12686_v62 }
0x10f8   : > { %v6813_v38 = vpack.c.bf16 %v6810_v33, %v6809_v36  ;;  %v6811_v42 = vmul.f32 %v6807_v41, %v12164_v19 }
0x10fa   : > { %6893 = vmatmul.bf16.vlgmr.msrb.gmra.mxu1 %v6813_v38 }
0x10fb   : > { %v6802_v40 = vpop.f32.mrf.mxu2 }
0x10fc   : > { %v6803_v44 = vadd.f32 %v10527_v17, %v6802_v40 }
0x10fe   : > { %v6808_v45 = vadd.f32 %v6803_v44, %v12689_v39 }
0x1100   : > { %v6812_v1 = vmul.f32 %v6808_v45, %v12170_v61 }
0x1102   : > { %v6814_v55 = vpack.c.bf16 %v6812_v1, %v6811_v42 }
0x1104   : > { %6898 = vmatmul.bf16.vlgmr.msrb.gmra.mxu3 %v6814_v55 }
0x1177   : > { %v6894_v6 = vpop.f32.mrf.mxu1 }
0x1178   : > { %v6895_v48 = vadd.f32 %v10528_v50, %v6894_v6 }
0x117a   : > { %v6904_v57 = vmul.f32 %v6895_v48, %v12146_v47 }
0x117c   : > { %9907 = vst [vmem:[%s12151_s20 + $0x40] sm:$0xff] %v6904_v57 }
0x117f   : > { %v6896_v29 = vpop.f32.mrf.mxu1 }
0x1180   : > { %v6897_v56 = vadd.f32 %v10528_v50, %v6896_v29 }
0x1182   : > { %v6905_v62 = vmul.f32 %v6897_v56, %v12158_v18 }
0x1184   : > { %9908 = vst [vmem:[%s12151_s20 + $0x48] sm:$0xff] %v6905_v62 }
0x1187   : > { %v6899_v39 = vpop.f32.mrf.mxu3 }
0x1188   : > { %v6900_v30 = vadd.f32 %v10528_v50, %v6899_v39 }
0x118a   : > { %v6906_v58 = vmul.f32 %v6900_v30, %v12164_v19 }
0x118c   : > { %9909 = vst [vmem:[%s12151_s20 + $0x50] sm:$0xff] %v6906_v58 }
0x118f   : > { %v6901_v52 = vpop.f32.mrf.mxu3 }
0x1190   : > { %v6902_v51 = vadd.f32 %v10528_v50, %v6901_v52 }
0x1192   : > { %v6907_v35 = vmul.f32 %v6902_v51, %v12170_v61 }
0x1194   : > { %9910 = vst [vmem:[%s12151_s20 + $0x58] sm:$0xff] %v6907_v35 }
0x1195 PF: > { %s12887_s6 = sld [smem:[#allocation45_spill]]  ;;  %s12894_s2 = smov %s11163_s3 }
0x1196   : > { %s12888_s1 = sld [smem:[#allocation40_spill]] }
0x1197   : > { %s12889_s22 = sld [smem:[#allocation41_spill]] }
0x1198   : > { %s12890_s23 = sld [smem:[#allocation49_spill]] }
0x1199   : > { %s12891_s24 = sld [smem:[#allocation44_spill]] }
0x119a   : > { %s12892_s25 = sld [smem:[#allocation46_spill]] }
0x119b   : > { %s60_s26 = sadd.s32 1, %s12887_s6   ;;  %s12893_s8 = sld [smem:[#allocation47_spill]] }
0x119c   : > { %p57_p1 = scmp.ge.s32.totalorder %s60_s26, 6  }
0x119e   :  { %59 = sbr.rel (!%p57_p1) target bundleno = 41 (0x29), region = 416 }
0x11a1   : > { %s12895_s3 = smov %s12893_s8 }
0x11a3   :  { %6942 = vsyncpa [#allocation3], 1 }
0x11a4   :  { %6944 = vsyncpa [#allocation3 + $0x1], 1 }
0x11a5   :  { %6945 = vsyncpa [#allocation5], 1 }
0x11a6   :  { %6947 = vsyncpa [#allocation5 + $0x1], 1 }
0x11a7   :  { %6948 = vsyncpa [#allocation8], 1 }
0x11a8   :  { %6950 = vsyncpa [#allocation8 + $0x1], 1 }
0x11a9   :  { %6951 = vsyncpa [#allocation11], 1 }
0x11aa   :  { %6953 = vsyncpa [#allocation11 + $0x1], 1 }
0x11ab   :  { %6954 = vsyncpa [#allocation14], 1 }
0x11ac   :  { %6956 = vsyncpa [#allocation14 + $0x1], 1 }
0x11ad   :  { %6957 = vsyncpa [#allocation17], 1 }
0x11ae   :  { %6959 = vsyncpa [#allocation17 + $0x1], 1 }
0x11af   :  { %6960 = vsyncpa [#allocation20], 1 }
0x11b0   :  { %6962 = vsyncpa [#allocation20 + $0x1], 1 }
0x11b1   :  { %6963 = vsyncpa [#allocation23], 1 }
0x11b2   :  { %6965 = vsyncpa [#allocation23 + $0x1], 1 }
0x11b3   :  { %6966 = vsyncpa [#allocation26], 1 }
0x11b4   :  { %6968 = vsyncpa [#allocation26 + $0x1], 1 }
0x11b5   :  { %6969 = vsyncpa [#allocation29], 1 }
0x11b6   :  { %6971 = vsyncpa [#allocation29 + $0x1], 1 }

// kernel: lf_mh_ms_tcn2_fwd.3
= control target key start
LH: loop header
LB: loop body
LE: loop exit
PB: predicated region body
PF: predicated region fallthrough
CT: control target
= control target key end

     0   :  { %s10070_s22 = smov 0   ;;  %s10072_s23 = smov 0   ;;  %s12076_s0 = inlined_call_operand.vmem [shape: f32[2,32,128], index: 0, kind: input, shape index: {}]   ;;  %s12077_s1 = inlined_call_operand.vmem [shape: f32[2,32,1], index: 1, kind: input, shape index: {}]   ;;  %s12078_s2 = inlined_call_operand.vmem [shape: bf16[1,128,128], index: 2, kind: input, shape index: {}]   ;;  %s12079_s3 = inlined_call_operand.vmem [shape: f32[1,1,128], index: 3, kind: input, shape index: {}]   ;;  %s12080_s4 = inlined_call_operand.vmem [shape: bf16[1,9,128,128], index: 4, kind: input, shape index: {}]   ;;  %s12081_s5 = inlined_call_operand.vmem [shape: f32[1,3,1,128], index: 5, kind: input, shape index: {}]   ;;  %s12082_s6 = inlined_call_operand.vmem [shape: bf16[1,9,128,128], index: 6, kind: input, shape index: {}]   ;;  %s12083_s7 = inlined_call_operand.vmem [shape: f32[1,3,1,128], index: 7, kind: input, shape index: {}]   ;;  %s12084_s8 = inlined_call_operand.vmem [shape: bf16[1,6,128,128], index: 8, kind: input, shape index: {}]   ;;  %s12085_s9 = inlined_call_operand.vmem [shape: f32[1,3,1,128], index: 9, kind: input, shape index: {}]   ;;  %s12086_s10 = inlined_call_operand.vmem [shape: bf16[1,128,128], index: 10, kind: input, shape index: {}]   ;;  %s12087_s11 = inlined_call_operand.vmem [shape: f32[1,1,128], index: 11, kind: input, shape index: {}]   ;;  %s12088_s12 = inlined_call_operand.vmem [shape: bf16[1,2,128,128], index: 12, kind: input, shape index: {}]   ;;  %s12089_s13 = inlined_call_operand.vmem [shape: f32[1,2,1,128], index: 13, kind: input, shape index: {}]   ;;  %s12090_s14 = inlined_call_operand.vmem [shape: bf16[1,18,128,128], index: 14, kind: input, shape index: {}]   ;;  %s12091_s15 = inlined_call_operand.vmem [shape: f32[1,6,1,128], index: 15, kind: input, shape index: {}]   ;;  %s12092_s16 = inlined_call_operand.vmem [shape: bf16[1,6,128,128], index: 16, kind: input, shape index: {}]   ;;  %s12093_s17 = inlined_call_operand.vmem [shape: f32[1,6,1,128], index: 17, kind: input, shape index: {}]   ;;  %s12094_s18 = inlined_call_operand.vmem [shape: bf16[1,2,128,128], index: 18, kind: input, shape index: {}]   ;;  %s12095_s19 = inlined_call_operand.vmem [shape: f32[1,2,1,128], index: 19, kind: input, shape index: {}]   ;;  %s12096_s20 = inlined_call_operand.vmem [shape: f32[1,2,3,32,128], index: 20, kind: output, shape index: {}]  }
   0x1   :  { %12101 = sst [smem:[#allocation4_spill]] %s12076_s0 }
   0x2   :  { %12102 = sst [smem:[#allocation5_spill]] %s12077_s1  ;;  %s10068_s1 = smov 0  }
   0x3   :  { %12103 = sst [smem:[#allocation6_spill]] %s12078_s2 }
   0x4   :  { %12104 = sst [smem:[#allocation7_spill]] %s12079_s3 }
   0x5   :  { %12105 = sst [smem:[#allocation8_spill]] %s12080_s4 }
   0x6 LB: > { %12106 = sst [smem:[#allocation2_spill]] %s9955_s22  ;;  %s39_s24 = sadd.s32 1, %s9955_s22  ;;  %s9959_s23 = sphi %s10072_s23, %s30_s23   ;;  %s9955_s22 = sphi %s10070_s22, %s12119_s22   ;;  %s9951_s1 = sphi %s10068_s1, %s12118_s1  }
   0x7   : > { %p6911_p0 = scmp.ge.s32.totalorder %s9959_s23, 1  ;;  %p40_p1 = scmp.ge.s32.totalorder %s39_s24, 2 }
   0x8   : > { %p755_p2 = scmp.lt.s32.totalorder %s9959_s23, 3 }
   0x9   : > { %s12121_s24 = smov (%p40_p1, %s39_s24), 0 }
   0xa   : > { %12107 = sst [smem:[#allocation3_spill]] %s12121_s24  ;;  %p756_p3 = pnand %p6911_p0, %p755_p2 }
   0xb   : > { %s12108_s3 = sld [smem:[#allocation6_spill]] (!%p756_p3)  ;;  %p901_p4 = scmp.lt.s32.totalorder (!%p756_p3), %s9951_s1, 1 }
   0xc   : > { %759 = sbr.rel (%p756_p3) target bundleno = 4317 (0x10dd), region = 100  ;;  %s12109_s26 = sld [smem:[#allocation8_spill]] (!%p756_p3) }
   0xd   : > { %s12110_s21 = sld [smem:[#allocation4_spill]] (!%p756_p3) }
   0xe   : > { %s12113_s22 = sld [smem:[#allocation5_spill]] (!%p756_p3) }
  0x11   : > { %v9408_v0 = vld [vmem:[%s12108_s3 + $0x38] sm:$0xff]  ;;  %v9407_v1 = vld [vmem:[%s12108_s3 + $0x30] sm:$0xff]  ;;  %v9406_v2 = vld [vmem:[%s12108_s3 + $0x28] sm:$0xff]  ;;  %s12123_s1 = smov (!%p901_p4, %s9951_s1), 1 }
  0x12   : > { %1177 = vmatpush.bf16.msra.mxu0 %v9408_v0  ;;  %v9405_v3 = vld [vmem:[%s12108_s3 + $0x20] sm:$0xff]  ;;  %v9404_v4 = vld [vmem:[%s12108_s3 + $0x18] sm:$0xff]  ;;  %v9403_v8 = vld [vmem:[%s12108_s3 + $0x10] sm:$0xff]  ;;  %s12100_s27 = sshll.u32 %s12123_s1, 5  ;;  %s12112_s30 = sshll.u32 %s12123_s1, 5 }
  0x13   : > { %v9424_v5 = vld [vmem:[%s12109_s26 + $0x38] sm:$0xff]  ;;  %v9423_v9 = vld [vmem:[%s12109_s26 + $0x30] sm:$0xff]  ;;  %v9402_v12 = vld [vmem:[%s12108_s3 + $0x8] sm:$0xff]  ;;  %s10133_s2 = scalar_lea.vmem %s12110_s21, %s12100_s27  ;;  %s12111_s21 = sld [smem:[#allocation7_spill]] }
  0x14   : > { %v9432_v6 = vld [vmem:[%s12109_s26 + $0xb8] sm:$0xff]  ;;  %1280 = vmatpush.bf16.msra.mxu1 %v9424_v5  ;;  %v9431_v10 = vld [vmem:[%s12109_s26 + $0xb0] sm:$0xff]  ;;  %v9422_v13 = vld [vmem:[%s12109_s26 + $0x28] sm:$0xff]  ;;  %s910_s0 = scalar_lea.vmem %s12113_s22, %s12112_s30  ;;  %s9849_s4 = smul.u32 96, %s12123_s1 }
  0x15   : > { %v9416_v7 = vld [vmem:[%s12109_s26 + $0x78] sm:$0xff]  ;;  %1364 = vmatpush.bf16.msra.mxu2 %v9432_v6  ;;  %v9415_v11 = vld [vmem:[%s12109_s26 + $0x70] sm:$0xff]  ;;  %v9430_v14 = vld [vmem:[%s12109_s26 + $0xa8] sm:$0xff] }
  0x16   : > { %1178 = vmatpush.bf16.msra.mxu0 %v9407_v1  ;;  %1444 = vmatpush.bf16.msra.mxu3 %v9416_v7  ;;  %v9414_v15 = vld [vmem:[%s12109_s26 + $0x68] sm:$0xff]  ;;  %v9401_v16 = vld [vmem:[%s12108_s3] sm:$0xff]  ;;  %v9448_v19 = vld [vmem:[%s12082_s6 + $0x38] sm:$0xff] }
  0x17   : > { %v999_v17 = vld [vmem:[%s10133_s2] sm:$0xff]  ;;  %v1000_v18 = vld [vmem:[%s10133_s2 + $0x8] sm:$0xff]  ;;  %v9447_v24 = vld [vmem:[%s12082_s6 + $0x30] sm:$0xff] }
  0x18   : > { %1281 = vmatpush.bf16.msra.mxu1 %v9423_v9  ;;  %v9421_v20 = vld [vmem:[%s12109_s26 + $0x20] sm:$0xff]  ;;  %v1107_v23 = vpack.c.bf16 %v1000_v18, %v999_v17  ;;  %v9420_v25 = vld [vmem:[%s12109_s26 + $0x18] sm:$0xff]  ;;  %v9446_v28 = vld [vmem:[%s12082_s6 + $0x28] sm:$0xff] }
  0x19   : > { %1365 = vmatpush.bf16.msra.mxu2 %v9431_v10  ;;  %v9429_v21 = vld [vmem:[%s12109_s26 + $0xa0] sm:$0xff]  ;;  %v9428_v26 = vld [vmem:[%s12109_s26 + $0x98] sm:$0xff]  ;;  %v1001_v30 = vld [vmem:[%s10133_s2 + $0x10] sm:$0xff] }
  0x1a   : > { %1179 = vmatpush.bf16.msra.mxu0 %v9406_v2  ;;  %1445 = vmatpush.bf16.msra.mxu3 %v9415_v11  ;;  %v9413_v22 = vld [vmem:[%s12109_s26 + $0x60] sm:$0xff]  ;;  %v9412_v27 = vld [vmem:[%s12109_s26 + $0x58] sm:$0xff]  ;;  %v9419_v34 = vld [vmem:[%s12109_s26 + $0x10] sm:$0xff] }
  0x1b   : > { %v9445_v29 = vld [vmem:[%s12082_s6 + $0x20] sm:$0xff]  ;;  %v1002_v31 = vld [vmem:[%s10133_s2 + $0x18] sm:$0xff]  ;;  %v9427_v35 = vld [vmem:[%s12109_s26 + $0x90] sm:$0xff]  ;;  %s10992_s2 = scalar_lea.vmem %s12096_s20, %s9849_s4 }
  0x1c   : > { %1282 = vmatpush.bf16.msra.mxu1 %v9422_v13  ;;  %v9444_v32 = vld [vmem:[%s12082_s6 + $0x18] sm:$0xff]  ;;  %v1108_v33 = vpack.c.bf16 %v1002_v31, %v1001_v30  ;;  %v9411_v36 = vld [vmem:[%s12109_s26 + $0x50] sm:$0xff]  ;;  %v9418_v38 = vld [vmem:[%s12109_s26 + $0x8] sm:$0xff]  ;;  %v1027_v30 = vlaneseq }
  0x1d   : > { %1366 = vmatpush.bf16.msra.mxu2 %v9430_v14  ;;  %v9443_v37 = vld [vmem:[%s12082_s6 + $0x10] sm:$0xff]  ;;  %v9426_v39 = vld [vmem:[%s12109_s26 + $0x88] sm:$0xff]  ;;  %v9417_v42 = vld [vmem:[%s12109_s26] sm:$0xff] }
  0x1e   : > { %1180 = vmatpush.bf16.msra.mxu0 %v9405_v3  ;;  %1446 = vmatpush.bf16.msra.mxu3 %v9414_v15  ;;  %v9410_v40 = vld [vmem:[%s12109_s26 + $0x48] sm:$0xff]  ;;  %v9425_v43 = vld [vmem:[%s12109_s26 + $0x80] sm:$0xff]  ;;  %v9456_v46 = vld [vmem:[%s12082_s6 + $0xb8] sm:$0xff] }
  0x1f   : > { %v9442_v41 = vld [vmem:[%s12082_s6 + $0x8] sm:$0xff]  ;;  %v9409_v44 = vld [vmem:[%s12109_s26 + $0x40] sm:$0xff]  ;;  %v9440_v47 = vld [vmem:[%s12082_s6 + $0x78] sm:$0xff] }
  0x20   : > { %1283 = vmatpush.bf16.msra.mxu1 %v9421_v20  ;;  %v9441_v45 = vld [vmem:[%s12082_s6] sm:$0xff]  ;;  %v9455_v48 = vld [vmem:[%s12082_s6 + $0xb0] sm:$0xff]  ;;  %v9454_v50 = vld [vmem:[%s12082_s6 + $0xa8] sm:$0xff] }
  0x21   : > { %1367 = vmatpush.bf16.msra.mxu2 %v9429_v21  ;;  %v9439_v49 = vld [vmem:[%s12082_s6 + $0x70] sm:$0xff]  ;;  %v9438_v51 = vld [vmem:[%s12082_s6 + $0x68] sm:$0xff]  ;;  %v9453_v52 = vld [vmem:[%s12082_s6 + $0xa0] sm:$0xff] }
  0x22   : > { %1181 = vmatpush.bf16.msra.mxu0 %v9404_v4  ;;  %1447 = vmatpush.bf16.msra.mxu3 %v9413_v22  ;;  %v9437_v53 = vld [vmem:[%s12082_s6 + $0x60] sm:$0xff]  ;;  %v9452_v54 = vld [vmem:[%s12082_s6 + $0x98] sm:$0xff]  ;;  %v9451_v56 = vld [vmem:[%s12082_s6 + $0x90] sm:$0xff] }
  0x23   : > { %v9436_v55 = vld [vmem:[%s12082_s6 + $0x58] sm:$0xff]  ;;  %v9435_v57 = vld [vmem:[%s12082_s6 + $0x50] sm:$0xff]  ;;  %v9450_v59 = vld [vmem:[%s12082_s6 + $0x88] sm:$0xff] }
  0x24   : > { %1284 = vmatpush.bf16.msra.mxu1 %v9420_v25  ;;  %v9434_v60 = vld [vmem:[%s12082_s6 + $0x48] sm:$0xff]  ;;  %v9878_v61 = vld [vmem:[%s12111_s21] ss:$0 sm:$0xff]  ;;  %v9464_v9 = vld [vmem:[%s12084_s8 + $0x38] sm:$0xff] }
  0x25   : > { %1368 = vmatpush.bf16.msra.mxu2 %v9428_v26  ;;  %v9449_v62 = vld [vmem:[%s12082_s6 + $0x80] sm:$0xff]  ;;  %v9463_v10 = vld [vmem:[%s12084_s8 + $0x30] sm:$0xff]  ;;  %v9462_v11 = vld [vmem:[%s12084_s8 + $0x28] sm:$0xff] }
  0x26   : > { %1182 = vmatpush.bf16.msra.mxu0 %v9403_v8  ;;  %1448 = vmatpush.bf16.msra.mxu3 %v9412_v27  ;;  %v9433_v63 = vld [vmem:[%s12082_s6 + $0x40] sm:$0xff]  ;;  %v9460_v13 = vld [vmem:[%s12084_s8 + $0x18] sm:$0xff]  ;;  %v9459_v15 = vld [vmem:[%s12084_s8 + $0x10] sm:$0xff] }
  0x27   : > { %v9472_v14 = vld [vmem:[%s12084_s8 + $0x78] sm:$0xff]  ;;  %v9458_v17 = vld [vmem:[%s12084_s8 + $0x8] sm:$0xff]  ;;  %v9457_v20 = vld [vmem:[%s12084_s8] sm:$0xff] }
  0x28   : > { %1285 = vmatpush.bf16.msra.mxu1 %v9419_v34  ;;  %v9468_v26 = vld [vmem:[%s12084_s8 + $0x58] sm:$0xff]  ;;  %v10335_v34 = vshrl.u32 %v1027_v30, 7 }
  0x29   : > { %1369 = vmatpush.bf16.msra.mxu2 %v9427_v35 }
  0x2a   : > { %1183 = vmatpush.bf16.msra.mxu0 %v9402_v12  ;;  %1449 = vmatpush.bf16.msra.mxu3 %v9411_v36  ;;  %v9461_v12 = vld [vmem:[%s12084_s8 + $0x20] sm:$0xff]  ;;  %vm1056_vm0 = vcmp.ge.s32.totalorder %v10335_v34, 4  ;;  %vm1387_vm1 = vcmp.lt.s32.totalorder %v10335_v34, 4  ;;  %vm1032_vm3 = vcmp.ge.s32.totalorder %v10335_v34, 1  ;;  %vm1675_vm4 = vcmp.lt.s32.totalorder %v10335_v34, 1 }
  0x2b   : > { %v9465_v36 = vld [vmem:[%s12084_s8 + $0x40] sm:$0xff]  ;;  %vm1755_vm5 = vcmp.lt.s32.totalorder %v10335_v34, 7  ;;  %vm1044_vm7 = vcmp.ge.s32.totalorder %v10335_v34, 2  ;;  %vm2155_vm8 = vcmp.lt.s32.totalorder %v10335_v34, 2  ;;  %vm2235_vm9 = vcmp.lt.s32.totalorder %v10335_v34, 6 }
  0x2c   : > { %1286 = vmatpush.bf16.msra.mxu1 %v9418_v38 }
  0x2d   : > { %1370 = vmatpush.bf16.msra.mxu2 %v9426_v39 }
  0x2e   : > { %1184 = vmatpush.bf16.msra.mxu0 %v9401_v16  ;;  %1450 = vmatpush.bf16.msra.mxu3 %v9410_v40  ;;  %v9471_v16 = vld [vmem:[%s12084_s8 + $0x70] sm:$0xff] }
  0x30   : > { %1287 = vmatpush.bf16.msra.mxu1 %v9417_v42  ;;  %v9961_v42 = vmov 0.0  }
  0x31   : > { %1185 = vmatmul.bf16.vlgmr.msra.gmra.mxu0 %v1107_v23  ;;  %1371 = vmatpush.bf16.msra.mxu2 %v9425_v43  ;;  %v9469_v23 = vld [vmem:[%s12084_s8 + $0x60] sm:$0xff]  ;;  %v10344_v43 = vsel %vm1056_vm0, 1.0, %v9961_v42 }
  0x32   : > { %1568 = vmatpush.bf16.msrb.mxu0 %v9448_v19  ;;  %1451 = vmatpush.bf16.msra.mxu3 %v9409_v44  ;;  %v9470_v19 = vld [vmem:[%s12084_s8 + $0x68] sm:$0xff] }
  0x34   : > { %1652 = vmatpush.bf16.msrb.mxu1 %v9456_v46 }
  0x35   : > { %1732 = vmatpush.bf16.msrb.mxu2 %v9440_v47 }
  0x36   : > { %1569 = vmatpush.bf16.msrb.mxu0 %v9447_v24  ;;  %1860 = vmatpush.bf16.msrb.mxu3 %v9472_v14 }
  0x38   : > { %1653 = vmatpush.bf16.msrb.mxu1 %v9455_v48 }
  0x39   : > { %1733 = vmatpush.bf16.msrb.mxu2 %v9439_v49 }
  0x3a   : > { %1570 = vmatpush.bf16.msrb.mxu0 %v9446_v28  ;;  %1861 = vmatpush.bf16.msrb.mxu3 %v9471_v16  ;;  %v9467_v28 = vld [vmem:[%s12084_s8 + $0x50] sm:$0xff] }
  0x3c   : > { %1654 = vmatpush.bf16.msrb.mxu1 %v9454_v50 }
  0x3d   : > { %1734 = vmatpush.bf16.msrb.mxu2 %v9438_v51 }
  0x3e   : > { %1571 = vmatpush.bf16.msrb.mxu0 %v9445_v29  ;;  %1862 = vmatpush.bf16.msrb.mxu3 %v9470_v19 }
  0x40   : > { %1655 = vmatpush.bf16.msrb.mxu1 %v9453_v52 }
  0x41   : > { %1190 = vmatmul.bf16.gmra.mxu0 %v1108_v33  ;;  %1735 = vmatpush.bf16.msrb.mxu2 %v9437_v53 }
  0x42   : > { %1572 = vmatpush.bf16.msrb.mxu0 %v9444_v32  ;;  %1863 = vmatpush.bf16.msrb.mxu3 %v9469_v23  ;;  %v9466_v32 = vld [vmem:[%s12084_s8 + $0x48] sm:$0xff] }
  0x44   : > { %1656 = vmatpush.bf16.msrb.mxu1 %v9452_v54  ;;  %v9879_v54 = vld [vmem:[%s12081_s5] ss:$0 sm:$0xff] }
  0x45   : > { %1736 = vmatpush.bf16.msrb.mxu2 %v9436_v55 }
  0x46   : > { %1573 = vmatpush.bf16.msrb.mxu0 %v9443_v37  ;;  %1864 = vmatpush.bf16.msrb.mxu3 %v9468_v26 }
  0x48   : > { %1657 = vmatpush.bf16.msrb.mxu1 %v9451_v56 }
  0x49   : > { %1737 = vmatpush.bf16.msrb.mxu2 %v9435_v57  ;;  %v10359_v57 = vadd.s32 24, %v10335_v34  ;;  %v9828_v34 = vld [vmem:[%s12094_s18 + $0x58] sm:$0xff] }
  0x4a   : > { %1574 = vmatpush.bf16.msrb.mxu0 %v9442_v41  ;;  %1865 = vmatpush.bf16.msrb.mxu3 %v9467_v28 }
  0x4b   : > { %vm1095_vm2 = vcmp.lt.s32.totalorder %v10359_v57, 28  ;;  %vm1071_vm6 = vcmp.lt.s32.totalorder %v10359_v57, 31  ;;  %vm1083_vm10 = vcmp.lt.s32.totalorder %v10359_v57, 30 }
  0x4c   : > { %1658 = vmatpush.bf16.msrb.mxu1 %v9450_v59 }
  0x4d   : > { %1738 = vmatpush.bf16.msrb.mxu2 %v9434_v60 }
  0x4e   : > { %1575 = vmatpush.bf16.msrb.mxu0 %v9441_v45  ;;  %1866 = vmatpush.bf16.msrb.mxu3 %v9466_v32 }
  0x50   : > { %1659 = vmatpush.bf16.msrb.mxu1 %v9449_v62 }
  0x51   : > { %1739 = vmatpush.bf16.msrb.mxu2 %v9433_v63 }
  0x52   : > { %1927 = vmatpush.bf16.msra.mxu0 %v9464_v9  ;;  %1867 = vmatpush.bf16.msrb.mxu3 %v9465_v36 }
  0x56   : > { %1928 = vmatpush.bf16.msra.mxu0 %v9463_v10 }
  0x5a   : > { %1929 = vmatpush.bf16.msra.mxu0 %v9462_v11 }
  0x5e   : > { %1930 = vmatpush.bf16.msra.mxu0 %v9461_v12 }
  0x62   : > { %1931 = vmatpush.bf16.msra.mxu0 %v9460_v13 }
  0x66   : > { %1932 = vmatpush.bf16.msra.mxu0 %v9459_v15 }
  0x6a   : > { %1933 = vmatpush.bf16.msra.mxu0 %v9458_v17  ;;  %v10375_v17 = vsel %vm1032_vm3, 1.0, %v9961_v42 }
  0x6e   : > { %1934 = vmatpush.bf16.msra.mxu0 %v9457_v20 }
  0xae   : > { %v1186_v58 = vpop.f32.mrf.mxu0 }
  0xaf   : > { %v10271_v1 = vadd.f32 %v9878_v61, %v1186_v58 }
  0xb6   : > { %v1188_v0 = vpop.f32.mrf.mxu0 }
  0xb7   : > { %v10273_v2 = vadd.f32 %v9878_v61, %v1188_v0 }
  0xb9   : > { %v1196_v3 = vpack.c.bf16 %v10273_v2, %v10271_v1 }
  0xbb   : > { %1288 = vmatmul.bf16.vlgmr.msra.gmra.mxu1 %v1196_v3  ;;  %1372 = vmatmul.bf16.vlgmr.msra.gmra.mxu2 %v1196_v3 }
  0xbc   : > { %1452 = vmatmul.bf16.vlgmr.msra.gmra.mxu3 %v1196_v3  ;;  %1576 = vmatmul.bf16.vlgmr.msrb.gmra.mxu0 %v1196_v3 }
  0xbe   : > { %v1191_v4 = vpop.f32.mrf.mxu0 }
  0xbf   : > { %v10277_v6 = vadd.f32 %v9878_v61, %v1191_v4 }
  0xc6   : > { %v1193_v5 = vpop.f32.mrf.mxu0 }
  0xc7   : > { %v10279_v7 = vadd.f32 %v9878_v61, %v1193_v5  ;;  %v10367_v5 = vsel %vm1095_vm2, 1.0, %v9961_v42 }
  0xc9   : > { %v1197_v8 = vpack.c.bf16 %v10279_v7, %v10277_v6 }
  0xcb   : > { %1293 = vmatmul.bf16.gmra.mxu1 %v1197_v8  ;;  %1377 = vmatmul.bf16.gmra.mxu2 %v1197_v8 }
  0xcc   : > { %1457 = vmatmul.bf16.gmra.mxu3 %v1197_v8  ;;  %1581 = vmatmul.bf16.gmra.mxu0 %v1197_v8 }
  0xdb   : > { %1660 = vmatmul.bf16.vlgmr.msrb.gmra.mxu1 %v1196_v3  ;;  %1740 = vmatmul.bf16.vlgmr.msrb.gmra.mxu2 %v1196_v3 }
  0xeb   : > { %1665 = vmatmul.bf16.gmra.mxu1 %v1197_v8  ;;  %1745 = vmatmul.bf16.gmra.mxu2 %v1197_v8 }
 0x138   : > { %v1289_v18 = vpop.f32.mrf.mxu1 }
 0x139   : > { %v10316_v21 = vpop.f32.mrf.mxu0  ;;  %v1383_v40 = vrot.slane %v1289_v18, 4 }
 0x13a   : > { %v1671_v14 = vrot.slane %v10316_v21, 7 }
 0x13e   : > { %v1373_v22 = vpop.f32.mrf.mxu2 }
 0x13f   : > { %v1453_v25 = vpop.f32.mrf.mxu3  ;;  %v1463_v51 = vrot.slane %v1373_v22, 4 }
 0x140   : > { %v10321_v24 = vpop.f32.mrf.mxu1 }
 0x141   : > { %v10329_v29 = vpop.f32.mrf.mxu0  ;;  %v1384_v37 = vrot.slane %v10321_v24, 4 }
 0x142   : > { %v1672_v24 = vrot.slane %v10329_v29, 7  ;;  %v9880_v29 = vld [vmem:[%s12083_s7] ss:$0 sm:$0xff] }
 0x143   : > { %v1390_v46 = vsel %vm1387_vm1, %v1383_v40, %v1384_v37 }
 0x144   : > { %v1678_v36 = vsel %vm1675_vm4, %v1671_v14, %v1672_v24 }
 0x146   : > { %v1375_v27 = vpop.f32.mrf.mxu2 }
 0x147   : > { %v1455_v33 = vpop.f32.mrf.mxu3  ;;  %v1464_v41 = vrot.slane %v1375_v27, 4 }
 0x148   : > { %v1294_v31 = vpop.f32.mrf.mxu1  ;;  %v1456_v49 = vadd.f32 %v1455_v33, %v1390_v46 }
 0x149   : > { %v10346_v45 = vpop.f32.mrf.mxu0  ;;  %v1469_v58 = vsel %vm1387_vm1, %v1463_v51, %v1464_v41  ;;  %v1385_v9 = vrot.slane %v1294_v31, 4 }
 0x14b   : > { %v1389_v18 = vsel %vm1387_vm1, %v1384_v37, %v1385_v9 }
 0x14e   : > { %v1378_v35 = vpop.f32.mrf.mxu2 }
 0x14f   : > { %v1465_v38 = vrot.slane %v1378_v35, 4  ;;  %v1458_v52 = vpop.f32.mrf.mxu3 }
 0x150   : > { %v1296_v39 = vpop.f32.mrf.mxu1  ;;  %v1459_v21 = vadd.f32 %v1458_v52, %v1389_v18  ;;  %v9486_v18 = vld [vmem:[%s12109_s26 + $0xe8] sm:$0xff] }
 0x151   : > { %v1386_v44 = vrot.slane %v1296_v39, 4  ;;  %v1468_v47 = vsel %vm1387_vm1, %v1464_v41, %v1465_v38  ;;  %v1584_v0 = vpop.f32.mrf.mxu0 }
 0x152   : > { %v1476_v53 = vadd.f32 %v1468_v47, %v1456_v49  ;;  %v1674_v10 = vrot.slane %v1584_v0, 7 }
 0x153   : > { %v1391_v48 = vsel %vm1387_vm1, %v1386_v44, %v1383_v40  ;;  %v1388_v15 = vsel %vm1387_vm1, %v1385_v9, %v1386_v44  ;;  %v9488_v9 = vld [vmem:[%s12109_s26 + $0xf8] sm:$0xff] }
 0x154   : > { %v1392_v50 = vmul.f32 %v10344_v43, %v1391_v48  ;;  %v1483_v62 = vadd.f32 %v9879_v54, %v1476_v53  ;;  %v1679_v20 = vsel %vm1675_vm4, %v1674_v10, %v1671_v14  ;;  %v1673_v53 = vrot.slane %v10346_v45, 7  ;;  %2048 = vmatpush.bf16.msra.mxu1 %v9488_v9  ;;  %v9495_v14 = vld [vmem:[%s12109_s26 + $0x170] sm:$0xff]  ;;  %v9514_v9 = vld [vmem:[%s12082_s6 + $0x148] sm:$0xff] }
 0x155   : > { %v1680_v26 = vmul.f32 %v10375_v17, %v1679_v20  ;;  %v9478_v20 = vld [vmem:[%s12109_s26 + $0x128] sm:$0xff] }
 0x156   : > { %v1454_v55 = vadd.f32 %v1453_v25, %v1392_v50  ;;  %v1380_v56 = vpop.f32.mrf.mxu2 }
 0x157   : > { %v1466_v61 = vrot.slane %v1380_v56, 4  ;;  %v1460_v11 = vpop.f32.mrf.mxu3  ;;  %v1676_v56 = vsel %vm1675_vm4, %v1673_v53, %v1674_v10  ;;  %v9496_v10 = vld [vmem:[%s12109_s26 + $0x178] sm:$0xff] }
 0x158   : > { %v1475_v59 = vadd.f32 %v1469_v58, %v1454_v55  ;;  %v1661_v60 = vpop.f32.mrf.mxu1  ;;  %v1461_v16 = vadd.f32 %v1460_v11, %v1388_v15  ;;  %v10401_v55 = vsel %vm1071_vm6, 1.0, %v9961_v42  ;;  %v9480_v11 = vld [vmem:[%s12109_s26 + $0x138] sm:$0xff]  ;;  %2132 = vmatpush.bf16.msra.mxu2 %v9496_v10  ;;  %v9479_v15 = vld [vmem:[%s12109_s26 + $0x130] sm:$0xff]  ;;  %v9498_v10 = vld [vmem:[%s12082_s6 + $0x108] sm:$0xff] }
 0x159   : > { %v1470_v4 = vsel %vm1387_vm1, %v1466_v61, %v1463_v51  ;;  %v1467_v19 = vsel %vm1387_vm1, %v1465_v38, %v1466_v61  ;;  %v1751_v25 = vrot.slane %v1661_v60, 1  ;;  %2212 = vmatpush.bf16.msra.mxu3 %v9480_v11 }
 0x15a   : > { %v1482_v63 = vadd.f32 %v9879_v54, %v1475_v59  ;;  %v1474_v12 = vmul.f32 %v10367_v5, %v1470_v4  ;;  %v1477_v28 = vadd.f32 %v1467_v19, %v1459_v21  ;;  %v1677_v59 = vsel %vm1675_vm4, %v1672_v24, %v1673_v53  ;;  %v9494_v19 = vld [vmem:[%s12109_s26 + $0x168] sm:$0xff]  ;;  %v9485_v21 = vld [vmem:[%s12109_s26 + $0xe0] sm:$0xff] }
 0x15b   : > { %v9477_v24 = vld [vmem:[%s12109_s26 + $0x120] sm:$0xff]  ;;  %v9502_v53 = vld [vmem:[%s12082_s6 + $0x128] sm:$0xff] }
 0x15c   : > { %v1775_v3 = vpack.c.bf16 %v1483_v62, %v1482_v63  ;;  %v1478_v23 = vadd.f32 %v1474_v12, %v1461_v16  ;;  %v1484_v40 = vadd.f32 %v9879_v54, %v1477_v28  ;;  %v9512_v12 = vld [vmem:[%s12082_s6 + $0xf8] sm:$0xff]  ;;  %v9511_v16 = vld [vmem:[%s12082_s6 + $0xf0] sm:$0xff]  ;;  %2133 = vmatpush.bf16.msra.mxu2 %v9495_v14 }
 0x15d   : > { %2339 = vmatpush.bf16.msrb.mxu0 %v9512_v12  ;;  %2213 = vmatpush.bf16.msra.mxu3 %v9479_v15  ;;  %v9476_v28 = vld [vmem:[%s12109_s26 + $0x118] sm:$0xff]  ;;  %v9513_v15 = vld [vmem:[%s12082_s6 + $0x140] sm:$0xff] }
 0x15e   : > { %v1741_v8 = vpop.f32.mrf.mxu2  ;;  %1935 = vmatmul.bf16.vlgmr.msra.gmra.mxu0 %v1775_v3  ;;  %v1485_v35 = vadd.f32 %v9879_v54, %v1478_v23  ;;  %v9493_v23 = vld [vmem:[%s12109_s26 + $0x160] sm:$0xff] }
 0x15f   : > { %v1742_v32 = vadd.f32 %v1741_v8, %v1680_v26  ;;  %v9484_v26 = vld [vmem:[%s12109_s26 + $0xd8] sm:$0xff] }
 0x160   : > { %v1663_v13 = vpop.f32.mrf.mxu1  ;;  %v1776_v46 = vpack.c.bf16 %v1485_v35, %v1484_v40  ;;  %2134 = vmatpush.bf16.msra.mxu2 %v9494_v19  ;;  %v9475_v35 = vld [vmem:[%s12109_s26 + $0x110] sm:$0xff]  ;;  %v9506_v40 = vld [vmem:[%s12082_s6 + $0xc8] sm:$0xff] }
 0x161   : > { %v1752_v22 = vrot.slane %v1663_v13, 1  ;;  %v9487_v13 = vld [vmem:[%s12109_s26 + $0xf0] sm:$0xff]  ;;  %2340 = vmatpush.bf16.msrb.mxu0 %v9511_v16  ;;  %2214 = vmatpush.bf16.msra.mxu3 %v9478_v20  ;;  %v9497_v16 = vld [vmem:[%s12082_s6 + $0x100] sm:$0xff] }
 0x162   : > { %2049 = vmatpush.bf16.msra.mxu1 %v9487_v13 }
 0x163   : > { %v1758_v31 = vsel %vm1755_vm5, %v1751_v25, %v1752_v22 }
 0x164   : > { %v1764_v38 = vadd.f32 %v1758_v31, %v1742_v32  ;;  %2135 = vmatpush.bf16.msra.mxu2 %v9493_v23  ;;  %v9508_v31 = vld [vmem:[%s12082_s6 + $0xd8] sm:$0xff]  ;;  %v9483_v32 = vld [vmem:[%s12109_s26 + $0xd0] sm:$0xff] }
 0x165   : > { %2215 = vmatpush.bf16.msra.mxu3 %v9477_v24 }
 0x166   : > { %v1743_v27 = vpop.f32.mrf.mxu2  ;;  %v1771_v48 = vadd.f32 %v9880_v29, %v1764_v38  ;;  %2050 = vmatpush.bf16.msra.mxu1 %v9486_v18  ;;  %v9490_v38 = vld [vmem:[%s12109_s26 + $0x148] sm:$0xff] }
 0x167   : > { %v1744_v39 = vadd.f32 %v1743_v27, %v1678_v36  ;;  %v9492_v27 = vld [vmem:[%s12109_s26 + $0x158] sm:$0xff]  ;;  %v9507_v36 = vld [vmem:[%s12082_s6 + $0xd0] sm:$0xff] }
 0x168   : > { %v1666_v33 = vpop.f32.mrf.mxu1  ;;  %2136 = vmatpush.bf16.msra.mxu2 %v9492_v27 }
 0x169   : > { %v1753_v37 = vrot.slane %v1666_v33, 1  ;;  %2216 = vmatpush.bf16.msra.mxu3 %v9476_v28  ;;  %v9491_v33 = vld [vmem:[%s12109_s26 + $0x150] sm:$0xff] }
 0x16a   : > { %2051 = vmatpush.bf16.msra.mxu1 %v9485_v21 }
 0x16b   : > { %v1757_v41 = vsel %vm1755_vm5, %v1752_v22, %v1753_v37  ;;  %v9510_v22 = vld [vmem:[%s12082_s6 + $0xe8] sm:$0xff] }
 0x16c   : > { %v1765_v44 = vadd.f32 %v1757_v41, %v1744_v39  ;;  %2341 = vmatpush.bf16.msrb.mxu0 %v9510_v22  ;;  %2137 = vmatpush.bf16.msra.mxu2 %v9491_v33  ;;  %v9474_v39 = vld [vmem:[%s12109_s26 + $0x108] sm:$0xff]  ;;  %v9489_v41 = vld [vmem:[%s12109_s26 + $0x140] sm:$0xff]  ;;  %v9528_v33 = vld [vmem:[%s12084_s8 + $0xb8] sm:$0xff] }
 0x16d   : > { %2217 = vmatpush.bf16.msra.mxu3 %v9475_v35  ;;  %v9525_v35 = vld [vmem:[%s12084_s8 + $0xa0] sm:$0xff] }
 0x16e   : > { %v1746_v47 = vpop.f32.mrf.mxu2  ;;  %1940 = vmatmul.bf16.gmra.mxu0 %v1776_v46  ;;  %v1772_v49 = vadd.f32 %v9880_v29, %v1765_v44  ;;  %2052 = vmatpush.bf16.msra.mxu1 %v9484_v26  ;;  %v9473_v44 = vld [vmem:[%s12109_s26 + $0x100] sm:$0xff] }
 0x16f   : > { %v1747_v45 = vadd.f32 %v1746_v47, %v1677_v59  ;;  %v9505_v46 = vld [vmem:[%s12082_s6 + $0xc0] sm:$0xff]  ;;  %v9520_v47 = vld [vmem:[%s12082_s6 + $0x178] sm:$0xff] }
 0x170   : > { %v1668_v50 = vpop.f32.mrf.mxu1  ;;  %v1793_v51 = vpack.c.bf16 %v1772_v49, %v1771_v48  ;;  %2138 = vmatpush.bf16.msra.mxu2 %v9490_v38  ;;  %v9504_v48 = vld [vmem:[%s12082_s6 + $0x138] sm:$0xff]  ;;  %v9519_v49 = vld [vmem:[%s12082_s6 + $0x170] sm:$0xff] }
 0x171   : > { %v1754_v52 = vrot.slane %v1668_v50, 1  ;;  %2218 = vmatpush.bf16.msra.mxu3 %v9474_v39  ;;  %v9503_v50 = vld [vmem:[%s12082_s6 + $0x130] sm:$0xff] }
 0x172   : > { %1868 = vmatmul.bf16.vlgmr.msrb.gmra.mxu3 %v1793_v51  ;;  %2053 = vmatpush.bf16.msra.mxu1 %v9483_v32  ;;  %v9523_v38 = vld [vmem:[%s12084_s8 + $0x90] sm:$0xff] }
 0x173   : > { %v1759_v54 = vsel %vm1755_vm5, %v1754_v52, %v1751_v25  ;;  %v1756_v60 = vsel %vm1755_vm5, %v1753_v37, %v1754_v52  ;;  %v9509_v25 = vld [vmem:[%s12082_s6 + $0xe0] sm:$0xff]  ;;  %v9482_v37 = vld [vmem:[%s12109_s26 + $0xc8] sm:$0xff]  ;;  %v9535_v39 = vld [vmem:[%s12084_s8 + $0xf0] sm:$0xff] }
 0x174   : > { %v1763_v62 = vmul.f32 %v10401_v55, %v1759_v54  ;;  %v1766_v0 = vadd.f32 %v1756_v60, %v1747_v45  ;;  %2342 = vmatpush.bf16.msrb.mxu0 %v9509_v25  ;;  %2139 = vmatpush.bf16.msra.mxu2 %v9489_v41  ;;  %v9518_v52 = vld [vmem:[%s12082_s6 + $0x168] sm:$0xff]  ;;  %v9881_v60 = vld [vmem:[%s12085_s9] ss:$0 sm:$0xff]  ;;  %v9500_v45 = vld [vmem:[%s12082_s6 + $0x118] sm:$0xff] }
 0x175   : > { %2219 = vmatpush.bf16.msra.mxu3 %v9473_v44  ;;  %v9534_v41 = vld [vmem:[%s12084_s8 + $0xe8] sm:$0xff]  ;;  %v9521_v44 = vld [vmem:[%s12084_s8 + $0x80] sm:$0xff] }
 0x176   : > { %v1748_v58 = vpop.f32.mrf.mxu2  ;;  %v1773_v4 = vadd.f32 %v9880_v29, %v1766_v0  ;;  %2054 = vmatpush.bf16.msra.mxu1 %v9482_v37  ;;  %v9499_v0 = vld [vmem:[%s12082_s6 + $0x110] sm:$0xff]  ;;  %v9536_v37 = vld [vmem:[%s12084_s8 + $0xf8] sm:$0xff] }
 0x177   : > { %v1749_v61 = vadd.f32 %v1748_v58, %v1676_v56  ;;  %v9517_v56 = vld [vmem:[%s12082_s6 + $0x160] sm:$0xff] }
 0x178   : > { %2343 = vmatpush.bf16.msrb.mxu0 %v9508_v31  ;;  %2502 = vmatpush.bf16.msrb.mxu2 %v9504_v48  ;;  %v9501_v58 = vld [vmem:[%s12082_s6 + $0x120] sm:$0xff] }
 0x179   : > { %v1767_v63 = vadd.f32 %v1763_v62, %v1749_v61  ;;  %v9516_v62 = vld [vmem:[%s12082_s6 + $0x158] sm:$0xff]  ;;  %2630 = vmatpush.bf16.msrb.mxu3 %v9536_v37  ;;  %v9533_v48 = vld [vmem:[%s12084_s8 + $0xe0] sm:$0xff] }
 0x17b   : > { %v1774_v3 = vadd.f32 %v9880_v29, %v1767_v63  ;;  %v9481_v29 = vld [vmem:[%s12109_s26 + $0xc0] sm:$0xff]  ;;  %v9515_v63 = vld [vmem:[%s12082_s6 + $0x150] sm:$0xff] }
 0x17c   : > { %2344 = vmatpush.bf16.msrb.mxu0 %v9507_v36  ;;  %2055 = vmatpush.bf16.msra.mxu1 %v9481_v29  ;;  %v9524_v36 = vld [vmem:[%s12084_s8 + $0x98] sm:$0xff] }
 0x17d   : > { %v1794_v8 = vpack.c.bf16 %v1774_v3, %v1773_v4  ;;  %2503 = vmatpush.bf16.msrb.mxu2 %v9503_v50  ;;  %2631 = vmatpush.bf16.msrb.mxu3 %v9535_v39 }
 0x180   : > { %2345 = vmatpush.bf16.msrb.mxu0 %v9506_v40  ;;  %2423 = vmatpush.bf16.msrb.mxu1 %v9520_v47  ;;  %v9522_v40 = vld [vmem:[%s12084_s8 + $0x88] sm:$0xff] }
 0x181   : > { %2504 = vmatpush.bf16.msrb.mxu2 %v9502_v53  ;;  %2632 = vmatpush.bf16.msrb.mxu3 %v9534_v41  ;;  %v9531_v53 = vld [vmem:[%s12084_s8 + $0xd0] sm:$0xff] }
 0x182   : > { %1873 = vmatmul.bf16.gmra.mxu3 %v1794_v8 }
 0x184   : > { %2346 = vmatpush.bf16.msrb.mxu0 %v9505_v46  ;;  %2424 = vmatpush.bf16.msrb.mxu1 %v9519_v49 }
 0x185   : > { %2505 = vmatpush.bf16.msrb.mxu2 %v9501_v58  ;;  %2633 = vmatpush.bf16.msrb.mxu3 %v9533_v48 }
 0x188   : > { %2425 = vmatpush.bf16.msrb.mxu1 %v9518_v52  ;;  %2697 = vmatpush.bf16.msra.mxu0 %v9528_v33 }
 0x189   : > { %2506 = vmatpush.bf16.msrb.mxu2 %v9500_v45  ;;  %v9529_v45 = vld [vmem:[%s12084_s8 + $0xc0] sm:$0xff] }
 0x18c   : > { %2426 = vmatpush.bf16.msrb.mxu1 %v9517_v56 }
 0x18d   : > { %2507 = vmatpush.bf16.msrb.mxu2 %v9499_v0 }
 0x190   : > { %2427 = vmatpush.bf16.msrb.mxu1 %v9516_v62 }
 0x191   : > { %2508 = vmatpush.bf16.msrb.mxu2 %v9498_v10 }
 0x194   : > { %2428 = vmatpush.bf16.msrb.mxu1 %v9515_v63 }
 0x195   : > { %2509 = vmatpush.bf16.msrb.mxu2 %v9497_v16 }
 0x198   : > { %2429 = vmatpush.bf16.msrb.mxu1 %v9514_v9 }
 0x19c   : > { %2430 = vmatpush.bf16.msrb.mxu1 %v9513_v15 }
 0x1db   : > { %v1936_v51 = vpop.f32.mrf.mxu0 }
 0x1e3   : > { %v1938_v61 = vpop.f32.mrf.mxu0 }
 0x1eb   : > { %v1941_v14 = vpop.f32.mrf.mxu0 }
 0x1f3   : > { %v1943_v24 = vpop.f32.mrf.mxu0 }
 0x1f5   : > { %v1869_v54 = vpop.f32.mrf.mxu3 }
 0x1f6   : > { %v1937_v59 = vadd.f32 %v1936_v51, %v1869_v54  ;;  %v9532_v51 = vld [vmem:[%s12084_s8 + $0xd8] sm:$0xff] }
 0x1f7   : > { %2634 = vmatpush.bf16.msrb.mxu3 %v9532_v51 }
 0x1f8   : > { %v1950_v3 = vadd.f32 %v9881_v60, %v1937_v59  ;;  %v9530_v59 = vld [vmem:[%s12084_s8 + $0xc8] sm:$0xff] }
 0x1fa   : > { %v1954_v11 = vmax.f32 %v1950_v3, 0.0 }
 0x1fb   : > { %2635 = vmatpush.bf16.msrb.mxu3 %v9531_v53 }
 0x1fc   : > { %v10558_v18 = vadd.f32 %v1954_v11, %v10271_v1 }
 0x1fd   : > { %v1871_v4 = vpop.f32.mrf.mxu3 }
 0x1fe   : > { %v1939_v8 = vadd.f32 %v1938_v61, %v1871_v4 }
 0x1ff   : > { %2636 = vmatpush.bf16.msrb.mxu3 %v9530_v59 }
 0x200   : > { %v1951_v12 = vadd.f32 %v9881_v60, %v1939_v8  ;;  %v10628_v8 = vsel %vm1044_vm7, 1.0, %v9961_v42 }
 0x202   : > { %v1955_v13 = vmax.f32 %v1951_v12, 0.0 }
 0x203   : > { %2637 = vmatpush.bf16.msrb.mxu3 %v9529_v45 }
 0x204   : > { %v10561_v19 = vadd.f32 %v1955_v13, %v10273_v2 }
 0x205   : > { %v1874_v20 = vpop.f32.mrf.mxu3 }
 0x206   : > { %v1962_v22 = vpack.c.bf16 %v10561_v19, %v10558_v18  ;;  %v1942_v21 = vadd.f32 %v1941_v14, %v1874_v20 }
 0x208   : > { %2056 = vmatmul.bf16.vlgmr.msra.gmra.mxu1 %v1962_v22  ;;  %2140 = vmatmul.bf16.vlgmr.msra.gmra.mxu2 %v1962_v22  ;;  %v1952_v23 = vadd.f32 %v9881_v60, %v1942_v21 }
 0x209   : > { %2220 = vmatmul.bf16.vlgmr.msra.gmra.mxu3 %v1962_v22  ;;  %2347 = vmatmul.bf16.vlgmr.msrb.gmra.mxu0 %v1962_v22 }
 0x20a   : > { %v1956_v1 = vmax.f32 %v1952_v23, 0.0 }
 0x20c   : > { %v10566_v2 = vadd.f32 %v1956_v1, %v10277_v6  ;;  %v9527_v6 = vld [vmem:[%s12084_s8 + $0xb0] sm:$0xff] }
 0x20d   : > { %v1876_v25 = vpop.f32.mrf.mxu3  ;;  %2698 = vmatpush.bf16.msra.mxu0 %v9527_v6 }
 0x20e   : > { %v1944_v26 = vadd.f32 %v1943_v24, %v1876_v25 }
 0x210   : > { %v1953_v27 = vadd.f32 %v9881_v60, %v1944_v26 }
 0x212   : > { %v1957_v28 = vmax.f32 %v1953_v27, 0.0 }
 0x214   : > { %v10569_v31 = vadd.f32 %v1957_v28, %v10279_v7  ;;  %v9526_v7 = vld [vmem:[%s12084_s8 + $0xa8] sm:$0xff] }
 0x215   : > { %2699 = vmatpush.bf16.msra.mxu0 %v9526_v7  ;;  %v10649_v7 = vsel %vm1083_vm10, 1.0, %v9961_v42 }
 0x216   : > { %v1963_v32 = vpack.c.bf16 %v10569_v31, %v10566_v2 }
 0x218   : > { %2061 = vmatmul.bf16.gmra.mxu1 %v1963_v32  ;;  %2145 = vmatmul.bf16.gmra.mxu2 %v1963_v32 }
 0x219   : > { %2225 = vmatmul.bf16.gmra.mxu3 %v1963_v32  ;;  %2352 = vmatmul.bf16.gmra.mxu0 %v1963_v32 }
 0x21a   : > { %2700 = vmatpush.bf16.msra.mxu0 %v9525_v35 }
 0x21e   : > { %2701 = vmatpush.bf16.msra.mxu0 %v9524_v36 }
 0x222   : > { %2702 = vmatpush.bf16.msra.mxu0 %v9523_v38 }
 0x226   : > { %2703 = vmatpush.bf16.msra.mxu0 %v9522_v40 }
 0x228   : > { %2431 = vmatmul.bf16.vlgmr.msrb.gmra.mxu1 %v1962_v22  ;;  %2510 = vmatmul.bf16.vlgmr.msrb.gmra.mxu2 %v1962_v22  ;;  %v9882_v22 = vld [vmem:[%s12081_s5 + $0x1] ss:$0 sm:$0xff] }
 0x22a   : > { %2704 = vmatpush.bf16.msra.mxu0 %v9521_v44 }
 0x238   : > { %2436 = vmatmul.bf16.gmra.mxu1 %v1963_v32  ;;  %2515 = vmatmul.bf16.gmra.mxu2 %v1963_v32 }
 0x285   : > { %v2057_v29 = vpop.f32.mrf.mxu1 }
 0x286   : > { %v10606_v46 = vpop.f32.mrf.mxu0  ;;  %v2151_v0 = vrot.slane %v2057_v29, 6 }
 0x287   : > { %v2442_v29 = vrot.slane %v10606_v46, 6 }
 0x28b   : > { %v2141_v47 = vpop.f32.mrf.mxu2 }
 0x28c   : > { %v2221_v50 = vpop.f32.mrf.mxu3  ;;  %v2231_v15 = vrot.slane %v2141_v47, 2 }
 0x28d   : > { %v2059_v49 = vpop.f32.mrf.mxu1 }
 0x28e   : > { %v10617_v54 = vpop.f32.mrf.mxu0  ;;  %v2152_v61 = vrot.slane %v2059_v49, 6 }
 0x28f   : > { %v2443_v51 = vrot.slane %v10617_v54, 6  ;;  %v9883_v54 = vld [vmem:[%s12083_s7 + $0x1] ss:$0 sm:$0xff] }
 0x290   : > { %v2158_v10 = vsel %vm2155_vm8, %v2151_v0, %v2152_v61 }
 0x293   : > { %v2143_v52 = vpop.f32.mrf.mxu2 }
 0x294   : > { %v2223_v58 = vpop.f32.mrf.mxu3  ;;  %v2232_v3 = vrot.slane %v2143_v52, 2 }
 0x295   : > { %v2062_v56 = vpop.f32.mrf.mxu1  ;;  %v2224_v13 = vadd.f32 %v2223_v58, %v2158_v10 }
 0x296   : > { %v10631_v9 = vpop.f32.mrf.mxu0  ;;  %v2238_v24 = vsel %vm2235_vm9, %v2231_v15, %v2232_v3  ;;  %v2153_v36 = vrot.slane %v2062_v56, 6 }
 0x298   : > { %v2157_v44 = vsel %vm2155_vm8, %v2152_v61, %v2153_v36 }
 0x29b   : > { %v2146_v60 = vpop.f32.mrf.mxu2 }
 0x29c   : > { %v2233_v62 = vrot.slane %v2146_v60, 2  ;;  %v2226_v16 = vpop.f32.mrf.mxu3 }
 0x29d   : > { %v2064_v63 = vpop.f32.mrf.mxu1  ;;  %v2227_v49 = vadd.f32 %v2226_v16, %v2157_v44  ;;  %v9550_v44 = vld [vmem:[%s12109_s26 + $0x1a8] sm:$0xff] }
 0x29e   : > { %v2154_v4 = vrot.slane %v2064_v63, 6  ;;  %v2237_v11 = vsel %vm2235_vm9, %v2232_v3, %v2233_v62  ;;  %v2355_v32 = vpop.f32.mrf.mxu0 }
 0x29f   : > { %v2245_v20 = vadd.f32 %v2237_v11, %v2224_v13  ;;  %v2445_v37 = vrot.slane %v2355_v32, 6 }
 0x2a0   : > { %v2159_v12 = vsel %vm2155_vm8, %v2154_v4, %v2151_v0  ;;  %v2156_v57 = vsel %vm2155_vm8, %v2153_v36, %v2154_v4  ;;  %v9552_v36 = vld [vmem:[%s12109_s26 + $0x1b8] sm:$0xff] }
 0x2a1   : > { %v2160_v14 = vmul.f32 %v10628_v8, %v2159_v12  ;;  %v2252_v27 = vadd.f32 %v9882_v22, %v2245_v20  ;;  %v2449_v47 = vsel %vm2155_vm8, %v2445_v37, %v2442_v29  ;;  %2819 = vmatpush.bf16.msra.mxu1 %v9552_v36  ;;  %v9578_v36 = vld [vmem:[%s12082_s6 + $0x208] sm:$0xff] }
 0x2a2   : > { %v2450_v46 = vmul.f32 %v10628_v8, %v2449_v47  ;;  %v9542_v47 = vld [vmem:[%s12109_s26 + $0x1e8] sm:$0xff] }
 0x2a3   : > { %v2148_v21 = vpop.f32.mrf.mxu2  ;;  %v2222_v23 = vadd.f32 %v2221_v50, %v2160_v14 }
 0x2a4   : > { %v2234_v1 = vrot.slane %v2148_v21, 2  ;;  %v2228_v38 = vpop.f32.mrf.mxu3  ;;  %v2444_v21 = vrot.slane %v10631_v9, 6 }
 0x2a5   : > { %v2432_v25 = vpop.f32.mrf.mxu1  ;;  %v2244_v26 = vadd.f32 %v2238_v24, %v2222_v23  ;;  %v2229_v41 = vadd.f32 %v2228_v38, %v2156_v57  ;;  %v9544_v38 = vld [vmem:[%s12109_s26 + $0x1f8] sm:$0xff]  ;;  %v9543_v57 = vld [vmem:[%s12109_s26 + $0x1f0] sm:$0xff] }
 0x2a6   : > { %v2239_v6 = vsel %vm2235_vm9, %v2234_v1, %v2231_v15  ;;  %v2236_v42 = vsel %vm2235_vm9, %v2233_v62, %v2234_v1  ;;  %v2521_v52 = vrot.slane %v2432_v25, 2  ;;  %v2448_v62 = vsel %vm2155_vm8, %v2442_v29, %v2443_v51  ;;  %2982 = vmatpush.bf16.msra.mxu3 %v9544_v38  ;;  %v9559_v29 = vld [vmem:[%s12109_s26 + $0x230] sm:$0xff] }
 0x2a7   : > { %v2251_v28 = vadd.f32 %v9882_v22, %v2244_v26  ;;  %v2243_v39 = vmul.f32 %v10649_v7, %v2239_v6  ;;  %v2246_v56 = vadd.f32 %v2236_v42, %v2227_v49  ;;  %v2447_v25 = vsel %vm2155_vm8, %v2443_v51, %v2444_v21  ;;  %v9558_v42 = vld [vmem:[%s12109_s26 + $0x228] sm:$0xff]  ;;  %v9549_v49 = vld [vmem:[%s12109_s26 + $0x1a0] sm:$0xff] }
 0x2a8   : > { %v9541_v51 = vld [vmem:[%s12109_s26 + $0x1e0] sm:$0xff] }
 0x2a9   : > { %v2544_v33 = vpack.c.bf16 %v2252_v27, %v2251_v28  ;;  %v2247_v50 = vadd.f32 %v2243_v39, %v2229_v41  ;;  %v2253_v3 = vadd.f32 %v9882_v22, %v2246_v56  ;;  %v9576_v39 = vld [vmem:[%s12082_s6 + $0x1b8] sm:$0xff]  ;;  %v9575_v41 = vld [vmem:[%s12082_s6 + $0x1b0] sm:$0xff] }
 0x2aa   : > { %3108 = vmatpush.bf16.msrb.mxu0 %v9576_v39  ;;  %2983 = vmatpush.bf16.msra.mxu3 %v9543_v57  ;;  %v9540_v56 = vld [vmem:[%s12109_s26 + $0x1d8] sm:$0xff]  ;;  %v9577_v57 = vld [vmem:[%s12082_s6 + $0x200] sm:$0xff] }
 0x2ab   : > { %v2511_v35 = vpop.f32.mrf.mxu2  ;;  %2705 = vmatmul.bf16.vlgmr.msra.gmra.mxu0 %v2544_v33  ;;  %v2254_v61 = vadd.f32 %v9882_v22, %v2247_v50  ;;  %v2446_v22 = vsel %vm2155_vm8, %v2444_v21, %v2445_v37  ;;  %v9560_v37 = vld [vmem:[%s12109_s26 + $0x238] sm:$0xff]  ;;  %v9557_v50 = vld [vmem:[%s12109_s26 + $0x220] sm:$0xff]  ;;  %v9566_v21 = vld [vmem:[%s12082_s6 + $0x1e8] sm:$0xff] }
 0x2ac   : > { %v2512_v59 = vadd.f32 %v2511_v35, %v2450_v46  ;;  %2903 = vmatpush.bf16.msra.mxu2 %v9560_v37  ;;  %v9548_v46 = vld [vmem:[%s12109_s26 + $0x198] sm:$0xff]  ;;  %v9562_v37 = vld [vmem:[%s12082_s6 + $0x1c8] sm:$0xff] }
 0x2ad   : > { %v2434_v40 = vpop.f32.mrf.mxu1  ;;  %v2545_v11 = vpack.c.bf16 %v2254_v61, %v2253_v3  ;;  %v9539_v61 = vld [vmem:[%s12109_s26 + $0x1d0] sm:$0xff]  ;;  %v9545_v3 = vld [vmem:[%s12109_s26 + $0x180] sm:$0xff] }
 0x2ae   : > { %v2522_v48 = vrot.slane %v2434_v40, 2  ;;  %v9551_v40 = vld [vmem:[%s12109_s26 + $0x1b0] sm:$0xff]  ;;  %3109 = vmatpush.bf16.msrb.mxu0 %v9575_v41  ;;  %2984 = vmatpush.bf16.msra.mxu3 %v9542_v47  ;;  %v9561_v41 = vld [vmem:[%s12082_s6 + $0x1c0] sm:$0xff] }
 0x2af   : > { %2820 = vmatpush.bf16.msra.mxu1 %v9551_v40 }
 0x2b0   : > { %v2527_v58 = vsel %vm2235_vm9, %v2521_v52, %v2522_v48  ;;  %2904 = vmatpush.bf16.msra.mxu2 %v9559_v29 }
 0x2b1   : > { %v2533_v63 = vadd.f32 %v2527_v58, %v2512_v59  ;;  %v9572_v58 = vld [vmem:[%s12082_s6 + $0x198] sm:$0xff]  ;;  %v9547_v59 = vld [vmem:[%s12109_s26 + $0x190] sm:$0xff] }
 0x2b2   : > { %2985 = vmatpush.bf16.msra.mxu3 %v9541_v51 }
 0x2b3   : > { %v2513_v53 = vpop.f32.mrf.mxu2  ;;  %v2540_v12 = vadd.f32 %v9883_v54, %v2533_v63  ;;  %2821 = vmatpush.bf16.msra.mxu1 %v9550_v44  ;;  %v9554_v63 = vld [vmem:[%s12109_s26 + $0x208] sm:$0xff] }
 0x2b4   : > { %v2514_v0 = vadd.f32 %v2513_v53, %v2448_v62  ;;  %2905 = vmatpush.bf16.msra.mxu2 %v9558_v42  ;;  %v9556_v53 = vld [vmem:[%s12109_s26 + $0x218] sm:$0xff]  ;;  %v9571_v62 = vld [vmem:[%s12082_s6 + $0x190] sm:$0xff] }
 0x2b5   : > { %v2437_v60 = vpop.f32.mrf.mxu1 }
 0x2b6   : > { %v2523_v45 = vrot.slane %v2437_v60, 2  ;;  %2986 = vmatpush.bf16.msra.mxu3 %v9540_v56  ;;  %v9555_v60 = vld [vmem:[%s12109_s26 + $0x210] sm:$0xff] }
 0x2b7   : > { %2822 = vmatpush.bf16.msra.mxu1 %v9549_v49 }
 0x2b8   : > { %v2526_v4 = vsel %vm2235_vm9, %v2522_v48, %v2523_v45  ;;  %v9574_v48 = vld [vmem:[%s12082_s6 + $0x1a8] sm:$0xff]  ;;  %2906 = vmatpush.bf16.msra.mxu2 %v9557_v50 }
 0x2b9   : > { %v2534_v10 = vadd.f32 %v2526_v4, %v2514_v0  ;;  %3110 = vmatpush.bf16.msrb.mxu0 %v9574_v48  ;;  %v9570_v0 = vld [vmem:[%s12082_s6 + $0x188] sm:$0xff]  ;;  %v9553_v4 = vld [vmem:[%s12109_s26 + $0x200] sm:$0xff] }
 0x2ba   : > { %2987 = vmatpush.bf16.msra.mxu3 %v9539_v61  ;;  %v9589_v61 = vld [vmem:[%s12084_s8 + $0x120] sm:$0xff] }
 0x2bb   : > { %v2541_v13 = vadd.f32 %v9883_v54, %v2534_v10  ;;  %v2516_v14 = vpop.f32.mrf.mxu2  ;;  %2710 = vmatmul.bf16.gmra.mxu0 %v2545_v11  ;;  %2823 = vmatpush.bf16.msra.mxu1 %v9548_v46  ;;  %v9537_v10 = vld [vmem:[%s12109_s26 + $0x1c0] sm:$0xff] }
 0x2bc   : > { %v2517_v28 = vadd.f32 %v2516_v14, %v2447_v25  ;;  %2907 = vmatpush.bf16.msra.mxu2 %v9556_v53  ;;  %v9569_v11 = vld [vmem:[%s12082_s6 + $0x180] sm:$0xff]  ;;  %v9583_v14 = vld [vmem:[%s12082_s6 + $0x230] sm:$0xff] }
 0x2bd   : > { %v2439_v15 = vpop.f32.mrf.mxu1  ;;  %v2563_v16 = vpack.c.bf16 %v2541_v13, %v2540_v12  ;;  %v9584_v12 = vld [vmem:[%s12082_s6 + $0x238] sm:$0xff] }
 0x2be   : > { %v2524_v20 = vrot.slane %v2439_v15, 2  ;;  %v9568_v13 = vld [vmem:[%s12082_s6 + $0x1f8] sm:$0xff]  ;;  %v9567_v15 = vld [vmem:[%s12082_s6 + $0x1f0] sm:$0xff] }
 0x2bf   : > { %2638 = vmatmul.bf16.vlgmr.msrb.gmra.mxu3 %v2563_v16  ;;  %2824 = vmatpush.bf16.msra.mxu1 %v9547_v59 }
 0x2c0   : > { %v2528_v23 = vsel %vm2235_vm9, %v2524_v20, %v2521_v52  ;;  %v2525_v26 = vsel %vm2235_vm9, %v2523_v45, %v2524_v20  ;;  %v9573_v52 = vld [vmem:[%s12082_s6 + $0x1a0] sm:$0xff]  ;;  %2908 = vmatpush.bf16.msra.mxu2 %v9555_v60  ;;  %v9546_v45 = vld [vmem:[%s12109_s26 + $0x188] sm:$0xff]  ;;  %v9592_v60 = vld [vmem:[%s12084_s8 + $0x138] sm:$0xff] }
 0x2c1   : > { %v2532_v27 = vmul.f32 %v10649_v7, %v2528_v23  ;;  %v2535_v33 = vadd.f32 %v2525_v26, %v2517_v28  ;;  %3111 = vmatpush.bf16.msrb.mxu0 %v9573_v52  ;;  %v9582_v20 = vld [vmem:[%s12082_s6 + $0x228] sm:$0xff]  ;;  %v9884_v26 = vld [vmem:[%s12085_s9 + $0x1] ss:$0 sm:$0xff]  ;;  %v9564_v28 = vld [vmem:[%s12082_s6 + $0x1d8] sm:$0xff] }
 0x2c3   : > { %v2518_v24 = vpop.f32.mrf.mxu2  ;;  %v2542_v6 = vadd.f32 %v9883_v54, %v2535_v33  ;;  %2825 = vmatpush.bf16.msra.mxu1 %v9546_v45  ;;  %v9563_v33 = vld [vmem:[%s12082_s6 + $0x1d0] sm:$0xff]  ;;  %v9600_v45 = vld [vmem:[%s12084_s8 + $0x178] sm:$0xff] }
 0x2c4   : > { %v2519_v1 = vadd.f32 %v2518_v24, %v2446_v22  ;;  %2909 = vmatpush.bf16.msra.mxu2 %v9554_v63  ;;  %v9581_v22 = vld [vmem:[%s12082_s6 + $0x220] sm:$0xff]  ;;  %v9587_v63 = vld [vmem:[%s12084_s8 + $0x110] sm:$0xff] }
 0x2c5   : > { %3112 = vmatpush.bf16.msrb.mxu0 %v9572_v58  ;;  %v9565_v24 = vld [vmem:[%s12082_s6 + $0x1e0] sm:$0xff] }
 0x2c6   : > { %v2536_v32 = vadd.f32 %v2532_v27, %v2519_v1  ;;  %v9580_v27 = vld [vmem:[%s12082_s6 + $0x218] sm:$0xff] }
 0x2c7   : > { %2826 = vmatpush.bf16.msra.mxu1 %v9545_v3 }
 0x2c8   : > { %v2543_v9 = vadd.f32 %v9883_v54, %v2536_v32  ;;  %v9538_v54 = vld [vmem:[%s12109_s26 + $0x1c8] sm:$0xff]  ;;  %2910 = vmatpush.bf16.msra.mxu2 %v9553_v4  ;;  %v9579_v32 = vld [vmem:[%s12082_s6 + $0x210] sm:$0xff] }
 0x2c9   : > { %3113 = vmatpush.bf16.msrb.mxu0 %v9571_v62  ;;  %2988 = vmatpush.bf16.msra.mxu3 %v9538_v54  ;;  %v9588_v62 = vld [vmem:[%s12084_s8 + $0x118] sm:$0xff]  ;;  %v9599_v54 = vld [vmem:[%s12084_s8 + $0x170] sm:$0xff]  ;;  %v9598_v4 = vld [vmem:[%s12084_s8 + $0x168] sm:$0xff] }
 0x2ca   : > { %v2564_v35 = vpack.c.bf16 %v2543_v9, %v2542_v6 }
 0x2cb   : > { %3192 = vmatpush.bf16.msrb.mxu1 %v9584_v12 }
 0x2cc   : > { %3271 = vmatpush.bf16.msrb.mxu2 %v9568_v13  ;;  %v9597_v13 = vld [vmem:[%s12084_s8 + $0x160] sm:$0xff] }
 0x2cd   : > { %3114 = vmatpush.bf16.msrb.mxu0 %v9570_v0  ;;  %2989 = vmatpush.bf16.msra.mxu3 %v9537_v10  ;;  %v9586_v0 = vld [vmem:[%s12084_s8 + $0x108] sm:$0xff]  ;;  %v9585_v10 = vld [vmem:[%s12084_s8 + $0x100] sm:$0xff] }
 0x2cf   : > { %2643 = vmatmul.bf16.gmra.mxu3 %v2564_v35  ;;  %3193 = vmatpush.bf16.msrb.mxu1 %v9583_v14 }
 0x2d0   : > { %3272 = vmatpush.bf16.msrb.mxu2 %v9567_v15 }
 0x2d1   : > { %3115 = vmatpush.bf16.msrb.mxu0 %v9569_v11  ;;  %3399 = vmatpush.bf16.msrb.mxu3 %v9600_v45 }
 0x2d3   : > { %3194 = vmatpush.bf16.msrb.mxu1 %v9582_v20 }
 0x2d4   : > { %3273 = vmatpush.bf16.msrb.mxu2 %v9566_v21  ;;  %v9595_v21 = vld [vmem:[%s12084_s8 + $0x150] sm:$0xff] }
 0x2d5   : > { %3466 = vmatpush.bf16.msra.mxu0 %v9592_v60  ;;  %3400 = vmatpush.bf16.msrb.mxu3 %v9599_v54 }
 0x2d7   : > { %3195 = vmatpush.bf16.msrb.mxu1 %v9581_v22 }
 0x2d8   : > { %3274 = vmatpush.bf16.msrb.mxu2 %v9565_v24 }
 0x2d9   : > { %3401 = vmatpush.bf16.msrb.mxu3 %v9598_v4 }
 0x2db   : > { %3196 = vmatpush.bf16.msrb.mxu1 %v9580_v27 }
 0x2dc   : > { %3275 = vmatpush.bf16.msrb.mxu2 %v9564_v28  ;;  %v9593_v28 = vld [vmem:[%s12084_s8 + $0x140] sm:$0xff] }
 0x2dd   : > { %3402 = vmatpush.bf16.msrb.mxu3 %v9597_v13 }
 0x2df   : > { %3197 = vmatpush.bf16.msrb.mxu1 %v9579_v32 }
 0x2e0   : > { %3276 = vmatpush.bf16.msrb.mxu2 %v9563_v33 }
 0x2e3   : > { %3198 = vmatpush.bf16.msrb.mxu1 %v9578_v36 }
 0x2e4   : > { %3277 = vmatpush.bf16.msrb.mxu2 %v9562_v37 }
 0x2e7   : > { %3199 = vmatpush.bf16.msrb.mxu1 %v9577_v57 }
 0x2e8   : > { %3278 = vmatpush.bf16.msrb.mxu2 %v9561_v41 }
 0x328   : > { %v2706_v16 = vpop.f32.mrf.mxu0 }
 0x330   : > { %v2708_v1 = vpop.f32.mrf.mxu0 }
 0x338   : > { %v2711_v29 = vpop.f32.mrf.mxu0 }
 0x340   : > { %v2713_v51 = vpop.f32.mrf.mxu0 }
 0x342   : > { %v2639_v23 = vpop.f32.mrf.mxu3 }
 0x343   : > { %v2707_v25 = vadd.f32 %v2706_v16, %v2639_v23  ;;  %v9596_v16 = vld [vmem:[%s12084_s8 + $0x158] sm:$0xff] }
 0x344   : > { %3403 = vmatpush.bf16.msrb.mxu3 %v9596_v16 }
 0x345   : > { %v2721_v9 = vadd.f32 %v9884_v26, %v2707_v25  ;;  %v9594_v25 = vld [vmem:[%s12084_s8 + $0x148] sm:$0xff] }
 0x347   : > { %v2725_v38 = vmax.f32 %v2721_v9, 0.0 }
 0x348   : > { %3404 = vmatpush.bf16.msrb.mxu3 %v9595_v21 }
 0x349   : > { %v10830_v44 = vadd.f32 %v2725_v38, %v10558_v18 }
 0x34a   : > { %v2641_v6 = vpop.f32.mrf.mxu3 }
 0x34b   : > { %v2709_v35 = vadd.f32 %v2708_v1, %v2641_v6 }
 0x34c   : > { %3405 = vmatpush.bf16.msrb.mxu3 %v9594_v25 }
 0x34d   : > { %v2722_v39 = vadd.f32 %v9884_v26, %v2709_v35 }
 0x34f   : > { %v2726_v40 = vmax.f32 %v2722_v39, 0.0 }
 0x350   : > { %3406 = vmatpush.bf16.msrb.mxu3 %v9593_v28 }
 0x351   : > { %v10833_v42 = vadd.f32 %v2726_v40, %v10561_v19 }
 0x352   : > { %v2644_v47 = vpop.f32.mrf.mxu3 }
 0x353   : > { %v2733_v48 = vpack.c.bf16 %v10833_v42, %v10830_v44  ;;  %v2712_v49 = vadd.f32 %v2711_v29, %v2644_v47  ;;  %v9885_v47 = vld [vmem:[%s12081_s5 + $0x2] ss:$0 sm:$0xff] }
 0x355   : > { %2827 = vmatmul.bf16.vlgmr.msra.gmra.mxu1 %v2733_v48  ;;  %2911 = vmatmul.bf16.vlgmr.msra.gmra.mxu2 %v2733_v48  ;;  %v2723_v50 = vadd.f32 %v9884_v26, %v2712_v49 }
 0x356   : > { %2990 = vmatmul.bf16.vlgmr.msra.gmra.mxu3 %v2733_v48  ;;  %3116 = vmatmul.bf16.vlgmr.msrb.gmra.mxu0 %v2733_v48 }
 0x357   : > { %v2727_v18 = vmax.f32 %v2723_v50, 0.0 }
 0x359   : > { %v10838_v19 = vadd.f32 %v2727_v18, %v10566_v2  ;;  %v9591_v2 = vld [vmem:[%s12084_s8 + $0x130] sm:$0xff] }
 0x35a   : > { %v2646_v52 = vpop.f32.mrf.mxu3  ;;  %3467 = vmatpush.bf16.msra.mxu0 %v9591_v2 }
 0x35b   : > { %v2714_v46 = vadd.f32 %v2713_v51, %v2646_v52 }
 0x35d   : > { %v2724_v53 = vadd.f32 %v9884_v26, %v2714_v46 }
 0x35f   : > { %v2728_v56 = vmax.f32 %v2724_v53, 0.0 }
 0x361   : > { %v10841_v58 = vadd.f32 %v2728_v56, %v10569_v31  ;;  %v9590_v31 = vld [vmem:[%s12084_s8 + $0x128] sm:$0xff] }
 0x362   : > { %3468 = vmatpush.bf16.msra.mxu0 %v9590_v31 }
 0x363   : > { %v2734_v59 = vpack.c.bf16 %v10841_v58, %v10838_v19 }
 0x365   : > { %2832 = vmatmul.bf16.gmra.mxu1 %v2734_v59  ;;  %2916 = vmatmul.bf16.gmra.mxu2 %v2734_v59 }
 0x366   : > { %2995 = vmatmul.bf16.gmra.mxu3 %v2734_v59  ;;  %3121 = vmatmul.bf16.gmra.mxu0 %v2734_v59 }
 0x367   : > { %3469 = vmatpush.bf16.msra.mxu0 %v9589_v61 }
 0x36b   : > { %3470 = vmatpush.bf16.msra.mxu0 %v9588_v62 }
 0x36f   : > { %3471 = vmatpush.bf16.msra.mxu0 %v9587_v63 }
 0x373   : > { %3472 = vmatpush.bf16.msra.mxu0 %v9586_v0 }
 0x375   : > { %3200 = vmatmul.bf16.vlgmr.msrb.gmra.mxu1 %v2733_v48  ;;  %3279 = vmatmul.bf16.vlgmr.msrb.gmra.mxu2 %v2733_v48 }
 0x377   : > { %3473 = vmatpush.bf16.msra.mxu0 %v9585_v10 }
 0x385   : > { %3205 = vmatmul.bf16.gmra.mxu1 %v2734_v59  ;;  %3284 = vmatmul.bf16.gmra.mxu2 %v2734_v59 }
 0x3d2   : > { %v2828_v3 = vpop.f32.mrf.mxu1 }
 0x3d3   : > { %v10878_v11 = vpop.f32.mrf.mxu0  ;;  %v2922_v33 = vrot.slane %v2828_v3, 7 }
 0x3d4   : > { %v3211_v54 = vrot.slane %v10878_v11, 4 }
 0x3d8   : > { %v2912_v12 = vpop.f32.mrf.mxu2 }
 0x3d9   : > { %v2991_v15 = vpop.f32.mrf.mxu3  ;;  %v3001_v29 = vrot.slane %v2912_v12, 1 }
 0x3da   : > { %v2830_v14 = vpop.f32.mrf.mxu1 }
 0x3db   : > { %v10889_v23 = vpop.f32.mrf.mxu0  ;;  %v2923_v1 = vrot.slane %v2830_v14, 7 }
 0x3dc   : > { %v3212_v16 = vrot.slane %v10889_v23, 4  ;;  %v9886_v23 = vld [vmem:[%s12083_s7 + $0x2] ss:$0 sm:$0xff] }
 0x3dd   : > { %v2928_v36 = vsel %vm1675_vm4, %v2922_v33, %v2923_v1 }
 0x3e0   : > { %v2914_v20 = vpop.f32.mrf.mxu2 }
 0x3e1   : > { %v2993_v24 = vpop.f32.mrf.mxu3  ;;  %v3002_v9 = vrot.slane %v2914_v20, 1 }
 0x3e2   : > { %v2833_v22 = vpop.f32.mrf.mxu1  ;;  %v2994_v39 = vadd.f32 %v2993_v24, %v2928_v36 }
 0x3e3   : > { %v10897_v35 = vpop.f32.mrf.mxu0  ;;  %v3007_v50 = vsel %vm1755_vm5, %v3001_v29, %v3002_v9  ;;  %v2924_v31 = vrot.slane %v2833_v22, 7 }
 0x3e5   : > { %v2927_v4 = vsel %vm1675_vm4, %v2923_v1, %v2924_v31 }
 0x3e8   : > { %v2917_v26 = vpop.f32.mrf.mxu2 }
 0x3e9   : > { %v3003_v27 = vrot.slane %v2917_v26, 1  ;;  %v2996_v57 = vpop.f32.mrf.mxu3 }
 0x3ea   : > { %v2835_v32 = vpop.f32.mrf.mxu1  ;;  %v2997_v14 = vadd.f32 %v2996_v57, %v2927_v4  ;;  %v1003_v4 = vld [vmem:[%s910_s0] sm:$0xff] }
 0x3eb   : > { %v2925_v6 = vrot.slane %v2835_v32, 7  ;;  %v3006_v37 = vsel %vm1755_vm5, %v3002_v9, %v3003_v27  ;;  %v3124_v56 = vpop.f32.mrf.mxu0 }
 0x3ec   : > { %v3014_v41 = vadd.f32 %v3006_v37, %v2994_v39  ;;  %v3214_v61 = vrot.slane %v3124_v56, 4 }
 0x3ed   : > { %v2929_v38 = vsel %vm1675_vm4, %v2925_v6, %v2922_v33  ;;  %v2926_v0 = vsel %vm1675_vm4, %v2924_v31, %v2925_v6  ;;  %v9608_v31 = vld [vmem:[%s12086_s10 + $0x38] sm:$0xff] }
 0x3ee   : > { %v2930_v40 = vmul.f32 %v10375_v17, %v2929_v38  ;;  %v3021_v18 = vadd.f32 %v9885_v47, %v3014_v41  ;;  %v3218_v12 = vsel %vm1387_vm1, %v3214_v61, %v3211_v54  ;;  %3572 = vmatpush.bf16.msra.mxu1 %v9608_v31 }
 0x3ef   : > { %v3219_v21 = vmul.f32 %v10344_v43, %v3218_v12 }
 0x3f0   : > { %v2992_v48 = vadd.f32 %v2991_v15, %v2930_v40  ;;  %v2919_v49 = vpop.f32.mrf.mxu2 }
 0x3f1   : > { %v3004_v46 = vrot.slane %v2919_v49, 1  ;;  %v2998_v62 = vpop.f32.mrf.mxu3 }
 0x3f2   : > { %v3013_v51 = vadd.f32 %v3007_v50, %v2992_v48  ;;  %v3201_v52 = vpop.f32.mrf.mxu1  ;;  %v2999_v3 = vadd.f32 %v2998_v62, %v2926_v0  ;;  %v3213_v48 = vrot.slane %v10897_v35, 4  ;;  %v9606_v62 = vld [vmem:[%s12086_s10 + $0x28] sm:$0xff] }
 0x3f3   : > { %v3008_v60 = vsel %vm1755_vm5, %v3004_v46, %v3001_v29  ;;  %v3005_v10 = vsel %vm1755_vm5, %v3003_v27, %v3004_v46  ;;  %v3290_v20 = vrot.slane %v3201_v52, 4  ;;  %v3217_v27 = vsel %vm1387_vm1, %v3211_v54, %v3212_v16  ;;  %v9603_v54 = vld [vmem:[%s12086_s10 + $0x10] sm:$0xff]  ;;  %v9602_v0 = vld [vmem:[%s12086_s10 + $0x8] sm:$0xff] }
 0x3f4   : > { %v3020_v53 = vadd.f32 %v9885_v47, %v3013_v51  ;;  %v3012_v45 = vmul.f32 %v10401_v55, %v3008_v60  ;;  %v3015_v11 = vadd.f32 %v3005_v10, %v2997_v14  ;;  %v3216_v51 = vsel %vm1387_vm1, %v3212_v16, %v3213_v48  ;;  %v9887_v16 = vld [vmem:[%s12085_s9 + $0x2] ss:$0 sm:$0xff] }
 0x3f5   : > { %v9962_v10 = vmov 0  }
 0x3f6   : > { %v3313_v59 = vpack.c.bf16 %v3021_v18, %v3020_v53  ;;  %v3016_v15 = vadd.f32 %v3012_v45, %v2999_v3  ;;  %v3022_v9 = vadd.f32 %v9885_v47, %v3015_v11  ;;  %v9605_v45 = vld [vmem:[%s12086_s10 + $0x20] sm:$0xff]  ;;  %9876 = vset.pattern.permute.xlu0 %v9962_v10  ;;  %9877 = vset.pattern.permute.xlu1 %v9962_v10 }
 0x3f7   : > { %v9601_v3 = vld [vmem:[%s12086_s10] sm:$0xff]  ;;  %1009 = vperm.xlu0 %9876, %v1003_v4   ;;  %v9616_v4 = vld [vmem:[%s12088_s12 + $0x38] sm:$0xff] }
 0x3f8   : > { %v3280_v2 = vpop.f32.mrf.mxu2  ;;  %3474 = vmatmul.bf16.vlgmr.msra.gmra.mxu0 %v3313_v59  ;;  %v3023_v25 = vadd.f32 %v9885_v47, %v3016_v15  ;;  %v3215_v47 = vsel %vm1387_vm1, %v3213_v48, %v3214_v61  ;;  %v9607_v61 = vld [vmem:[%s12086_s10 + $0x30] sm:$0xff]  ;;  %3765 = vmatpush.bf16.msra.mxu2 %v9616_v4  ;;  %v9622_v4 = vld [vmem:[%s12090_s14 + $0x68] sm:$0xff] }
 0x3f9   : > { %v3281_v26 = vadd.f32 %v3280_v2, %v3219_v21  ;;  %3573 = vmatpush.bf16.msra.mxu1 %v9607_v61 }
 0x3fa   : > { %v3203_v63 = vpop.f32.mrf.mxu1  ;;  %v3314_v37 = vpack.c.bf16 %v3023_v25, %v3022_v9  ;;  %v1006_v25 = vld [vmem:[%s910_s0 + $0x18] sm:$0xff] }
 0x3fb   : > { %v3291_v13 = vrot.slane %v3203_v63, 4  ;;  %v9604_v63 = vld [vmem:[%s12086_s10 + $0x18] sm:$0xff] }
 0x3fd   : > { %v3296_v24 = vsel %vm1387_vm1, %v3290_v20, %v3291_v13  ;;  %3574 = vmatpush.bf16.msra.mxu1 %v9606_v62 }
 0x3fe   : > { %v3302_v32 = vadd.f32 %v3296_v24, %v3281_v26 }
 0x400   : > { %v3282_v22 = vpop.f32.mrf.mxu2  ;;  %v3309_v38 = vadd.f32 %v9886_v23, %v3302_v32 }
 0x401   : > { %v3283_v33 = vadd.f32 %v3282_v22, %v3217_v27  ;;  %3575 = vmatpush.bf16.msra.mxu1 %v9605_v45 }
 0x402   : > { %v3206_v1 = vpop.f32.mrf.mxu1 }
 0x403   : > { %v3292_v28 = vrot.slane %v3206_v1, 4 }
 0x405   : > { %v3295_v6 = vsel %vm1387_vm1, %v3291_v13, %v3292_v28  ;;  %3576 = vmatpush.bf16.msra.mxu1 %v9604_v63  ;;  %v1004_v13 = vld [vmem:[%s910_s0 + $0x8] sm:$0xff] }
 0x406   : > { %v3303_v36 = vadd.f32 %v3295_v6, %v3283_v33  ;;  %1014 = vperm.xlu0 %9876, %v1004_v13  }
 0x408   : > { %v3310_v39 = vadd.f32 %v9886_v23, %v3303_v36  ;;  %v3285_v40 = vpop.f32.mrf.mxu2  ;;  %3479 = vmatmul.bf16.gmra.mxu0 %v3314_v37 }
 0x409   : > { %v3286_v53 = vadd.f32 %v3285_v40, %v3216_v51  ;;  %3577 = vmatpush.bf16.msra.mxu1 %v9603_v54 }
 0x40a   : > { %v3208_v29 = vpop.f32.mrf.mxu1  ;;  %v3332_v57 = vpack.c.bf16 %v3310_v39, %v3309_v38 }
 0x40b   : > { %v3293_v41 = vrot.slane %v3208_v29, 4 }
 0x40c   : > { %3407 = vmatmul.bf16.vlgmr.msrb.gmra.mxu3 %v3332_v57 }
 0x40d   : > { %v3297_v49 = vsel %vm1387_vm1, %v3293_v41, %v3290_v20  ;;  %v3294_v52 = vsel %vm1387_vm1, %v3292_v28, %v3293_v41  ;;  %3578 = vmatpush.bf16.msra.mxu1 %v9602_v0  ;;  %v1005_v20 = vld [vmem:[%s910_s0 + $0x10] sm:$0xff] }
 0x40e   : > { %v3301_v18 = vmul.f32 %v10367_v5, %v3297_v49  ;;  %v3304_v59 = vadd.f32 %v3294_v52, %v3286_v53  ;;  %1019 = vperm.xlu1 %9877, %v1005_v20  }
 0x410   : > { %v3287_v50 = vpop.f32.mrf.mxu2  ;;  %v3311_v60 = vadd.f32 %v9886_v23, %v3304_v59 }
 0x411   : > { %v3288_v46 = vadd.f32 %v3287_v50, %v3215_v47  ;;  %3579 = vmatpush.bf16.msra.mxu1 %v9601_v3 }
 0x413   : > { %v3305_v56 = vadd.f32 %v3301_v18, %v3288_v46 }
 0x415   : > { %v3312_v35 = vadd.f32 %v9886_v23, %v3305_v56 }
 0x416   : > { %1024 = vperm.xlu1 %9877, %v1006_v25  }
 0x417   : > { %v3333_v2 = vpack.c.bf16 %v3312_v35, %v3311_v60 }
 0x41c   : > { %3412 = vmatmul.bf16.gmra.mxu3 %v3333_v2 }
 0x469   : > { %v10987_v47 = vpop.permute.xlu0 %1009 }
 0x475   : > { %v3475_v12 = vpop.f32.mrf.mxu0 }
 0x478   : > { %v10999_v46 = vpop.permute.xlu0 %1014 }
 0x47d   : > { %v3477_v11 = vpop.f32.mrf.mxu0 }
 0x480   : > { %v11005_v56 = vpop.permute.xlu1 %1019 }
 0x485   : > { %v3480_v28 = vpop.f32.mrf.mxu0 }
 0x488   : > { %v11011_v62 = vpop.permute.xlu1 %1024 }
 0x48d   : > { %v3482_v37 = vpop.f32.mrf.mxu0 }
 0x48f   : > { %v3408_v14 = vpop.f32.mrf.mxu3 }
 0x490   : > { %v3476_v15 = vadd.f32 %v3475_v12, %v3408_v14 }
 0x492   : > { %v3490_v21 = vadd.f32 %v9887_v16, %v3476_v15 }
 0x494   : > { %v3494_v26 = vmax.f32 %v3490_v21, 0.0 }
 0x496   : > { %v3498_v32 = vadd.f32 %v3494_v26, %v10830_v44  ;;  %v9888_v44 = vld [vmem:[%s12087_s11] ss:$0 sm:$0xff] }
 0x497   : > { %v3410_v22 = vpop.f32.mrf.mxu3 }
 0x498   : > { %v3478_v24 = vadd.f32 %v3477_v11, %v3410_v22 }
 0x49a   : > { %v3491_v1 = vadd.f32 %v9887_v16, %v3478_v24 }
 0x49c   : > { %v3495_v27 = vmax.f32 %v3491_v1, 0.0  ;;  %v9615_v1 = vld [vmem:[%s12088_s12 + $0x30] sm:$0xff] }
 0x49d   : > { %3766 = vmatpush.bf16.msra.mxu2 %v9615_v1 }
 0x49e   : > { %v3499_v23 = vadd.f32 %v3495_v27, %v10833_v42  ;;  %v10985_v42 = vand.u32 127, %v1027_v30  ;;  %v9614_v27 = vld [vmem:[%s12088_s12 + $0x28] sm:$0xff] }
 0x49f   : > { %v3413_v33 = vpop.f32.mrf.mxu3 }
 0x4a0   : > { %v3502_v9 = vpack.c.bf16 %v3499_v23, %v3498_v32  ;;  %v3481_v6 = vadd.f32 %v3480_v28, %v3413_v33  ;;  %vm1106_vm11 = vcmp.lt.s32.totalorder %v10985_v42, 8  ;;  %v9613_v28 = vld [vmem:[%s12088_s12 + $0x20] sm:$0xff]  ;;  %v9612_v32 = vld [vmem:[%s12088_s12 + $0x18] sm:$0xff]  ;;  %v9611_v23 = vld [vmem:[%s12088_s12 + $0x10] sm:$0xff] }
 0x4a1   : > { %3767 = vmatpush.bf16.msra.mxu2 %v9614_v27  ;;  %v9610_v33 = vld [vmem:[%s12088_s12 + $0x8] sm:$0xff] }
 0x4a2   : > { %3580 = vmatmul.bf16.vlgmr.msra.gmra.mxu1 %v3502_v9  ;;  %v3492_v36 = vadd.f32 %v9887_v16, %v3481_v6  ;;  %v9609_v9 = vld [vmem:[%s12088_s12] sm:$0xff] }
 0x4a4   : > { %v3496_v40 = vmax.f32 %v3492_v36, 0.0 }
 0x4a5   : > { %3768 = vmatpush.bf16.msra.mxu2 %v9613_v28 }
 0x4a6   : > { %v3500_v41 = vadd.f32 %v3496_v40, %v10838_v19 }
 0x4a7   : > { %v3415_v38 = vpop.f32.mrf.mxu3 }
 0x4a8   : > { %v3483_v39 = vadd.f32 %v3482_v37, %v3415_v38 }
 0x4a9   : > { %3769 = vmatpush.bf16.msra.mxu2 %v9612_v32 }
 0x4aa   : > { %v3493_v29 = vadd.f32 %v9887_v16, %v3483_v39 }
 0x4ac   : > { %v3497_v57 = vmax.f32 %v3493_v29, 0.0 }
 0x4ad   : > { %3770 = vmatpush.bf16.msra.mxu2 %v9611_v23  ;;  %v9628_v23 = vld [vmem:[%s12090_s14 + $0x18] sm:$0xff] }
 0x4ae   : > { %v3501_v48 = vadd.f32 %v3497_v57, %v10841_v58 }
 0x4b0   : > { %v3503_v49 = vpack.c.bf16 %v3501_v48, %v3500_v41 }
 0x4b1   : > { %3771 = vmatpush.bf16.msra.mxu2 %v9610_v33  ;;  %v9636_v33 = vld [vmem:[%s12090_s14 + $0x98] sm:$0xff] }
 0x4b2   : > { %3585 = vmatmul.bf16.gmra.mxu1 %v3503_v49 }
 0x4b5   : > { %3772 = vmatpush.bf16.msra.mxu2 %v9609_v9 }
 0x51f   : > { %v3581_v50 = vpop.f32.mrf.mxu1 }
 0x520   : > { %v3582_v51 = vadd.f32 %v9888_v44, %v3581_v50  ;;  %v9632_v50 = vld [vmem:[%s12090_s14 + $0x38] sm:$0xff] }
 0x521   : > { %3868 = vmatpush.bf16.msra.mxu3 %v9632_v50 }
 0x522   : > { %v3591_v19 = vmul.f32 %v3582_v51, %v10987_v47  ;;  %v9640_v51 = vld [vmem:[%s12090_s14 + $0xb8] sm:$0xff] }
 0x523   : > { %3952 = vmatpush.bf16.msrb.mxu0 %v9640_v51 }
 0x524   : > { %v3599_v30 = vsel %vm1106_vm11, %v3591_v19, -1e+30  ;;  %3595 = vst [vmem:[%s10992_s2] sm:$0xff] %v3591_v19  ;;  %v9624_v19 = vld [vmem:[%s12090_s14 + $0x78] sm:$0xff] }
 0x525   : > { %3603 = vmax.xlane.f32.xlu2 %v3599_v30  ;;  %4031 = vmatpush.bf16.msrb.mxu1 %v9624_v19 }
 0x527   : > { %v3583_v58 = vpop.f32.mrf.mxu1 }
 0x528   : > { %v3584_v52 = vadd.f32 %v9888_v44, %v3583_v58 }
 0x52a   : > { %v3592_v18 = vmul.f32 %v3584_v52, %v10999_v46 }
 0x52c   : > { %3596 = vst [vmem:[%s10992_s2 + $0x8] sm:$0xff] %v3592_v18  ;;  %v3600_v53 = vsel %vm1106_vm11, %v3592_v18, -1e+30  ;;  %v9631_v18 = vld [vmem:[%s12090_s14 + $0x30] sm:$0xff] }
 0x52d   : > { %3605 = vmax.xlane.f32.xlu2 %v3600_v53  ;;  %3869 = vmatpush.bf16.msra.mxu3 %v9631_v18 }
 0x52f   : > { %v3586_v59 = vpop.f32.mrf.mxu1 }
 0x530   : > { %v3587_v35 = vadd.f32 %v9888_v44, %v3586_v59 }
 0x532   : > { %v3593_v60 = vmul.f32 %v3587_v35, %v11005_v56 }
 0x534   : > { %v3601_v2 = vsel %vm1106_vm11, %v3593_v60, -1e+30  ;;  %3597 = vst [vmem:[%s10992_s2 + $0x10] sm:$0xff] %v3593_v60  ;;  %v9623_v60 = vld [vmem:[%s12090_s14 + $0x70] sm:$0xff] }
 0x535   : > { %3607 = vmax.xlane.f32.xlu0 %v3601_v2  ;;  %4032 = vmatpush.bf16.msrb.mxu1 %v9623_v60  ;;  %v9634_v60 = vld [vmem:[%s12090_s14 + $0x88] sm:$0xff] }
 0x537   : > { %v3588_v31 = vpop.f32.mrf.mxu1 }
 0x538   : > { %v3589_v61 = vadd.f32 %v9888_v44, %v3588_v31 }
 0x539   : > { %4033 = vmatpush.bf16.msrb.mxu1 %v9622_v4 }
 0x53a   : > { %v3594_v45 = vmul.f32 %v3589_v61, %v11011_v62 }
 0x53c   : > { %v3602_v63 = vsel %vm1106_vm11, %v3594_v45, -1e+30  ;;  %3598 = vst [vmem:[%s10992_s2 + $0x18] sm:$0xff] %v3594_v45 }
 0x53d   : > { %3609 = vmax.xlane.f32.xlu1 %v3602_v63 }
 0x598   : > { %v3604_v54 = vpop.xlane.xlu2 %3603 }
 0x599   : > { %v3611_v0 = vsub.f32 %v3599_v30, %v3604_v54  ;;  %v9638_v54 = vld [vmem:[%s12090_s14 + $0xa8] sm:$0xff] }
 0x59b   : > { %v3615_v3 = vmul.f32 1.442695, %v3611_v0 }
 0x59d   : > { %9905 = vpow2.f32 %v3615_v3 }
 0x5a0   : > { %v3606_v10 = vpop.xlane.xlu2 %3605 }
 0x5a1   : > { %v3612_v12 = vsub.f32 %v3600_v53, %v3606_v10  ;;  %v9639_v53 = vld [vmem:[%s12090_s14 + $0xb0] sm:$0xff] }
 0x5a2   : > { %3953 = vmatpush.bf16.msrb.mxu0 %v9639_v53 }
 0x5a3   : > { %v11020_v13 = vpop.eup %9905  ;;  %v3617_v14 = vmul.f32 1.442695, %v3612_v12 }
 0x5a4   : > { %3623 = vadd.xlane.f32.xlu2 %v11020_v13 }
 0x5a5   : > { %9907 = vpow2.f32 %v3617_v14 }
 0x5a6   : > { %3954 = vmatpush.bf16.msrb.mxu0 %v9638_v54  ;;  %v9889_v54 = vld [vmem:[%s12089_s13] ss:$0 sm:$0xff] }
 0x5a8   : > { %v3608_v15 = vpop.xlane.xlu0 %3607 }
 0x5a9   : > { %v3613_v16 = vsub.f32 %v3601_v2, %v3608_v15 }
 0x5ab   : > { %v11023_v20 = vpop.eup %9907  ;;  %v3619_v11 = vmul.f32 1.442695, %v3613_v16 }
 0x5ac   : > { %3625 = vadd.xlane.f32.xlu2 %v11023_v20 }
 0x5ad   : > { %9909 = vpow2.f32 %v3619_v11 }
 0x5b0   : > { %v3610_v21 = vpop.xlane.xlu1 %3609 }
 0x5b1   : > { %v3614_v22 = vsub.f32 %v3602_v63, %v3610_v21  ;;  %v9630_v63 = vld [vmem:[%s12090_s14 + $0x28] sm:$0xff] }
 0x5b2   : > { %3870 = vmatpush.bf16.msra.mxu3 %v9630_v63 }
 0x5b3   : > { %v11026_v24 = vpop.eup %9909  ;;  %v3621_v25 = vmul.f32 1.442695, %v3614_v22  ;;  %v9629_v22 = vld [vmem:[%s12090_s14 + $0x20] sm:$0xff] }
 0x5b4   : > { %3627 = vadd.xlane.f32.xlu2 %v11026_v24 }
 0x5b5   : > { %9911 = vpow2.f32 %v3621_v25  ;;  %v9621_v25 = vld [vmem:[%s12090_s14 + $0x60] sm:$0xff] }
 0x5b6   : > { %3871 = vmatpush.bf16.msra.mxu3 %v9629_v22  ;;  %4034 = vmatpush.bf16.msrb.mxu1 %v9621_v25  ;;  %v9647_v22 = vld [vmem:[%s12092_s16 + $0x30] sm:$0xff]  ;;  %v9645_v25 = vld [vmem:[%s12092_s16 + $0x20] sm:$0xff] }
 0x5ba   : > { %3872 = vmatpush.bf16.msra.mxu3 %v9628_v23  ;;  %v9641_v23 = vld [vmem:[%s12092_s16] sm:$0xff] }
 0x5bb   : > { %v11029_v26 = vpop.eup %9911 }
 0x5bc   : > { %3629 = vadd.xlane.f32.xlu2 %v11029_v26 }
 0x617   : > { %v3624_v6 = vpop.xlane.xlu2 %3623 }
 0x618   : > { %9913 = vrcp.f32 %v3624_v6  ;;  %v3642_v41 = vand.u32 2147483648, %v3624_v6  ;;  %vm3636_vm13 = vweird.f32 %v3624_v6  ;;  %v3640_v48 = vand.u32 2147483647, %v3624_v6 }
 0x61a   : > { %v3643_v59 = vor.u32 1.1754944e-38, %v3642_v41  ;;  %vm3641_vm15 = vcmp.eq.f32.partialorder %v3640_v48, 8.507059e+37 }
 0x61e   : > { %v9914_v36 = vpop.eup %9913 }
 0x61f   : > { %v3632_v37 = vmul.f32 %v9914_v36, %v3624_v6  ;;  %v3626_v38 = vpop.xlane.xlu2 %3625  ;;  %vm3637_vm12 = vweird.f32 %v9914_v36 }
 0x620   : > { %9915 = vrcp.f32 %v3626_v38  ;;  %vm11064_vm14 = vmor %vm3636_vm13, %vm3637_vm12  ;;  %v3656_v35 = vand.u32 2147483648, %v3626_v38  ;;  %v3654_v31 = vand.u32 2147483647, %v3626_v38  ;;  %vm3650_vm2 = vweird.f32 %v3626_v38 }
 0x621   : > { %v3633_v39 = vsub.f32 1.0, %v3632_v37 }
 0x622   : > { %v3657_v3 = vor.u32 1.1754944e-38, %v3656_v35  ;;  %vm3655_vm6 = vcmp.eq.f32.partialorder %v3654_v31, 8.507059e+37  ;;  %v9635_v35 = vld [vmem:[%s12090_s14 + $0x90] sm:$0xff]  ;;  %v9625_v31 = vld [vmem:[%s12090_s14] sm:$0xff] }
 0x623   : > { %v3634_v40 = vmul.f32 %v9914_v36, %v3633_v39 }
 0x625   : > { %v3635_v29 = vadd.f32 %v9914_v36, %v3634_v40 }
 0x626   : > { %v9916_v57 = vpop.eup %9915 }
 0x627   : > { %v3646_v49 = vmul.f32 %v9916_v57, %v3626_v38  ;;  %v11053_v44 = vpop.xlane.xlu2 %3627  ;;  %v3639_v58 = vsel %vm11064_vm14, %v9914_v36, %v3635_v29  ;;  %vm3651_vm0 = vweird.f32 %v9916_v57  ;;  %v9620_v36 = vld [vmem:[%s12090_s14 + $0x58] sm:$0xff] }
 0x628   : > { %9917 = vrcp.f32 %v11053_v44  ;;  %v3644_v61 = vsel %vm3641_vm15, %v3643_v59, %v3639_v58  ;;  %vm3652_vm3 = vmor %vm3650_vm2, %vm3651_vm0  ;;  %v3670_v6 = vand.u32 2147483648, %v11053_v44  ;;  %vm3664_vm10 = vweird.f32 %v11053_v44  ;;  %4035 = vmatpush.bf16.msrb.mxu1 %v9620_v36  ;;  %v9627_v59 = vld [vmem:[%s12090_s14 + $0x10] sm:$0xff] }
 0x629   : > { %v3647_v52 = vsub.f32 1.0, %v3646_v49  ;;  %v3687_v10 = vmul.f32 %v11020_v13, %v3644_v61  ;;  %v9637_v13 = vld [vmem:[%s12090_s14 + $0xa0] sm:$0xff]  ;;  %v3668_v37 = vand.u32 2147483647, %v11053_v44  ;;  %3873 = vmatpush.bf16.msra.mxu3 %v9627_v59  ;;  %v9655_v59 = vld [vmem:[%s12090_s14 + $0x130] sm:$0xff] }
 0x62a   : > { %3955 = vmatpush.bf16.msrb.mxu0 %v9637_v13  ;;  %v3671_v29 = vor.u32 1.1754944e-38, %v3670_v6  ;;  %v9633_v61 = vld [vmem:[%s12090_s14 + $0x80] sm:$0xff]  ;;  %v9646_v13 = vld [vmem:[%s12092_s16 + $0x28] sm:$0xff] }
 0x62b   : > { %v3648_v2 = vmul.f32 %v9916_v57, %v3647_v52  ;;  %v3691_v27 = vmul.f32 %v3687_v10, %v10987_v47  ;;  %vm3669_vm13 = vcmp.eq.f32.partialorder %v3668_v37, 8.507059e+37 }
 0x62d   : > { %v3649_v45 = vadd.f32 %v9916_v57, %v3648_v2  ;;  %v9618_v2 = vld [vmem:[%s12090_s14 + $0x48] sm:$0xff] }
 0x62e   : > { %v9918_v0 = vpop.eup %9917  ;;  %3956 = vmatpush.bf16.msrb.mxu0 %v9636_v33 }
 0x62f   : > { %v3653_v12 = vsel %vm3652_vm3, %v9916_v57, %v3649_v45  ;;  %v3660_v14 = vmul.f32 %v9918_v0, %v11053_v44  ;;  %v3630_v15 = vpop.xlane.xlu2 %3629  ;;  %vm3665_vm7 = vweird.f32 %v9918_v0  ;;  %v9617_v45 = vld [vmem:[%s12090_s14 + $0x40] sm:$0xff] }
 0x630   : > { %v3658_v16 = vsel %vm3655_vm6, %v3657_v3, %v3653_v12  ;;  %9919 = vrcp.f32 %v3630_v15  ;;  %vm3666_vm12 = vmor %vm3664_vm10, %vm3665_vm7  ;;  %v3684_v57 = vand.u32 2147483648, %v3630_v15  ;;  %v3682_v48 = vand.u32 2147483647, %v3630_v15 }
 0x631   : > { %v3688_v11 = vmul.f32 %v11023_v20, %v3658_v16  ;;  %v3661_v21 = vsub.f32 1.0, %v3660_v14  ;;  %vm3678_vm15 = vweird.f32 %v3630_v15 }
 0x632   : > { %v3685_v51 = vor.u32 1.1754944e-38, %v3684_v57  ;;  %vm3683_vm2 = vcmp.eq.f32.partialorder %v3682_v48, 8.507059e+37  ;;  %3957 = vmatpush.bf16.msrb.mxu0 %v9635_v35 }
 0x633   : > { %v3662_v1 = vmul.f32 %v9918_v0, %v3661_v21  ;;  %v3692_v20 = vmul.f32 %v3688_v11, %v10999_v46  ;;  %v9648_v21 = vld [vmem:[%s12092_s16 + $0x38] sm:$0xff] }
 0x634   : > { %4147 = vmatpush.bf16.msrb.mxu2 %v9648_v21  ;;  %v9661_v21 = vld [vmem:[%s12090_s14 + $0xe0] sm:$0xff] }
 0x635   : > { %v3663_v28 = vadd.f32 %v9918_v0, %v3662_v1  ;;  %v3695_v32 = vpack.c.bf16 %v3692_v20, %v3691_v27  ;;  %v9644_v1 = vld [vmem:[%s12092_s16 + $0x18] sm:$0xff]  ;;  %v9643_v27 = vld [vmem:[%s12092_s16 + $0x10] sm:$0xff] }
 0x636   : > { %v9920_v9 = vpop.eup %9919  ;;  %3958 = vmatpush.bf16.msrb.mxu0 %v9634_v60 }
 0x637   : > { %v3674_v38 = vmul.f32 %v9920_v9, %v3630_v15  ;;  %3773 = vmatmul.bf16.vlgmr.msra.gmra.mxu2 %v3695_v32  ;;  %v3667_v40 = vsel %vm3666_vm12, %v9918_v0, %v3663_v28  ;;  %vm3679_vm14 = vweird.f32 %v9920_v9  ;;  %v9642_v32 = vld [vmem:[%s12092_s16 + $0x8] sm:$0xff] }
 0x638   : > { %v3672_v49 = vsel %vm3669_vm13, %v3671_v29, %v3667_v40  ;;  %vm3680_vm0 = vmor %vm3678_vm15, %vm3679_vm14  ;;  %4148 = vmatpush.bf16.msrb.mxu2 %v9647_v22  ;;  %v9669_v22 = vld [vmem:[%s12090_s14 + $0x160] sm:$0xff] }
 0x639   : > { %v3675_v39 = vsub.f32 1.0, %v3674_v38  ;;  %v3689_v19 = vmul.f32 %v11026_v24, %v3672_v49  ;;  %v9619_v24 = vld [vmem:[%s12090_s14 + $0x50] sm:$0xff] }
 0x63a   : > { %4036 = vmatpush.bf16.msrb.mxu1 %v9619_v24  ;;  %3959 = vmatpush.bf16.msrb.mxu0 %v9633_v61  ;;  %v9890_v24 = vld [vmem:[%s12091_s15] ss:$0 sm:$0xff]  ;;  %v9662_v61 = vld [vmem:[%s12090_s14 + $0xe8] sm:$0xff] }
 0x63b   : > { %v3676_v41 = vmul.f32 %v9920_v9, %v3675_v39  ;;  %v3693_v52 = vmul.f32 %v3689_v19, %v11005_v56 }
 0x63c   : > { %4149 = vmatpush.bf16.msrb.mxu2 %v9646_v13 }
 0x63d   : > { %v3677_v50 = vadd.f32 %v9920_v9, %v3676_v41 }
 0x63e   : > { %4037 = vmatpush.bf16.msrb.mxu1 %v9618_v2 }
 0x63f   : > { %v3681_v44 = vsel %vm3680_vm0, %v9920_v9, %v3677_v50  ;;  %v9664_v50 = vld [vmem:[%s12090_s14 + $0xf8] sm:$0xff] }
 0x640   : > { %v3686_v30 = vsel %vm3683_vm2, %v3685_v51, %v3681_v44  ;;  %4150 = vmatpush.bf16.msrb.mxu2 %v9645_v25  ;;  %v9672_v51 = vld [vmem:[%s12090_s14 + $0x178] sm:$0xff]  ;;  %v9653_v25 = vld [vmem:[%s12090_s14 + $0x120] sm:$0xff] }
 0x641   : > { %v3690_v58 = vmul.f32 %v11029_v26, %v3686_v30  ;;  %v9626_v26 = vld [vmem:[%s12090_s14 + $0x8] sm:$0xff]  ;;  %v9656_v44 = vld [vmem:[%s12090_s14 + $0x138] sm:$0xff]  ;;  %4344 = vmatpush.bf16.msra.mxu0 %v9672_v51  ;;  %v9659_v51 = vld [vmem:[%s12090_s14 + $0xd0] sm:$0xff] }
 0x642   : > { %3874 = vmatpush.bf16.msra.mxu3 %v9626_v26  ;;  %4038 = vmatpush.bf16.msrb.mxu1 %v9617_v45  ;;  %v9670_v45 = vld [vmem:[%s12090_s14 + $0x168] sm:$0xff] }
 0x643   : > { %v3694_v18 = vmul.f32 %v3690_v58, %v11011_v62  ;;  %v9663_v58 = vld [vmem:[%s12090_s14 + $0xf0] sm:$0xff] }
 0x644   : > { %4151 = vmatpush.bf16.msrb.mxu2 %v9644_v1 }
 0x645   : > { %v3696_v53 = vpack.c.bf16 %v3694_v18, %v3693_v52  ;;  %v9671_v52 = vld [vmem:[%s12090_s14 + $0x170] sm:$0xff] }
 0x646   : > { %3875 = vmatpush.bf16.msra.mxu3 %v9625_v31  ;;  %4423 = vmatpush.bf16.msra.mxu1 %v9656_v44  ;;  %v9667_v44 = vld [vmem:[%s12090_s14 + $0x150] sm:$0xff] }
 0x647   : > { %3778 = vmatmul.bf16.gmra.mxu2 %v3696_v53  ;;  %4345 = vmatpush.bf16.msra.mxu0 %v9671_v52  ;;  %v9650_v52 = vld [vmem:[%s12090_s14 + $0x108] sm:$0xff] }
 0x648   : > { %4152 = vmatpush.bf16.msrb.mxu2 %v9643_v27 }
 0x64a   : > { %4260 = vmatpush.bf16.msrb.mxu3 %v9664_v50  ;;  %4424 = vmatpush.bf16.msra.mxu1 %v9655_v59  ;;  %v9668_v50 = vld [vmem:[%s12090_s14 + $0x158] sm:$0xff]  ;;  %v9649_v59 = vld [vmem:[%s12090_s14 + $0x100] sm:$0xff] }
 0x64b   : > { %4346 = vmatpush.bf16.msra.mxu0 %v9670_v45 }
 0x64c   : > { %4153 = vmatpush.bf16.msrb.mxu2 %v9642_v32 }
 0x64e   : > { %4261 = vmatpush.bf16.msrb.mxu3 %v9663_v58  ;;  %v9666_v58 = vld [vmem:[%s12090_s14 + $0x148] sm:$0xff] }
 0x64f   : > { %4347 = vmatpush.bf16.msra.mxu0 %v9669_v22 }
 0x650   : > { %4154 = vmatpush.bf16.msrb.mxu2 %v9641_v23 }
 0x652   : > { %4262 = vmatpush.bf16.msrb.mxu3 %v9662_v61 }
 0x653   : > { %4348 = vmatpush.bf16.msra.mxu0 %v9668_v50 }
 0x656   : > { %4263 = vmatpush.bf16.msrb.mxu3 %v9661_v21 }
 0x657   : > { %4349 = vmatpush.bf16.msra.mxu0 %v9667_v44  ;;  %v9688_v44 = vld [vmem:[%s12090_s14 + $0x1f8] sm:$0xff] }
 0x65b   : > { %4350 = vmatpush.bf16.msra.mxu0 %v9666_v58  ;;  %v9695_v58 = vld [vmem:[%s12090_s14 + $0x1b0] sm:$0xff] }
 0x6ba   : > { %v3774_v63 = vpop.f32.mrf.mxu2 }
 0x6bb   : > { %v11149_v3 = vadd.f32 %v9889_v54, %v3774_v63 }
 0x6c2   : > { %v3776_v0 = vpop.f32.mrf.mxu2 }
 0x6c3   : > { %v11151_v4 = vadd.f32 %v9889_v54, %v3776_v0 }
 0x6c5   : > { %v3784_v10 = vpack.c.bf16 %v11151_v4, %v11149_v3 }
 0x6c7   : > { %3876 = vmatmul.bf16.vlgmr.msra.gmra.mxu3 %v3784_v10  ;;  %3960 = vmatmul.bf16.vlgmr.msrb.gmra.mxu0 %v3784_v10 }
 0x6c8   : > { %4039 = vmatmul.bf16.vlgmr.msrb.gmra.mxu1 %v3784_v10 }
 0x6ca   : > { %v3779_v12 = vpop.f32.mrf.mxu2 }
 0x6cb   : > { %v11155_v15 = vadd.f32 %v9889_v54, %v3779_v12 }
 0x6d2   : > { %v3781_v14 = vpop.f32.mrf.mxu2 }
 0x6d3   : > { %v11157_v16 = vadd.f32 %v9889_v54, %v3781_v14  ;;  %v9654_v54 = vld [vmem:[%s12090_s14 + $0x128] sm:$0xff] }
 0x6d4   : > { %4425 = vmatpush.bf16.msra.mxu1 %v9654_v54 }
 0x6d5   : > { %v3785_v11 = vpack.c.bf16 %v11157_v16, %v11155_v15 }
 0x6d7   : > { %3881 = vmatmul.bf16.gmra.mxu3 %v3785_v11  ;;  %3965 = vmatmul.bf16.gmra.mxu0 %v3785_v11 }
 0x6d8   : > { %4044 = vmatmul.bf16.gmra.mxu1 %v3785_v11 }
 0x6d9   : > { %4426 = vmatpush.bf16.msra.mxu1 %v9653_v25  ;;  %v9677_v25 = vld [vmem:[%s12092_s16 + $0x60] sm:$0xff] }
 0x744   : > { %v11179_v20 = vpop.f32.mrf.mxu0 }
 0x745   : > { %v4040_v33 = vpop.f32.mrf.mxu1  ;;  %v4050_v60 = vrot.slane %v11179_v20, 1 }
 0x74a   : > { %v3877_v28 = vpop.f32.mrf.mxu3 }
 0x74b   : > { %v3971_v40 = vrot.slane %v3877_v28, 7 }
 0x74c   : > { %v3963_v9 = vpop.f32.mrf.mxu0 }
 0x74d   : > { %v4042_v37 = vpop.f32.mrf.mxu1  ;;  %v4051_v41 = vrot.slane %v3963_v9, 1 }
 0x74f   : > { %v4056_v63 = vsel %vm1755_vm5, %v4050_v60, %v4051_v41 }
 0x752   : > { %v3879_v6 = vpop.f32.mrf.mxu3 }
 0x753   : > { %v3972_v38 = vrot.slane %v3879_v6, 7 }
 0x754   : > { %v3966_v39 = vpop.f32.mrf.mxu0 }
 0x755   : > { %v3977_v29 = vsel %vm1675_vm4, %v3971_v40, %v3972_v38  ;;  %v4052_v57 = vrot.slane %v3966_v39, 1  ;;  %v4045_v18 = vpop.f32.mrf.mxu1 }
 0x756   : > { %v4043_v48 = vadd.f32 %v4042_v37, %v3977_v29 }
 0x757   : > { %v4055_v19 = vsel %vm1755_vm5, %v4051_v41, %v4052_v57 }
 0x758   : > { %v4063_v35 = vadd.f32 %v4055_v19, %v4043_v48  ;;  %v9651_v19 = vld [vmem:[%s12090_s14 + $0x110] sm:$0xff] }
 0x75a   : > { %v3882_v36 = vpop.f32.mrf.mxu3  ;;  %v4070_v0 = vadd.f32 %v9890_v24, %v4063_v35 }
 0x75b   : > { %v3973_v12 = vrot.slane %v3882_v36, 7 }
 0x75c   : > { %v3968_v2 = vpop.f32.mrf.mxu0  ;;  %v4074_v1 = vmax.f32 %v4070_v0, 0.0 }
 0x75d   : > { %v4053_v14 = vrot.slane %v3968_v2, 1  ;;  %v3976_v20 = vsel %vm1675_vm4, %v3972_v38, %v3973_v12  ;;  %v4047_v32 = vpop.f32.mrf.mxu1 }
 0x75e   : > { %v4046_v9 = vadd.f32 %v4045_v18, %v3976_v20  ;;  %v9657_v18 = vld [vmem:[%s12090_s14 + $0xc0] sm:$0xff] }
 0x75f   : > { %v4057_v28 = vsel %vm1755_vm5, %v4053_v14, %v4050_v60  ;;  %v4054_v36 = vsel %vm1755_vm5, %v4052_v57, %v4053_v14  ;;  %v9652_v57 = vld [vmem:[%s12090_s14 + $0x118] sm:$0xff] }
 0x760   : > { %v4061_v6 = vmul.f32 %v10401_v55, %v4057_v28  ;;  %v4064_v39 = vadd.f32 %v4054_v36, %v4046_v9  ;;  %4427 = vmatpush.bf16.msra.mxu1 %v9652_v57  ;;  %v9696_v57 = vld [vmem:[%s12090_s14 + $0x1b8] sm:$0xff] }
 0x762   : > { %v3884_v49 = vpop.f32.mrf.mxu3  ;;  %v4071_v38 = vadd.f32 %v9890_v24, %v4064_v39 }
 0x763   : > { %v3974_v30 = vrot.slane %v3884_v49, 7  ;;  %v9660_v49 = vld [vmem:[%s12090_s14 + $0xd8] sm:$0xff] }
 0x764   : > { %v4075_v41 = vmax.f32 %v4071_v38, 0.0  ;;  %4264 = vmatpush.bf16.msrb.mxu3 %v9660_v49  ;;  %4428 = vmatpush.bf16.msra.mxu1 %v9651_v19 }
 0x765   : > { %v3978_v53 = vsel %vm1675_vm4, %v3974_v30, %v3971_v40  ;;  %v3975_v13 = vsel %vm1675_vm4, %v3973_v12, %v3974_v30  ;;  %v9658_v30 = vld [vmem:[%s12090_s14 + $0xc8] sm:$0xff] }
 0x766   : > { %v3979_v26 = vmul.f32 %v10375_v17, %v3978_v53  ;;  %v4048_v23 = vadd.f32 %v4047_v32, %v3975_v13  ;;  %v9665_v53 = vld [vmem:[%s12090_s14 + $0x140] sm:$0xff]  ;;  %v9680_v13 = vld [vmem:[%s12092_s16 + $0x78] sm:$0xff]  ;;  %v9674_v32 = vld [vmem:[%s12092_s16 + $0x48] sm:$0xff] }
 0x767   : > { %4351 = vmatpush.bf16.msra.mxu0 %v9665_v53  ;;  %4541 = vmatpush.bf16.msra.mxu2 %v9680_v13  ;;  %v9693_v13 = vld [vmem:[%s12090_s14 + $0x1a0] sm:$0xff] }
 0x768   : > { %v4041_v31 = vadd.f32 %v4040_v33, %v3979_v26  ;;  %v4065_v37 = vadd.f32 %v4061_v6, %v4048_v23  ;;  %4265 = vmatpush.bf16.msrb.mxu3 %v9659_v51  ;;  %4429 = vmatpush.bf16.msra.mxu1 %v9650_v52  ;;  %v9673_v23 = vld [vmem:[%s12092_s16 + $0x40] sm:$0xff]  ;;  %v9704_v51 = vld [vmem:[%s12090_s14 + $0x238] sm:$0xff]  ;;  %v9703_v52 = vld [vmem:[%s12090_s14 + $0x230] sm:$0xff] }
 0x76a   : > { %v4062_v10 = vadd.f32 %v4056_v63, %v4041_v31  ;;  %v4072_v40 = vadd.f32 %v9890_v24, %v4065_v37 }
 0x76b   : > { %4738 = vmatpush.bf16.msrb.mxu0 %v9704_v51  ;;  %v9691_v51 = vld [vmem:[%s12090_s14 + $0x190] sm:$0xff] }
 0x76c   : > { %v4069_v11 = vadd.f32 %v9890_v24, %v4062_v10  ;;  %v4076_v29 = vmax.f32 %v4072_v40, 0.0  ;;  %4266 = vmatpush.bf16.msrb.mxu3 %v9658_v30  ;;  %4430 = vmatpush.bf16.msra.mxu1 %v9649_v59  ;;  %v9891_v24 = vld [vmem:[%s12093_s17] ss:$0 sm:$0xff]  ;;  %v9687_v59 = vld [vmem:[%s12090_s14 + $0x1f0] sm:$0xff] }
 0x76e   : > { %v4073_v27 = vmax.f32 %v4069_v11, 0.0  ;;  %v4078_v48 = vpack.c.bf16 %v4076_v29, %v4075_v41 }
 0x76f   : > { %4739 = vmatpush.bf16.msrb.mxu0 %v9703_v52  ;;  %v9682_v52 = vld [vmem:[%s12090_s14 + $0x1c8] sm:$0xff] }
 0x770   : > { %v4077_v33 = vpack.c.bf16 %v4074_v1, %v4073_v27  ;;  %4267 = vmatpush.bf16.msrb.mxu3 %v9657_v18  ;;  %v9676_v1 = vld [vmem:[%s12092_s16 + $0x58] sm:$0xff]  ;;  %v9675_v27 = vld [vmem:[%s12092_s16 + $0x50] sm:$0xff]  ;;  %4817 = vmatpush.bf16.msrb.mxu1 %v9688_v44 }
 0x771   : > { %v9699_v44 = vld [vmem:[%s12090_s14 + $0x210] sm:$0xff] }
 0x772   : > { %4155 = vmatmul.bf16.vlgmr.msrb.gmra.mxu2 %v4077_v33 }
 0x774   : > { %4654 = vmatpush.bf16.msra.mxu3 %v9696_v57  ;;  %4818 = vmatpush.bf16.msrb.mxu1 %v9687_v59  ;;  %v9700_v57 = vld [vmem:[%s12090_s14 + $0x218] sm:$0xff]  ;;  %v9681_v59 = vld [vmem:[%s12090_s14 + $0x1c0] sm:$0xff] }
 0x778   : > { %4655 = vmatpush.bf16.msra.mxu3 %v9695_v58  ;;  %v9698_v58 = vld [vmem:[%s12090_s14 + $0x208] sm:$0xff] }
 0x782   : > { %4160 = vmatmul.bf16.gmra.mxu2 %v4078_v48 }
 0x7f5   : > { %v4156_v35 = vpop.f32.mrf.mxu2 }
 0x7f6   : > { %v4157_v26 = vadd.f32 %v9891_v24, %v4156_v35 }
 0x7f8   : > { %v4166_v2 = vadd.f32 %v4157_v26, %v11149_v3 }
 0x7fa   : > { %v11287_v45 = vmul.f32 %v4166_v2, %v10987_v47 }
 0x7fd   : > { %v4158_v60 = vpop.f32.mrf.mxu2 }
 0x7fe   : > { %v4159_v31 = vadd.f32 %v9891_v24, %v4158_v60 }
 0x800   : > { %v4167_v61 = vadd.f32 %v4159_v31, %v11151_v4 }
 0x802   : > { %v11290_v63 = vmul.f32 %v4167_v61, %v10999_v46  ;;  %v9694_v61 = vld [vmem:[%s12090_s14 + $0x1a8] sm:$0xff] }
 0x803   : > { %4656 = vmatpush.bf16.msra.mxu3 %v9694_v61 }
 0x804   : > { %v4174_v54 = vpack.c.bf16 %v11290_v63, %v11287_v45 }
 0x805   : > { %v4161_v0 = vpop.f32.mrf.mxu2 }
 0x806   : > { %4268 = vmatmul.bf16.vlgmr.msrb.gmra.mxu3 %v4174_v54  ;;  %4352 = vmatmul.bf16.vlgmr.msra.gmra.mxu0 %v4174_v54  ;;  %v4162_v10 = vadd.f32 %v9891_v24, %v4161_v0 }
 0x807   : > { %4431 = vmatmul.bf16.vlgmr.msra.gmra.mxu1 %v4174_v54  ;;  %v9702_v54 = vld [vmem:[%s12090_s14 + $0x228] sm:$0xff]  ;;  %4657 = vmatpush.bf16.msra.mxu3 %v9693_v13 }
 0x808   : > { %v4168_v3 = vadd.f32 %v4162_v10, %v11155_v15  ;;  %v9679_v15 = vld [vmem:[%s12092_s16 + $0x70] sm:$0xff]  ;;  %v9686_v10 = vld [vmem:[%s12090_s14 + $0x1e8] sm:$0xff]  ;;  %4740 = vmatpush.bf16.msrb.mxu0 %v9702_v54 }
 0x809   : > { %4542 = vmatpush.bf16.msra.mxu2 %v9679_v15  ;;  %v9701_v15 = vld [vmem:[%s12090_s14 + $0x220] sm:$0xff]  ;;  %4819 = vmatpush.bf16.msrb.mxu1 %v9686_v10 }
 0x80a   : > { %v11297_v11 = vmul.f32 %v4168_v3, %v11005_v56 }
 0x80c   : > { %4741 = vmatpush.bf16.msrb.mxu0 %v9701_v15 }
 0x80d   : > { %v4163_v12 = vpop.f32.mrf.mxu2 }
 0x80e   : > { %v4164_v14 = vadd.f32 %v9891_v24, %v4163_v12  ;;  %v9892_v24 = vld [vmem:[%s12091_s15 + $0x1] ss:$0 sm:$0xff] }
 0x810   : > { %v4169_v4 = vadd.f32 %v4164_v14, %v11157_v16  ;;  %v9678_v16 = vld [vmem:[%s12092_s16 + $0x68] sm:$0xff]  ;;  %4742 = vmatpush.bf16.msrb.mxu0 %v9700_v57 }
 0x811   : > { %4543 = vmatpush.bf16.msra.mxu2 %v9678_v16 }
 0x812   : > { %v11300_v21 = vmul.f32 %v4169_v4, %v11011_v62 }
 0x814   : > { %v4175_v22 = vpack.c.bf16 %v11300_v21, %v11297_v11  ;;  %4743 = vmatpush.bf16.msrb.mxu0 %v9699_v44 }
 0x815   : > { %4544 = vmatpush.bf16.msra.mxu2 %v9677_v25  ;;  %v9685_v25 = vld [vmem:[%s12090_s14 + $0x1e0] sm:$0xff] }
 0x816   : > { %4273 = vmatmul.bf16.gmra.mxu3 %v4175_v22  ;;  %4357 = vmatmul.bf16.gmra.mxu0 %v4175_v22 }
 0x817   : > { %4436 = vmatmul.bf16.gmra.mxu1 %v4175_v22 }
 0x818   : > { %4820 = vmatpush.bf16.msrb.mxu1 %v9685_v25  ;;  %4744 = vmatpush.bf16.msrb.mxu0 %v9698_v58  ;;  %v9709_v25 = vld [vmem:[%s12092_s16 + $0xa0] sm:$0xff] }
 0x819   : > { %4545 = vmatpush.bf16.msra.mxu2 %v9676_v1 }
 0x81d   : > { %4546 = vmatpush.bf16.msra.mxu2 %v9675_v27 }
 0x821   : > { %4547 = vmatpush.bf16.msra.mxu2 %v9674_v32 }
 0x825   : > { %4548 = vmatpush.bf16.msra.mxu2 %v9673_v23 }
 0x883   : > { %v11322_v20 = vpop.f32.mrf.mxu0 }
 0x884   : > { %v4432_v33 = vpop.f32.mrf.mxu1  ;;  %v4442_v60 = vrot.slane %v11322_v20, 2 }
 0x889   : > { %v4269_v28 = vpop.f32.mrf.mxu3 }
 0x88a   : > { %v4363_v38 = vrot.slane %v4269_v28, 6 }
 0x88b   : > { %v4355_v9 = vpop.f32.mrf.mxu0 }
 0x88c   : > { %v4434_v37 = vpop.f32.mrf.mxu1  ;;  %v4443_v48 = vrot.slane %v4355_v9, 2 }
 0x88e   : > { %v4448_v0 = vsel %vm2235_vm9, %v4442_v60, %v4443_v48 }
 0x891   : > { %v4271_v6 = vpop.f32.mrf.mxu3 }
 0x892   : > { %v4364_v39 = vrot.slane %v4271_v6, 6 }
 0x893   : > { %v4358_v40 = vpop.f32.mrf.mxu0 }
 0x894   : > { %v4369_v29 = vsel %vm2155_vm8, %v4363_v38, %v4364_v39  ;;  %v4444_v41 = vrot.slane %v4358_v40, 2  ;;  %v4437_v18 = vpop.f32.mrf.mxu1 }
 0x895   : > { %v4435_v49 = vadd.f32 %v4434_v37, %v4369_v29 }
 0x896   : > { %v4447_v19 = vsel %vm2235_vm9, %v4443_v48, %v4444_v41 }
 0x897   : > { %v4455_v35 = vadd.f32 %v4447_v19, %v4435_v49  ;;  %v9683_v19 = vld [vmem:[%s12090_s14 + $0x1d0] sm:$0xff] }
 0x899   : > { %v4274_v36 = vpop.f32.mrf.mxu3  ;;  %v4462_v12 = vadd.f32 %v9892_v24, %v4455_v35 }
 0x89a   : > { %v4365_v14 = vrot.slane %v4274_v36, 6 }
 0x89b   : > { %v4360_v2 = vpop.f32.mrf.mxu0  ;;  %v4466_v1 = vmax.f32 %v4462_v12, 0.0 }
 0x89c   : > { %v4445_v4 = vrot.slane %v4360_v2, 2  ;;  %v4368_v20 = vsel %vm2155_vm8, %v4364_v39, %v4365_v14  ;;  %v4439_v32 = vpop.f32.mrf.mxu1 }
 0x89d   : > { %v4438_v9 = vadd.f32 %v4437_v18, %v4368_v20  ;;  %v9689_v18 = vld [vmem:[%s12090_s14 + $0x180] sm:$0xff] }
 0x89e   : > { %v4449_v28 = vsel %vm2235_vm9, %v4445_v4, %v4442_v60  ;;  %v4446_v36 = vsel %vm2235_vm9, %v4444_v41, %v4445_v4  ;;  %v9684_v41 = vld [vmem:[%s12090_s14 + $0x1d8] sm:$0xff] }
 0x89f   : > { %v4453_v6 = vmul.f32 %v10649_v7, %v4449_v28  ;;  %v4456_v40 = vadd.f32 %v4446_v36, %v4438_v9  ;;  %4821 = vmatpush.bf16.msrb.mxu1 %v9684_v41  ;;  %v9720_v41 = vld [vmem:[%s12094_s18 + $0x38] sm:$0xff] }
 0x8a1   : > { %v4276_v50 = vpop.f32.mrf.mxu3  ;;  %v4463_v39 = vadd.f32 %v9892_v24, %v4456_v40 }
 0x8a2   : > { %v4366_v30 = vrot.slane %v4276_v50, 6  ;;  %v9692_v50 = vld [vmem:[%s12090_s14 + $0x198] sm:$0xff] }
 0x8a3   : > { %v4467_v48 = vmax.f32 %v4463_v39, 0.0  ;;  %4658 = vmatpush.bf16.msra.mxu3 %v9692_v50  ;;  %4822 = vmatpush.bf16.msrb.mxu1 %v9683_v19  ;;  %v9719_v19 = vld [vmem:[%s12094_s18 + $0x30] sm:$0xff] }
 0x8a4   : > { %v4370_v53 = vsel %vm2155_vm8, %v4366_v30, %v4363_v38  ;;  %v4367_v16 = vsel %vm2155_vm8, %v4365_v14, %v4366_v30  ;;  %v9690_v30 = vld [vmem:[%s12090_s14 + $0x188] sm:$0xff] }
 0x8a5   : > { %v4371_v26 = vmul.f32 %v10628_v8, %v4370_v53  ;;  %v4440_v23 = vadd.f32 %v4439_v32, %v4367_v16  ;;  %v9697_v53 = vld [vmem:[%s12090_s14 + $0x200] sm:$0xff]  ;;  %v9712_v16 = vld [vmem:[%s12092_s16 + $0xb8] sm:$0xff]  ;;  %v9706_v32 = vld [vmem:[%s12092_s16 + $0x88] sm:$0xff] }
 0x8a6   : > { %4745 = vmatpush.bf16.msrb.mxu0 %v9697_v53  ;;  %4935 = vmatpush.bf16.msrb.mxu2 %v9712_v16 }
 0x8a7   : > { %v4433_v31 = vadd.f32 %v4432_v33, %v4371_v26  ;;  %v4457_v37 = vadd.f32 %v4453_v6, %v4440_v23  ;;  %4659 = vmatpush.bf16.msra.mxu3 %v9691_v51  ;;  %4823 = vmatpush.bf16.msrb.mxu1 %v9682_v52  ;;  %v9705_v23 = vld [vmem:[%s12092_s16 + $0x80] sm:$0xff] }
 0x8a9   : > { %v4454_v3 = vadd.f32 %v4448_v0, %v4433_v31  ;;  %v4464_v38 = vadd.f32 %v9892_v24, %v4457_v37 }
 0x8ab   : > { %v4461_v22 = vadd.f32 %v9892_v24, %v4454_v3  ;;  %v4468_v29 = vmax.f32 %v4464_v38, 0.0  ;;  %4660 = vmatpush.bf16.msra.mxu3 %v9690_v30  ;;  %4824 = vmatpush.bf16.msrb.mxu1 %v9681_v59  ;;  %v9893_v24 = vld [vmem:[%s12093_s17 + $0x1] ss:$0 sm:$0xff] }
 0x8ad   : > { %v4465_v27 = vmax.f32 %v4461_v22, 0.0  ;;  %v4470_v49 = vpack.c.bf16 %v4468_v29, %v4467_v48 }
 0x8af   : > { %v4469_v33 = vpack.c.bf16 %v4466_v1, %v4465_v27  ;;  %4661 = vmatpush.bf16.msra.mxu3 %v9689_v18  ;;  %v9708_v1 = vld [vmem:[%s12092_s16 + $0x98] sm:$0xff]  ;;  %v9707_v27 = vld [vmem:[%s12092_s16 + $0x90] sm:$0xff]  ;;  %v9894_v18 = vld [vmem:[%s12091_s15 + $0x2] ss:$0 sm:$0xff] }
 0x8b1   : > { %4549 = vmatmul.bf16.vlgmr.msra.gmra.mxu2 %v4469_v33 }
 0x8b3   : > { %5032 = vmatpush.bf16.msrb.mxu3 %v9720_v41 }
 0x8b7   : > { %5033 = vmatpush.bf16.msrb.mxu3 %v9719_v19 }
 0x8c1   : > { %4554 = vmatmul.bf16.gmra.mxu2 %v4470_v49 }
 0x934   : > { %v4550_v35 = vpop.f32.mrf.mxu2 }
 0x935   : > { %v4551_v26 = vadd.f32 %v9893_v24, %v4550_v35 }
 0x937   : > { %v4560_v2 = vadd.f32 %v4551_v26, %v11287_v45  ;;  %v9718_v26 = vld [vmem:[%s12094_s18 + $0x28] sm:$0xff] }
 0x938   : > { %5034 = vmatpush.bf16.msrb.mxu3 %v9718_v26 }
 0x939   : > { %v11430_v54 = vmul.f32 %v4560_v2, %v10987_v47 }
 0x93c   : > { %v4552_v60 = vpop.f32.mrf.mxu2 }
 0x93d   : > { %v4553_v31 = vadd.f32 %v9893_v24, %v4552_v60 }
 0x93f   : > { %v4561_v61 = vadd.f32 %v4553_v31, %v11290_v63 }
 0x941   : > { %v11433_v0 = vmul.f32 %v4561_v61, %v10999_v46 }
 0x943   : > { %v4568_v10 = vpack.c.bf16 %v11433_v0, %v11430_v54 }
 0x944   : > { %v4555_v12 = vpop.f32.mrf.mxu2 }
 0x945   : > { %4662 = vmatmul.bf16.vlgmr.msra.gmra.mxu3 %v4568_v10  ;;  %4746 = vmatmul.bf16.vlgmr.msrb.gmra.mxu0 %v4568_v10  ;;  %v4556_v3 = vadd.f32 %v9893_v24, %v4555_v12 }
 0x946   : > { %4825 = vmatmul.bf16.vlgmr.msrb.gmra.mxu1 %v4568_v10 }
 0x947   : > { %v4562_v45 = vadd.f32 %v4556_v3, %v11297_v11  ;;  %v9711_v11 = vld [vmem:[%s12092_s16 + $0xb0] sm:$0xff]  ;;  %v9717_v3 = vld [vmem:[%s12094_s18 + $0x20] sm:$0xff] }
 0x948   : > { %4936 = vmatpush.bf16.msrb.mxu2 %v9711_v11  ;;  %5035 = vmatpush.bf16.msrb.mxu3 %v9717_v3 }
 0x949   : > { %v11440_v22 = vmul.f32 %v4562_v45, %v11005_v56 }
 0x94c   : > { %v4557_v14 = vpop.f32.mrf.mxu2 }
 0x94d   : > { %v4558_v4 = vadd.f32 %v9893_v24, %v4557_v14 }
 0x94f   : > { %v4563_v63 = vadd.f32 %v4558_v4, %v11300_v21  ;;  %v9710_v21 = vld [vmem:[%s12092_s16 + $0xa8] sm:$0xff] }
 0x950   : > { %4937 = vmatpush.bf16.msrb.mxu2 %v9710_v21 }
 0x951   : > { %v11443_v13 = vmul.f32 %v4563_v63, %v11011_v62 }
 0x953   : > { %v4569_v15 = vpack.c.bf16 %v11443_v13, %v11440_v22 }
 0x954   : > { %4938 = vmatpush.bf16.msrb.mxu2 %v9709_v25 }
 0x955   : > { %4667 = vmatmul.bf16.gmra.mxu3 %v4569_v15  ;;  %4751 = vmatmul.bf16.gmra.mxu0 %v4569_v15 }
 0x956   : > { %4830 = vmatmul.bf16.gmra.mxu1 %v4569_v15 }
 0x958   : > { %4939 = vmatpush.bf16.msrb.mxu2 %v9708_v1 }
 0x95c   : > { %4940 = vmatpush.bf16.msrb.mxu2 %v9707_v27 }
 0x960   : > { %4941 = vmatpush.bf16.msrb.mxu2 %v9706_v32 }
 0x964   : > { %4942 = vmatpush.bf16.msrb.mxu2 %v9705_v23 }
 0x9c2   : > { %v4747_v20 = vpop.f32.mrf.mxu0 }
 0x9c3   : > { %v4826_v33 = vpop.f32.mrf.mxu1  ;;  %v4836_v59 = vrot.slane %v4747_v20, 4 }
 0x9c8   : > { %v4663_v28 = vpop.f32.mrf.mxu3 }
 0x9c9   : > { %v4757_v39 = vrot.slane %v4663_v28, 4 }
 0x9ca   : > { %v4749_v9 = vpop.f32.mrf.mxu0 }
 0x9cb   : > { %v4828_v37 = vpop.f32.mrf.mxu1  ;;  %v4837_v49 = vrot.slane %v4749_v9, 4 }
 0x9cd   : > { %v4842_v60 = vsel %vm1387_vm1, %v4836_v59, %v4837_v49 }
 0x9d0   : > { %v4665_v6 = vpop.f32.mrf.mxu3 }
 0x9d1   : > { %v4758_v40 = vrot.slane %v4665_v6, 4 }
 0x9d2   : > { %v4752_v38 = vpop.f32.mrf.mxu0 }
 0x9d3   : > { %v4763_v29 = vsel %vm1387_vm1, %v4757_v39, %v4758_v40  ;;  %v4838_v48 = vrot.slane %v4752_v38, 4  ;;  %v4831_v30 = vpop.f32.mrf.mxu1  ;;  %v9713_v38 = vld [vmem:[%s12094_s18] sm:$0xff] }
 0x9d4   : > { %v4829_v50 = vadd.f32 %v4828_v37, %v4763_v29  ;;  %v9715_v37 = vld [vmem:[%s12094_s18 + $0x10] sm:$0xff]  ;;  %v9895_v29 = vld [vmem:[%s12093_s17 + $0x2] ss:$0 sm:$0xff] }
 0x9d5   : > { %v4841_v51 = vsel %vm1387_vm1, %v4837_v49, %v4838_v48 }
 0x9d6   : > { %v4849_v52 = vadd.f32 %v4841_v51, %v4829_v50 }
 0x9d8   : > { %v4668_v36 = vpop.f32.mrf.mxu3  ;;  %v4856_v2 = vadd.f32 %v9894_v18, %v4849_v52 }
 0x9d9   : > { %v4759_v61 = vrot.slane %v4668_v36, 4  ;;  %v9716_v36 = vld [vmem:[%s12094_s18 + $0x18] sm:$0xff] }
 0x9da   : > { %v4754_v35 = vpop.f32.mrf.mxu0  ;;  %v4860_v45 = vmax.f32 %v4856_v2, 0.0  ;;  %5036 = vmatpush.bf16.msrb.mxu3 %v9716_v36 }
 0x9db   : > { %v4839_v10 = vrot.slane %v4754_v35, 4  ;;  %v4762_v63 = vsel %vm1387_vm1, %v4758_v40, %v4759_v61  ;;  %v4833_v16 = vpop.f32.mrf.mxu1  ;;  %v9714_v40 = vld [vmem:[%s12094_s18 + $0x8] sm:$0xff] }
 0x9dc   : > { %v4832_v25 = vadd.f32 %v4831_v30, %v4762_v63 }
 0x9dd   : > { %v4843_v15 = vsel %vm1387_vm1, %v4839_v10, %v4836_v59  ;;  %v4840_v27 = vsel %vm1387_vm1, %v4838_v48, %v4839_v10 }
 0x9de   : > { %v4847_v1 = vmul.f32 %v10367_v5, %v4843_v15  ;;  %v4850_v28 = vadd.f32 %v4840_v27, %v4832_v25  ;;  %5037 = vmatpush.bf16.msrb.mxu3 %v9715_v37 }
 0x9e0   : > { %v4670_v57 = vpop.f32.mrf.mxu3  ;;  %v4857_v23 = vadd.f32 %v9894_v18, %v4850_v28 }
 0x9e1   : > { %v4760_v44 = vrot.slane %v4670_v57, 4 }
 0x9e2   : > { %v4861_v9 = vmax.f32 %v4857_v23, 0.0  ;;  %5038 = vmatpush.bf16.msrb.mxu3 %v9714_v40 }
 0x9e3   : > { %v4764_v58 = vsel %vm1387_vm1, %v4760_v44, %v4757_v39  ;;  %v4761_v14 = vsel %vm1387_vm1, %v4759_v61, %v4760_v44 }
 0x9e4   : > { %v4765_v53 = vmul.f32 %v10344_v43, %v4764_v58  ;;  %v4834_v11 = vadd.f32 %v4833_v16, %v4761_v14 }
 0x9e6   : > { %v4827_v24 = vadd.f32 %v4826_v33, %v4765_v53  ;;  %v4851_v20 = vadd.f32 %v4847_v1, %v4834_v11  ;;  %5039 = vmatpush.bf16.msrb.mxu3 %v9713_v38  ;;  %v9728_v1 = vld [vmem:[%s12088_s12 + $0x78] sm:$0xff] }
 0x9e7   : > { %5228 = vmatpush.bf16.msra.mxu0 %v9728_v1 }
 0x9e8   : > { %v4848_v31 = vadd.f32 %v4842_v60, %v4827_v24  ;;  %v4858_v32 = vadd.f32 %v9894_v18, %v4851_v20  ;;  %v9896_v24 = vld [vmem:[%s12095_s19] ss:$0 sm:$0xff] }
 0x9ea   : > { %v4855_v12 = vadd.f32 %v9894_v18, %v4848_v31  ;;  %v4862_v33 = vmax.f32 %v4858_v32, 0.0 }
 0x9ec   : > { %v4859_v4 = vmax.f32 %v4855_v12, 0.0  ;;  %v4864_v6 = vpack.c.bf16 %v4862_v33, %v4861_v9 }
 0x9ee   : > { %v4863_v21 = vpack.c.bf16 %v4860_v45, %v4859_v4 }
 0x9f0   : > { %4943 = vmatmul.bf16.vlgmr.msrb.gmra.mxu2 %v4863_v21 }
 0xa00   : > { %4948 = vmatmul.bf16.gmra.mxu2 %v4864_v6 }
 0xa73   : > { %v4944_v39 = vpop.f32.mrf.mxu2 }
 0xa74   : > { %v4945_v48 = vadd.f32 %v9895_v29, %v4944_v39  ;;  %v9727_v39 = vld [vmem:[%s12088_s12 + $0x70] sm:$0xff] }
 0xa75   : > { %5229 = vmatpush.bf16.msra.mxu0 %v9727_v39 }
 0xa76   : > { %v4954_v50 = vadd.f32 %v4945_v48, %v11430_v54  ;;  %v9725_v48 = vld [vmem:[%s12088_s12 + $0x60] sm:$0xff] }
 0xa78   : > { %v4958_v51 = vmul.f32 %v4954_v50, %v10987_v47  ;;  %v9723_v50 = vld [vmem:[%s12088_s12 + $0x50] sm:$0xff] }
 0xa7b   : > { %v4946_v49 = vpop.f32.mrf.mxu2 }
 0xa7c   : > { %v4947_v57 = vadd.f32 %v9895_v29, %v4946_v49  ;;  %v9724_v49 = vld [vmem:[%s12088_s12 + $0x58] sm:$0xff] }
 0xa7e   : > { %v4955_v41 = vadd.f32 %v4947_v57, %v11433_v0  ;;  %v9722_v57 = vld [vmem:[%s12088_s12 + $0x48] sm:$0xff] }
 0xa80   : > { %v4959_v44 = vmul.f32 %v4955_v41, %v10999_v46  ;;  %v9721_v41 = vld [vmem:[%s12088_s12 + $0x40] sm:$0xff] }
 0xa82   : > { %v4962_v19 = vpack.c.bf16 %v4959_v44, %v4958_v51 }
 0xa83   : > { %v4949_v30 = vpop.f32.mrf.mxu2 }
 0xa84   : > { %5040 = vmatmul.bf16.vlgmr.msrb.gmra.mxu3 %v4962_v19  ;;  %v4950_v58 = vadd.f32 %v9895_v29, %v4949_v30 }
 0xa86   : > { %v4956_v18 = vadd.f32 %v4950_v58, %v11440_v22 }
 0xa88   : > { %v4960_v54 = vmul.f32 %v4956_v18, %v11005_v56 }
 0xa8b   : > { %v4951_v52 = vpop.f32.mrf.mxu2 }
 0xa8c   : > { %v4952_v53 = vadd.f32 %v9895_v29, %v4951_v52  ;;  %v9726_v29 = vld [vmem:[%s12088_s12 + $0x68] sm:$0xff] }
 0xa8d   : > { %5230 = vmatpush.bf16.msra.mxu0 %v9726_v29 }
 0xa8e   : > { %v4957_v59 = vadd.f32 %v4952_v53, %v11443_v13 }
 0xa90   : > { %v4961_v0 = vmul.f32 %v4957_v59, %v11011_v62 }
 0xa91   : > { %5231 = vmatpush.bf16.msra.mxu0 %v9725_v48 }
 0xa92   : > { %v4963_v35 = vpack.c.bf16 %v4961_v0, %v4960_v54 }
 0xa94   : > { %5045 = vmatmul.bf16.gmra.mxu3 %v4963_v35 }
 0xa95   : > { %5232 = vmatpush.bf16.msra.mxu0 %v9724_v49  ;;  %v9740_v49 = vld [vmem:[%s12090_s14 + $0x258] sm:$0xff] }
 0xa99   : > { %5233 = vmatpush.bf16.msra.mxu0 %v9723_v50  ;;  %v9748_v50 = vld [vmem:[%s12090_s14 + $0x2d8] sm:$0xff] }
 0xa9d   : > { %5234 = vmatpush.bf16.msra.mxu0 %v9722_v57 }
 0xaa1   : > { %5235 = vmatpush.bf16.msra.mxu0 %v9721_v41 }
 0xb07   : > { %v5041_v26 = vpop.f32.mrf.mxu3 }
 0xb08   : > { %v5042_v60 = vadd.f32 %v9896_v24, %v5041_v26  ;;  %v9752_v26 = vld [vmem:[%s12090_s14 + $0x2f8] sm:$0xff] }
 0xb09   : > { %5417 = vmatpush.bf16.msra.mxu2 %v9752_v26 }
 0xb0a   : > { %v5051_v2 = vmul.f32 %v5042_v60, %v10987_v47  ;;  %v9736_v60 = vld [vmem:[%s12090_s14 + $0x2b8] sm:$0xff] }
 0xb0b   : > { %5496 = vmatpush.bf16.msra.mxu3 %v9736_v60 }
 0xb0c   : > { %v5060_v22 = vsel %vm1106_vm11, %v5051_v2, -1e+30  ;;  %8709 = vst [vmem:[%s10992_s2 + $0x20] sm:$0xff] %v5051_v2 }
 0xb0d   : > { %5064 = vmax.xlane.f32.xlu2 %v5060_v22 }
 0xb0f   : > { %v5043_v13 = vpop.f32.mrf.mxu3 }
 0xb10   : > { %v5044_v31 = vadd.f32 %v9896_v24, %v5043_v13 }
 0xb12   : > { %v5052_v61 = vmul.f32 %v5044_v31, %v10999_v46  ;;  %v9743_v31 = vld [vmem:[%s12090_s14 + $0x270] sm:$0xff] }
 0xb14   : > { %8710 = vst [vmem:[%s10992_s2 + $0x28] sm:$0xff] %v5052_v61  ;;  %v5061_v10 = vsel %vm1106_vm11, %v5052_v61, -1e+30  ;;  %v9751_v61 = vld [vmem:[%s12090_s14 + $0x2f0] sm:$0xff] }
 0xb15   : > { %5066 = vmax.xlane.f32.xlu2 %v5061_v10  ;;  %5418 = vmatpush.bf16.msra.mxu2 %v9751_v61  ;;  %v9739_v61 = vld [vmem:[%s12090_s14 + $0x250] sm:$0xff] }
 0xb17   : > { %v5046_v12 = vpop.f32.mrf.mxu3 }
 0xb18   : > { %v5047_v3 = vadd.f32 %v9896_v24, %v5046_v12 }
 0xb1a   : > { %v5053_v14 = vmul.f32 %v5047_v3, %v11005_v56  ;;  %v9735_v3 = vld [vmem:[%s12090_s14 + $0x2b0] sm:$0xff] }
 0xb1b   : > { %5497 = vmatpush.bf16.msra.mxu3 %v9735_v3  ;;  %v9730_v3 = vld [vmem:[%s12090_s14 + $0x288] sm:$0xff] }
 0xb1c   : > { %v5062_v45 = vsel %vm1106_vm11, %v5053_v14, -1e+30  ;;  %8711 = vst [vmem:[%s10992_s2 + $0x30] sm:$0xff] %v5053_v14 }
 0xb1d   : > { %5068 = vmax.xlane.f32.xlu0 %v5062_v45 }
 0xb1f   : > { %v5048_v4 = vpop.f32.mrf.mxu3 }
 0xb20   : > { %v5049_v63 = vadd.f32 %v9896_v24, %v5048_v4  ;;  %v9744_v24 = vld [vmem:[%s12090_s14 + $0x278] sm:$0xff] }
 0xb21   : > { %5333 = vmatpush.bf16.msra.mxu1 %v9744_v24 }
 0xb22   : > { %v5054_v15 = vmul.f32 %v5049_v63, %v11011_v62 }
 0xb24   : > { %v5063_v16 = vsel %vm1106_vm11, %v5054_v15, -1e+30  ;;  %8712 = vst [vmem:[%s10992_s2 + $0x38] sm:$0xff] %v5054_v15  ;;  %v9742_v15 = vld [vmem:[%s12090_s14 + $0x268] sm:$0xff] }
 0xb25   : > { %5070 = vmax.xlane.f32.xlu1 %v5063_v16  ;;  %5334 = vmatpush.bf16.msra.mxu1 %v9743_v31 }
 0xb29   : > { %5335 = vmatpush.bf16.msra.mxu1 %v9742_v15  ;;  %v9897_v15 = vld [vmem:[%s12089_s13 + $0x1] ss:$0 sm:$0xff] }
 0xb80   : > { %v5065_v11 = vpop.xlane.xlu2 %5064 }
 0xb81   : > { %v5072_v21 = vsub.f32 %v5060_v22, %v5065_v11 }
 0xb83   : > { %v5076_v25 = vmul.f32 1.442695, %v5072_v21 }
 0xb85   : > { %9921 = vpow2.f32 %v5076_v25  ;;  %v9734_v25 = vld [vmem:[%s12090_s14 + $0x2a8] sm:$0xff] }
 0xb86   : > { %5498 = vmatpush.bf16.msra.mxu3 %v9734_v25 }
 0xb88   : > { %v5067_v27 = vpop.xlane.xlu2 %5066 }
 0xb89   : > { %v5073_v20 = vsub.f32 %v5061_v10, %v5067_v27 }
 0xb8b   : > { %v11549_v28 = vpop.eup %9921  ;;  %v5078_v32 = vmul.f32 1.442695, %v5073_v20 }
 0xb8c   : > { %5084 = vadd.xlane.f32.xlu2 %v11549_v28 }
 0xb8d   : > { %9923 = vpow2.f32 %v5078_v32 }
 0xb90   : > { %v5069_v42 = vpop.xlane.xlu0 %5068 }
 0xb91   : > { %v5074_v23 = vsub.f32 %v5062_v45, %v5069_v42 }
 0xb93   : > { %v11552_v33 = vpop.eup %9923  ;;  %v5080_v9 = vmul.f32 1.442695, %v5074_v23 }
 0xb94   : > { %5086 = vadd.xlane.f32.xlu0 %v11552_v33 }
 0xb95   : > { %9925 = vpow2.f32 %v5080_v9 }
 0xb98   : > { %v5071_v6 = vpop.xlane.xlu1 %5070 }
 0xb99   : > { %v5075_v36 = vsub.f32 %v5063_v16, %v5071_v6  ;;  %v9750_v16 = vld [vmem:[%s12090_s14 + $0x2e8] sm:$0xff]  ;;  %v9741_v6 = vld [vmem:[%s12090_s14 + $0x260] sm:$0xff] }
 0xb9a   : > { %5419 = vmatpush.bf16.msra.mxu2 %v9750_v16  ;;  %5336 = vmatpush.bf16.msra.mxu1 %v9741_v6  ;;  %v9758_v6 = vld [vmem:[%s12092_s16 + $0xe8] sm:$0xff] }
 0xb9b   : > { %v11555_v37 = vpop.eup %9925  ;;  %v5082_v40 = vmul.f32 1.442695, %v5075_v36  ;;  %v9733_v36 = vld [vmem:[%s12090_s14 + $0x2a0] sm:$0xff] }
 0xb9c   : > { %5088 = vadd.xlane.f32.xlu1 %v11555_v37  ;;  %5499 = vmatpush.bf16.msra.mxu3 %v9733_v36  ;;  %v9756_v36 = vld [vmem:[%s12092_s16 + $0xd8] sm:$0xff] }
 0xb9d   : > { %9927 = vpow2.f32 %v5082_v40 }
 0xb9e   : > { %5337 = vmatpush.bf16.msra.mxu1 %v9740_v49 }
 0xba2   : > { %5338 = vmatpush.bf16.msra.mxu1 %v9739_v61 }
 0xba3   : > { %v11558_v38 = vpop.eup %9927 }
 0xba4   : > { %5090 = vadd.xlane.f32.xlu2 %v11558_v38 }
 0xbff   : > { %v5085_v51 = vpop.xlane.xlu2 %5084 }
 0xc00   : > { %9929 = vrcp.f32 %v5085_v51  ;;  %v5103_v59 = vand.u32 2147483648, %v5085_v51  ;;  %vm5097_vm3 = vweird.f32 %v5085_v51  ;;  %v5101_v54 = vand.u32 2147483647, %v5085_v51 }
 0xc02   : > { %v5104_v10 = vor.u32 1.1754944e-38, %v5103_v59  ;;  %vm5102_vm7 = vcmp.eq.f32.partialorder %v5101_v54, 8.507059e+37 }
 0xc06   : > { %v9930_v44 = vpop.eup %9929 }
 0xc07   : > { %v5093_v19 = vmul.f32 %v9930_v44, %v5085_v51  ;;  %v5087_v30 = vpop.xlane.xlu0 %5086  ;;  %vm5098_vm11 = vweird.f32 %v9930_v44  ;;  %v9732_v51 = vld [vmem:[%s12090_s14 + $0x298] sm:$0xff] }
 0xc08   : > { %9931 = vrcp.f32 %v5087_v30  ;;  %vm11593_vm6 = vmor %vm5097_vm3, %vm5098_vm11  ;;  %v5117_v12 = vand.u32 2147483648, %v5087_v30  ;;  %v5115_v45 = vand.u32 2147483647, %v5087_v30  ;;  %vm5111_vm12 = vweird.f32 %v5087_v30  ;;  %5500 = vmatpush.bf16.msra.mxu3 %v9732_v51 }
 0xc09   : > { %v5094_v58 = vsub.f32 1.0, %v5093_v19 }
 0xc0a   : > { %v5118_v21 = vor.u32 1.1754944e-38, %v5117_v12  ;;  %vm5116_vm14 = vcmp.eq.f32.partialorder %v5115_v45, 8.507059e+37  ;;  %v9746_v12 = vld [vmem:[%s12090_s14 + $0x2c8] sm:$0xff]  ;;  %v9745_v45 = vld [vmem:[%s12090_s14 + $0x2c0] sm:$0xff] }
 0xc0b   : > { %v5095_v52 = vmul.f32 %v9930_v44, %v5094_v58 }
 0xc0d   : > { %v5096_v18 = vadd.f32 %v9930_v44, %v5095_v52 }
 0xc0e   : > { %v9932_v53 = vpop.eup %9931 }
 0xc0f   : > { %v5107_v0 = vmul.f32 %v9932_v53, %v5087_v30  ;;  %v11582_v35 = vpop.xlane.xlu1 %5088  ;;  %v5100_v22 = vsel %vm11593_vm6, %v9930_v44, %v5096_v18  ;;  %vm5112_vm10 = vweird.f32 %v9932_v53 }
 0xc10   : > { %9933 = vrcp.f32 %v11582_v35  ;;  %v5105_v4 = vsel %vm5102_vm7, %v5104_v10, %v5100_v22  ;;  %vm5113_vm13 = vmor %vm5111_vm12, %vm5112_vm10  ;;  %v5131_v41 = vand.u32 2147483648, %v11582_v35  ;;  %vm5125_vm0 = vweird.f32 %v11582_v35  ;;  %v9747_v10 = vld [vmem:[%s12090_s14 + $0x2d0] sm:$0xff] }
 0xc11   : > { %v5108_v13 = vsub.f32 1.0, %v5107_v0  ;;  %v5148_v1 = vmul.f32 %v11549_v28, %v5105_v4  ;;  %v9749_v28 = vld [vmem:[%s12090_s14 + $0x2e0] sm:$0xff]  ;;  %v5129_v44 = vand.u32 2147483647, %v11582_v35 }
 0xc12   : > { %5420 = vmatpush.bf16.msra.mxu2 %v9749_v28  ;;  %v5132_v52 = vor.u32 1.1754944e-38, %v5131_v41  ;;  %v9729_v4 = vld [vmem:[%s12090_s14 + $0x280] sm:$0xff] }
 0xc13   : > { %v5109_v14 = vmul.f32 %v9932_v53, %v5108_v13  ;;  %vm5130_vm11 = vcmp.eq.f32.partialorder %v5129_v44, 8.507059e+37  ;;  %v9757_v28 = vld [vmem:[%s12092_s16 + $0xe0] sm:$0xff] }
 0xc15   : > { %v5110_v63 = vadd.f32 %v9932_v53, %v5109_v14  ;;  %v9737_v14 = vld [vmem:[%s12090_s14 + $0x240] sm:$0xff] }
 0xc16   : > { %v9934_v11 = vpop.eup %9933  ;;  %5421 = vmatpush.bf16.msra.mxu2 %v9748_v50 }
 0xc17   : > { %v5114_v27 = vsel %vm5113_vm13, %v9932_v53, %v5110_v63  ;;  %v5121_v20 = vmul.f32 %v9934_v11, %v11582_v35  ;;  %v5091_v32 = vpop.xlane.xlu2 %5090  ;;  %vm5126_vm15 = vweird.f32 %v9934_v11 }
 0xc18   : > { %v5119_v42 = vsel %vm5116_vm14, %v5118_v21, %v5114_v27  ;;  %9935 = vrcp.f32 %v5091_v32  ;;  %vm5127_vm2 = vmor %vm5125_vm0, %vm5126_vm15  ;;  %v5145_v18 = vand.u32 2147483648, %v5091_v32  ;;  %v5143_v59 = vand.u32 2147483647, %v5091_v32 }
 0xc19   : > { %v5149_v23 = vmul.f32 %v11552_v33, %v5119_v42  ;;  %v5122_v9 = vsub.f32 1.0, %v5121_v20  ;;  %v5152_v33 = vmul.f32 %v5148_v1, %v10987_v47  ;;  %vm5139_vm6 = vweird.f32 %v5091_v32 }
 0xc1a   : > { %v5146_v24 = vor.u32 1.1754944e-38, %v5145_v18  ;;  %vm5144_vm10 = vcmp.eq.f32.partialorder %v5143_v59, 8.507059e+37  ;;  %5422 = vmatpush.bf16.msra.mxu2 %v9747_v10  ;;  %v9784_v59 = vld [vmem:[%s12090_s14 + $0x3b8] sm:$0xff]  ;;  %v9898_v10 = vld [vmem:[%s12091_s15 + $0x3] ss:$0 sm:$0xff] }
 0xc1b   : > { %v5153_v40 = vmul.f32 %v5149_v23, %v10999_v46  ;;  %v5123_v39 = vmul.f32 %v9934_v11, %v5122_v9  ;;  %v9760_v23 = vld [vmem:[%s12092_s16 + $0xf8] sm:$0xff]  ;;  %v9759_v9 = vld [vmem:[%s12092_s16 + $0xf0] sm:$0xff] }
 0xc1c   : > { %5614 = vmatpush.bf16.msrb.mxu0 %v9760_v23  ;;  %v9765_v23 = vld [vmem:[%s12090_s14 + $0x360] sm:$0xff] }
 0xc1d   : > { %v5124_v29 = vadd.f32 %v9934_v11, %v5123_v39  ;;  %v5156_v48 = vpack.c.bf16 %v5153_v40, %v5152_v33  ;;  %v9755_v40 = vld [vmem:[%s12092_s16 + $0xd0] sm:$0xff]  ;;  %v9754_v33 = vld [vmem:[%s12092_s16 + $0xc8] sm:$0xff] }
 0xc1e   : > { %v9936_v57 = vpop.eup %9935  ;;  %5423 = vmatpush.bf16.msra.mxu2 %v9746_v12 }
 0xc1f   : > { %v5135_v19 = vmul.f32 %v9936_v57, %v5091_v32  ;;  %5236 = vmatmul.bf16.vlgmr.msra.gmra.mxu0 %v5156_v48  ;;  %v5128_v30 = vsel %vm5127_vm2, %v9934_v11, %v5124_v29  ;;  %vm5140_vm3 = vweird.f32 %v9936_v57  ;;  %v9753_v29 = vld [vmem:[%s12092_s16 + $0xc0] sm:$0xff] }
 0xc20   : > { %v5133_v54 = vsel %vm5130_vm11, %v5132_v52, %v5128_v30  ;;  %vm5141_vm7 = vmor %vm5139_vm6, %vm5140_vm3  ;;  %5615 = vmatpush.bf16.msrb.mxu0 %v9759_v9 }
 0xc21   : > { %v5136_v58 = vsub.f32 1.0, %v5135_v19  ;;  %v5150_v26 = vmul.f32 %v11555_v37, %v5133_v54  ;;  %v9731_v37 = vld [vmem:[%s12090_s14 + $0x290] sm:$0xff]  ;;  %v9768_v54 = vld [vmem:[%s12090_s14 + $0x378] sm:$0xff] }
 0xc22   : > { %5501 = vmatpush.bf16.msra.mxu3 %v9731_v37  ;;  %5424 = vmatpush.bf16.msra.mxu2 %v9745_v45  ;;  %v9782_v45 = vld [vmem:[%s12090_s14 + $0x3a8] sm:$0xff] }
 0xc23   : > { %v5137_v53 = vmul.f32 %v9936_v57, %v5136_v58  ;;  %v5154_v22 = vmul.f32 %v5150_v26, %v11005_v56 }
 0xc24   : > { %5616 = vmatpush.bf16.msrb.mxu0 %v9758_v6 }
 0xc25   : > { %v5138_v0 = vadd.f32 %v9936_v57, %v5137_v53  ;;  %v9776_v53 = vld [vmem:[%s12090_s14 + $0x338] sm:$0xff] }
 0xc26   : > { %5502 = vmatpush.bf16.msra.mxu3 %v9730_v3  ;;  %5811 = vmatpush.bf16.msrb.mxu2 %v9784_v59  ;;  %v9779_v59 = vld [vmem:[%s12090_s14 + $0x390] sm:$0xff] }
 0xc27   : > { %v5142_v35 = vsel %vm5141_vm7, %v9936_v57, %v5138_v0 }
 0xc28   : > { %v5147_v60 = vsel %vm5144_vm10, %v5146_v24, %v5142_v35  ;;  %5617 = vmatpush.bf16.msrb.mxu0 %v9757_v28 }
 0xc29   : > { %v5151_v2 = vmul.f32 %v11558_v38, %v5147_v60  ;;  %v9738_v38 = vld [vmem:[%s12090_s14 + $0x248] sm:$0xff]  ;;  %v9775_v60 = vld [vmem:[%s12090_s14 + $0x330] sm:$0xff] }
 0xc2a   : > { %5339 = vmatpush.bf16.msra.mxu1 %v9738_v38  ;;  %5503 = vmatpush.bf16.msra.mxu3 %v9729_v4 }
 0xc2b   : > { %v5155_v13 = vmul.f32 %v5151_v2, %v11011_v62  ;;  %v9783_v2 = vld [vmem:[%s12090_s14 + $0x3b0] sm:$0xff] }
 0xc2c   : > { %5618 = vmatpush.bf16.msrb.mxu0 %v9756_v36  ;;  %5812 = vmatpush.bf16.msrb.mxu2 %v9783_v2  ;;  %v9761_v2 = vld [vmem:[%s12090_s14 + $0x340] sm:$0xff] }
 0xc2d   : > { %v5157_v31 = vpack.c.bf16 %v5155_v13, %v5154_v22 }
 0xc2e   : > { %5340 = vmatpush.bf16.msra.mxu1 %v9737_v14  ;;  %5890 = vmatpush.bf16.msrb.mxu3 %v9768_v54  ;;  %v9774_v14 = vld [vmem:[%s12090_s14 + $0x328] sm:$0xff]  ;;  %v9763_v54 = vld [vmem:[%s12090_s14 + $0x350] sm:$0xff] }
 0xc2f   : > { %5241 = vmatmul.bf16.gmra.mxu0 %v5157_v31  ;;  %v9767_v31 = vld [vmem:[%s12090_s14 + $0x370] sm:$0xff] }
 0xc30   : > { %5619 = vmatpush.bf16.msrb.mxu0 %v9755_v40  ;;  %5813 = vmatpush.bf16.msrb.mxu2 %v9782_v45 }
 0xc32   : > { %5727 = vmatpush.bf16.msrb.mxu1 %v9776_v53  ;;  %5891 = vmatpush.bf16.msrb.mxu3 %v9767_v31  ;;  %v9771_v53 = vld [vmem:[%s12090_s14 + $0x310] sm:$0xff] }
 0xc34   : > { %5620 = vmatpush.bf16.msrb.mxu0 %v9754_v33 }
 0xc36   : > { %5728 = vmatpush.bf16.msrb.mxu1 %v9775_v60  ;;  %v9777_v60 = vld [vmem:[%s12090_s14 + $0x380] sm:$0xff] }
 0xc38   : > { %5621 = vmatpush.bf16.msrb.mxu0 %v9753_v29 }
 0xc3a   : > { %5729 = vmatpush.bf16.msrb.mxu1 %v9774_v14 }
 0xc9c   : > { %v5237_v63 = vpop.f32.mrf.mxu0 }
 0xc9d   : > { %v11678_v11 = vadd.f32 %v9897_v15, %v5237_v63 }
 0xca4   : > { %v5239_v16 = vpop.f32.mrf.mxu0 }
 0xca5   : > { %v11680_v21 = vadd.f32 %v9897_v15, %v5239_v16 }
 0xca7   : > { %v5247_v25 = vpack.c.bf16 %v11680_v21, %v11678_v11 }
 0xca9   : > { %5341 = vmatmul.bf16.vlgmr.msra.gmra.mxu1 %v5247_v25  ;;  %5425 = vmatmul.bf16.vlgmr.msra.gmra.mxu2 %v5247_v25 }
 0xcaa   : > { %5504 = vmatmul.bf16.vlgmr.msra.gmra.mxu3 %v5247_v25 }
 0xcac   : > { %v5242_v1 = vpop.f32.mrf.mxu0 }
 0xcad   : > { %v11684_v20 = vadd.f32 %v9897_v15, %v5242_v1  ;;  %v9773_v1 = vld [vmem:[%s12090_s14 + $0x320] sm:$0xff] }
 0xcae   : > { %5730 = vmatpush.bf16.msrb.mxu1 %v9773_v1  ;;  %v9792_v1 = vld [vmem:[%s12092_s16 + $0x138] sm:$0xff] }
 0xcaf   : > { %6008 = vmatpush.bf16.msra.mxu0 %v9792_v1 }
 0xcb4   : > { %v5244_v27 = vpop.f32.mrf.mxu0 }
 0xcb5   : > { %v11686_v32 = vadd.f32 %v9897_v15, %v5244_v27  ;;  %v9781_v27 = vld [vmem:[%s12090_s14 + $0x3a0] sm:$0xff] }
 0xcb6   : > { %5814 = vmatpush.bf16.msrb.mxu2 %v9781_v27  ;;  %v9789_v27 = vld [vmem:[%s12092_s16 + $0x120] sm:$0xff] }
 0xcb7   : > { %v5248_v42 = vpack.c.bf16 %v11686_v32, %v11684_v20 }
 0xcb9   : > { %5346 = vmatmul.bf16.gmra.mxu1 %v5248_v42  ;;  %5430 = vmatmul.bf16.gmra.mxu2 %v5248_v42 }
 0xcba   : > { %5509 = vmatmul.bf16.gmra.mxu3 %v5248_v42 }
 0xd26   : > { %v5342_v39 = vpop.f32.mrf.mxu1 }
 0xd27   : > { %v5436_v30 = vrot.slane %v5342_v39, 7 }
 0xd2c   : > { %v5426_v48 = vpop.f32.mrf.mxu2 }
 0xd2d   : > { %v5505_v49 = vpop.f32.mrf.mxu3  ;;  %v5515_v38 = vrot.slane %v5426_v48, 1 }
 0xd2e   : > { %v11714_v50 = vpop.f32.mrf.mxu1 }
 0xd2f   : > { %v5437_v44 = vrot.slane %v11714_v50, 7 }
 0xd31   : > { %v5442_v0 = vsel %vm1675_vm4, %v5436_v30, %v5437_v44 }
 0xd34   : > { %v5428_v57 = vpop.f32.mrf.mxu2 }
 0xd35   : > { %v5507_v51 = vpop.f32.mrf.mxu3  ;;  %v5516_v58 = vrot.slane %v5428_v57, 1 }
 0xd36   : > { %v5347_v41 = vpop.f32.mrf.mxu1  ;;  %v5508_v26 = vadd.f32 %v5507_v51, %v5442_v0  ;;  %v9770_v0 = vld [vmem:[%s12090_s14 + $0x308] sm:$0xff] }
 0xd37   : > { %v5521_v4 = vsel %vm1755_vm5, %v5515_v38, %v5516_v58  ;;  %v5438_v28 = vrot.slane %v5347_v41, 7 }
 0xd39   : > { %v5441_v48 = vsel %vm1675_vm4, %v5437_v44, %v5438_v28  ;;  %v9780_v44 = vld [vmem:[%s12090_s14 + $0x398] sm:$0xff] }
 0xd3a   : > { %5815 = vmatpush.bf16.msrb.mxu2 %v9780_v44 }
 0xd3c   : > { %v5431_v19 = vpop.f32.mrf.mxu2 }
 0xd3d   : > { %v5517_v52 = vrot.slane %v5431_v19, 1  ;;  %v5510_v22 = vpop.f32.mrf.mxu3 }
 0xd3e   : > { %v5349_v18 = vpop.f32.mrf.mxu1  ;;  %v5511_v50 = vadd.f32 %v5510_v22, %v5441_v48  ;;  %5816 = vmatpush.bf16.msrb.mxu2 %v9779_v59  ;;  %v9815_v59 = vld [vmem:[%s12090_s14 + $0x470] sm:$0xff] }
 0xd3f   : > { %v5520_v24 = vsel %vm1755_vm5, %v5516_v58, %v5517_v52  ;;  %v5439_v35 = vrot.slane %v5349_v18, 7  ;;  %v9772_v18 = vld [vmem:[%s12090_s14 + $0x318] sm:$0xff] }
 0xd40   : > { %v5528_v61 = vadd.f32 %v5520_v24, %v5508_v26  ;;  %5731 = vmatpush.bf16.msrb.mxu1 %v9772_v18  ;;  %v9778_v24 = vld [vmem:[%s12090_s14 + $0x388] sm:$0xff]  ;;  %v9769_v26 = vld [vmem:[%s12090_s14 + $0x300] sm:$0xff] }
 0xd41   : > { %v5443_v13 = vsel %vm1675_vm4, %v5439_v35, %v5436_v30  ;;  %v5440_v33 = vsel %vm1675_vm4, %v5438_v28, %v5439_v35  ;;  %v9762_v35 = vld [vmem:[%s12090_s14 + $0x348] sm:$0xff]  ;;  %v9785_v28 = vld [vmem:[%s12092_s16 + $0x100] sm:$0xff] }
 0xd42   : > { %v5444_v37 = vmul.f32 %v10375_v17, %v5443_v13  ;;  %v9766_v17 = vld [vmem:[%s12090_s14 + $0x368] sm:$0xff]  ;;  %v5535_v15 = vadd.f32 %v9898_v10, %v5528_v61  ;;  %5817 = vmatpush.bf16.msrb.mxu2 %v9778_v24  ;;  %v9899_v13 = vld [vmem:[%s12093_s17 + $0x3] ss:$0 sm:$0xff] }
 0xd43   : > { %5892 = vmatpush.bf16.msrb.mxu3 %v9766_v17 }
 0xd44   : > { %v5506_v12 = vadd.f32 %v5505_v49, %v5444_v37  ;;  %v5433_v3 = vpop.f32.mrf.mxu2  ;;  %v5539_v9 = vmax.f32 %v5535_v15, 0.0  ;;  %5732 = vmatpush.bf16.msrb.mxu1 %v9771_v53 }
 0xd45   : > { %v5518_v63 = vrot.slane %v5433_v3, 1  ;;  %v5512_v36 = vpop.f32.mrf.mxu3 }
 0xd46   : > { %v5527_v16 = vadd.f32 %v5521_v4, %v5506_v12  ;;  %v5513_v29 = vadd.f32 %v5512_v36, %v5440_v33  ;;  %5818 = vmatpush.bf16.msrb.mxu2 %v9777_v60  ;;  %v9900_v60 = vld [vmem:[%s12091_s15 + $0x4] ss:$0 sm:$0xff] }
 0xd47   : > { %v5522_v42 = vsel %vm1755_vm5, %v5518_v63, %v5515_v38  ;;  %5893 = vmatpush.bf16.msrb.mxu3 %v9765_v23  ;;  %v5519_v49 = vsel %vm1755_vm5, %v5517_v52, %v5518_v63  ;;  %v9764_v52 = vld [vmem:[%s12090_s14 + $0x358] sm:$0xff]  ;;  %v9787_v23 = vld [vmem:[%s12092_s16 + $0x110] sm:$0xff] }
 0xd48   : > { %v5534_v25 = vadd.f32 %v9898_v10, %v5527_v16  ;;  %v5526_v40 = vmul.f32 %v10401_v55, %v5522_v42  ;;  %v5529_v41 = vadd.f32 %v5519_v49, %v5511_v50  ;;  %5733 = vmatpush.bf16.msrb.mxu1 %v9770_v0  ;;  %v9788_v42 = vld [vmem:[%s12092_s16 + $0x118] sm:$0xff] }
 0xd4a   : > { %v5538_v6 = vmax.f32 %v5534_v25, 0.0  ;;  %v5530_v57 = vadd.f32 %v5526_v40, %v5513_v29  ;;  %v5536_v55 = vadd.f32 %v9898_v10, %v5529_v41 }
 0xd4b   : > { %5894 = vmatpush.bf16.msrb.mxu3 %v9764_v52 }
 0xd4c   : > { %v5542_v39 = vpack.c.bf16 %v5539_v9, %v5538_v6  ;;  %v5537_v51 = vadd.f32 %v9898_v10, %v5530_v57  ;;  %v5540_v30 = vmax.f32 %v5536_v55, 0.0  ;;  %5734 = vmatpush.bf16.msrb.mxu1 %v9769_v26  ;;  %v9786_v6 = vld [vmem:[%s12092_s16 + $0x108] sm:$0xff] }
 0xd4e   : > { %5622 = vmatmul.bf16.vlgmr.msrb.gmra.mxu0 %v5542_v39  ;;  %v5541_v19 = vmax.f32 %v5537_v51, 0.0 }
 0xd4f   : > { %5895 = vmatpush.bf16.msrb.mxu3 %v9763_v54  ;;  %v9807_v54 = vld [vmem:[%s12090_s14 + $0x3f0] sm:$0xff] }
 0xd50   : > { %v5543_v58 = vpack.c.bf16 %v5541_v19, %v5540_v30  ;;  %v9816_v19 = vld [vmem:[%s12090_s14 + $0x478] sm:$0xff] }
 0xd51   : > { %v9808_v30 = vld [vmem:[%s12090_s14 + $0x3f8] sm:$0xff]  ;;  %6205 = vmatpush.bf16.msra.mxu2 %v9816_v19  ;;  %v9795_v19 = vld [vmem:[%s12090_s14 + $0x410] sm:$0xff] }
 0xd52   : > { %6121 = vmatpush.bf16.msra.mxu1 %v9808_v30  ;;  %v9810_v30 = vld [vmem:[%s12090_s14 + $0x448] sm:$0xff] }
 0xd53   : > { %5896 = vmatpush.bf16.msrb.mxu3 %v9762_v35  ;;  %v9799_v35 = vld [vmem:[%s12090_s14 + $0x430] sm:$0xff] }
 0xd55   : > { %6206 = vmatpush.bf16.msra.mxu2 %v9815_v59 }
 0xd56   : > { %6122 = vmatpush.bf16.msra.mxu1 %v9807_v54  ;;  %v9901_v54 = vld [vmem:[%s12093_s17 + $0x4] ss:$0 sm:$0xff] }
 0xd57   : > { %5897 = vmatpush.bf16.msrb.mxu3 %v9761_v2 }
 0xd5e   : > { %5627 = vmatmul.bf16.gmra.mxu0 %v5543_v58  ;;  %v9800_v58 = vld [vmem:[%s12090_s14 + $0x438] sm:$0xff] }
 0xd5f   : > { %6284 = vmatpush.bf16.msra.mxu3 %v9800_v58  ;;  %v9802_v58 = vld [vmem:[%s12090_s14 + $0x3c8] sm:$0xff] }
 0xd63   : > { %6285 = vmatpush.bf16.msra.mxu3 %v9799_v35 }
 0xdcb   : > { %v5623_v22 = vpop.f32.mrf.mxu0 }
 0xdcc   : > { %v5624_v31 = vadd.f32 %v9899_v13, %v5623_v22 }
 0xdce   : > { %v5633_v10 = vadd.f32 %v5624_v31, %v11678_v11 }
 0xdd0   : > { %v11816_v12 = vmul.f32 %v5633_v10, %v10987_v47  ;;  %v9806_v10 = vld [vmem:[%s12090_s14 + $0x3e8] sm:$0xff] }
 0xdd1   : > { %6123 = vmatpush.bf16.msra.mxu1 %v9806_v10 }
 0xdd3   : > { %v5625_v61 = vpop.f32.mrf.mxu0 }
 0xdd4   : > { %v5626_v37 = vadd.f32 %v9899_v13, %v5625_v61  ;;  %v9814_v61 = vld [vmem:[%s12090_s14 + $0x468] sm:$0xff] }
 0xdd5   : > { %6207 = vmatpush.bf16.msra.mxu2 %v9814_v61 }
 0xdd6   : > { %v5634_v38 = vadd.f32 %v5626_v37, %v11680_v21 }
 0xdd8   : > { %v11819_v3 = vmul.f32 %v5634_v38, %v10999_v46 }
 0xdda   : > { %v5641_v14 = vpack.c.bf16 %v11819_v3, %v11816_v12 }
 0xddb   : > { %v5628_v45 = vpop.f32.mrf.mxu0 }
 0xddc   : > { %5735 = vmatmul.bf16.vlgmr.msrb.gmra.mxu1 %v5641_v14  ;;  %5819 = vmatmul.bf16.vlgmr.msrb.gmra.mxu2 %v5641_v14  ;;  %v5629_v4 = vadd.f32 %v9899_v13, %v5628_v45 }
 0xddd   : > { %5898 = vmatmul.bf16.vlgmr.msrb.gmra.mxu3 %v5641_v14 }
 0xdde   : > { %v5635_v11 = vadd.f32 %v5629_v4, %v11684_v20  ;;  %v9791_v20 = vld [vmem:[%s12092_s16 + $0x130] sm:$0xff] }
 0xddf   : > { %6009 = vmatpush.bf16.msra.mxu0 %v9791_v20 }
 0xde0   : > { %v11826_v15 = vmul.f32 %v5635_v11, %v11005_v56  ;;  %v9805_v11 = vld [vmem:[%s12090_s14 + $0x3e0] sm:$0xff] }
 0xde1   : > { %6124 = vmatpush.bf16.msra.mxu1 %v9805_v11  ;;  %v9819_v11 = vld [vmem:[%s12092_s16 + $0x150] sm:$0xff] }
 0xde3   : > { %v5630_v63 = vpop.f32.mrf.mxu0 }
 0xde4   : > { %v5631_v17 = vadd.f32 %v9899_v13, %v5630_v63  ;;  %v9813_v63 = vld [vmem:[%s12090_s14 + $0x460] sm:$0xff] }
 0xde5   : > { %6208 = vmatpush.bf16.msra.mxu2 %v9813_v63  ;;  %v9820_v63 = vld [vmem:[%s12092_s16 + $0x158] sm:$0xff] }
 0xde6   : > { %v5636_v21 = vadd.f32 %v5631_v17, %v11686_v32  ;;  %v9790_v32 = vld [vmem:[%s12092_s16 + $0x128] sm:$0xff] }
 0xde7   : > { %6010 = vmatpush.bf16.msra.mxu0 %v9790_v32 }
 0xde8   : > { %v11829_v16 = vmul.f32 %v5636_v21, %v11011_v62  ;;  %v9797_v21 = vld [vmem:[%s12090_s14 + $0x420] sm:$0xff] }
 0xdea   : > { %v5642_v25 = vpack.c.bf16 %v11829_v16, %v11826_v15 }
 0xdeb   : > { %6011 = vmatpush.bf16.msra.mxu0 %v9789_v27 }
 0xdec   : > { %5740 = vmatmul.bf16.gmra.mxu1 %v5642_v25  ;;  %5824 = vmatmul.bf16.gmra.mxu2 %v5642_v25 }
 0xded   : > { %5903 = vmatmul.bf16.gmra.mxu3 %v5642_v25 }
 0xdef   : > { %6012 = vmatpush.bf16.msra.mxu0 %v9788_v42 }
 0xdf3   : > { %6013 = vmatpush.bf16.msra.mxu0 %v9787_v23 }
 0xdf7   : > { %6014 = vmatpush.bf16.msra.mxu0 %v9786_v6 }
 0xdfb   : > { %6015 = vmatpush.bf16.msra.mxu0 %v9785_v28 }
 0xe59   : > { %v5736_v9 = vpop.f32.mrf.mxu1 }
 0xe5a   : > { %v5830_v57 = vrot.slane %v5736_v9, 6 }
 0xe5f   : > { %v5820_v36 = vpop.f32.mrf.mxu2 }
 0xe60   : > { %v5899_v40 = vpop.f32.mrf.mxu3  ;;  %v5909_v22 = vrot.slane %v5820_v36, 2 }
 0xe61   : > { %v11857_v39 = vpop.f32.mrf.mxu1 }
 0xe62   : > { %v5831_v49 = vrot.slane %v11857_v39, 6 }
 0xe64   : > { %v5836_v18 = vsel %vm2155_vm8, %v5830_v57, %v5831_v49 }
 0xe67   : > { %v5822_v33 = vpop.f32.mrf.mxu2 }
 0xe68   : > { %v5901_v48 = vpop.f32.mrf.mxu3  ;;  %v5910_v41 = vrot.slane %v5822_v33, 2 }
 0xe69   : > { %v5741_v29 = vpop.f32.mrf.mxu1  ;;  %v5902_v53 = vadd.f32 %v5901_v48, %v5836_v18  ;;  %v9794_v18 = vld [vmem:[%s12090_s14 + $0x408] sm:$0xff] }
 0xe6a   : > { %v5915_v37 = vsel %vm2235_vm9, %v5909_v22, %v5910_v41  ;;  %v5832_v20 = vrot.slane %v5741_v29, 6 }
 0xe6c   : > { %v5835_v6 = vsel %vm2155_vm8, %v5831_v49, %v5832_v20  ;;  %v9804_v49 = vld [vmem:[%s12090_s14 + $0x3d8] sm:$0xff] }
 0xe6d   : > { %6125 = vmatpush.bf16.msra.mxu1 %v9804_v49 }
 0xe6f   : > { %v5825_v50 = vpop.f32.mrf.mxu2 }
 0xe70   : > { %v5911_v51 = vrot.slane %v5825_v50, 2  ;;  %v5904_v0 = vpop.f32.mrf.mxu3 }
 0xe71   : > { %v5743_v55 = vpop.f32.mrf.mxu1  ;;  %v5905_v36 = vadd.f32 %v5904_v0, %v5835_v6 }
 0xe72   : > { %v5914_v44 = vsel %vm2235_vm9, %v5910_v41, %v5911_v51  ;;  %v5833_v52 = vrot.slane %v5743_v55, 6  ;;  %v9796_v41 = vld [vmem:[%s12090_s14 + $0x418] sm:$0xff]  ;;  %v9803_v55 = vld [vmem:[%s12090_s14 + $0x3d0] sm:$0xff] }
 0xe73   : > { %v5922_v26 = vadd.f32 %v5914_v44, %v5902_v53  ;;  %6126 = vmatpush.bf16.msra.mxu1 %v9803_v55  ;;  %v9809_v44 = vld [vmem:[%s12090_s14 + $0x440] sm:$0xff] }
 0xe74   : > { %v5837_v24 = vsel %vm2155_vm8, %v5833_v52, %v5830_v57  ;;  %v5834_v23 = vsel %vm2155_vm8, %v5832_v20, %v5833_v52  ;;  %v9812_v57 = vld [vmem:[%s12090_s14 + $0x458] sm:$0xff]  ;;  %v9801_v52 = vld [vmem:[%s12090_s14 + $0x3c0] sm:$0xff] }
 0xe75   : > { %v5838_v2 = vmul.f32 %v10628_v8, %v5837_v24  ;;  %v9798_v8 = vld [vmem:[%s12090_s14 + $0x428] sm:$0xff]  ;;  %v5929_v14 = vadd.f32 %v9900_v60, %v5922_v26  ;;  %6209 = vmatpush.bf16.msra.mxu2 %v9812_v57  ;;  %v9793_v53 = vld [vmem:[%s12090_s14 + $0x400] sm:$0xff] }
 0xe76   : > { %6286 = vmatpush.bf16.msra.mxu3 %v9798_v8 }
 0xe77   : > { %v5900_v13 = vadd.f32 %v5899_v40, %v5838_v2  ;;  %v5827_v31 = vpop.f32.mrf.mxu2  ;;  %v5933_v25 = vmax.f32 %v5929_v14, 0.0  ;;  %6127 = vmatpush.bf16.msra.mxu1 %v9802_v58  ;;  %v9902_v58 = vld [vmem:[%s12091_s15 + $0x5] ss:$0 sm:$0xff] }
 0xe78   : > { %v5912_v38 = vrot.slane %v5827_v31, 2  ;;  %v5906_v32 = vpop.f32.mrf.mxu3 }
 0xe79   : > { %v5921_v45 = vadd.f32 %v5915_v37, %v5900_v13  ;;  %v5907_v9 = vadd.f32 %v5906_v32, %v5834_v23  ;;  %v9831_v23 = vld [vmem:[%s12094_s18 + $0x70] sm:$0xff] }
 0xe7a   : > { %v5916_v17 = vsel %vm2235_vm9, %v5912_v38, %v5909_v22  ;;  %6287 = vmatpush.bf16.msra.mxu3 %v9797_v21  ;;  %v5913_v28 = vsel %vm2235_vm9, %v5911_v51, %v5912_v38  ;;  %v9811_v51 = vld [vmem:[%s12090_s14 + $0x450] sm:$0xff]  ;;  %v9818_v21 = vld [vmem:[%s12092_s16 + $0x148] sm:$0xff] }
 0xe7b   : > { %v5928_v4 = vadd.f32 %v9900_v60, %v5921_v45  ;;  %v5920_v27 = vmul.f32 %v10649_v7, %v5916_v17  ;;  %v5923_v39 = vadd.f32 %v5913_v28, %v5905_v36  ;;  %6210 = vmatpush.bf16.msra.mxu2 %v9811_v51  ;;  %6128 = vmatpush.bf16.msra.mxu1 %v9801_v52  ;;  %v9824_v45 = vld [vmem:[%s12092_s16 + $0x178] sm:$0xff]  ;;  %v9830_v28 = vld [vmem:[%s12094_s18 + $0x68] sm:$0xff] }
 0xe7c   : > { %6402 = vmatpush.bf16.msrb.mxu0 %v9824_v45 }
 0xe7d   : > { %v5932_v1 = vmax.f32 %v5928_v4, 0.0  ;;  %v5924_v40 = vadd.f32 %v5920_v27, %v5907_v9  ;;  %v5930_v7 = vadd.f32 %v9900_v60, %v5923_v39  ;;  %v9821_v4 = vld [vmem:[%s12092_s16 + $0x160] sm:$0xff]  ;;  %v9832_v27 = vld [vmem:[%s12094_s18 + $0x78] sm:$0xff] }
 0xe7e   : > { %6288 = vmatpush.bf16.msra.mxu3 %v9796_v41  ;;  %v9829_v39 = vld [vmem:[%s12094_s18 + $0x60] sm:$0xff] }
 0xe7f   : > { %v5936_v42 = vpack.c.bf16 %v5933_v25, %v5932_v1  ;;  %v5931_v33 = vadd.f32 %v9900_v60, %v5924_v40  ;;  %v5934_v48 = vmax.f32 %v5930_v7, 0.0  ;;  %6211 = vmatpush.bf16.msra.mxu2 %v9810_v30  ;;  %v9817_v25 = vld [vmem:[%s12092_s16 + $0x140] sm:$0xff]  ;;  %6501 = vmatpush.bf16.msrb.mxu1 %v9832_v27 }
 0xe81   : > { %6016 = vmatmul.bf16.vlgmr.msra.gmra.mxu0 %v5936_v42  ;;  %v5935_v29 = vmax.f32 %v5931_v33, 0.0 }
 0xe82   : > { %6289 = vmatpush.bf16.msra.mxu3 %v9795_v19 }
 0xe83   : > { %v5937_v50 = vpack.c.bf16 %v5935_v29, %v5934_v48  ;;  %6212 = vmatpush.bf16.msra.mxu2 %v9809_v44  ;;  %6502 = vmatpush.bf16.msrb.mxu1 %v9831_v23 }
 0xe86   : > { %6290 = vmatpush.bf16.msra.mxu3 %v9794_v18 }
 0xe87   : > { %9833 = vmatpush.bf16.msrb.mxu2 %v9824_v45  ;;  %6503 = vmatpush.bf16.msrb.mxu1 %v9830_v28 }
 0xe8a   : > { %6291 = vmatpush.bf16.msra.mxu3 %v9793_v53 }
 0xe8b   : > { %6504 = vmatpush.bf16.msrb.mxu1 %v9829_v39 }
 0xe8e   : > { %9841 = vmatpush.bf16.msrb.mxu3 %v9832_v27 }
 0xe8f   : > { %6505 = vmatpush.bf16.msrb.mxu1 %v9828_v34 }
 0xe91   : > { %6021 = vmatmul.bf16.gmra.mxu0 %v5937_v50 }
 0xe92   : > { %9842 = vmatpush.bf16.msrb.mxu3 %v9831_v23 }
 0xe96   : > { %9843 = vmatpush.bf16.msrb.mxu3 %v9830_v28 }
 0xe9a   : > { %9844 = vmatpush.bf16.msrb.mxu3 %v9829_v39 }
 0xe9e   : > { %9845 = vmatpush.bf16.msrb.mxu3 %v9828_v34 }
 0xefe   : > { %v6017_v59 = vpop.f32.mrf.mxu0 }
 0xeff   : > { %v6018_v0 = vadd.f32 %v9901_v54, %v6017_v59 }
 0xf01   : > { %v6027_v35 = vadd.f32 %v6018_v0, %v11816_v12 }
 0xf03   : > { %v11959_v2 = vmul.f32 %v6027_v35, %v10987_v47 }
 0xf06   : > { %v6019_v24 = vpop.f32.mrf.mxu0 }
 0xf07   : > { %v6020_v26 = vadd.f32 %v9901_v54, %v6019_v24 }
 0xf09   : > { %v6028_v60 = vadd.f32 %v6020_v26, %v11819_v3 }
 0xf0b   : > { %v11962_v22 = vmul.f32 %v6028_v60, %v10999_v46 }
 0xf0d   : > { %v6035_v13 = vpack.c.bf16 %v11962_v22, %v11959_v2 }
 0xf0e   : > { %v6022_v31 = vpop.f32.mrf.mxu0 }
 0xf0f   : > { %6129 = vmatmul.bf16.vlgmr.msra.gmra.mxu1 %v6035_v13  ;;  %6213 = vmatmul.bf16.vlgmr.msra.gmra.mxu2 %v6035_v13  ;;  %v6023_v61 = vadd.f32 %v9901_v54, %v6022_v31 }
 0xf10   : > { %6292 = vmatmul.bf16.vlgmr.msra.gmra.mxu3 %v6035_v13 }
 0xf11   : > { %v6029_v12 = vadd.f32 %v6023_v61, %v11826_v15  ;;  %v9823_v15 = vld [vmem:[%s12092_s16 + $0x170] sm:$0xff] }
 0xf12   : > { %6403 = vmatpush.bf16.msrb.mxu0 %v9823_v15  ;;  %9834 = vmatpush.bf16.msrb.mxu2 %v9823_v15 }
 0xf13   : > { %v11969_v38 = vmul.f32 %v6029_v12, %v11005_v56 }
 0xf16   : > { %v6024_v10 = vpop.f32.mrf.mxu0 }
 0xf17   : > { %v6025_v37 = vadd.f32 %v9901_v54, %v6024_v10 }
 0xf19   : > { %v6030_v3 = vadd.f32 %v6025_v37, %v11829_v16  ;;  %v9822_v16 = vld [vmem:[%s12092_s16 + $0x168] sm:$0xff] }
 0xf1a   : > { %6404 = vmatpush.bf16.msrb.mxu0 %v9822_v16  ;;  %9835 = vmatpush.bf16.msrb.mxu2 %v9822_v16 }
 0xf1b   : > { %v11972_v8 = vmul.f32 %v6030_v3, %v11011_v62 }
 0xf1d   : > { %v6036_v14 = vpack.c.bf16 %v11972_v8, %v11969_v38 }
 0xf1e   : > { %6405 = vmatpush.bf16.msrb.mxu0 %v9821_v4  ;;  %9836 = vmatpush.bf16.msrb.mxu2 %v9821_v4 }
 0xf1f   : > { %6134 = vmatmul.bf16.gmra.mxu1 %v6036_v14  ;;  %6218 = vmatmul.bf16.gmra.mxu2 %v6036_v14 }
 0xf20   : > { %6297 = vmatmul.bf16.gmra.mxu3 %v6036_v14 }
 0xf22   : > { %6406 = vmatpush.bf16.msrb.mxu0 %v9820_v63  ;;  %9837 = vmatpush.bf16.msrb.mxu2 %v9820_v63 }
 0xf26   : > { %6407 = vmatpush.bf16.msrb.mxu0 %v9819_v11  ;;  %9838 = vmatpush.bf16.msrb.mxu2 %v9819_v11 }
 0xf2a   : > { %6408 = vmatpush.bf16.msrb.mxu0 %v9818_v21  ;;  %9839 = vmatpush.bf16.msrb.mxu2 %v9818_v21  ;;  %v9826_v21 = vld [vmem:[%s12094_s18 + $0x48] sm:$0xff] }
 0xf2e   : > { %6409 = vmatpush.bf16.msrb.mxu0 %v9817_v25  ;;  %9840 = vmatpush.bf16.msrb.mxu2 %v9817_v25  ;;  %v9825_v25 = vld [vmem:[%s12094_s18 + $0x40] sm:$0xff] }
 0xf8c   : > { %v6130_v17 = vpop.f32.mrf.mxu1 }
 0xf8d   : > { %v6224_v33 = vrot.slane %v6130_v17, 4 }
 0xf92   : > { %v6214_v1 = vpop.f32.mrf.mxu2 }
 0xf93   : > { %v6293_v20 = vpop.f32.mrf.mxu3  ;;  %v6303_v44 = vrot.slane %v6214_v1, 4 }
 0xf94   : > { %v6132_v32 = vpop.f32.mrf.mxu1 }
 0xf95   : > { %v6225_v36 = vrot.slane %v6132_v32, 4 }
 0xf97   : > { %v6230_v57 = vsel %vm1387_vm1, %v6224_v33, %v6225_v36 }
 0xf9a   : > { %v6216_v42 = vpop.f32.mrf.mxu2 }
 0xf9b   : > { %v6295_v9 = vpop.f32.mrf.mxu3  ;;  %v6304_v7 = vrot.slane %v6216_v42, 4 }
 0xf9c   : > { %v6135_v6 = vpop.f32.mrf.mxu1  ;;  %v6296_v51 = vadd.f32 %v6295_v9, %v6230_v57  ;;  %v9904_v57 = vld [vmem:[%s12095_s19 + $0x1] ss:$0 sm:$0xff] }
 0xf9d   : > { %v6226_v55 = vrot.slane %v6135_v6, 4  ;;  %v6309_v59 = vsel %vm1387_vm1, %v6303_v44, %v6304_v7 }
 0xf9f   : > { %v6229_v54 = vsel %vm1387_vm1, %v6225_v36, %v6226_v55 }
 0xfa2   : > { %v6219_v40 = vpop.f32.mrf.mxu2 }
 0xfa3   : > { %v6305_v29 = vrot.slane %v6219_v40, 4  ;;  %v6298_v48 = vpop.f32.mrf.mxu3 }
 0xfa4   : > { %v6137_v50 = vpop.f32.mrf.mxu1  ;;  %v6299_v26 = vadd.f32 %v6298_v48, %v6229_v54 }
 0xfa5   : > { %v6308_v49 = vsel %vm1387_vm1, %v6304_v7, %v6305_v29  ;;  %v6227_v41 = vrot.slane %v6137_v50, 4 }
 0xfa6   : > { %v6316_v30 = vadd.f32 %v6308_v49, %v6296_v51 }
 0xfa7   : > { %v6231_v19 = vsel %vm1387_vm1, %v6227_v41, %v6224_v33  ;;  %v6228_v31 = vsel %vm1387_vm1, %v6226_v55, %v6227_v41 }
 0xfa8   : > { %v6232_v18 = vmul.f32 %v10344_v43, %v6231_v19  ;;  %v6323_v35 = vadd.f32 %v9902_v58, %v6316_v30 }
 0xfaa   : > { %v6294_v52 = vadd.f32 %v6293_v20, %v6232_v18  ;;  %v6221_v53 = vpop.f32.mrf.mxu2  ;;  %v6327_v3 = vmax.f32 %v6323_v35, 0.0  ;;  %v9903_v20 = vld [vmem:[%s12093_s17 + $0x5] ss:$0 sm:$0xff] }
 0xfab   : > { %v6306_v0 = vrot.slane %v6221_v53, 4  ;;  %v6300_v24 = vpop.f32.mrf.mxu3 }
 0xfac   : > { %v6315_v60 = vadd.f32 %v6309_v59, %v6294_v52  ;;  %v6301_v12 = vadd.f32 %v6300_v24, %v6228_v31 }
 0xfad   : > { %v6307_v13 = vsel %vm1387_vm1, %v6305_v29, %v6306_v0  ;;  %v6310_v43 = vsel %vm1387_vm1, %v6306_v0, %v6303_v44 }
 0xfae   : > { %v6322_v61 = vadd.f32 %v9902_v58, %v6315_v60  ;;  %v6317_v10 = vadd.f32 %v6307_v13, %v6299_v26  ;;  %v6314_v37 = vmul.f32 %v10367_v5, %v6310_v43  ;;  %v9827_v5 = vld [vmem:[%s12094_s18 + $0x50] sm:$0xff] }
 0xfaf   : > { %6506 = vmatpush.bf16.msrb.mxu1 %v9827_v5  ;;  %9846 = vmatpush.bf16.msrb.mxu3 %v9827_v5 }
 0xfb0   : > { %v6326_v14 = vmax.f32 %v6322_v61, 0.0  ;;  %v6324_v45 = vadd.f32 %v9902_v58, %v6317_v10  ;;  %v6318_v15 = vadd.f32 %v6314_v37, %v6301_v12 }
 0xfb2   : > { %v6325_v16 = vadd.f32 %v9902_v58, %v6318_v15  ;;  %v6330_v4 = vpack.c.bf16 %v6327_v3, %v6326_v14  ;;  %v6328_v63 = vmax.f32 %v6324_v45, 0.0 }
 0xfb3   : > { %6507 = vmatpush.bf16.msrb.mxu1 %v9826_v21  ;;  %9847 = vmatpush.bf16.msrb.mxu3 %v9826_v21 }
 0xfb4   : > { %v6329_v11 = vmax.f32 %v6325_v16, 0.0  ;;  %6410 = vmatmul.bf16.vlgmr.msrb.gmra.mxu0 %v6330_v4 }
 0xfb6   : > { %v6331_v17 = vpack.c.bf16 %v6329_v11, %v6328_v63 }
 0xfb7   : > { %6508 = vmatpush.bf16.msrb.mxu1 %v9825_v25  ;;  %9848 = vmatpush.bf16.msrb.mxu3 %v9825_v25 }
 0xfb8   : > { %6415 = vmatmul.bf16.vlgmr.msrb.gmra.mxu2 %v6331_v17 }
0x1031   : > { %v6411_v1 = vpop.f32.mrf.mxu0 }
0x1032   : > { %v6412_v32 = vadd.f32 %v9903_v20, %v6411_v1 }
0x1034   : > { %v6421_v42 = vadd.f32 %v6412_v32, %v11959_v2 }
0x1036   : > { %v6425_v28 = vmul.f32 %v6421_v42, %v10987_v47 }
0x1039   : > { %v6413_v27 = vpop.f32.mrf.mxu0 }
0x103a   : > { %v6414_v23 = vadd.f32 %v9903_v20, %v6413_v27 }
0x103b   : > { %v6416_v9 = vpop.f32.mrf.mxu2 }
0x103c   : > { %v6422_v6 = vadd.f32 %v6414_v23, %v11962_v22  ;;  %v6417_v39 = vadd.f32 %v9903_v20, %v6416_v9 }
0x103e   : > { %v6426_v36 = vmul.f32 %v6422_v6, %v10999_v46  ;;  %v6423_v7 = vadd.f32 %v6417_v39, %v11969_v38 }
0x1040   : > { %v6429_v40 = vpack.c.bf16 %v6426_v36, %v6425_v28  ;;  %v6427_v2 = vmul.f32 %v6423_v7, %v11005_v56 }
0x1042   : > { %6509 = vmatmul.bf16.vlgmr.msrb.gmra.mxu1 %v6429_v40 }
0x1043   : > { %v6418_v33 = vpop.f32.mrf.mxu2 }
0x1044   : > { %v6419_v29 = vadd.f32 %v9903_v20, %v6418_v33 }
0x1046   : > { %v6424_v48 = vadd.f32 %v6419_v29, %v11972_v8 }
0x1048   : > { %v6428_v22 = vmul.f32 %v6424_v48, %v11011_v62 }
0x104a   : > { %v6430_v50 = vpack.c.bf16 %v6428_v22, %v6427_v2 }
0x104c   : > { %6514 = vmatmul.bf16.vlgmr.msrb.gmra.mxu3 %v6430_v50 }
0x10bf   : > { %v6510_v49 = vpop.f32.mrf.mxu1 }
0x10c0   : > { %v6511_v41 = vadd.f32 %v9904_v57, %v6510_v49 }
0x10c2   : > { %v6520_v51 = vmul.f32 %v6511_v41, %v10987_v47 }
0x10c4   : > { %9393 = vst [vmem:[%s10992_s2 + $0x40] sm:$0xff] %v6520_v51 }
0x10c7   : > { %v6512_v38 = vpop.f32.mrf.mxu1 }
0x10c8   : > { %v6513_v55 = vadd.f32 %v9904_v57, %v6512_v38 }
0x10ca   : > { %v6521_v8 = vmul.f32 %v6513_v55, %v10999_v46 }
0x10cc   : > { %9394 = vst [vmem:[%s10992_s2 + $0x48] sm:$0xff] %v6521_v8 }
0x10cf   : > { %v6515_v19 = vpop.f32.mrf.mxu3 }
0x10d0   : > { %v6516_v30 = vadd.f32 %v9904_v57, %v6515_v19 }
0x10d2   : > { %v6522_v58 = vmul.f32 %v6516_v30, %v11005_v56 }
0x10d4   : > { %9395 = vst [vmem:[%s10992_s2 + $0x50] sm:$0xff] %v6522_v58 }
0x10d7   : > { %v6517_v18 = vpop.f32.mrf.mxu3 }
0x10d8   : > { %v6518_v44 = vadd.f32 %v9904_v57, %v6517_v18 }
0x10da   : > { %v6523_v52 = vmul.f32 %v6518_v44, %v11011_v62 }
0x10dc   : > { %9396 = vst [vmem:[%s10992_s2 + $0x58] sm:$0xff] %v6523_v52 }
0x10dd PF: > { %s30_s23 = sadd.s32 1, %s9959_s23   ;;  %s12118_s1 = sld [smem:[#allocation2_spill]] }
0x10de   : > { %p27_p5 = scmp.ge.s32.totalorder %s30_s23, 4   ;;  %s12119_s22 = sld [smem:[#allocation3_spill]] }
0x10e0   :  { %29 = sbr.rel (!%p27_p5) target bundleno = 6 (0x6), region = 252 }

</bundles_post_ra>
